<compile_context>
chip_gen: v5e
topology: v5e:2x2
jax: 0.10.0
libtpu: 0.0.40
codegen_flags: <defaults>
</compile_context>

<pallas_src>
import jax
import jax.numpy as jnp
from jax.experimental import pallas as pl
from jax.experimental.pallas import tpu as pltpu

N_OBJ = 8      # objects per n-body sample
F_IN = 7       # [mass, x, y, z, vx, vy, vz]
H = 32         # hidden width of the synthetic graph net
BATCH = 512    # samples per forward call in the demo
TILE_B = 128   # samples per grid step (N_OBJ * TILE_B = 1024 lanes per block)


def nbody_kernel(x_ref, wd_ref, wew_ref, wed_ref, be_ref,
                 wna_ref, wnv_ref, wnm_ref, bn_ref, wo_ref, out_ref):
    """One batch tile. Lane index within a block = obj * tile_b + sample."""
    f32 = jnp.float32
    x = x_ref[...]                        # (7, L) feature-major
    L = x.shape[1]
    tb = L // N_OBJ
    h = wd_ref.shape[0]

    m = x[0:1, :]                         # (1, L) masses
    loc = x[1:4, :]                       # (3, L) locations
    vel = x[4:7, :]                       # (3, L) velocities

    # --- COM canonicalization (mode='com': weights = masses), per sample -----
    msum = m[:, 0:tb]
    mloc = m[:, 0:tb] * loc[:, 0:tb]
    for n in range(1, N_OBJ):
        sl = slice(n * tb, (n + 1) * tb)
        msum = msum + m[:, sl]
        mloc = mloc + m[:, sl] * loc[:, sl]
    com = mloc / msum                                      # (3, tb)
    com_rep = jnp.concatenate([com] * N_OBJ, axis=1)       # (3, L) aligned copies
    locc = loc - com_rep                                   # (3, L)

    # --- loop-invariant weight broadcasts (hoisted; JAX does not CSE these) --
    wew_b = jnp.broadcast_to(wew_ref[...], (h, L))         # prod-mass weight
    wed_b = jnp.broadcast_to(wed_ref[...], (h, L))         # |d|^2 weight
    be_b = jnp.broadcast_to(be_ref[...], (h, L))           # edge bias
    wd = wd_ref[...]                                       # (h, 3)

    # --- self edge (d = 0, dist2 = 0, w = m^2): subtracted analytically ------
    self_msg = jnp.maximum(wew_b * (m * m) + be_b, 0.0)    # (h, L)
    agg = -self_msg

    # --- edge messages, streamed over the source object (8 unrolled steps) ---
    for s in range(N_OBJ):
        sl = slice(s * tb, (s + 1) * tb)
        loc_s = jnp.concatenate([locc[:, sl]] * N_OBJ, axis=1)   # (3, L)
        m_s = jnp.concatenate([m[:, sl]] * N_OBJ, axis=1)        # (1, L)
        d = locc - loc_s                                          # dst - src
        w = m * m_s                                               # m_dst * m_src
        dist2 = jnp.sum(d * d, axis=0, keepdims=True)             # (1, L)
        z = (jnp.dot(wd, d, preferred_element_type=f32)           # MXU, K=3
             + wew_b * w + wed_b * dist2 + be_b)
        agg = agg + jnp.maximum(z, 0.0)

    # --- node update: two MXU dots + scalar-feature broadcasts ---------------
    wnm_b = jnp.broadcast_to(wnm_ref[...], (h, L))
    bn_b = jnp.broadcast_to(bn_ref[...], (h, L))
    hid = jnp.maximum(
        jnp.dot(wna_ref[...], agg, preferred_element_type=f32)    # MXU, K=H
        + jnp.dot(wnv_ref[...], vel, preferred_element_type=f32)  # MXU, K=3
        + wnm_b * m + bn_b, 0.0)
    pred = jnp.dot(wo_ref[...], hid, preferred_element_type=f32)  # (3, L)

    # --- wrapper residual, stored lane-dense / feature-major -----------------
    out_ref[...] = locc + pred + com_rep


def init_params(key):
    """Synthetic graph-net weights, stored feature-major (out-features on rows)."""
    ks = jax.random.split(key, 8)
    s = 0.1
    wdT = s * jax.random.normal(ks[0], (H, 3), jnp.float32)    # edge: loc_dst - loc_src
    wewT = s * jax.random.normal(ks[1], (H, 1), jnp.float32)   # edge: m_dst * m_src
    wedT = s * jax.random.normal(ks[2], (H, 1), jnp.float32)   # edge: |d|^2
    beT = s * jax.random.normal(ks[3], (H, 1), jnp.float32)    # edge bias
    wnaT = s * jax.random.normal(ks[4], (H, H), jnp.float32)   # node: aggregated msgs
    wnvT = s * jax.random.normal(ks[5], (H, 3), jnp.float32)   # node: velocity
    wnmT = s * jax.random.normal(ks[6], (H, 1), jnp.float32)   # node: mass
    bnT = jnp.zeros((H, 1), jnp.float32)                       # node bias
    woT = s * jax.random.normal(ks[7], (3, H), jnp.float32)    # output head
    return (wdT, wewT, wedT, beT, wnaT, wnvT, wnmT, bnT, woT)


def nbody_forward(inputs, params, *, tile_b=TILE_B):
    """Pallas forward. inputs: (B, N, 7) -> (predictions (B, N, 3), zeros (B,))."""
    wdT, wewT, wedT, beT, wnaT, wnvT, wnmT, bnT, woT = params
    b_total, n, f = inputs.shape
    assert (n, f) == (N_OBJ, F_IN)
    h = wdT.shape[0]

    # Pad the batch to a tile multiple (unit mass so the COM stays finite).
    b_pad = ((b_total + tile_b - 1) // tile_b) * tile_b
    if b_pad != b_total:
        pad = jnp.zeros((b_pad - b_total, n, f), inputs.dtype).at[:, :, 0].set(1.0)
        x_full = jnp.concatenate([inputs, pad], axis=0)
    else:
        x_full = inputs
    num_tiles = b_pad // tile_b
    lanes = n * tile_b

    # Feature-major, lane-dense layout; within a tile: lane = obj*tile_b + sample.
    x_fm = (x_full.reshape(num_tiles, tile_b, n, f)
            .transpose(3, 0, 2, 1)                       # (F, T, N, tile_b)
            .reshape(f, num_tiles * lanes))

    weights = (wdT, wewT, wedT, beT, wnaT, wnvT, wnmT, bnT, woT)
    weight_specs = [pl.BlockSpec(w.shape, lambda i: (0, 0)) for w in weights]

    flops = b_pad * (N_OBJ * N_OBJ * (2 * 3 * h + 6 * h)
                     + N_OBJ * (2 * h * h + 2 * 3 * h + 4 * h)
                     + N_OBJ * 2 * h * 3)
    bytes_accessed = 4 * (x_fm.size + 3 * b_pad * n
                          + sum(w.size for w in weights))

    out_fm = pl.pallas_call(
        nbody_kernel,
        out_shape=jax.ShapeDtypeStruct((3, num_tiles * lanes), jnp.float32),
        grid=(num_tiles,),
        in_specs=[pl.BlockSpec((f, lanes), lambda i: (0, i))] + weight_specs,
        out_specs=pl.BlockSpec((3, lanes), lambda i: (0, i)),
        compiler_params=pltpu.CompilerParams(
            dimension_semantics=("parallel",),
            vmem_limit_bytes=32 * 1024 * 1024),
        cost_estimate=pl.CostEstimate(
            flops=int(flops), transcendentals=0,
            bytes_accessed=int(bytes_accessed)),
    )(x_fm, *weights)

    preds = (out_fm.reshape(3, num_tiles, n, tile_b)
             .transpose(1, 3, 2, 0)                      # (T, tile_b, N, 3)
             .reshape(b_pad, n, 3))[:b_total]
    return preds, jnp.zeros((b_total,), dtype=jnp.float32)


def nbody_forward_ref(inputs, params):
    """Pure-JAX reference (same math) for a correctness check."""
    wdT, wewT, wedT, beT, wnaT, wnvT, wnmT, bnT, woT = params
    m = inputs[:, :, 0:1]
    loc = inputs[:, :, 1:4]
    vel = inputs[:, :, 4:7]
    wsum = jnp.sum(m, axis=-2, keepdims=True)
    com = jnp.sum((m / wsum) * loc, axis=-2, keepdims=True)
    locc = loc - com
    d = locc[:, None, :, :] - locc[:, :, None, :]         # (B, src, dst, 3)
    w = m[:, None, :, :] * m[:, :, None, :]               # (B, src, dst, 1)
    dist2 = jnp.sum(d * d, axis=-1, keepdims=True)
    z = (jnp.einsum('bstk,hk->bsth', d, wdT)
         + w * wewT[:, 0] + dist2 * wedT[:, 0] + beT[:, 0])
    msg = jnp.maximum(z, 0.0)
    no_self = 1.0 - jnp.eye(N_OBJ, dtype=msg.dtype)[None, :, :, None]
    agg = jnp.sum(msg * no_self, axis=1)                  # sum over src -> (B, N, H)
    hid = jnp.maximum(
        jnp.einsum('bnh,gh->bng', agg, wnaT)
        + jnp.einsum('bnk,gk->bng', vel, wnvT)
        + m * wnmT[:, 0] + bnT[:, 0], 0.0)
    pred = jnp.einsum('bng,og->bno', hid, woT)
    return locc + pred + com, jnp.zeros((inputs.shape[0],), jnp.float32)


if __name__ == "__main__":
    key = jax.random.PRNGKey(0)
    k_in, k_par = jax.random.split(key)
    raw = jax.random.normal(k_in, (BATCH, N_OBJ, F_IN), jnp.float32)
    # positive masses, as in the n-body dataset
    inputs = raw.at[:, :, 0].set(jnp.abs(raw[:, :, 0]) + 0.5)

    params = init_params(k_par)

    preds, reg = nbody_forward(inputs, params, tile_b=TILE_B)
    preds = jax.block_until_ready(preds)
    reg = jax.block_until_ready(reg)

    preds_ref, _ = nbody_forward_ref(inputs, params)
    assert preds.shape == (BATCH, N_OBJ, 3) and reg.shape == (BATCH,)
    assert jnp.allclose(preds, preds_ref, atol=1e-3, rtol=1e-3)

    print("KERNEL_OK")
</pallas_src>

<mosaic_0001>
module attributes {stable_mosaic.version = 11 : i64} {
  func.func @nbody_kernel(%arg0: i32, %arg1: memref<7x1024xf32, #tpu.memory_space<vmem>>, %arg2: memref<32x3xf32, #tpu.memory_space<vmem>>, %arg3: memref<32x1xf32, #tpu.memory_space<vmem>>, %arg4: memref<32x1xf32, #tpu.memory_space<vmem>>, %arg5: memref<32x1xf32, #tpu.memory_space<vmem>>, %arg6: memref<32x32xf32, #tpu.memory_space<vmem>>, %arg7: memref<32x3xf32, #tpu.memory_space<vmem>>, %arg8: memref<32x1xf32, #tpu.memory_space<vmem>>, %arg9: memref<32x1xf32, #tpu.memory_space<vmem>>, %arg10: memref<3x32xf32, #tpu.memory_space<vmem>>, %arg11: memref<3x1024xf32, #tpu.memory_space<vmem>>) attributes {dimension_semantics = [#tpu.dimension_semantics<parallel>], iteration_bounds = array<i64: 4>, scalar_prefetch = 0 : i64, scratch_operands = 0 : i64, tpu.core_type = #tpu.core_type<tc>, window_params = [{transform_indices = @transform_0, window_bounds = array<i64: 7, 1024>}, {pipeline_mode = #tpu.pipeline_mode<synchronous>, transform_indices = @transform_1, window_bounds = array<i64: 32, 3>}, {pipeline_mode = #tpu.pipeline_mode<synchronous>, transform_indices = @transform_2, window_bounds = array<i64: 32, 1>}, {pipeline_mode = #tpu.pipeline_mode<synchronous>, transform_indices = @transform_3, window_bounds = array<i64: 32, 1>}, {pipeline_mode = #tpu.pipeline_mode<synchronous>, transform_indices = @transform_4, window_bounds = array<i64: 32, 1>}, {pipeline_mode = #tpu.pipeline_mode<synchronous>, transform_indices = @transform_5, window_bounds = array<i64: 32, 32>}, {pipeline_mode = #tpu.pipeline_mode<synchronous>, transform_indices = @transform_6, window_bounds = array<i64: 32, 3>}, {pipeline_mode = #tpu.pipeline_mode<synchronous>, transform_indices = @transform_7, window_bounds = array<i64: 32, 1>}, {pipeline_mode = #tpu.pipeline_mode<synchronous>, transform_indices = @transform_8, window_bounds = array<i64: 32, 1>}, {pipeline_mode = #tpu.pipeline_mode<synchronous>, transform_indices = @transform_9, window_bounds = array<i64: 3, 32>}, {transform_indices = @transform_10, window_bounds = array<i64: 3, 1024>}]} {
    %c0 = arith.constant 0 : index
    %c0_0 = arith.constant 0 : index
    %0 = vector.load %arg1[%c0, %c0_0] : memref<7x1024xf32, #tpu.memory_space<vmem>>, vector<7x1024xf32>
    %1 = vector.extract_strided_slice %0 {offsets = [0, 0], sizes = [1, 1024], strides = [1, 1]} : vector<7x1024xf32> to vector<1x1024xf32>
    %2 = vector.extract_strided_slice %0 {offsets = [1, 0], sizes = [3, 1024], strides = [1, 1]} : vector<7x1024xf32> to vector<3x1024xf32>
    %3 = vector.extract_strided_slice %0 {offsets = [4, 0], sizes = [3, 1024], strides = [1, 1]} : vector<7x1024xf32> to vector<3x1024xf32>
    %4 = vector.extract_strided_slice %1 {offsets = [0, 0], sizes = [1, 128], strides = [1, 1]} : vector<1x1024xf32> to vector<1x128xf32>
    %5 = vector.extract_strided_slice %1 {offsets = [0, 0], sizes = [1, 128], strides = [1, 1]} : vector<1x1024xf32> to vector<1x128xf32>
    %6 = vector.extract_strided_slice %2 {offsets = [0, 0], sizes = [3, 128], strides = [1, 1]} : vector<3x1024xf32> to vector<3x128xf32>
    %7 = vector.broadcast %5 : vector<1x128xf32> to vector<3x128xf32>
    %8 = arith.mulf %7, %6 : vector<3x128xf32>
    %9 = vector.extract_strided_slice %1 {offsets = [0, 128], sizes = [1, 128], strides = [1, 1]} : vector<1x1024xf32> to vector<1x128xf32>
    %10 = arith.addf %4, %9 : vector<1x128xf32>
    %11 = vector.extract_strided_slice %1 {offsets = [0, 128], sizes = [1, 128], strides = [1, 1]} : vector<1x1024xf32> to vector<1x128xf32>
    %12 = vector.extract_strided_slice %2 {offsets = [0, 128], sizes = [3, 128], strides = [1, 1]} : vector<3x1024xf32> to vector<3x128xf32>
    %13 = vector.broadcast %11 : vector<1x128xf32> to vector<3x128xf32>
    %14 = arith.mulf %13, %12 : vector<3x128xf32>
    %15 = arith.addf %8, %14 : vector<3x128xf32>
    %16 = vector.extract_strided_slice %1 {offsets = [0, 256], sizes = [1, 128], strides = [1, 1]} : vector<1x1024xf32> to vector<1x128xf32>
    %17 = arith.addf %10, %16 : vector<1x128xf32>
    %18 = vector.extract_strided_slice %1 {offsets = [0, 256], sizes = [1, 128], strides = [1, 1]} : vector<1x1024xf32> to vector<1x128xf32>
    %19 = vector.extract_strided_slice %2 {offsets = [0, 256], sizes = [3, 128], strides = [1, 1]} : vector<3x1024xf32> to vector<3x128xf32>
    %20 = vector.broadcast %18 : vector<1x128xf32> to vector<3x128xf32>
    %21 = arith.mulf %20, %19 : vector<3x128xf32>
    %22 = arith.addf %15, %21 : vector<3x128xf32>
    %23 = vector.extract_strided_slice %1 {offsets = [0, 384], sizes = [1, 128], strides = [1, 1]} : vector<1x1024xf32> to vector<1x128xf32>
    %24 = arith.addf %17, %23 : vector<1x128xf32>
    %25 = vector.extract_strided_slice %1 {offsets = [0, 384], sizes = [1, 128], strides = [1, 1]} : vector<1x1024xf32> to vector<1x128xf32>
    %26 = vector.extract_strided_slice %2 {offsets = [0, 384], sizes = [3, 128], strides = [1, 1]} : vector<3x1024xf32> to vector<3x128xf32>
    %27 = vector.broadcast %25 : vector<1x128xf32> to vector<3x128xf32>
    %28 = arith.mulf %27, %26 : vector<3x128xf32>
    %29 = arith.addf %22, %28 : vector<3x128xf32>
    %30 = vector.extract_strided_slice %1 {offsets = [0, 512], sizes = [1, 128], strides = [1, 1]} : vector<1x1024xf32> to vector<1x128xf32>
    %31 = arith.addf %24, %30 : vector<1x128xf32>
    %32 = vector.extract_strided_slice %1 {offsets = [0, 512], sizes = [1, 128], strides = [1, 1]} : vector<1x1024xf32> to vector<1x128xf32>
    %33 = vector.extract_strided_slice %2 {offsets = [0, 512], sizes = [3, 128], strides = [1, 1]} : vector<3x1024xf32> to vector<3x128xf32>
    %34 = vector.broadcast %32 : vector<1x128xf32> to vector<3x128xf32>
    %35 = arith.mulf %34, %33 : vector<3x128xf32>
    %36 = arith.addf %29, %35 : vector<3x128xf32>
    %37 = vector.extract_strided_slice %1 {offsets = [0, 640], sizes = [1, 128], strides = [1, 1]} : vector<1x1024xf32> to vector<1x128xf32>
    %38 = arith.addf %31, %37 : vector<1x128xf32>
    %39 = vector.extract_strided_slice %1 {offsets = [0, 640], sizes = [1, 128], strides = [1, 1]} : vector<1x1024xf32> to vector<1x128xf32>
    %40 = vector.extract_strided_slice %2 {offsets = [0, 640], sizes = [3, 128], strides = [1, 1]} : vector<3x1024xf32> to vector<3x128xf32>
    %41 = vector.broadcast %39 : vector<1x128xf32> to vector<3x128xf32>
    %42 = arith.mulf %41, %40 : vector<3x128xf32>
    %43 = arith.addf %36, %42 : vector<3x128xf32>
    %44 = vector.extract_strided_slice %1 {offsets = [0, 768], sizes = [1, 128], strides = [1, 1]} : vector<1x1024xf32> to vector<1x128xf32>
    %45 = arith.addf %38, %44 : vector<1x128xf32>
    %46 = vector.extract_strided_slice %1 {offsets = [0, 768], sizes = [1, 128], strides = [1, 1]} : vector<1x1024xf32> to vector<1x128xf32>
    %47 = vector.extract_strided_slice %2 {offsets = [0, 768], sizes = [3, 128], strides = [1, 1]} : vector<3x1024xf32> to vector<3x128xf32>
    %48 = vector.broadcast %46 : vector<1x128xf32> to vector<3x128xf32>
    %49 = arith.mulf %48, %47 : vector<3x128xf32>
    %50 = arith.addf %43, %49 : vector<3x128xf32>
    %51 = vector.extract_strided_slice %1 {offsets = [0, 896], sizes = [1, 128], strides = [1, 1]} : vector<1x1024xf32> to vector<1x128xf32>
    %52 = arith.addf %45, %51 : vector<1x128xf32>
    %53 = vector.extract_strided_slice %1 {offsets = [0, 896], sizes = [1, 128], strides = [1, 1]} : vector<1x1024xf32> to vector<1x128xf32>
    %54 = vector.extract_strided_slice %2 {offsets = [0, 896], sizes = [3, 128], strides = [1, 1]} : vector<3x1024xf32> to vector<3x128xf32>
    %55 = vector.broadcast %53 : vector<1x128xf32> to vector<3x128xf32>
    %56 = arith.mulf %55, %54 : vector<3x128xf32>
    %57 = arith.addf %50, %56 : vector<3x128xf32>
    %58 = vector.broadcast %52 : vector<1x128xf32> to vector<3x128xf32>
    %59 = arith.divf %57, %58 : vector<3x128xf32>
    %60 = tpu.concatenate %59, %59, %59, %59, %59, %59, %59, %59 in 1 : vector<3x128xf32>, vector<3x128xf32>, vector<3x128xf32>, vector<3x128xf32>, vector<3x128xf32>, vector<3x128xf32>, vector<3x128xf32>, vector<3x128xf32> -> vector<3x1024xf32>
    %61 = arith.subf %2, %60 : vector<3x1024xf32>
    %c0_1 = arith.constant 0 : index
    %c0_2 = arith.constant 0 : index
    %62 = vector.load %arg3[%c0_1, %c0_2] : memref<32x1xf32, #tpu.memory_space<vmem>>, vector<32x1xf32>
    %63 = vector.shape_cast %62 : vector<32x1xf32> to vector<32x1xf32>
    %64 = vector.broadcast %63 : vector<32x1xf32> to vector<32x1024xf32>
    %c0_3 = arith.constant 0 : index
    %c0_4 = arith.constant 0 : index
    %65 = vector.load %arg4[%c0_3, %c0_4] : memref<32x1xf32, #tpu.memory_space<vmem>>, vector<32x1xf32>
    %66 = vector.shape_cast %65 : vector<32x1xf32> to vector<32x1xf32>
    %67 = vector.broadcast %66 : vector<32x1xf32> to vector<32x1024xf32>
    %c0_5 = arith.constant 0 : index
    %c0_6 = arith.constant 0 : index
    %68 = vector.load %arg5[%c0_5, %c0_6] : memref<32x1xf32, #tpu.memory_space<vmem>>, vector<32x1xf32>
    %69 = vector.shape_cast %68 : vector<32x1xf32> to vector<32x1xf32>
    %70 = vector.broadcast %69 : vector<32x1xf32> to vector<32x1024xf32>
    %c0_7 = arith.constant 0 : index
    %c0_8 = arith.constant 0 : index
    %71 = vector.load %arg2[%c0_7, %c0_8] : memref<32x3xf32, #tpu.memory_space<vmem>>, vector<32x3xf32>
    %72 = arith.mulf %1, %1 : vector<1x1024xf32>
    %73 = vector.broadcast %72 : vector<1x1024xf32> to vector<32x1024xf32>
    %74 = arith.mulf %64, %73 : vector<32x1024xf32>
    %75 = arith.addf %74, %70 : vector<32x1024xf32>
    %cst = arith.constant 0.000000e+00 : f32
    %76 = vector.broadcast %cst : f32 to vector<32x1024xf32>
    %77 = arith.maximumf %75, %76 : vector<32x1024xf32>
    %cst_9 = arith.constant 0.000000e+00 : f32
    %78 = vector.broadcast %cst_9 : f32 to vector<32x1024xf32>
    %79 = arith.subf %78, %77 : vector<32x1024xf32>
    %80 = vector.extract_strided_slice %61 {offsets = [0, 0], sizes = [3, 128], strides = [1, 1]} : vector<3x1024xf32> to vector<3x128xf32>
    %81 = tpu.concatenate %80, %80, %80, %80, %80, %80, %80, %80 in 1 : vector<3x128xf32>, vector<3x128xf32>, vector<3x128xf32>, vector<3x128xf32>, vector<3x128xf32>, vector<3x128xf32>, vector<3x128xf32>, vector<3x128xf32> -> vector<3x1024xf32>
    %82 = vector.extract_strided_slice %1 {offsets = [0, 0], sizes = [1, 128], strides = [1, 1]} : vector<1x1024xf32> to vector<1x128xf32>
    %83 = tpu.concatenate %82, %82, %82, %82, %82, %82, %82, %82 in 1 : vector<1x128xf32>, vector<1x128xf32>, vector<1x128xf32>, vector<1x128xf32>, vector<1x128xf32>, vector<1x128xf32>, vector<1x128xf32>, vector<1x128xf32> -> vector<1x1024xf32>
    %84 = arith.subf %61, %81 : vector<3x1024xf32>
    %85 = arith.mulf %1, %83 : vector<1x1024xf32>
    %86 = arith.mulf %84, %84 : vector<3x1024xf32>
    %cst_10 = arith.constant dense<0.000000e+00> : vector<1024xf32>
    %87 = vector.multi_reduction <add>, %86, %cst_10 [0] : vector<3x1024xf32> to vector<1024xf32>
    %88 = vector.shape_cast %87 : vector<1024xf32> to vector<1x1024xf32>
    %cst_11 = arith.constant dense<0.000000e+00> : vector<32x1024xf32>
    %89 = tpu.matmul %71, %84, %cst_11 {dimension_numbers = #tpu.dot_dimension_numbers<[1], [0], [0], [1], [0, 0, 1, 1], [], []>} : vector<32x3xf32>, vector<3x1024xf32>, vector<32x1024xf32> -> vector<32x1024xf32>
    %90 = vector.broadcast %85 : vector<1x1024xf32> to vector<32x1024xf32>
    %91 = arith.mulf %64, %90 : vector<32x1024xf32>
    %92 = arith.addf %89, %91 : vector<32x1024xf32>
    %93 = vector.broadcast %88 : vector<1x1024xf32> to vector<32x1024xf32>
    %94 = arith.mulf %67, %93 : vector<32x1024xf32>
    %95 = arith.addf %92, %94 : vector<32x1024xf32>
    %96 = arith.addf %95, %70 : vector<32x1024xf32>
    %cst_12 = arith.constant 0.000000e+00 : f32
    %97 = vector.broadcast %cst_12 : f32 to vector<32x1024xf32>
    %98 = arith.maximumf %96, %97 : vector<32x1024xf32>
    %99 = arith.addf %79, %98 : vector<32x1024xf32>
    %100 = vector.extract_strided_slice %61 {offsets = [0, 128], sizes = [3, 128], strides = [1, 1]} : vector<3x1024xf32> to vector<3x128xf32>
    %101 = tpu.concatenate %100, %100, %100, %100, %100, %100, %100, %100 in 1 : vector<3x128xf32>, vector<3x128xf32>, vector<3x128xf32>, vector<3x128xf32>, vector<3x128xf32>, vector<3x128xf32>, vector<3x128xf32>, vector<3x128xf32> -> vector<3x1024xf32>
    %102 = vector.extract_strided_slice %1 {offsets = [0, 128], sizes = [1, 128], strides = [1, 1]} : vector<1x1024xf32> to vector<1x128xf32>
    %103 = tpu.concatenate %102, %102, %102, %102, %102, %102, %102, %102 in 1 : vector<1x128xf32>, vector<1x128xf32>, vector<1x128xf32>, vector<1x128xf32>, vector<1x128xf32>, vector<1x128xf32>, vector<1x128xf32>, vector<1x128xf32> -> vector<1x1024xf32>
    %104 = arith.subf %61, %101 : vector<3x1024xf32>
    %105 = arith.mulf %1, %103 : vector<1x1024xf32>
    %106 = arith.mulf %104, %104 : vector<3x1024xf32>
    %cst_13 = arith.constant dense<0.000000e+00> : vector<1024xf32>
    %107 = vector.multi_reduction <add>, %106, %cst_13 [0] : vector<3x1024xf32> to vector<1024xf32>
    %108 = vector.shape_cast %107 : vector<1024xf32> to vector<1x1024xf32>
    %cst_14 = arith.constant dense<0.000000e+00> : vector<32x1024xf32>
    %109 = tpu.matmul %71, %104, %cst_14 {dimension_numbers = #tpu.dot_dimension_numbers<[1], [0], [0], [1], [0, 0, 1, 1], [], []>} : vector<32x3xf32>, vector<3x1024xf32>, vector<32x1024xf32> -> vector<32x1024xf32>
    %110 = vector.broadcast %105 : vector<1x1024xf32> to vector<32x1024xf32>
    %111 = arith.mulf %64, %110 : vector<32x1024xf32>
    %112 = arith.addf %109, %111 : vector<32x1024xf32>
    %113 = vector.broadcast %108 : vector<1x1024xf32> to vector<32x1024xf32>
    %114 = arith.mulf %67, %113 : vector<32x1024xf32>
    %115 = arith.addf %112, %114 : vector<32x1024xf32>
    %116 = arith.addf %115, %70 : vector<32x1024xf32>
    %cst_15 = arith.constant 0.000000e+00 : f32
    %117 = vector.broadcast %cst_15 : f32 to vector<32x1024xf32>
    %118 = arith.maximumf %116, %117 : vector<32x1024xf32>
    %119 = arith.addf %99, %118 : vector<32x1024xf32>
    %120 = vector.extract_strided_slice %61 {offsets = [0, 256], sizes = [3, 128], strides = [1, 1]} : vector<3x1024xf32> to vector<3x128xf32>
    %121 = tpu.concatenate %120, %120, %120, %120, %120, %120, %120, %120 in 1 : vector<3x128xf32>, vector<3x128xf32>, vector<3x128xf32>, vector<3x128xf32>, vector<3x128xf32>, vector<3x128xf32>, vector<3x128xf32>, vector<3x128xf32> -> vector<3x1024xf32>
    %122 = vector.extract_strided_slice %1 {offsets = [0, 256], sizes = [1, 128], strides = [1, 1]} : vector<1x1024xf32> to vector<1x128xf32>
    %123 = tpu.concatenate %122, %122, %122, %122, %122, %122, %122, %122 in 1 : vector<1x128xf32>, vector<1x128xf32>, vector<1x128xf32>, vector<1x128xf32>, vector<1x128xf32>, vector<1x128xf32>, vector<1x128xf32>, vector<1x128xf32> -> vector<1x1024xf32>
    %124 = arith.subf %61, %121 : vector<3x1024xf32>
    %125 = arith.mulf %1, %123 : vector<1x1024xf32>
    %126 = arith.mulf %124, %124 : vector<3x1024xf32>
    %cst_16 = arith.constant dense<0.000000e+00> : vector<1024xf32>
    %127 = vector.multi_reduction <add>, %126, %cst_16 [0] : vector<3x1024xf32> to vector<1024xf32>
    %128 = vector.shape_cast %127 : vector<1024xf32> to vector<1x1024xf32>
    %cst_17 = arith.constant dense<0.000000e+00> : vector<32x1024xf32>
    %129 = tpu.matmul %71, %124, %cst_17 {dimension_numbers = #tpu.dot_dimension_numbers<[1], [0], [0], [1], [0, 0, 1, 1], [], []>} : vector<32x3xf32>, vector<3x1024xf32>, vector<32x1024xf32> -> vector<32x1024xf32>
    %130 = vector.broadcast %125 : vector<1x1024xf32> to vector<32x1024xf32>
    %131 = arith.mulf %64, %130 : vector<32x1024xf32>
    %132 = arith.addf %129, %131 : vector<32x1024xf32>
    %133 = vector.broadcast %128 : vector<1x1024xf32> to vector<32x1024xf32>
    %134 = arith.mulf %67, %133 : vector<32x1024xf32>
    %135 = arith.addf %132, %134 : vector<32x1024xf32>
    %136 = arith.addf %135, %70 : vector<32x1024xf32>
    %cst_18 = arith.constant 0.000000e+00 : f32
    %137 = vector.broadcast %cst_18 : f32 to vector<32x1024xf32>
    %138 = arith.maximumf %136, %137 : vector<32x1024xf32>
    %139 = arith.addf %119, %138 : vector<32x1024xf32>
    %140 = vector.extract_strided_slice %61 {offsets = [0, 384], sizes = [3, 128], strides = [1, 1]} : vector<3x1024xf32> to vector<3x128xf32>
    %141 = tpu.concatenate %140, %140, %140, %140, %140, %140, %140, %140 in 1 : vector<3x128xf32>, vector<3x128xf32>, vector<3x128xf32>, vector<3x128xf32>, vector<3x128xf32>, vector<3x128xf32>, vector<3x128xf32>, vector<3x128xf32> -> vector<3x1024xf32>
    %142 = vector.extract_strided_slice %1 {offsets = [0, 384], sizes = [1, 128], strides = [1, 1]} : vector<1x1024xf32> to vector<1x128xf32>
    %143 = tpu.concatenate %142, %142, %142, %142, %142, %142, %142, %142 in 1 : vector<1x128xf32>, vector<1x128xf32>, vector<1x128xf32>, vector<1x128xf32>, vector<1x128xf32>, vector<1x128xf32>, vector<1x128xf32>, vector<1x128xf32> -> vector<1x1024xf32>
    %144 = arith.subf %61, %141 : vector<3x1024xf32>
    %145 = arith.mulf %1, %143 : vector<1x1024xf32>
    %146 = arith.mulf %144, %144 : vector<3x1024xf32>
    %cst_19 = arith.constant dense<0.000000e+00> : vector<1024xf32>
    %147 = vector.multi_reduction <add>, %146, %cst_19 [0] : vector<3x1024xf32> to vector<1024xf32>
    %148 = vector.shape_cast %147 : vector<1024xf32> to vector<1x1024xf32>
    %cst_20 = arith.constant dense<0.000000e+00> : vector<32x1024xf32>
    %149 = tpu.matmul %71, %144, %cst_20 {dimension_numbers = #tpu.dot_dimension_numbers<[1], [0], [0], [1], [0, 0, 1, 1], [], []>} : vector<32x3xf32>, vector<3x1024xf32>, vector<32x1024xf32> -> vector<32x1024xf32>
    %150 = vector.broadcast %145 : vector<1x1024xf32> to vector<32x1024xf32>
    %151 = arith.mulf %64, %150 : vector<32x1024xf32>
    %152 = arith.addf %149, %151 : vector<32x1024xf32>
    %153 = vector.broadcast %148 : vector<1x1024xf32> to vector<32x1024xf32>
    %154 = arith.mulf %67, %153 : vector<32x1024xf32>
    %155 = arith.addf %152, %154 : vector<32x1024xf32>
    %156 = arith.addf %155, %70 : vector<32x1024xf32>
    %cst_21 = arith.constant 0.000000e+00 : f32
    %157 = vector.broadcast %cst_21 : f32 to vector<32x1024xf32>
    %158 = arith.maximumf %156, %157 : vector<32x1024xf32>
    %159 = arith.addf %139, %158 : vector<32x1024xf32>
    %160 = vector.extract_strided_slice %61 {offsets = [0, 512], sizes = [3, 128], strides = [1, 1]} : vector<3x1024xf32> to vector<3x128xf32>
    %161 = tpu.concatenate %160, %160, %160, %160, %160, %160, %160, %160 in 1 : vector<3x128xf32>, vector<3x128xf32>, vector<3x128xf32>, vector<3x128xf32>, vector<3x128xf32>, vector<3x128xf32>, vector<3x128xf32>, vector<3x128xf32> -> vector<3x1024xf32>
    %162 = vector.extract_strided_slice %1 {offsets = [0, 512], sizes = [1, 128], strides = [1, 1]} : vector<1x1024xf32> to vector<1x128xf32>
    %163 = tpu.concatenate %162, %162, %162, %162, %162, %162, %162, %162 in 1 : vector<1x128xf32>, vector<1x128xf32>, vector<1x128xf32>, vector<1x128xf32>, vector<1x128xf32>, vector<1x128xf32>, vector<1x128xf32>, vector<1x128xf32> -> vector<1x1024xf32>
    %164 = arith.subf %61, %161 : vector<3x1024xf32>
    %165 = arith.mulf %1, %163 : vector<1x1024xf32>
    %166 = arith.mulf %164, %164 : vector<3x1024xf32>
    %cst_22 = arith.constant dense<0.000000e+00> : vector<1024xf32>
    %167 = vector.multi_reduction <add>, %166, %cst_22 [0] : vector<3x1024xf32> to vector<1024xf32>
    %168 = vector.shape_cast %167 : vector<1024xf32> to vector<1x1024xf32>
    %cst_23 = arith.constant dense<0.000000e+00> : vector<32x1024xf32>
    %169 = tpu.matmul %71, %164, %cst_23 {dimension_numbers = #tpu.dot_dimension_numbers<[1], [0], [0], [1], [0, 0, 1, 1], [], []>} : vector<32x3xf32>, vector<3x1024xf32>, vector<32x1024xf32> -> vector<32x1024xf32>
    %170 = vector.broadcast %165 : vector<1x1024xf32> to vector<32x1024xf32>
    %171 = arith.mulf %64, %170 : vector<32x1024xf32>
    %172 = arith.addf %169, %171 : vector<32x1024xf32>
    %173 = vector.broadcast %168 : vector<1x1024xf32> to vector<32x1024xf32>
    %174 = arith.mulf %67, %173 : vector<32x1024xf32>
    %175 = arith.addf %172, %174 : vector<32x1024xf32>
    %176 = arith.addf %175, %70 : vector<32x1024xf32>
    %cst_24 = arith.constant 0.000000e+00 : f32
    %177 = vector.broadcast %cst_24 : f32 to vector<32x1024xf32>
    %178 = arith.maximumf %176, %177 : vector<32x1024xf32>
    %179 = arith.addf %159, %178 : vector<32x1024xf32>
    %180 = vector.extract_strided_slice %61 {offsets = [0, 640], sizes = [3, 128], strides = [1, 1]} : vector<3x1024xf32> to vector<3x128xf32>
    %181 = tpu.concatenate %180, %180, %180, %180, %180, %180, %180, %180 in 1 : vector<3x128xf32>, vector<3x128xf32>, vector<3x128xf32>, vector<3x128xf32>, vector<3x128xf32>, vector<3x128xf32>, vector<3x128xf32>, vector<3x128xf32> -> vector<3x1024xf32>
    %182 = vector.extract_strided_slice %1 {offsets = [0, 640], sizes = [1, 128], strides = [1, 1]} : vector<1x1024xf32> to vector<1x128xf32>
    %183 = tpu.concatenate %182, %182, %182, %182, %182, %182, %182, %182 in 1 : vector<1x128xf32>, vector<1x128xf32>, vector<1x128xf32>, vector<1x128xf32>, vector<1x128xf32>, vector<1x128xf32>, vector<1x128xf32>, vector<1x128xf32> -> vector<1x1024xf32>
    %184 = arith.subf %61, %181 : vector<3x1024xf32>
    %185 = arith.mulf %1, %183 : vector<1x1024xf32>
    %186 = arith.mulf %184, %184 : vector<3x1024xf32>
    %cst_25 = arith.constant dense<0.000000e+00> : vector<1024xf32>
    %187 = vector.multi_reduction <add>, %186, %cst_25 [0] : vector<3x1024xf32> to vector<1024xf32>
    %188 = vector.shape_cast %187 : vector<1024xf32> to vector<1x1024xf32>
    %cst_26 = arith.constant dense<0.000000e+00> : vector<32x1024xf32>
    %189 = tpu.matmul %71, %184, %cst_26 {dimension_numbers = #tpu.dot_dimension_numbers<[1], [0], [0], [1], [0, 0, 1, 1], [], []>} : vector<32x3xf32>, vector<3x1024xf32>, vector<32x1024xf32> -> vector<32x1024xf32>
    %190 = vector.broadcast %185 : vector<1x1024xf32> to vector<32x1024xf32>
    %191 = arith.mulf %64, %190 : vector<32x1024xf32>
    %192 = arith.addf %189, %191 : vector<32x1024xf32>
    %193 = vector.broadcast %188 : vector<1x1024xf32> to vector<32x1024xf32>
    %194 = arith.mulf %67, %193 : vector<32x1024xf32>
    %195 = arith.addf %192, %194 : vector<32x1024xf32>
    %196 = arith.addf %195, %70 : vector<32x1024xf32>
    %cst_27 = arith.constant 0.000000e+00 : f32
    %197 = vector.broadcast %cst_27 : f32 to vector<32x1024xf32>
    %198 = arith.maximumf %196, %197 : vector<32x1024xf32>
    %199 = arith.addf %179, %198 : vector<32x1024xf32>
    %200 = vector.extract_strided_slice %61 {offsets = [0, 768], sizes = [3, 128], strides = [1, 1]} : vector<3x1024xf32> to vector<3x128xf32>
    %201 = tpu.concatenate %200, %200, %200, %200, %200, %200, %200, %200 in 1 : vector<3x128xf32>, vector<3x128xf32>, vector<3x128xf32>, vector<3x128xf32>, vector<3x128xf32>, vector<3x128xf32>, vector<3x128xf32>, vector<3x128xf32> -> vector<3x1024xf32>
    %202 = vector.extract_strided_slice %1 {offsets = [0, 768], sizes = [1, 128], strides = [1, 1]} : vector<1x1024xf32> to vector<1x128xf32>
    %203 = tpu.concatenate %202, %202, %202, %202, %202, %202, %202, %202 in 1 : vector<1x128xf32>, vector<1x128xf32>, vector<1x128xf32>, vector<1x128xf32>, vector<1x128xf32>, vector<1x128xf32>, vector<1x128xf32>, vector<1x128xf32> -> vector<1x1024xf32>
    %204 = arith.subf %61, %201 : vector<3x1024xf32>
    %205 = arith.mulf %1, %203 : vector<1x1024xf32>
    %206 = arith.mulf %204, %204 : vector<3x1024xf32>
    %cst_28 = arith.constant dense<0.000000e+00> : vector<1024xf32>
    %207 = vector.multi_reduction <add>, %206, %cst_28 [0] : vector<3x1024xf32> to vector<1024xf32>
    %208 = vector.shape_cast %207 : vector<1024xf32> to vector<1x1024xf32>
    %cst_29 = arith.constant dense<0.000000e+00> : vector<32x1024xf32>
    %209 = tpu.matmul %71, %204, %cst_29 {dimension_numbers = #tpu.dot_dimension_numbers<[1], [0], [0], [1], [0, 0, 1, 1], [], []>} : vector<32x3xf32>, vector<3x1024xf32>, vector<32x1024xf32> -> vector<32x1024xf32>
    %210 = vector.broadcast %205 : vector<1x1024xf32> to vector<32x1024xf32>
    %211 = arith.mulf %64, %210 : vector<32x1024xf32>
    %212 = arith.addf %209, %211 : vector<32x1024xf32>
    %213 = vector.broadcast %208 : vector<1x1024xf32> to vector<32x1024xf32>
    %214 = arith.mulf %67, %213 : vector<32x1024xf32>
    %215 = arith.addf %212, %214 : vector<32x1024xf32>
    %216 = arith.addf %215, %70 : vector<32x1024xf32>
    %cst_30 = arith.constant 0.000000e+00 : f32
    %217 = vector.broadcast %cst_30 : f32 to vector<32x1024xf32>
    %218 = arith.maximumf %216, %217 : vector<32x1024xf32>
    %219 = arith.addf %199, %218 : vector<32x1024xf32>
    %220 = vector.extract_strided_slice %61 {offsets = [0, 896], sizes = [3, 128], strides = [1, 1]} : vector<3x1024xf32> to vector<3x128xf32>
    %221 = tpu.concatenate %220, %220, %220, %220, %220, %220, %220, %220 in 1 : vector<3x128xf32>, vector<3x128xf32>, vector<3x128xf32>, vector<3x128xf32>, vector<3x128xf32>, vector<3x128xf32>, vector<3x128xf32>, vector<3x128xf32> -> vector<3x1024xf32>
    %222 = vector.extract_strided_slice %1 {offsets = [0, 896], sizes = [1, 128], strides = [1, 1]} : vector<1x1024xf32> to vector<1x128xf32>
    %223 = tpu.concatenate %222, %222, %222, %222, %222, %222, %222, %222 in 1 : vector<1x128xf32>, vector<1x128xf32>, vector<1x128xf32>, vector<1x128xf32>, vector<1x128xf32>, vector<1x128xf32>, vector<1x128xf32>, vector<1x128xf32> -> vector<1x1024xf32>
    %224 = arith.subf %61, %221 : vector<3x1024xf32>
    %225 = arith.mulf %1, %223 : vector<1x1024xf32>
    %226 = arith.mulf %224, %224 : vector<3x1024xf32>
    %cst_31 = arith.constant dense<0.000000e+00> : vector<1024xf32>
    %227 = vector.multi_reduction <add>, %226, %cst_31 [0] : vector<3x1024xf32> to vector<1024xf32>
    %228 = vector.shape_cast %227 : vector<1024xf32> to vector<1x1024xf32>
    %cst_32 = arith.constant dense<0.000000e+00> : vector<32x1024xf32>
    %229 = tpu.matmul %71, %224, %cst_32 {dimension_numbers = #tpu.dot_dimension_numbers<[1], [0], [0], [1], [0, 0, 1, 1], [], []>} : vector<32x3xf32>, vector<3x1024xf32>, vector<32x1024xf32> -> vector<32x1024xf32>
    %230 = vector.broadcast %225 : vector<1x1024xf32> to vector<32x1024xf32>
    %231 = arith.mulf %64, %230 : vector<32x1024xf32>
    %232 = arith.addf %229, %231 : vector<32x1024xf32>
    %233 = vector.broadcast %228 : vector<1x1024xf32> to vector<32x1024xf32>
    %234 = arith.mulf %67, %233 : vector<32x1024xf32>
    %235 = arith.addf %232, %234 : vector<32x1024xf32>
    %236 = arith.addf %235, %70 : vector<32x1024xf32>
    %cst_33 = arith.constant 0.000000e+00 : f32
    %237 = vector.broadcast %cst_33 : f32 to vector<32x1024xf32>
    %238 = arith.maximumf %236, %237 : vector<32x1024xf32>
    %239 = arith.addf %219, %238 : vector<32x1024xf32>
    %c0_34 = arith.constant 0 : index
    %c0_35 = arith.constant 0 : index
    %240 = vector.load %arg8[%c0_34, %c0_35] : memref<32x1xf32, #tpu.memory_space<vmem>>, vector<32x1xf32>
    %241 = vector.shape_cast %240 : vector<32x1xf32> to vector<32x1xf32>
    %242 = vector.broadcast %241 : vector<32x1xf32> to vector<32x1024xf32>
    %c0_36 = arith.constant 0 : index
    %c0_37 = arith.constant 0 : index
    %243 = vector.load %arg9[%c0_36, %c0_37] : memref<32x1xf32, #tpu.memory_space<vmem>>, vector<32x1xf32>
    %244 = vector.shape_cast %243 : vector<32x1xf32> to vector<32x1xf32>
    %245 = vector.broadcast %244 : vector<32x1xf32> to vector<32x1024xf32>
    %c0_38 = arith.constant 0 : index
    %c0_39 = arith.constant 0 : index
    %246 = vector.load %arg6[%c0_38, %c0_39] : memref<32x32xf32, #tpu.memory_space<vmem>>, vector<32x32xf32>
    %cst_40 = arith.constant dense<0.000000e+00> : vector<32x1024xf32>
    %247 = tpu.matmul %246, %239, %cst_40 {dimension_numbers = #tpu.dot_dimension_numbers<[1], [0], [0], [1], [0, 0, 1, 1], [], []>} : vector<32x32xf32>, vector<32x1024xf32>, vector<32x1024xf32> -> vector<32x1024xf32>
    %c0_41 = arith.constant 0 : index
    %c0_42 = arith.constant 0 : index
    %248 = vector.load %arg7[%c0_41, %c0_42] : memref<32x3xf32, #tpu.memory_space<vmem>>, vector<32x3xf32>
    %cst_43 = arith.constant dense<0.000000e+00> : vector<32x1024xf32>
    %249 = tpu.matmul %248, %3, %cst_43 {dimension_numbers = #tpu.dot_dimension_numbers<[1], [0], [0], [1], [0, 0, 1, 1], [], []>} : vector<32x3xf32>, vector<3x1024xf32>, vector<32x1024xf32> -> vector<32x1024xf32>
    %250 = arith.addf %247, %249 : vector<32x1024xf32>
    %251 = vector.broadcast %1 : vector<1x1024xf32> to vector<32x1024xf32>
    %252 = arith.mulf %242, %251 : vector<32x1024xf32>
    %253 = arith.addf %250, %252 : vector<32x1024xf32>
    %254 = arith.addf %253, %245 : vector<32x1024xf32>
    %cst_44 = arith.constant 0.000000e+00 : f32
    %255 = vector.broadcast %cst_44 : f32 to vector<32x1024xf32>
    %256 = arith.maximumf %254, %255 : vector<32x1024xf32>
    %c0_45 = arith.constant 0 : index
    %c0_46 = arith.constant 0 : index
    %257 = vector.load %arg10[%c0_45, %c0_46] : memref<3x32xf32, #tpu.memory_space<vmem>>, vector<3x32xf32>
    %cst_47 = arith.constant dense<0.000000e+00> : vector<3x1024xf32>
    %258 = tpu.matmul %257, %256, %cst_47 {dimension_numbers = #tpu.dot_dimension_numbers<[1], [0], [0], [1], [0, 0, 1, 1], [], []>} : vector<3x32xf32>, vector<32x1024xf32>, vector<3x1024xf32> -> vector<3x1024xf32>
    %259 = arith.addf %61, %258 : vector<3x1024xf32>
    %260 = arith.addf %259, %60 : vector<3x1024xf32>
    %c0_48 = arith.constant 0 : index
    %c0_49 = arith.constant 0 : index
    %261 = vector.load %arg11[%c0_48, %c0_49] : memref<3x1024xf32, #tpu.memory_space<vmem>>, vector<3x1024xf32>
    tpu.vector_store %arg11[%c0_48, %c0_49], %260 {strides = array<i32>} : memref<3x1024xf32, #tpu.memory_space<vmem>>, vector<3x1024xf32>,
    return
  }
  func.func @transform_0(%arg0: i32) -> (i32, i32) {
    %c0_i32 = arith.constant 0 : i32
    %c0_i32_0 = arith.constant 0 : i32
    return %c0_i32, %arg0 : i32, i32
  }
  func.func @transform_1(%arg0: i32) -> (i32, i32) {
    %c0_i32 = arith.constant 0 : i32
    %c0_i32_0 = arith.constant 0 : i32
    %c0_i32_1 = arith.constant 0 : i32
    return %c0_i32, %c0_i32_0 : i32, i32
  }
  func.func @transform_2(%arg0: i32) -> (i32, i32) {
    %c0_i32 = arith.constant 0 : i32
    %c0_i32_0 = arith.constant 0 : i32
    %c0_i32_1 = arith.constant 0 : i32
    return %c0_i32, %c0_i32_0 : i32, i32
  }
  func.func @transform_3(%arg0: i32) -> (i32, i32) {
    %c0_i32 = arith.constant 0 : i32
    %c0_i32_0 = arith.constant 0 : i32
    %c0_i32_1 = arith.constant 0 : i32
    return %c0_i32, %c0_i32_0 : i32, i32
  }
  func.func @transform_4(%arg0: i32) -> (i32, i32) {
    %c0_i32 = arith.constant 0 : i32
    %c0_i32_0 = arith.constant 0 : i32
    %c0_i32_1 = arith.constant 0 : i32
    return %c0_i32, %c0_i32_0 : i32, i32
  }
  func.func @transform_5(%arg0: i32) -> (i32, i32) {
    %c0_i32 = arith.constant 0 : i32
    %c0_i32_0 = arith.constant 0 : i32
    %c0_i32_1 = arith.constant 0 : i32
    return %c0_i32, %c0_i32_0 : i32, i32
  }
  func.func @transform_6(%arg0: i32) -> (i32, i32) {
    %c0_i32 = arith.constant 0 : i32
    %c0_i32_0 = arith.constant 0 : i32
    %c0_i32_1 = arith.constant 0 : i32
    return %c0_i32, %c0_i32_0 : i32, i32
  }
  func.func @transform_7(%arg0: i32) -> (i32, i32) {
    %c0_i32 = arith.constant 0 : i32
    %c0_i32_0 = arith.constant 0 : i32
    %c0_i32_1 = arith.constant 0 : i32
    return %c0_i32, %c0_i32_0 : i32, i32
  }
  func.func @transform_8(%arg0: i32) -> (i32, i32) {
    %c0_i32 = arith.constant 0 : i32
    %c0_i32_0 = arith.constant 0 : i32
    %c0_i32_1 = arith.constant 0 : i32
    return %c0_i32, %c0_i32_0 : i32, i32
  }
  func.func @transform_9(%arg0: i32) -> (i32, i32) {
    %c0_i32 = arith.constant 0 : i32
    %c0_i32_0 = arith.constant 0 : i32
    %c0_i32_1 = arith.constant 0 : i32
    return %c0_i32, %c0_i32_0 : i32, i32
  }
  func.func @transform_10(%arg0: i32) -> (i32, i32) {
    %c0_i32 = arith.constant 0 : i32
    %c0_i32_0 = arith.constant 0 : i32
    return %c0_i32, %arg0 : i32, i32
  }
}

</mosaic_0001>

<bundles_post_ra>
// kernel: tpu_custom_call.1
= control target key start
LH: loop header
LB: loop body
LE: loop exit
PB: predicated region body
PF: predicated region fallthrough
CT: control target
= control target key end

     0   :  { %15 = vsyncpa [#allocation3], 0  ;;  %s12255_s0 = inlined_call_operand.hbm [shape: f32[7,4096], index: 0, kind: input, shape index: {}]   ;;  %s12256_s1 = inlined_call_operand.vmem [shape: f32[32,3], index: 1, kind: input, shape index: {}]   ;;  %s12257_s2 = inlined_call_operand.vmem [shape: f32[32,1], index: 2, kind: input, shape index: {}]   ;;  %s12258_s3 = inlined_call_operand.vmem [shape: f32[32,1], index: 3, kind: input, shape index: {}]   ;;  %s12259_s4 = inlined_call_operand.vmem [shape: f32[32,1], index: 4, kind: input, shape index: {}]   ;;  %s12260_s5 = inlined_call_operand.vmem [shape: f32[32,32], index: 5, kind: input, shape index: {}]   ;;  %s12261_s6 = inlined_call_operand.vmem [shape: f32[32,3], index: 6, kind: input, shape index: {}]   ;;  %s12262_s7 = inlined_call_operand.vmem [shape: f32[32,1], index: 7, kind: input, shape index: {}]   ;;  %s12263_s8 = inlined_call_operand.vmem [shape: f32[32,1], index: 8, kind: input, shape index: {}]   ;;  %s12264_s9 = inlined_call_operand.vmem [shape: f32[3,32], index: 9, kind: input, shape index: {}]   ;;  %s12265_s10 = inlined_call_operand.hbm [shape: f32[3,4096], index: 10, kind: output, shape index: {}]  }
   0x1   :  { %17 = vsyncpa [#allocation3 + $0x1], 0 }
   0x2   :  { %18 = vsyncpa [#allocation4], 0 }
   0x3   :  { %20 = vsyncpa [#allocation4 + $0x1], 0  ;;  %s6697_s13 = smov 0   ;;  %s6699_s14 = smov 0  }
   0x4   :  { %s6701_s15 = smov 0   ;;  %s6703_s16 = smov 0  }
   0x5 LB: > { %12690 = sst [smem:[#allocation8_spill]] %s6635_s15  ;;  %s6718_s17 = sadd.s32 4294967295, %s6639_s16   ;;  %s6639_s16 = sphi %s6703_s16, %s13730_s16   ;;  %s6635_s15 = sphi %s6701_s15, %s13732_s15   ;;  %s6631_s14 = sphi %s6699_s14, %s13734_s14   ;;  %s6627_s13 = sphi %s6697_s13, %s13733_s13  }
   0x6   : > { %s6033_s18 = sadd.s32 4294967294, %s6639_s16   ;;  %s6722_s19 = sadd.s32 1, %s6639_s16  }
   0x7   : > { %12691 = sst [smem:[#allocation9_spill]] %s6722_s19  ;;  %s33_s20 = sadd.s32 1, %s6635_s15 }
   0x8   : > { %s30_s21 = ssub.s32 %s6639_s16, %s6722_s19  ;;  %p40_p0 = scmp.ne.s32.totalorder %s6635_s15, %s6631_s14 }
   0x9   : > { %p31_p1 = scmp.eq.s32.totalorder %s30_s21, 0  ;;  %p41_p2 = scmp.eq.s32.totalorder %s6639_s16, 0 }
   0xa   : > { %p46_p3 = scmp.ne.s32.totalorder %s6631_s14, %s6627_s13  ;;  %p47_p4 = scmp.eq.s32.totalorder %s6718_s17, 0 }
   0xb   : > { %s6734_s22 = scalar_select %p31_p1, %s6635_s15, %s33_s20  }
   0xc   : > { %p6736_p5 = por %p41_p2, %p40_p0  ;;  %p6740_p6 = por %p47_p4, %p46_p3 }
   0xd   : > { %12692 = sst [smem:[#allocation10_spill]] %s6734_s22  ;;  %p259_p7 = scmp.eq.s32.totalorder %s6718_s17, 3 }
   0xe   : > { %p265_p8 = scmp.eq.s32.totalorder %s6033_s18, 3  ;;  %p6465_p9 = scmp.lt.s32.totalorder %s6639_s16, 4 }
   0xf   : > { %p6746_p10 = por %p259_p7, %p40_p0  ;;  %s312_s27 = sand.u32 1, %s6635_s15  }
  0x10   : > { %p6750_p11 = por %p265_p8, %p46_p3  ;;  %s6451_s28 = sshll.u32 %s6639_s16, 6 }
  0x11   : > { %s6036_s29 = sshll.u32 %s312_s27, 6  ;;  %s321_s12 = scalar_lea.hbm %s12255_s0, %s6451_s28 }
  0x12   : > { %s12696_s26 = scalar_select %p6750_p11, 1, 0 }
  0x13   : > { %s323_s20 = sshll.u32 %s321_s12, 4  ;;  %s316_s21 = scalar_lea.vmem [#allocation2], %s6036_s29  ;;  %s324_s20 = int_to_ptr.hbm [resolvable:$true] %s323_s20 }
  0x14   : > { %12697 = sst [smem:[#allocation11_spill]] %s12696_s26  ;;  %s325_s22 = sshll.u32 %s316_s21, 4  ;;  %s326_s22 = int_to_ptr.vmem [resolvable:$true] %s325_s22 }
  0x15   : > { %p6761_p12 = pnand %p6465_p9, %p6736_p5  ;;  %p6039_p13 = scmp.ge.s32.totalorder %s6639_s16, 1 }
  0x16   : > { %p330_p0 = scmp.lt.s32.totalorder %s6639_s16, 5  ;;  %s313_s15 = scalar_lea.sflag [#allocation3], %s312_s27 }
  0x17   : > { %s6543_s19 = sshra.s32 %s324_s20, 4  ;;  %p6547_p2 = pneg %p6761_p12  ;;  %s6544_s19 = int_to_ptr.hbm [resolvable:$true] %s6543_s19 }
  0x18   : > { %s6545_s26 = scalar_lea.hbm %s6544_s19, 64  ;;  %s6550_s23 = scalar_lea.hbm %s12255_s0, 256 }
  0x19   : > { %p6546_p1 = scmp.ne.s32.totalorder %s6544_s19, %s6545_s26  ;;  %p6551_p5 = scmp.lt.s32.totalorder %s6544_s19, %s12255_s0 }
  0x1a   : > { %p6552_p7 = scmp.lt.s32.totalorder %s6550_s23, %s6545_s26 }
  0x1b   : > { %p6548_p3 = pnand %p6547_p2, %p6546_p1 }
  0x1c   : > { %p6553_p8 = por %p6552_p7, %p6551_p5 }
  0x1d   : > { %p6549_p4 = pneg %p6548_p3 }
  0x1f   : > { %p6554_p9 = pnand %p6553_p8, %p6549_p4 }
  0x21   : > { %6557 = shalt.err (!%p6554_p9)
}
  0x22   : > { %6460 = dma.hbm_to_vmem [thread:$0]  (!%p6761_p12), %s324_s20, 1024, %s326_s22, %s313_s15  }
  0x23   : > { %p331_p1 = pnand %p6039_p13, %p330_p0 }
  0x25   : > { %334 = sbr.rel (%p331_p1) target bundleno = 1160 (0x488), region = 60 }
  0x2a   : > { %s6782_s27 = sand.u32 1, %s6631_s14  }
  0x2b   : > { %s6040_s19 = sshll.u32 %s6782_s27, 6  ;;  %s337_s26 = scalar_lea.sflag [#allocation3], %s6782_s27 }
  0x2c   : > { %s6786_s12 = scalar_lea.vmem [#allocation2], %s6040_s19 }
  0x2d   : > { %6618 = dma.done.wait (%p6740_p6), %s337_s26, 1024  }
  0x2e   : > { %6620 = vsyncadd (%p6740_p6), %s337_s26, 4294966272  ;;  %v6641_v0 = vmov 0   ;;  %v445_v1 = vld [vmem:[%s12257_s2 + $0x18] sm:$0xff]  ;;  %v6796_v2 = vld [vmem:[%s6786_s12] sm:$0x7f]  ;;  %vm709_vm4 = vcmask 1042432  }
  0x2f   : > { %6500 = vset.pattern.permute.xlu0 %v6641_v0  ;;  %6501 = vset.pattern.permute.xlu1 %v6641_v0  ;;  %v6799_v3 = vld [vmem:[%s6786_s12 + $0x8] sm:$0x7f]  ;;  %v6802_v4 = vld [vmem:[%s6786_s12 + $0x10] sm:$0x7f]  ;;  %v6807_v6 = vld [vmem:[%s6786_s12 + $0x18] sm:$0x7f] }
  0x30   : > { %6502 = vset.pattern.permute.xlu2 %v6641_v0  ;;  %463 = vperm.xlu0 %6500, %v445_v1   ;;  %v390_v5 = vadd.f32 %v6799_v3, %v6796_v2  ;;  %v6810_v7 = vperm.slane %v6796_v2, 0  ;;  %v6813_v8 = vperm.slane %v6799_v3, 0  ;;  %v6817_v10 = vperm.slane %v6802_v4, 0  ;;  %v6820_v11 = vld [vmem:[%s6786_s12 + $0x20] sm:$0x7f]  ;;  %v444_v28 = vld [vmem:[%s12257_s2 + $0x10] sm:$0xff] }
  0x31   : > { %v6828_v15 = vld [vmem:[%s6786_s12 + $0x28] sm:$0x7f]  ;;  %v6833_v17 = vperm.slane %v6807_v6, 0  ;;  %v6837_v20 = vld [vmem:[%s6786_s12 + $0x30] sm:$0x7f]  ;;  %v6846_v25 = vperm.slane %v6820_v11, 0 }
  0x32   : > { %12699 = vst [vmem:[#allocation12_spill] sm:$0xff] %v6810_v7  ;;  %v394_v9 = vadd.f32 %v390_v5, %v6802_v4  ;;  %v389_v12 = vmul.f32 %v6810_v7, %v6796_v2  ;;  %v392_v13 = vmul.f32 %v6813_v8, %v6799_v3  ;;  %v396_v16 = vmul.f32 %v6817_v10, %v6802_v4  ;;  %v6841_v22 = vld [vmem:[%s6786_s12 + $0x38] sm:$0x7f]  ;;  %v442_v37 = vld [vmem:[%s12257_s2] sm:$0xff]  ;;  %v443_v42 = vld [vmem:[%s12257_s2 + $0x8] sm:$0xff]  ;;  %s6041_s28 = sshll.u32 %s6782_s27, 5 }
  0x33   : > { %12700 = vst [vmem:[#allocation13_spill] sm:$0xff] %v6813_v8  ;;  %v400_v24 = vmul.f32 %v6833_v17, %v6807_v6  ;;  %v404_v30 = vmul.f32 %v6846_v25, %v6820_v11  ;;  %v6856_v31 = vperm.slane %v6828_v15, 0  ;;  %v469_v33 = vld [vmem:[%s12258_s3 + $0x18] sm:$0xff]  ;;  %v6864_v36 = vperm.slane %v6837_v20, 0  ;;  %v466_v51 = vld [vmem:[%s12258_s3] sm:$0xff]  ;;  %v468_v52 = vld [vmem:[%s12258_s3 + $0x10] sm:$0xff] }
  0x34   : > { %12701 = vst [vmem:[#allocation14_spill] sm:$0xff] %v6817_v10  ;;  %v398_v14 = vadd.f32 %v394_v9, %v6807_v6  ;;  %v393_v18 = vadd.f32 %v392_v13, %v389_v12  ;;  %487 = vperm.xlu1 %6501, %v469_v33   ;;  %v6872_v40 = vperm.slane %v6841_v22, 0  ;;  %v467_v53 = vld [vmem:[%s12258_s3 + $0x8] sm:$0xff]  ;;  %482 = vperm.xlu2 %6502, %v468_v52   ;;  %v493_v0 = vld [vmem:[%s12259_s4 + $0x18] sm:$0xff]  ;;  %vm817_vm5 = vcmask 23552   ;;  %s12205_s29 = scalar_lea.vmem [#allocation5], %s6041_s28 }
  0x35   : > { %12702 = vst [vmem:[#allocation15_spill] sm:$0xff] %v6833_v17  ;;  %v408_v35 = vmul.f32 %v6856_v31, %v6828_v15  ;;  %v412_v39 = vmul.f32 %v6864_v36, %v6837_v20  ;;  %v491_v1 = vld [vmem:[%s12259_s4 + $0x8] sm:$0xff]  ;;  %vm5336_vm6 = vcmask 261120   ;;  %vm5925_vm7 = vcmask 1043456   ;;  %s6452_s23 = sshll.u32 %s6718_s17, 5  ;;  %s5960_s19 = sshll.u32 %s12205_s29, 4  ;;  %s5961_s19 = int_to_ptr.vmem [resolvable:$true] %s5960_s19 }
  0x36   : > { %v402_v19 = vadd.f32 %v398_v14, %v6820_v11  ;;  %v397_v23 = vadd.f32 %v396_v16, %v393_v18  ;;  %12703 = vst [vmem:[#allocation16_spill] sm:$0xff] %v6846_v25  ;;  %v416_v46 = vmul.f32 %v6872_v40, %v6841_v22  ;;  %s5958_s11 = scalar_lea.hbm %s12265_s10, %s6452_s23  ;;  %s5947_s17 = scalar_lea.sflag [#allocation4], %s6782_s27 }
  0x37   : > { %12704 = vst [vmem:[#allocation17_spill] sm:$0xff] %v6856_v31  ;;  %s5962_s26 = sshll.u32 %s5958_s11, 4  ;;  %s6593_s21 = scalar_lea.hbm %s12265_s10, 128  ;;  %s5963_s26 = int_to_ptr.hbm [resolvable:$true] %s5962_s26 }
  0x38   : > { %v406_v21 = vadd.f32 %v402_v19, %v6828_v15  ;;  %v401_v29 = vadd.f32 %v400_v24, %v397_v23  ;;  %458 = vperm.xlu0 %6500, %v444_v28   ;;  %12705 = vst [vmem:[#allocation18_spill] sm:$0xff] %v6864_v36  ;;  %s6587_s15 = sshra.s32 %s5963_s26, 4  ;;  %s6588_s15 = int_to_ptr.hbm [resolvable:$true] %s6587_s15 }
  0x39   : > { %12706 = vst [vmem:[#allocation19_spill] sm:$0xff] %v6872_v40  ;;  %s6589_s22 = scalar_lea.hbm %s6588_s15, 32  ;;  %p6594_p0 = scmp.lt.s32.totalorder %s6588_s15, %s12265_s10 }
  0x3a   : > { %v410_v26 = vadd.f32 %v406_v21, %v6837_v20  ;;  %v405_v34 = vadd.f32 %v404_v30, %v401_v29  ;;  %p6590_p6 = scmp.ne.s32.totalorder %s6588_s15, %s6589_s22  ;;  %p6595_p2 = scmp.lt.s32.totalorder %s6593_s21, %s6589_s22 }
  0x3c   : > { %v414_v27 = vadd.f32 %v410_v26, %v6841_v22  ;;  %v409_v38 = vadd.f32 %v408_v35, %v405_v34  ;;  %453 = vperm.xlu1 %6501, %v443_v42   ;;  %511 = vperm.xlu2 %6502, %v493_v0   ;;  %v6984_v34 = vld [vmem:[%s12256_s1 + $0x8] sm:$0xff]  ;;  %v7024_v42 = vld [vmem:[%s12256_s1 + $0x18] sm:$0xff]  ;;  %p6591_p12 = pnand %p6590_p6, %p6746_p10  ;;  %p6596_p3 = por %p6595_p2, %p6594_p0 }
  0x3d   : > { %12718 = vst [vmem:[#allocation31_spill] sm:$0xff] %v7024_v42 }
  0x3e   : > { %v418_v32 = vperm.slane %v414_v27, 0  ;;  %v413_v45 = vadd.f32 %v412_v39, %v409_v38  ;;  %v6955_v27 = vld [vmem:[%s12256_s1] sm:$0xff]  ;;  %v7009_v39 = vld [vmem:[%s12256_s1 + $0x10] sm:$0xff]  ;;  %p6592_p13 = pneg %p6591_p12 }
  0x3f   : > { %12715 = vst [vmem:[#allocation28_spill] sm:$0xff] %v6955_v27  ;;  %v490_v38 = vld [vmem:[%s12259_s4] sm:$0xff] }
  0x40   : > { %6503 = vrcp.f32 %v418_v32  ;;  %448 = vperm.xlu0 %6500, %v442_v37   ;;  %vm424_vm0 = vweird.f32 %v418_v32  ;;  %v430_v44 = vand.u32 2147483648, %v418_v32  ;;  %v428_v48 = vand.u32 2147483647, %v418_v32  ;;  %12717 = vst [vmem:[#allocation30_spill] sm:$0xff] %v7009_v39  ;;  %p6597_p4 = pnand %p6596_p3, %p6592_p13 }
  0x41   : > { %v417_v54 = vadd.f32 %v416_v46, %v413_v45 }
  0x42   : > { %v431_v50 = vor.u32 1.1754944e-38, %v430_v44  ;;  %vm429_vm3 = vcmp.eq.f32.partialorder %v428_v48, 8.507059e+37 }
  0x44   : > { %477 = vperm.xlu1 %6501, %v467_v53  }
  0x46   : > { %v6504_v41 = vpop.eup %6503 }
  0x47   : > { %v420_v43 = vmul.f32 %v6504_v41, %v418_v32  ;;  %vm425_vm1 = vweird.f32 %v6504_v41  ;;  %v492_v32 = vld [vmem:[%s12259_s4 + $0x10] sm:$0xff] }
  0x48   : > { %vm426_vm2 = vmor %vm424_vm0, %vm425_vm1  ;;  %472 = vperm.xlu0 %6500, %v466_v51   ;;  %506 = vperm.xlu2 %6502, %v492_v32  }
  0x49   : > { %v421_v47 = vsub.f32 1.0, %v420_v43 }
  0x4b   : > { %v422_v49 = vmul.f32 %v6504_v41, %v421_v47 }
  0x4c   : > { %501 = vperm.xlu1 %6501, %v491_v1  }
  0x4d   : > { %v423_v55 = vadd.f32 %v6504_v41, %v422_v49 }
  0x4f   : > { %v427_v56 = vsel %vm426_vm2, %v6504_v41, %v423_v55 }
  0x50   : > { %v432_v57 = vsel %vm429_vm3, %v431_v50, %v427_v56  ;;  %496 = vperm.xlu2 %6502, %v490_v38  }
  0x51   : > { %v6888_v58 = vmul.f32 %v432_v57, %v417_v54 }
  0x53   : > { %12707 = vst [vmem:[#allocation20_spill] sm:$0xff] %v6888_v58  ;;  %v6892_v59 = vsub.f32 %v6796_v2, %v6888_v58  ;;  %v6896_v60 = vsub.f32 %v6799_v3, %v6888_v58  ;;  %v6900_v61 = vsub.f32 %v6802_v4, %v6888_v58  ;;  %v6904_v62 = vsub.f32 %v6807_v6, %v6888_v58 }
  0x54   : > { %v6908_v63 = vsub.f32 %v6841_v22, %v6888_v58  ;;  %v6918_v5 = vsub.f32 %v6837_v20, %v6888_v58  ;;  %v6948_v23 = vsub.f32 %v6820_v11, %v6888_v58  ;;  %v6988_v35 = vsub.f32 %v6828_v15, %v6888_v58 }
  0x55   : > { %12708 = vst [vmem:[#allocation21_spill] sm:$0xff] %v6892_v59  ;;  %v6922_v9 = vsub.f32 %v6892_v59, %v6892_v59  ;;  %v6926_v12 = vsub.f32 %v6896_v60, %v6892_v59  ;;  %v6930_v13 = vsub.f32 %v6900_v61, %v6892_v59  ;;  %v6934_v14 = vsub.f32 %v6904_v62, %v6892_v59 }
  0x56   : > { %12709 = vst [vmem:[#allocation22_spill] sm:$0xff] %v6896_v60  ;;  %v6938_v16 = vsub.f32 %v6908_v63, %v6892_v59  ;;  %v6942_v18 = vsub.f32 %v6918_v5, %v6892_v59  ;;  %v6969_v30 = vsub.f32 %v6948_v23, %v6892_v59  ;;  %v7001_v37 = vsub.f32 %v6988_v35, %v6892_v59 }
  0x57   : > { %12710 = vst [vmem:[#allocation23_spill] sm:$0xff] %v6900_v61  ;;  %v809_v19 = vrot.slane %v6922_v9, 1  ;;  %v810_v21 = vrot.slane %v6926_v12, 1  ;;  %v811_v24 = vrot.slane %v6930_v13, 1  ;;  %v812_v26 = vrot.slane %v6934_v14, 1 }
  0x58   : > { %12711 = vst [vmem:[#allocation24_spill] sm:$0xff] %v6904_v62  ;;  %v816_v28 = vrot.slane %v6938_v16, 1  ;;  %v815_v29 = vrot.slane %v6942_v18, 1  ;;  %v813_v33 = vrot.slane %v6969_v30, 1  ;;  %v814_v41 = vrot.slane %v7001_v37, 1 }
  0x59   : > { %12712 = vst [vmem:[#allocation25_spill] sm:$0xff] %v6908_v63  ;;  %6042 = vmatpush.msk.msra.mxu0 %vm709_vm4, %v809_v19  ;;  %6047 = vmatpush.msk.msra.mxu1 %vm709_vm4, %v810_v21  ;;  %v7036_v43 = vsub.f32 %v6904_v62, %v6896_v60  ;;  %v7040_v44 = vsub.f32 %v6900_v61, %v6896_v60 }
  0x5a   : > { %12713 = vst [vmem:[#allocation26_spill] sm:$0xff] %v6918_v5  ;;  %6052 = vmatpush.msk.msra.mxu2 %vm709_vm4, %v811_v24  ;;  %6057 = vmatpush.msk.msra.mxu3 %vm709_vm4, %v812_v26  ;;  %v7044_v45 = vsub.f32 %v6892_v59, %v6896_v60  ;;  %v7048_v46 = vsub.f32 %v6896_v60, %v6896_v60 }
  0x5b   : > { %12714 = vst [vmem:[#allocation27_spill] sm:$0xff] %v6948_v23  ;;  %6043 = vmatmul.msk.f32.vlgmr.msra.gmra.mxu0 %vm817_vm5, %v6955_v27  ;;  %6048 = vmatmul.msk.f32.vlgmr.msra.gmra.mxu1 %vm817_vm5, %v6955_v27  ;;  %v1381_v47 = vrot.slane %v7036_v43, 1  ;;  %v1380_v48 = vrot.slane %v7040_v44, 1  ;;  %v7092_v51 = vsub.f32 %v6908_v63, %v6896_v60  ;;  %v7096_v52 = vsub.f32 %v6918_v5, %v6896_v60 }
  0x5c   : > { %6053 = vmatmul.msk.f32.vlgmr.msra.gmra.mxu2 %vm817_vm5, %v6955_v27  ;;  %6058 = vmatmul.msk.f32.vlgmr.msra.gmra.mxu3 %vm817_vm5, %v6955_v27  ;;  %12716 = vst [vmem:[#allocation29_spill] sm:$0xff] %v6988_v35  ;;  %v1378_v49 = vrot.slane %v7044_v45, 1  ;;  %v1379_v50 = vrot.slane %v7048_v46, 1  ;;  %v7100_v53 = vsub.f32 %v6948_v23, %v6896_v60  ;;  %v7104_v54 = vsub.f32 %v6988_v35, %v6896_v60 }
  0x5d   : > { %6077 = vmatpush.msk.msrb.mxu3 %vm709_vm4, %v816_v28  ;;  %6072 = vmatpush.msk.msrb.mxu2 %vm709_vm4, %v815_v29  ;;  %v1385_v55 = vrot.slane %v7092_v51, 1  ;;  %v1384_v56 = vrot.slane %v7096_v52, 1  ;;  %v677_v1 = vmul.f32 %v6922_v9, %v6922_v9  ;;  %v678_v19 = vmul.f32 %v6926_v12, %v6926_v12 }
  0x5e   : > { %6062 = vmatpush.msk.msrb.mxu0 %vm709_vm4, %v813_v33  ;;  %6067 = vmatpush.msk.msrb.mxu1 %vm709_vm4, %v814_v41  ;;  %v1382_v57 = vrot.slane %v7100_v53, 1  ;;  %v1383_v0 = vrot.slane %v7104_v54, 1  ;;  %v679_v21 = vmul.f32 %v6930_v13, %v6930_v13  ;;  %v680_v24 = vmul.f32 %v6934_v14, %v6934_v14 }
  0x5f   : > { %6097 = vmatpush.msk.msra.mxu3 %vm709_vm4, %v1381_v47  ;;  %6092 = vmatpush.msk.msra.mxu2 %vm709_vm4, %v1380_v48  ;;  %v693_v26 = vrot.slane %v677_v1, 1  ;;  %v694_v28 = vrot.slane %v678_v19, 1  ;;  %v684_v9 = vmul.f32 %v6938_v16, %v6938_v16  ;;  %v683_v32 = vmul.f32 %v6942_v18, %v6942_v18 }
  0x60   : > { %6082 = vmatpush.msk.msra.mxu0 %vm709_vm4, %v1378_v49  ;;  %6087 = vmatpush.msk.msra.mxu1 %vm709_vm4, %v1379_v50  ;;  %v695_v12 = vrot.slane %v679_v21, 1  ;;  %v696_v13 = vrot.slane %v680_v24, 1  ;;  %v681_v33 = vmul.f32 %v6969_v30, %v6969_v30  ;;  %v682_v38 = vmul.f32 %v7001_v37, %v7001_v37 }
  0x61   : > { %v710_v14 = vsel %vm709_vm4, %v693_v26, 0.0  ;;  %v717_v29 = vsel %vm709_vm4, %v694_v28, 0.0  ;;  %v700_v41 = vrot.slane %v684_v9, 1  ;;  %v699_v18 = vrot.slane %v683_v32, 1 }
  0x62   : > { %v711_v47 = vrot.slane %v710_v14, 4  ;;  %v718_v48 = vrot.slane %v717_v29, 4  ;;  %v724_v16 = vsel %vm709_vm4, %v695_v12, 0.0  ;;  %v731_v49 = vsel %vm709_vm4, %v696_v13, 0.0 }
  0x63   : > { %6044 = vmatmul.msk.f32.gmra.mxu0 %vm817_vm5, %v6984_v34  ;;  %6049 = vmatmul.msk.f32.gmra.mxu1 %vm817_vm5, %v6984_v34  ;;  %v697_v30 = vrot.slane %v681_v33, 1  ;;  %v698_v37 = vrot.slane %v682_v38, 1  ;;  %v725_v50 = vrot.slane %v724_v16, 4  ;;  %v752_v1 = vsel %vm709_vm4, %v699_v18, 0.0 }
  0x64   : > { %6054 = vmatmul.msk.f32.gmra.mxu2 %vm817_vm5, %v6984_v34  ;;  %6059 = vmatmul.msk.f32.gmra.mxu3 %vm817_vm5, %v6984_v34  ;;  %v753_v32 = vrot.slane %v752_v1, 4  ;;  %v1797_v33 = vsub.f32 %v6904_v62, %v6900_v61  ;;  %v7176_v38 = vsub.f32 %v6900_v61, %v6900_v61 }
  0x65   : > { %v738_v24 = vsel %vm709_vm4, %v697_v30, 0.0  ;;  %v745_v26 = vsel %vm709_vm4, %v698_v37, 0.0  ;;  %v726_v28 = vadd.f32 %v725_v50, %v724_v16  ;;  %v7183_v50 = vsub.f32 %v6892_v59, %v6900_v61 }
  0x66   : > { %v1930_v18 = vrot.slane %v7176_v38, 1  ;;  %v754_v37 = vadd.f32 %v753_v32, %v752_v1 }
  0x67   : > { %v1928_v1 = vrot.slane %v7183_v50, 1 }
  0x6b   : > { %6045 = vmatmul.msk.f32.gmra.mxu0 %vm817_vm5, %v7009_v39  ;;  %6050 = vmatmul.msk.f32.gmra.mxu1 %vm817_vm5, %v7009_v39 }
  0x6c   : > { %6055 = vmatmul.msk.f32.gmra.mxu2 %vm817_vm5, %v7009_v39  ;;  %6060 = vmatmul.msk.f32.gmra.mxu3 %vm817_vm5, %v7009_v39 }
  0x73   : > { %6046 = vmatmul.msk.f32.gmra.mxu0 %vm817_vm5, %v7024_v42  ;;  %6051 = vmatmul.msk.f32.gmra.mxu1 %vm817_vm5, %v7024_v42 }
  0x74   : > { %6056 = vmatmul.msk.f32.gmra.mxu2 %vm817_vm5, %v7024_v42  ;;  %6061 = vmatmul.msk.f32.gmra.mxu3 %vm817_vm5, %v7024_v42 }
  0x7b   : > { %6063 = vmatmul.msk.f32.vlgmr.msrb.gmra.mxu0 %vm817_vm5, %v6955_v27  ;;  %6068 = vmatmul.msk.f32.vlgmr.msrb.gmra.mxu1 %vm817_vm5, %v6955_v27 }
  0x7c   : > { %6073 = vmatmul.msk.f32.vlgmr.msrb.gmra.mxu2 %vm817_vm5, %v6955_v27  ;;  %6078 = vmatmul.msk.f32.vlgmr.msrb.gmra.mxu3 %vm817_vm5, %v6955_v27 }
  0x7d   : > { %6117 = vmatpush.msk.msrb.mxu3 %vm709_vm4, %v1385_v55  ;;  %6112 = vmatpush.msk.msrb.mxu2 %vm709_vm4, %v1384_v56  ;;  %v732_v55 = vrot.slane %v731_v49, 4  ;;  %v759_v56 = vsel %vm709_vm4, %v700_v41, 0.0 }
  0x7e   : > { %6102 = vmatpush.msk.msrb.mxu0 %vm709_vm4, %v1382_v57  ;;  %6107 = vmatpush.msk.msrb.mxu1 %vm709_vm4, %v1383_v0  ;;  %v712_v57 = vadd.f32 %v711_v47, %v710_v14  ;;  %v719_v0 = vadd.f32 %v718_v48, %v717_v29  ;;  %v760_v21 = vrot.slane %v759_v56, 4  ;;  %v739_v14 = vrot.slane %v738_v24, 4 }
  0x7f   : > { %v733_v9 = vadd.f32 %v732_v55, %v731_v49  ;;  %v746_v29 = vrot.slane %v745_v26, 4  ;;  %v727_v48 = vrot.slane %v726_v28, 2  ;;  %v1931_v49 = vrot.slane %v1797_v33, 1 }
  0x80   : > { %v713_v12 = vrot.slane %v712_v57, 2  ;;  %v720_v13 = vrot.slane %v719_v0, 2  ;;  %v761_v41 = vadd.f32 %v760_v21, %v759_v56  ;;  %v7187_v55 = vsub.f32 %v6896_v60, %v6900_v61 }
  0x81   : > { %v734_v16 = vrot.slane %v733_v9, 2  ;;  %v740_v40 = vadd.f32 %v739_v14, %v738_v24  ;;  %v747_v56 = vadd.f32 %v746_v29, %v745_v26  ;;  %v728_v31 = vadd.f32 %v727_v48, %v726_v28 }
  0x82   : > { %v714_v30 = vadd.f32 %v713_v12, %v712_v57  ;;  %v721_v58 = vadd.f32 %v720_v13, %v719_v0  ;;  %v762_v21 = vrot.slane %v761_v41, 2  ;;  %v1255_v57 = vmul.f32 %v7036_v43, %v7036_v43 }
  0x83   : > { %6064 = vmatmul.msk.f32.gmra.mxu0 %vm817_vm5, %v6984_v34  ;;  %6069 = vmatmul.msk.f32.gmra.mxu1 %vm817_vm5, %v6984_v34  ;;  %v1929_v32 = vrot.slane %v7187_v55, 1  ;;  %v735_v25 = vadd.f32 %v734_v16, %v733_v9  ;;  %v755_v0 = vrot.slane %v754_v37, 2  ;;  %v741_v43 = vrot.slane %v740_v40, 2 }
  0x84   : > { %6074 = vmatmul.msk.f32.gmra.mxu2 %vm817_vm5, %v6984_v34  ;;  %6079 = vmatmul.msk.f32.gmra.mxu3 %vm817_vm5, %v6984_v34  ;;  %v715_v36 = vrot.slane %v714_v30, 1  ;;  %v722_v26 = vrot.slane %v721_v58, 1  ;;  %v748_v13 = vrot.slane %v747_v56, 2  ;;  %v1254_v14 = vmul.f32 %v7040_v44, %v7040_v44 }
  0x85   : > { %v7209_v28 = vadd.f32 %v762_v21, %v761_v41  ;;  %v1271_v9 = vrot.slane %v1255_v57, 1  ;;  %v1252_v29 = vmul.f32 %v7044_v45, %v7044_v45  ;;  %v729_v16 = vrot.slane %v728_v31, 1 }
  0x86   : > { %v7215_v48 = vadd.f32 %v715_v36, %v714_v30  ;;  %v736_v44 = vrot.slane %v735_v25, 1  ;;  %v7221_v17 = vadd.f32 %v722_v26, %v721_v58  ;;  %v7223_v41 = vadd.f32 %v741_v43, %v740_v40 }
  0x87   : > { %v7225_v21 = vadd.f32 %v748_v13, %v747_v56  ;;  %v1270_v57 = vrot.slane %v1254_v14, 1  ;;  %v1268_v36 = vrot.slane %v1252_v29, 1  ;;  %v1253_v30 = vmul.f32 %v7048_v46, %v7048_v46 }
  0x88   : > { %v1258_v58 = vmul.f32 %v7096_v52, %v7096_v52  ;;  %v1256_v40 = vmul.f32 %v7100_v53, %v7100_v53  ;;  %v1257_v56 = vmul.f32 %v7104_v54, %v7104_v54  ;;  %v1810_v46 = vmul.f32 %v1797_v33, %v1797_v33 }
  0x89   : > { %v7253_v53 = vsel %vm709_vm4, %v1270_v57, 0.0  ;;  %v7265_v33 = vsel %vm709_vm4, %v1268_v36, 0.0  ;;  %v1269_v43 = vrot.slane %v1253_v30, 1  ;;  %v518_v14 = vmul.f32 %v6796_v2, %v6796_v2 }
  0x8a   : > { %12724 = vst [vmem:[#allocation37_spill] sm:$0xff] %v7253_v53  ;;  %v1274_v29 = vrot.slane %v1258_v58, 1  ;;  %v1826_v45 = vrot.slane %v1810_v46, 1  ;;  %v1807_v36 = vmul.f32 %v7183_v50, %v7183_v50  ;;  %v1808_v30 = vmul.f32 %v7187_v55, %v7187_v55 }
  0x8b   : > { %6065 = vmatmul.msk.f32.gmra.mxu0 %vm817_vm5, %v7009_v39  ;;  %6070 = vmatmul.msk.f32.gmra.mxu1 %vm817_vm5, %v7009_v39  ;;  %12726 = vst [vmem:[#allocation39_spill] sm:$0xff] %v7265_v33  ;;  %v671_v26 = vmul.f32 %v6802_v4, %v6796_v2  ;;  %v7288_v46 = vperm.slane %v518_v14, 0  ;;  %v672_v50 = vmul.f32 %v6807_v6, %v6796_v2 }
  0x8c   : > { %6075 = vmatmul.msk.f32.gmra.mxu2 %vm817_vm5, %v7009_v39  ;;  %6080 = vmatmul.msk.f32.gmra.mxu3 %vm817_vm5, %v7009_v39  ;;  %v7296_v4 = vsel %vm709_vm4, %v1274_v29, 0.0  ;;  %v7309_v6 = vsel %vm709_vm4, %v1826_v45, 0.0  ;;  %v1823_v14 = vrot.slane %v1807_v36, 1  ;;  %v1801_v33 = vsub.f32 %v6908_v63, %v6900_v61 }
  0x8d   : > { %12731 = vst [vmem:[#allocation44_spill] sm:$0xff] %v7296_v4  ;;  %v768_v57 = vperm.slane %v672_v50, 0 }
  0x8e   : > { %v7178_v47 = vpop.permute.xlu2 %482  ;;  %12734 = vst [vmem:[#allocation47_spill] sm:$0xff] %v7309_v6  ;;  %v7348_v52 = vsel %vm709_vm4, %v1823_v14, 0.0 }
  0x8f   : > { %12719 = vst [vmem:[#allocation32_spill] sm:$0xff] %v7178_v47 }
  0x90   : > { %12738 = vst [vmem:[#allocation51_spill] sm:$0xff] %v7348_v52  ;;  %v7419_v52 = vmul.f32 %v7215_v48, %v7178_v47 }
  0x93   : > { %6066 = vmatmul.msk.f32.gmra.mxu0 %vm817_vm5, %v7024_v42  ;;  %6071 = vmatmul.msk.f32.gmra.mxu1 %vm817_vm5, %v7024_v42 }
  0x94   : > { %6076 = vmatmul.msk.f32.gmra.mxu2 %vm817_vm5, %v7024_v42  ;;  %6081 = vmatmul.msk.f32.gmra.mxu3 %vm817_vm5, %v7024_v42 }
  0x9b   : > { %6083 = vmatmul.msk.f32.vlgmr.msra.gmra.mxu0 %vm817_vm5, %v6955_v27  ;;  %6088 = vmatmul.msk.f32.vlgmr.msra.gmra.mxu1 %vm817_vm5, %v6955_v27 }
  0x9c   : > { %6093 = vmatmul.msk.f32.vlgmr.msra.gmra.mxu2 %vm817_vm5, %v6955_v27  ;;  %6098 = vmatmul.msk.f32.vlgmr.msra.gmra.mxu3 %vm817_vm5, %v6955_v27 }
  0x9d   : > { %6137 = vmatpush.msk.msra.mxu3 %vm709_vm4, %v1931_v49  ;;  %6132 = vmatpush.msk.msra.mxu2 %vm709_vm4, %v1930_v18  ;;  %v7217_v49 = vadd.f32 %v755_v0, %v754_v37  ;;  %v7219_v18 = vpop.permute.xlu2 %511  ;;  %v1259_v37 = vmul.f32 %v7092_v51, %v7092_v51  ;;  %v7243_v0 = vadd.f32 %v736_v44, %v735_v25  ;;  %v1273_v44 = vrot.slane %v1257_v56, 1 }
  0x9e   : > { %6122 = vmatpush.msk.msra.mxu0 %vm709_vm4, %v1928_v1  ;;  %6127 = vmatpush.msk.msra.mxu1 %vm709_vm4, %v1929_v32  ;;  %12722 = vst [vmem:[#allocation35_spill] sm:$0xff] %v7219_v18  ;;  %v7229_v1 = vsel %vm709_vm4, %v1271_v9, 0.0  ;;  %v7241_v32 = vadd.f32 %v729_v16, %v728_v31  ;;  %v1809_v31 = vmul.f32 %v7176_v38, %v7176_v38  ;;  %v1272_v16 = vrot.slane %v1256_v40, 1 }
  0x9f   : > { %12723 = vst [vmem:[#allocation36_spill] sm:$0xff] %v7229_v1  ;;  %v1275_v9 = vrot.slane %v1259_v37, 1  ;;  %v670_v38 = vmul.f32 %v6799_v3, %v6796_v2  ;;  %v519_v37 = vmul.f32 %v6799_v3, %v6799_v3  ;;  %v7284_v40 = vsel %vm709_vm4, %v1269_v43, 0.0 }
  0xa0   : > { %v1825_v54 = vrot.slane %v1809_v31, 1  ;;  %12728 = vst [vmem:[#allocation41_spill] sm:$0xff] %v7284_v40  ;;  %v7299_v3 = vsel %vm709_vm4, %v1272_v16, 0.0  ;;  %v7302_v31 = vsel %vm709_vm4, %v1273_v44, 0.0  ;;  %v1824_v16 = vrot.slane %v1808_v30, 1 }
  0xa1   : > { %v7293_v55 = vsel %vm709_vm4, %v1275_v9, 0.0  ;;  %12732 = vst [vmem:[#allocation45_spill] sm:$0xff] %v7299_v3  ;;  %v7311_v43 = vperm.slane %v670_v38, 0  ;;  %v7324_v44 = vperm.slane %v671_v26, 0  ;;  %v7326_v45 = vperm.slane %v519_v37, 0 }
  0xa2   : > { %v7160_v19 = vpop.permute.xlu0 %463  ;;  %12730 = vst [vmem:[#allocation43_spill] sm:$0xff] %v7293_v55  ;;  %v7322_v29 = vsel %vm709_vm4, %v1825_v54, 0.0  ;;  %v7353_v54 = vsel %vm709_vm4, %v1824_v16, 0.0 }
  0xa3   : > { %6084 = vmatmul.msk.f32.gmra.mxu0 %vm817_vm5, %v6984_v34  ;;  %6089 = vmatmul.msk.f32.gmra.mxu1 %vm817_vm5, %v6984_v34  ;;  %12733 = vst [vmem:[#allocation46_spill] sm:$0xff] %v7302_v31 }
  0xa4   : > { %6094 = vmatmul.msk.f32.gmra.mxu2 %vm817_vm5, %v6984_v34  ;;  %6099 = vmatmul.msk.f32.gmra.mxu3 %vm817_vm5, %v6984_v34  ;;  %12735 = vst [vmem:[#allocation48_spill] sm:$0xff] %v7322_v29 }
  0xa5   : > { %v7286_v56 = vpop.permute.xlu2 %506  ;;  %12736 = vst [vmem:[#allocation49_spill] sm:$0xff] %v7326_v45 }
  0xa6   : > { %v7201_v24 = vpop.permute.xlu1 %487  ;;  %12729 = vst [vmem:[#allocation42_spill] sm:$0xff] %v7286_v56 }
  0xa7   : > { %12721 = vst [vmem:[#allocation34_spill] sm:$0xff] %v7201_v24 }
  0xa8   : > { %12740 = vst [vmem:[#allocation53_spill] sm:$0xff] %v7353_v54 }
  0xaa   : > { %v7194_v12 = vpop.permute.xlu0 %458 }
  0xab   : > { %6085 = vmatmul.msk.f32.gmra.mxu0 %vm817_vm5, %v7009_v39  ;;  %6090 = vmatmul.msk.f32.gmra.mxu1 %vm817_vm5, %v7009_v39  ;;  %12720 = vst [vmem:[#allocation33_spill] sm:$0xff] %v7194_v12  ;;  %v7315_v9 = vmul.f32 %v7288_v46, %v7194_v12  ;;  %v7430_v62 = vmul.f32 %v768_v57, %v7194_v12 }
  0xac   : > { %6095 = vmatmul.msk.f32.gmra.mxu2 %vm817_vm5, %v7009_v39  ;;  %6100 = vmatmul.msk.f32.gmra.mxu3 %vm817_vm5, %v7009_v39  ;;  %v7440_v54 = vmul.f32 %v7324_v44, %v7194_v12 }
  0xad   : > { %v582_v58 = vadd.f32 %v7315_v9, %v7286_v56  ;;  %v7399_v4 = vpop.permute.xlu2 %496  ;;  %12748 = vst [vmem:[#allocation61_spill] sm:$0xff] %v7430_v62  ;;  %v1798_v62 = vsub.f32 %v6948_v23, %v6900_v61  ;;  %v7466_v56 = vmul.f32 %v7311_v43, %v7194_v12  ;;  %v7482_v23 = vmul.f32 %v7215_v48, %v7201_v24 }
  0xae   : > { %v7267_v13 = vpop.permute.xlu1 %453  ;;  %12749 = vst [vmem:[#allocation62_spill] sm:$0xff] %v7440_v54 }
  0xaf   : > { %12727 = vst [vmem:[#allocation40_spill] sm:$0xff] %v7267_v13  ;;  %v7376_v16 = vmul.f32 %v7288_v46, %v7267_v13  ;;  %v614_v8 = vmax.f32 %v582_v58, 0.0  ;;  %v7384_v6 = vmul.f32 %v7311_v43, %v7267_v13  ;;  %v7392_v55 = vmul.f32 %v7324_v44, %v7267_v13 }
  0xb0   : > { %v7406_v3 = vmul.f32 %v768_v57, %v7267_v13  ;;  %12752 = vst [vmem:[#allocation65_spill] sm:$0xff] %v7466_v56 }
  0xb1   : > { %12744 = vst [vmem:[#allocation57_spill] sm:$0xff] %v7384_v6  ;;  %v7427_v59 = vsub.f32 0.0, %v614_v8  ;;  %v7448_v8 = vmul.f32 %v7288_v46, %v7160_v19 }
  0xb2   : > { %v7259_v25 = vpop.permute.xlu0 %448  ;;  %12745 = vst [vmem:[#allocation58_spill] sm:$0xff] %v7392_v55 }
  0xb3   : > { %6086 = vmatmul.msk.f32.gmra.mxu0 %vm817_vm5, %v7024_v42  ;;  %6091 = vmatmul.msk.f32.gmra.mxu1 %vm817_vm5, %v7024_v42  ;;  %12725 = vst [vmem:[#allocation38_spill] sm:$0xff] %v7259_v25  ;;  %v7337_v26 = vmul.f32 %v7288_v46, %v7259_v25  ;;  %v7345_v50 = vmul.f32 %v7311_v43, %v7259_v25 }
  0xb4   : > { %6096 = vmatmul.msk.f32.gmra.mxu2 %vm817_vm5, %v7024_v42  ;;  %6101 = vmatmul.msk.f32.gmra.mxu3 %vm817_vm5, %v7024_v42  ;;  %v7357_v38 = vmul.f32 %v7324_v44, %v7259_v25  ;;  %v7365_v36 = vmul.f32 %v7326_v45, %v7259_v25  ;;  %v7368_v14 = vmul.f32 %v768_v57, %v7259_v25 }
  0xb5   : > { %12737 = vst [vmem:[#allocation50_spill] sm:$0xff] %v7345_v50  ;;  %v566_v40 = vadd.f32 %v7337_v26, %v7399_v4 }
  0xb6   : > { %v7350_v51 = vpop.permute.xlu1 %477  ;;  %12741 = vst [vmem:[#allocation54_spill] sm:$0xff] %v7357_v38  ;;  %v567_v53 = vadd.f32 %v7365_v36, %v7399_v4 }
  0xb7   : > { %12739 = vst [vmem:[#allocation52_spill] sm:$0xff] %v7350_v51  ;;  %v7380_v7 = vmul.f32 %v7215_v48, %v7350_v51  ;;  %v7388_v29 = vmul.f32 %v7221_v17, %v7350_v51  ;;  %v7403_v31 = vmul.f32 %v7241_v32, %v7350_v51  ;;  %v7410_v1 = vmul.f32 %v7243_v0, %v7350_v51 }
  0xb8   : > { %12742 = vst [vmem:[#allocation55_spill] sm:$0xff] %v7365_v36  ;;  %v7444_v36 = vmul.f32 %v7243_v0, %v7178_v47  ;;  %v599_v63 = vmax.f32 %v567_v53, 0.0  ;;  %v598_v12 = vmax.f32 %v566_v40, 0.0 }
  0xb9   : > { %12743 = vst [vmem:[#allocation56_spill] sm:$0xff] %v7368_v14 }
  0xba   : > { %v7339_v30 = vpop.permute.xlu0 %472  ;;  %12746 = vst [vmem:[#allocation59_spill] sm:$0xff] %v7406_v3 }
  0xbb   : > { %6103 = vmatmul.msk.f32.vlgmr.msrb.gmra.mxu0 %vm817_vm5, %v6955_v27  ;;  %6108 = vmatmul.msk.f32.vlgmr.msrb.gmra.mxu1 %vm817_vm5, %v6955_v27  ;;  %v7361_v37 = vmul.f32 %v7241_v32, %v7339_v30  ;;  %v7372_v10 = vmul.f32 %v7243_v0, %v7339_v30  ;;  %v7425_v60 = vmul.f32 %v7221_v17, %v7339_v30 }
  0xbc   : > { %6113 = vmatmul.msk.f32.vlgmr.msrb.gmra.mxu2 %vm817_vm5, %v6955_v27  ;;  %6118 = vmatmul.msk.f32.vlgmr.msrb.gmra.mxu3 %vm817_vm5, %v6955_v27  ;;  %12747 = vst [vmem:[#allocation60_spill] sm:$0xff] %v7427_v59  ;;  %v7436_v58 = vmul.f32 %v7215_v48, %v7339_v30  ;;  %v7452_v59 = vmul.f32 %v7326_v45, %v7267_v13 }
  0xbd   : > { %12750 = vst [vmem:[#allocation63_spill] sm:$0xff] %v7444_v36  ;;  %v7462_v36 = vsub.f32 %v6988_v35, %v6900_v61  ;;  %v7470_v45 = vmul.f32 %v7221_v17, %v7178_v47  ;;  %v7478_v35 = vmul.f32 %v7241_v32, %v7178_v47  ;;  %v1814_v13 = vmul.f32 %v1801_v33, %v1801_v33 }
  0xbe   : > { %12751 = vst [vmem:[#allocation64_spill] sm:$0xff] %v7452_v59  ;;  %v7474_v51 = vpop.permute.xlu1 %501 }
  0xbf   : > { %v7493_v53 = vadd.f32 %v7452_v59, %v7474_v51  ;;  %v1933_v40 = vrot.slane %v7462_v36, 1  ;;  %v7509_v59 = vsub.f32 0.0, %v599_v63  ;;  %v7528_v63 = vmul.f32 %v7241_v32, %v7201_v24 }
  0xc0   : > { %v675_v32 = vmul.f32 %v6837_v20, %v6796_v2 }
  0xc1   : > { %6147 = vmatpush.msk.msrb.mxu1 %vm709_vm4, %v1933_v40 }
  0xc3   : > { %6104 = vmatmul.msk.f32.gmra.mxu0 %vm817_vm5, %v6984_v34  ;;  %6109 = vmatmul.msk.f32.gmra.mxu1 %vm817_vm5, %v6984_v34 }
  0xc4   : > { %6114 = vmatmul.msk.f32.gmra.mxu2 %vm817_vm5, %v6984_v34  ;;  %6119 = vmatmul.msk.f32.gmra.mxu3 %vm817_vm5, %v6984_v34 }
  0xcb   : > { %6105 = vmatmul.msk.f32.gmra.mxu0 %vm817_vm5, %v7009_v39  ;;  %6110 = vmatmul.msk.f32.gmra.mxu1 %vm817_vm5, %v7009_v39 }
  0xcc   : > { %6115 = vmatmul.msk.f32.gmra.mxu2 %vm817_vm5, %v7009_v39  ;;  %6120 = vmatmul.msk.f32.gmra.mxu3 %vm817_vm5, %v7009_v39  ;;  %v1935_v39 = vrot.slane %v1801_v33, 1 }
  0xce   : > { %6157 = vmatpush.msk.msrb.mxu3 %vm709_vm4, %v1935_v39  ;;  %v674_v39 = vmul.f32 %v6828_v15, %v6796_v2  ;;  %v12758_v15 = vrot.slane %v7223_v41, 1 }
  0xd3   : > { %6106 = vmatmul.msk.f32.gmra.mxu0 %vm817_vm5, %v7024_v42  ;;  %6111 = vmatmul.msk.f32.gmra.mxu1 %vm817_vm5, %v7024_v42 }
  0xd4   : > { %6116 = vmatmul.msk.f32.gmra.mxu2 %vm817_vm5, %v7024_v42  ;;  %6121 = vmatmul.msk.f32.gmra.mxu3 %vm817_vm5, %v7024_v42  ;;  %v1800_v42 = vsub.f32 %v6918_v5, %v6900_v61  ;;  %v590_v5 = vadd.f32 %v7448_v8, %v7219_v18  ;;  %v7485_v61 = vmul.f32 %v768_v57, %v7160_v19 }
  0xd5   : > { %v7489_v18 = vmul.f32 %v7324_v44, %v7160_v19  ;;  %v7507_v44 = vmul.f32 %v7243_v0, %v7201_v24 }
  0xd6   : > { %12753 = vst [vmem:[#allocation66_spill] sm:$0xff] %v7485_v61  ;;  %v622_v48 = vmax.f32 %v590_v5, 0.0  ;;  %v1934_v57 = vrot.slane %v1800_v42, 1  ;;  %v1932_v61 = vrot.slane %v1798_v62, 1  ;;  %v7513_v5 = vadd.f32 %v7376_v16, %v7474_v51 }
  0xd7   : > { %12754 = vst [vmem:[#allocation67_spill] sm:$0xff] %v7489_v18  ;;  %v1813_v0 = vmul.f32 %v1800_v42, %v1800_v42  ;;  %v676_v42 = vmul.f32 %v6841_v22, %v6796_v2 }
  0xd8   : > { %v863_v54 = vpop.f32.mrf.mxu0  ;;  %v892_v46 = vpop.f32.mrf.mxu1  ;;  %6152 = vmatpush.msk.msrb.mxu2 %vm709_vm4, %v1934_v57  ;;  %6142 = vmatpush.msk.msrb.mxu0 %vm709_vm4, %v1932_v61 }
  0xd9   : > { %v864_v33 = vadd.f32 %v863_v54, %v7337_v26  ;;  %v893_v18 = vadd.f32 %v892_v46, %v7345_v50  ;;  %v7518_v54 = vmul.f32 %v7311_v43, %v7160_v19  ;;  %v7522_v26 = vmul.f32 %v7221_v17, %v7201_v24 }
  0xda   : > { %v673_v46 = vmul.f32 %v6820_v11, %v6796_v2  ;;  %v7534_v43 = vsub.f32 0.0, %v598_v12  ;;  %v7536_v50 = vsub.f32 0.0, %v622_v48  ;;  %v1829_v40 = vrot.slane %v1813_v0, 1 }
  0xdb   : > { %6123 = vmatmul.msk.f32.vlgmr.msra.gmra.mxu0 %vm817_vm5, %v6955_v27  ;;  %6128 = vmatmul.msk.f32.vlgmr.msra.gmra.mxu1 %vm817_vm5, %v6955_v27  ;;  %12755 = vst [vmem:[#allocation68_spill] sm:$0xff] %v7518_v54  ;;  %v1811_v24 = vmul.f32 %v1798_v62, %v1798_v62  ;;  %v1110_v2 = vadd.f32 %v7436_v58, %v864_v33  ;;  %v7571_v0 = vperm.slane %v676_v42, 0  ;;  %v606_v58 = vmax.f32 %v7513_v5, 0.0 }
  0xdc   : > { %6133 = vmatmul.msk.f32.vlgmr.msra.gmra.mxu2 %vm817_vm5, %v6955_v27  ;;  %6138 = vmatmul.msk.f32.vlgmr.msra.gmra.mxu3 %vm817_vm5, %v6955_v27  ;;  %v1830_v27 = vrot.slane %v1814_v13, 1  ;;  %12756 = vst [vmem:[#allocation69_spill] sm:$0xff] %v7536_v50  ;;  %v7552_v50 = vadd.f32 %v12758_v15, %v7223_v41  ;;  %v7554_v20 = vperm.slane %v673_v46, 0  ;;  %v7569_v41 = vperm.slane %v674_v39, 0  ;;  %v12779_v46 = vld [vmem:[#allocation42_spill] sm:$0xff] }
  0xdd   : > { %v1812_v33 = vmul.f32 %v7462_v36, %v7462_v36  ;;  %v12763_v5 = vrot.slane %v7225_v21, 1 }
  0xde   : > { %v7547_v48 = vsel %vm709_vm4, %v1830_v27, 0.0  ;;  %v7611_v15 = vmul.f32 %v7569_v41, %v7259_v25 }
  0xdf   : > { %v921_v17 = vpop.f32.mrf.mxu2  ;;  %v950_v13 = vpop.f32.mrf.mxu3  ;;  %12757 = vst [vmem:[#allocation70_spill] sm:$0xff] %v7547_v48  ;;  %v7597_v39 = vadd.f32 %v12763_v5, %v7225_v21  ;;  %v1828_v42 = vrot.slane %v1812_v33, 1  ;;  %v7613_v21 = vperm.slane %v675_v32, 0 }
  0xe0   : > { %v922_v11 = vadd.f32 %v921_v17, %v7357_v38  ;;  %v951_v61 = vadd.f32 %v950_v13, %v7368_v14  ;;  %v866_v57 = vpop.f32.mrf.mxu0  ;;  %v895_v12 = vpop.f32.mrf.mxu1  ;;  %12765 = vst [vmem:[#allocation75_spill] sm:$0xff] %v7611_v15 }
  0xe1   : > { %v867_v62 = vadd.f32 %v866_v57, %v7376_v16  ;;  %v896_v27 = vadd.f32 %v895_v12, %v7384_v6  ;;  %v1827_v16 = vrot.slane %v1811_v24, 1  ;;  %v12784_v6 = vld [vmem:[#allocation33_spill] sm:$0xff] }
  0xe2   : > { %v7558_v22 = vadd.f32 %v7361_v37, %v922_v11  ;;  %v7561_v17 = vadd.f32 %v7372_v10, %v951_v61  ;;  %v1111_v37 = vadd.f32 %v7425_v60, %v893_v18  ;;  %v7580_v10 = vsel %vm709_vm4, %v1829_v40, 0.0 }
  0xe3   : > { %6124 = vmatmul.msk.f32.gmra.mxu0 %vm817_vm5, %v6984_v34  ;;  %6129 = vmatmul.msk.f32.gmra.mxu1 %vm817_vm5, %v6984_v34  ;;  %12761 = vst [vmem:[#allocation73_spill] sm:$0xff] %v7580_v10  ;;  %v7588_v60 = vmul.f32 %v7554_v20, %v7259_v25  ;;  %v7592_v18 = vmul.f32 %v7552_v50, %v7339_v30  ;;  %v12764_v11 = vrot.slane %v7217_v49, 1  ;;  %v7623_v5 = vsel %vm709_vm4, %v1827_v16, 0.0 }
  0xe4   : > { %12759 = vst [vmem:[#allocation71_spill] sm:$0xff] %v7558_v22  ;;  %6134 = vmatmul.msk.f32.gmra.mxu2 %vm817_vm5, %v6984_v34  ;;  %6139 = vmatmul.msk.f32.gmra.mxu3 %vm817_vm5, %v6984_v34  ;;  %v1118_v24 = vadd.f32 %v7380_v7, %v867_v62  ;;  %v7601_v36 = vadd.f32 %v7388_v29, %v896_v27  ;;  %v12766_v7 = vrot.slane %v7209_v28, 1 }
  0xe5   : > { %12760 = vst [vmem:[#allocation72_spill] sm:$0xff] %v7561_v17  ;;  %v7606_v61 = vadd.f32 %v12764_v11, %v7217_v49  ;;  %v1142_v11 = vadd.f32 %v1110_v2, %v7399_v4  ;;  %v7630_v40 = vmul.f32 %v7597_v39, %v7339_v30  ;;  %v7643_v2 = vsel %vm709_vm4, %v1828_v42, 0.0 }
  0xe6   : > { %12762 = vst [vmem:[#allocation74_spill] sm:$0xff] %v7588_v60  ;;  %v7618_v29 = vadd.f32 %v12766_v7, %v7209_v28  ;;  %v7634_v28 = vmul.f32 %v7571_v0, %v7259_v25 }
  0xe7   : > { %v924_v57 = vpop.f32.mrf.mxu2  ;;  %v953_v12 = vpop.f32.mrf.mxu3  ;;  %12767 = vst [vmem:[#allocation76_spill] sm:$0xff] %v7623_v5  ;;  %v12782_v5 = vld [vmem:[#allocation62_spill] sm:$0xff] }
  0xe8   : > { %v925_v62 = vadd.f32 %v924_v57, %v7392_v55  ;;  %v954_v49 = vadd.f32 %v953_v12, %v7406_v3  ;;  %v869_v27 = vpop.f32.mrf.mxu0  ;;  %v898_v33 = vpop.f32.mrf.mxu1  ;;  %12768 = vst [vmem:[#allocation77_spill] sm:$0xff] %v7634_v28  ;;  %v12783_v55 = vld [vmem:[#allocation61_spill] sm:$0xff] }
  0xe9   : > { %v870_v13 = vadd.f32 %v869_v27, %v7315_v9  ;;  %v899_v32 = vadd.f32 %v898_v33, %v7466_v56  ;;  %12771 = vst [vmem:[#allocation80_spill] sm:$0xff] %v7643_v2  ;;  %v7647_v9 = vmul.f32 %v7606_v61, %v7339_v30  ;;  %v12772_v27 = vld [vmem:[#allocation30_spill] sm:$0xff]  ;;  %v1143_v33 = vadd.f32 %v1111_v37, %v7399_v4 }
  0xea   : > { %v7637_v57 = vadd.f32 %v7403_v31, %v925_v62  ;;  %v7640_v16 = vadd.f32 %v7410_v1, %v954_v49  ;;  %v12773_v31 = vld [vmem:[#allocation40_spill] sm:$0xff]  ;;  %v1174_v49 = vmax.f32 %v1142_v11, 0.0  ;;  %v1150_v2 = vadd.f32 %v1118_v24, %v7474_v51 }
  0xeb   : > { %v1126_v12 = vadd.f32 %v7419_v52, %v870_v13  ;;  %v1127_v7 = vadd.f32 %v7470_v45, %v899_v32  ;;  %6125 = vmatmul.msk.f32.gmra.mxu0 %vm817_vm5, %v12772_v27  ;;  %6130 = vmatmul.msk.f32.gmra.mxu1 %vm817_vm5, %v12772_v27  ;;  %v7658_v42 = vmul.f32 %v7554_v20, %v12773_v31  ;;  %v12776_v13 = vld [vmem:[#allocation52_spill] sm:$0xff] }
  0xec   : > { %12769 = vst [vmem:[#allocation78_spill] sm:$0xff] %v7637_v57  ;;  %6135 = vmatmul.msk.f32.gmra.mxu2 %vm817_vm5, %v12772_v27  ;;  %6140 = vmatmul.msk.f32.gmra.mxu3 %vm817_vm5, %v12772_v27  ;;  %v7666_v52 = vmul.f32 %v7613_v21, %v7259_v25  ;;  %v7670_v45 = vmul.f32 %v7618_v29, %v7339_v30  ;;  %v1175_v25 = vmax.f32 %v1143_v33, 0.0 }
  0xed   : > { %12770 = vst [vmem:[#allocation79_spill] sm:$0xff] %v7640_v16  ;;  %v7674_v62 = vmul.f32 %v7552_v50, %v12776_v13  ;;  %v7679_v32 = vmul.f32 %v7569_v41, %v12773_v31  ;;  %v7683_v27 = vmul.f32 %v7597_v39, %v12776_v13  ;;  %v7687_v1 = vmul.f32 %v7613_v21, %v12773_v31 }
  0xee   : > { %12774 = vst [vmem:[#allocation30_spill] sm:$0xff] %v7658_v42  ;;  %v1158_v16 = vadd.f32 %v1126_v12, %v12779_v46  ;;  %v7692_v3 = vmul.f32 %v7606_v61, %v12776_v13  ;;  %v7696_v11 = vmul.f32 %v7571_v0, %v12773_v31  ;;  %v7700_v17 = vadd.f32 %v1127_v7, %v12779_v46 }
  0xef   : > { %12775 = vst [vmem:[#allocation81_spill] sm:$0xff] %v7666_v52  ;;  %v927_v14 = vpop.f32.mrf.mxu2  ;;  %v956_v48 = vpop.f32.mrf.mxu3  ;;  %v7704_v10 = vmul.f32 %v7618_v29, %v12776_v13  ;;  %v638_v12 = vsub.f32 0.0, %v606_v58  ;;  %v7711_v37 = vmul.f32 %v7554_v20, %v12784_v6  ;;  %v7714_v7 = vadd.f32 %v1174_v49, %v7534_v43 }
  0xf0   : > { %12777 = vst [vmem:[#allocation82_spill] sm:$0xff] %v7679_v32  ;;  %v928_v57 = vadd.f32 %v927_v14, %v12782_v5  ;;  %v957_v22 = vadd.f32 %v956_v48, %v12783_v55  ;;  %v872_v38 = vpop.f32.mrf.mxu0  ;;  %v901_v56 = vpop.f32.mrf.mxu1  ;;  %v7720_v58 = vmul.f32 %v7552_v50, %v7178_v47  ;;  %v7724_v14 = vmul.f32 %v7571_v0, %v12784_v6  ;;  %v12788_v55 = vld [vmem:[#allocation63_spill] sm:$0xff] }
  0xf1   : > { %12778 = vst [vmem:[#allocation83_spill] sm:$0xff] %v7687_v1  ;;  %v873_v31 = vadd.f32 %v872_v38, %v7448_v8  ;;  %v902_v13 = vadd.f32 %v901_v56, %v7518_v54  ;;  %v1190_v48 = vmax.f32 %v1158_v16, 0.0  ;;  %v12789_v8 = vld [vmem:[#allocation31_spill] sm:$0xff]  ;;  %v12792_v16 = vmax.f32 %v7493_v53, 0.0 }
  0xf2   : > { %12780 = vst [vmem:[#allocation84_spill] sm:$0xff] %v7696_v11  ;;  %v1128_v24 = vadd.f32 %v7478_v35, %v928_v57  ;;  %v1129_v5 = vadd.f32 %v12788_v55, %v957_v22  ;;  %v12790_v56 = vld [vmem:[#allocation39_spill] sm:$0xff]  ;;  %v12796_v22 = vld [vmem:[#allocation41_spill] sm:$0xff]  ;;  %v7760_v33 = vmul.f32 %v7613_v21, %v12784_v6 }
  0xf3   : > { %12781 = vst [vmem:[#allocation85_spill] sm:$0xff] %v7700_v17  ;;  %v1134_v43 = vadd.f32 %v7482_v23, %v873_v31  ;;  %v1135_v38 = vadd.f32 %v7522_v26, %v902_v13  ;;  %6126 = vmatmul.msk.f32.gmra.mxu0 %vm817_vm5, %v12789_v8  ;;  %6131 = vmatmul.msk.f32.gmra.mxu1 %vm817_vm5, %v12789_v8  ;;  %v12791_v49 = vrot.slane %v12790_v56, 4  ;;  %v7739_v35 = vsub.f32 0.0, %v12792_v16  ;;  %v12798_v31 = vld [vmem:[#allocation35_spill] sm:$0xff] }
  0xf4   : > { %12785 = vst [vmem:[#allocation86_spill] sm:$0xff] %v7711_v37  ;;  %6136 = vmatmul.msk.f32.gmra.mxu2 %vm817_vm5, %v12789_v8  ;;  %6141 = vmatmul.msk.f32.gmra.mxu3 %vm817_vm5, %v12789_v8  ;;  %v7748_v23 = vmul.f32 %v7569_v41, %v12784_v6  ;;  %v7752_v26 = vmul.f32 %v7597_v39, %v7178_v47  ;;  %v12797_v53 = vrot.slane %v12796_v22, 4 }
  0xf5   : > { %12786 = vst [vmem:[#allocation87_spill] sm:$0xff] %v7714_v7  ;;  %v1286_v54 = vadd.f32 %v12791_v49, %v12790_v56  ;;  %v1166_v13 = vadd.f32 %v1134_v43, %v12798_v31  ;;  %v7764_v8 = vmul.f32 %v7606_v61, %v7178_v47  ;;  %v1182_v56 = vmax.f32 %v1150_v2, 0.0  ;;  %v12801_v49 = vld [vmem:[#allocation60_spill] sm:$0xff] }
  0xf6   : > { %12787 = vst [vmem:[#allocation88_spill] sm:$0xff] %v7724_v14  ;;  %v1293_v57 = vadd.f32 %v12797_v53, %v12796_v22  ;;  %v7767_v16 = vadd.f32 %v1190_v48, %v12801_v49  ;;  %v7770_v55 = vadd.f32 %v1128_v24, %v12779_v46  ;;  %v7774_v22 = vmul.f32 %v7618_v29, %v7178_v47  ;;  %v12807_v49 = vld [vmem:[#allocation67_spill] sm:$0xff]  ;;  %v12808_v47 = vld [vmem:[#allocation66_spill] sm:$0xff] }
  0xf7   : > { %12793 = vst [vmem:[#allocation63_spill] sm:$0xff] %v7739_v35  ;;  %v7777_v43 = vadd.f32 %v1175_v25, %v7509_v59  ;;  %v7780_v53 = vadd.f32 %v1129_v5, %v12779_v46  ;;  %v7783_v17 = vadd.f32 %v1135_v38, %v12798_v31  ;;  %v930_v2 = vpop.f32.mrf.mxu2  ;;  %v959_v7 = vpop.f32.mrf.mxu3  ;;  %v1287_v48 = vrot.slane %v1286_v54, 2  ;;  %v12809_v25 = vld [vmem:[#allocation24_spill] sm:$0xff] }
  0xf8   : > { %12794 = vst [vmem:[#allocation31_spill] sm:$0xff] %v7748_v23  ;;  %v7787_v24 = vadd.f32 %v7601_v36, %v7474_v51  ;;  %v960_v6 = vadd.f32 %v959_v7, %v12808_v47  ;;  %v979_v35 = vpop.f32.mrf.mxu0  ;;  %v1008_v59 = vpop.f32.mrf.mxu1  ;;  %v2347_v5 = vsub.f32 %v12809_v25, %v12809_v25  ;;  %v7795_v14 = vadd.f32 %v1182_v56, %v638_v12 }
  0xf9   : > { %12795 = vst [vmem:[#allocation39_spill] sm:$0xff] %v7752_v26  ;;  %v980_v38 = vadd.f32 %v979_v35, %v7588_v60  ;;  %v12810_v26 = vld [vmem:[#allocation28_spill] sm:$0xff]  ;;  %v7808_v12 = vmul.f32 %v7554_v20, %v7160_v19  ;;  %v7822_v35 = vmul.f32 %v7569_v41, %v7160_v19  ;;  %v1288_v56 = vadd.f32 %v1287_v48, %v1286_v54 }
  0xfa   : > { %12799 = vst [vmem:[#allocation41_spill] sm:$0xff] %v7760_v33  ;;  %v1137_v33 = vadd.f32 %v7507_v44, %v960_v6  ;;  %v7839_v41 = vmul.f32 %v7613_v21, %v7160_v19 }
  0xfb   : > { %12800 = vst [vmem:[#allocation35_spill] sm:$0xff] %v7764_v8  ;;  %v1009_v8 = vadd.f32 %v1008_v59, %v7611_v15  ;;  %v1114_v46 = vadd.f32 %v7592_v18, %v980_v38  ;;  %6143 = vmatmul.msk.f32.vlgmr.msrb.gmra.mxu0 %vm817_vm5, %v12810_v26  ;;  %6148 = vmatmul.msk.f32.vlgmr.msrb.gmra.mxu1 %vm817_vm5, %v12810_v26  ;;  %v1289_v7 = vrot.slane %v1288_v56, 1 }
  0xfc   : > { %12802 = vst [vmem:[#allocation60_spill] sm:$0xff] %v7767_v16  ;;  %v931_v16 = vadd.f32 %v930_v2, %v12807_v49  ;;  %v2359_v2 = vmul.f32 %v2347_v5, %v2347_v5  ;;  %v2475_v49 = vrot.slane %v2347_v5, 1  ;;  %6153 = vmatmul.msk.f32.vlgmr.msrb.gmra.mxu2 %vm817_vm5, %v12810_v26  ;;  %6158 = vmatmul.msk.f32.vlgmr.msrb.gmra.mxu3 %vm817_vm5, %v12810_v26  ;;  %v12815_v26 = vld [vmem:[#allocation69_spill] sm:$0xff] }
  0xfd   : > { %12803 = vst [vmem:[#allocation89_spill] sm:$0xff] %v7770_v55  ;;  %v1115_v44 = vadd.f32 %v7630_v40, %v1009_v8  ;;  %v12814_v40 = vld [vmem:[#allocation23_spill] sm:$0xff]  ;;  %v7849_v59 = vadd.f32 %v1114_v46, %v7399_v4  ;;  %v12844_v15 = vld [vmem:[#allocation88_spill] sm:$0xff] }
  0xfe   : > { %12804 = vst [vmem:[#allocation90_spill] sm:$0xff] %v7774_v22  ;;  %v1198_v22 = vmax.f32 %v1166_v13, 0.0  ;;  %v1136_v36 = vadd.f32 %v7528_v63, %v931_v16  ;;  %v12812_v63 = vld [vmem:[#allocation34_spill] sm:$0xff]  ;;  %v2375_v13 = vrot.slane %v2359_v2, 1  ;;  %6177 = vmatpush.msk.msra.mxu3 %vm709_vm4, %v2475_v49  ;;  %v2346_v8 = vsub.f32 %v12814_v40, %v12809_v25 }
  0xff   : > { %12805 = vst [vmem:[#allocation91_spill] sm:$0xff] %v7777_v43  ;;  %v1294_v43 = vrot.slane %v1293_v57, 2  ;;  %v7818_v18 = vmul.f32 %v7552_v50, %v12812_v63  ;;  %v7826_v20 = vmul.f32 %v7597_v39, %v12812_v63  ;;  %v7843_v39 = vmul.f32 %v7606_v61, %v12812_v63  ;;  %v1037_v54 = vpop.f32.mrf.mxu2 }
 0x100   : > { %12806 = vst [vmem:[#allocation92_spill] sm:$0xff] %v7780_v53  ;;  %v7832_v16 = vadd.f32 %v1198_v22, %v12815_v26  ;;  %v7835_v50 = vadd.f32 %v1136_v36, %v12798_v31  ;;  %v7846_v49 = vadd.f32 %v1137_v33, %v12798_v31  ;;  %v1066_v22 = vpop.f32.mrf.mxu3  ;;  %v2358_v48 = vmul.f32 %v2346_v8, %v2346_v8  ;;  %v982_v2 = vpop.f32.mrf.mxu0 }
 0x101   : > { %12811 = vst [vmem:[#allocation28_spill] sm:$0xff] %v7808_v12  ;;  %v1295_v5 = vadd.f32 %v1294_v43, %v1293_v57  ;;  %v7852_v38 = vadd.f32 %v1115_v44, %v7399_v4  ;;  %v1038_v21 = vadd.f32 %v1037_v54, %v7666_v52  ;;  %v1067_v36 = vadd.f32 %v1066_v22, %v7634_v28  ;;  %v1011_v61 = vpop.f32.mrf.mxu1  ;;  %v12822_v54 = vld [vmem:[#allocation21_spill] sm:$0xff] }
 0x102   : > { %12813 = vst [vmem:[#allocation34_spill] sm:$0xff] %v7822_v35  ;;  %v2474_v26 = vrot.slane %v2346_v8, 1  ;;  %v983_v33 = vadd.f32 %v982_v2, %v7658_v42  ;;  %v1012_v47 = vadd.f32 %v1011_v61, %v7679_v32  ;;  %v7859_v46 = vsel %vm709_vm4, %v2375_v13, 0.0  ;;  %v12846_v42 = vld [vmem:[#allocation35_spill] sm:$0xff] }
 0x103   : > { %12816 = vst [vmem:[#allocation69_spill] sm:$0xff] %v7835_v50  ;;  %v1116_v57 = vadd.f32 %v7647_v9, %v1038_v21  ;;  %v1117_v43 = vadd.f32 %v7670_v45, %v1067_v36  ;;  %v2374_v44 = vrot.slane %v2358_v48, 1  ;;  %v2344_v22 = vsub.f32 %v12822_v54, %v12809_v25  ;;  %6144 = vmatmul.msk.f32.gmra.mxu0 %vm817_vm5, %v6984_v34  ;;  %v12825_v48 = vld [vmem:[#allocation22_spill] sm:$0xff]  ;;  %v12869_v54 = vld [vmem:[#allocation57_spill] sm:$0xff] }
 0x104   : > { %12817 = vst [vmem:[#allocation93_spill] sm:$0xff] %v7839_v41  ;;  %6172 = vmatpush.msk.msra.mxu2 %vm709_vm4, %v2474_v26  ;;  %v1122_v8 = vadd.f32 %v7674_v62, %v983_v33  ;;  %6149 = vmatmul.msk.f32.gmra.mxu1 %vm817_vm5, %v6984_v34  ;;  %v7873_v13 = vmul.f32 %v7571_v0, %v7160_v19  ;;  %v1296_v9 = vrot.slane %v1295_v5, 1 }
 0x105   : > { %12818 = vst [vmem:[#allocation94_spill] sm:$0xff] %v7846_v49  ;;  %6154 = vmatmul.msk.f32.gmra.mxu2 %vm817_vm5, %v6984_v34  ;;  %6159 = vmatmul.msk.f32.gmra.mxu3 %vm817_vm5, %v6984_v34  ;;  %v7885_v62 = vmul.f32 %v7618_v29, %v12812_v63  ;;  %v1123_v2 = vadd.f32 %v7683_v27, %v1012_v47  ;;  %v7893_v33 = vsel %vm709_vm4, %v2374_v44, 0.0  ;;  %v2472_v21 = vrot.slane %v2344_v22, 1 }
 0x106   : > { %12819 = vst [vmem:[#allocation95_spill] sm:$0xff] %v7849_v59  ;;  %v7890_v26 = vadd.f32 %v1289_v7, %v1288_v56  ;;  %v2356_v36 = vmul.f32 %v2344_v22, %v2344_v22  ;;  %v2345_v34 = vsub.f32 %v12825_v48, %v12809_v25  ;;  %v7898_v6 = vadd.f32 %v1116_v57, %v7399_v4  ;;  %v12867_v48 = vld [vmem:[#allocation87_spill] sm:$0xff] }
 0x107   : > { %12820 = vst [vmem:[#allocation96_spill] sm:$0xff] %v7852_v38  ;;  %v7901_v29 = vadd.f32 %v1117_v43, %v7399_v4  ;;  %v7904_v47 = vadd.f32 %v1122_v8, %v7474_v51  ;;  %v1040_v27 = vpop.f32.mrf.mxu2  ;;  %v7906_v56 = vadd.f32 %v1296_v9, %v1295_v5  ;;  %6162 = vmatpush.msk.msra.mxu0 %vm709_vm4, %v2472_v21  ;;  %v12830_v9 = vld [vmem:[#allocation37_spill] sm:$0xff] }
 0x108   : > { %12821 = vst [vmem:[#allocation97_spill] sm:$0xff] %v7859_v46  ;;  %v1069_v7 = vpop.f32.mrf.mxu3  ;;  %v1041_v44 = vadd.f32 %v1040_v27, %v7687_v1  ;;  %v985_v0 = vpop.f32.mrf.mxu0  ;;  %v2357_v57 = vmul.f32 %v2345_v34, %v2345_v34  ;;  %v2473_v43 = vrot.slane %v2345_v34, 1  ;;  %v7912_v45 = vadd.f32 %v1123_v2, %v7474_v51  ;;  %v7923_v21 = vld [vmem:[%s6786_s12 + $0x8] sm:$0x7f]  ;;  %v7926_v34 = vld [vmem:[%s6786_s12 + $0x10] sm:$0x7f] }
 0x109   : > { %12823 = vst [vmem:[#allocation98_spill] sm:$0xff] %v7873_v13  ;;  %v1070_v22 = vadd.f32 %v1069_v7, %v7696_v11  ;;  %v1014_v61 = vpop.f32.mrf.mxu1  ;;  %v986_v8 = vadd.f32 %v985_v0, %v7711_v37  ;;  %v12831_v28 = vrot.slane %v12830_v9, 4  ;;  %v2372_v11 = vrot.slane %v2356_v36, 1  ;;  %v7933_v2 = vld [vmem:[%s12256_s1 + $0x10] sm:$0xff]  ;;  %v12861_v46 = vld [vmem:[#allocation55_spill] sm:$0xff] }
 0x10a   : > { %12824 = vst [vmem:[#allocation99_spill] sm:$0xff] %v7893_v33  ;;  %v1015_v5 = vadd.f32 %v1014_v61, %v7748_v23  ;;  %v1124_v1 = vadd.f32 %v7692_v3, %v1041_v44  ;;  %6167 = vmatpush.msk.msra.mxu1 %vm709_vm4, %v2473_v43  ;;  %v1246_v0 = vmul.f32 %v7926_v34, %v7923_v21  ;;  %v7958_v61 = vld [vmem:[%s6786_s12 + $0x18] sm:$0x7f] }
 0x10b   : > { %12826 = vst [vmem:[#allocation100_spill] sm:$0xff] %v7898_v6  ;;  %v1300_v27 = vadd.f32 %v12831_v28, %v12830_v9  ;;  %v1125_v7 = vadd.f32 %v7704_v10, %v1070_v22  ;;  %6145 = vmatmul.msk.f32.gmra.mxu0 %vm817_vm5, %v7933_v2  ;;  %v7942_v10 = vmul.f32 %v7890_v26, %v7339_v30  ;;  %v2373_v28 = vrot.slane %v2357_v57, 1  ;;  %v12833_v57 = vld [vmem:[#allocation39_spill] sm:$0xff]  ;;  %v12836_v6 = vld [vmem:[#allocation36_spill] sm:$0xff] }
 0x10c   : > { %12827 = vst [vmem:[#allocation101_spill] sm:$0xff] %v7901_v29  ;;  %6150 = vmatmul.msk.f32.gmra.mxu1 %vm817_vm5, %v7933_v2  ;;  %v1130_v22 = vadd.f32 %v7720_v58, %v986_v8  ;;  %v7953_v43 = vmul.f32 %v7906_v56, %v7339_v30  ;;  %v1131_v3 = vadd.f32 %v12833_v57, %v1015_v5  ;;  %v7964_v44 = vsel %vm709_vm4, %v2372_v11, 0.0  ;;  %v12841_v11 = vld [vmem:[#allocation42_spill] sm:$0xff] }
 0x10d   : > { %12828 = vst [vmem:[#allocation102_spill] sm:$0xff] %v7904_v47  ;;  %v1301_v36 = vrot.slane %v1300_v27, 2  ;;  %6155 = vmatmul.msk.f32.gmra.mxu2 %vm817_vm5, %v7933_v2  ;;  %6160 = vmatmul.msk.f32.gmra.mxu3 %vm817_vm5, %v7933_v2  ;;  %v1247_v58 = vmul.f32 %v7958_v61, %v7923_v21  ;;  %v7966_v29 = vperm.slane %v1246_v0, 0  ;;  %v12837_v38 = vrot.slane %v12836_v6, 4  ;;  %v12843_v0 = vld [vmem:[#allocation41_spill] sm:$0xff] }
 0x10e   : > { %12829 = vst [vmem:[#allocation103_spill] sm:$0xff] %v7912_v45  ;;  %v7972_v9 = vadd.f32 %v1124_v1, %v7474_v51  ;;  %v7975_v5 = vadd.f32 %v1125_v7, %v7474_v51  ;;  %v7978_v57 = vsel %vm709_vm4, %v2373_v28, 0.0  ;;  %v7981_v45 = vadd.f32 %v1130_v22, %v12841_v11  ;;  %v12847_v22 = vld [vmem:[#allocation90_spill] sm:$0xff] }
 0x10f   : > { %12832 = vst [vmem:[#allocation37_spill] sm:$0xff] %v7926_v34  ;;  %v1302_v52 = vadd.f32 %v1301_v36, %v1300_v27  ;;  %v1307_v23 = vadd.f32 %v12837_v38, %v12836_v6  ;;  %v1043_v27 = vpop.f32.mrf.mxu2  ;;  %v7986_v59 = vadd.f32 %v1131_v3, %v12841_v11  ;;  %v7990_v28 = vperm.slane %v1247_v58, 0  ;;  %v8001_v3 = vld [vmem:[%s12256_s1 + $0x18] sm:$0xff] }
 0x110   : > { %12834 = vst [vmem:[#allocation39_spill] sm:$0xff] %v7958_v61  ;;  %v1072_v36 = vpop.f32.mrf.mxu3  ;;  %v1044_v32 = vadd.f32 %v1043_v27, %v12843_v0  ;;  %v988_v6 = vpop.f32.mrf.mxu0 }
 0x111   : > { %12835 = vst [vmem:[#allocation104_spill] sm:$0xff] %v7964_v44  ;;  %v1303_v8 = vrot.slane %v1302_v52, 1  ;;  %v1073_v47 = vadd.f32 %v1072_v36, %v12844_v15  ;;  %v1017_v38 = vpop.f32.mrf.mxu1  ;;  %v1308_v1 = vrot.slane %v1307_v23, 2  ;;  %v989_v7 = vadd.f32 %v988_v6, %v7808_v12  ;;  %v12850_v6 = vld [vmem:[#allocation52_spill] sm:$0xff] }
 0x112   : > { %12838 = vst [vmem:[#allocation36_spill] sm:$0xff] %v7972_v9  ;;  %v1018_v37 = vadd.f32 %v1017_v38, %v7822_v35  ;;  %v1132_v60 = vadd.f32 %v12846_v42, %v1044_v32  ;;  %v8027_v38 = vmul.f32 %v7890_v26, %v12850_v6  ;;  %v12854_v32 = vmax.f32 %v7787_v24, 0.0  ;;  %v12858_v9 = vld [vmem:[#allocation49_spill] sm:$0xff]  ;;  %v12859_v35 = vld [vmem:[#allocation40_spill] sm:$0xff] }
 0x113   : > { %12839 = vst [vmem:[#allocation105_spill] sm:$0xff] %v7975_v5  ;;  %v1133_v49 = vadd.f32 %v12847_v22, %v1073_v47  ;;  %v7994_v53 = vadd.f32 %v1303_v8, %v1302_v52  ;;  %v1309_v27 = vadd.f32 %v1308_v1, %v1307_v23  ;;  %v1138_v36 = vadd.f32 %v7818_v18, %v989_v7  ;;  %v12853_v23 = vld [vmem:[#allocation63_spill] sm:$0xff]  ;;  %v12857_v5 = vld [vmem:[#allocation33_spill] sm:$0xff] }
 0x114   : > { %12840 = vst [vmem:[#allocation106_spill] sm:$0xff] %v7978_v57  ;;  %v1139_v15 = vadd.f32 %v7826_v20, %v1018_v37  ;;  %6146 = vmatmul.msk.f32.gmra.mxu0 %vm817_vm5, %v8001_v3  ;;  %6151 = vmatmul.msk.f32.gmra.mxu1 %vm817_vm5, %v8001_v3  ;;  %v12848_v37 = vld [vmem:[#allocation38_spill] sm:$0xff]  ;;  %v8030_v1 = vadd.f32 %v1132_v60, %v12841_v11 }
 0x115   : > { %12842 = vst [vmem:[#allocation42_spill] sm:$0xff] %v7981_v45  ;;  %6156 = vmatmul.msk.f32.gmra.mxu2 %vm817_vm5, %v8001_v3  ;;  %6161 = vmatmul.msk.f32.gmra.mxu3 %vm817_vm5, %v8001_v3  ;;  %v8017_v18 = vmul.f32 %v7966_v29, %v12848_v37  ;;  %v1310_v20 = vrot.slane %v1309_v27, 1  ;;  %v8023_v8 = vmul.f32 %v7990_v28, %v12848_v37  ;;  %v12860_v45 = vld [vmem:[#allocation50_spill] sm:$0xff] }
 0x116   : > { %12845 = vst [vmem:[#allocation107_spill] sm:$0xff] %v7986_v59  ;;  %v8033_v7 = vadd.f32 %v1133_v49, %v12841_v11  ;;  %v1636_v22 = vmul.f32 %v7994_v53, %v7339_v30  ;;  %v8040_v58 = vadd.f32 %v12854_v32, %v12853_v23  ;;  %v8043_v47 = vadd.f32 %v1138_v36, %v12798_v31 }
 0x117   : > { %12849 = vst [vmem:[#allocation35_spill] sm:$0xff] %v8023_v8  ;;  %v8046_v52 = vadd.f32 %v1139_v15, %v12798_v31  ;;  %v1046_v42 = vpop.f32.mrf.mxu2  ;;  %v1643_v49 = vmul.f32 %v7906_v56, %v12850_v6  ;;  %v8052_v0 = vmul.f32 %v12858_v9, %v12857_v5  ;;  %v8056_v36 = vadd.f32 %v1310_v20, %v1309_v27 }
 0x118   : > { %12851 = vst [vmem:[#allocation90_spill] sm:$0xff] %v8030_v1  ;;  %v1075_v60 = vpop.f32.mrf.mxu3  ;;  %v1047_v59 = vadd.f32 %v1046_v42, %v7839_v41  ;;  %v1419_v32 = vpop.f32.mrf.mxu0  ;;  %v8060_v15 = vmul.f32 %v7966_v29, %v12859_v35  ;;  %v8066_v57 = vmul.f32 %v7994_v53, %v12850_v6 }
 0x119   : > { %12852 = vst [vmem:[#allocation108_spill] sm:$0xff] %v8033_v7  ;;  %v1076_v24 = vadd.f32 %v1075_v60, %v7873_v13  ;;  %v1448_v23 = vpop.f32.mrf.mxu1  ;;  %v1420_v12 = vadd.f32 %v1419_v32, %v12860_v45  ;;  %v583_v42 = vadd.f32 %v8052_v0, %v12841_v11  ;;  %v8080_v32 = vld [vmem:[%s12256_s1] sm:$0xff] }
 0x11a   : > { %12855 = vst [vmem:[#allocation63_spill] sm:$0xff] %v8043_v47  ;;  %v1449_v33 = vadd.f32 %v1448_v23, %v12861_v46  ;;  %v1140_v20 = vadd.f32 %v7843_v39, %v1047_v59  ;;  %v8088_v39 = vmul.f32 %v7990_v28, %v12859_v35  ;;  %v8105_v23 = vmul.f32 %v8056_v36, %v12850_v6  ;;  %v12870_v6 = vld [vmem:[#allocation64_spill] sm:$0xff] }
 0x11b   : > { %12856 = vst [vmem:[#allocation109_spill] sm:$0xff] %v8046_v52  ;;  %v1141_v13 = vadd.f32 %v7885_v62, %v1076_v24  ;;  %v1666_v45 = vadd.f32 %v7942_v10, %v1420_v12  ;;  %v1637_v12 = vmul.f32 %v8056_v36, %v7339_v30  ;;  %v12863_v62 = vld [vmem:[#allocation32_spill] sm:$0xff]  ;;  %v615_v10 = vmax.f32 %v583_v42, 0.0  ;;  %v12866_v52 = vld [vmem:[#allocation25_spill] sm:$0xff] }
 0x11c   : > { %v1667_v46 = vadd.f32 %v7953_v43, %v1449_v33  ;;  %6163 = vmatmul.msk.f32.vlgmr.msra.gmra.mxu0 %vm817_vm5, %v8080_v32  ;;  %6168 = vmatmul.msk.f32.vlgmr.msra.gmra.mxu1 %vm817_vm5, %v8080_v32  ;;  %12862 = vst [vmem:[#allocation33_spill] sm:$0xff] %v8088_v39  ;;  %v8099_v33 = vmul.f32 %v7890_v26, %v12863_v62 }
 0x11d   : > { %6173 = vmatmul.msk.f32.vlgmr.msra.gmra.mxu2 %vm817_vm5, %v8080_v32  ;;  %6178 = vmatmul.msk.f32.vlgmr.msra.gmra.mxu3 %vm817_vm5, %v8080_v32  ;;  %v1698_v43 = vadd.f32 %v1666_v45, %v7399_v4  ;;  %v8109_v27 = vmul.f32 %v7906_v56, %v12863_v62  ;;  %v8112_v60 = vadd.f32 %v1140_v20, %v12798_v31  ;;  %v647_v34 = vsub.f32 0.0, %v615_v10 }
 0x11e   : > { %v1699_v24 = vadd.f32 %v1667_v46, %v7399_v4  ;;  %v8116_v59 = vmul.f32 %v7966_v29, %v12857_v5  ;;  %v8120_v42 = vmul.f32 %v7994_v53, %v12863_v62  ;;  %v8124_v45 = vmul.f32 %v12858_v9, %v7160_v19 }
 0x11f   : > { %12864 = vst [vmem:[#allocation49_spill] sm:$0xff] %v8112_v60  ;;  %v8127_v46 = vadd.f32 %v1141_v13, %v12798_v31  ;;  %v1730_v41 = vmax.f32 %v1698_v43, 0.0  ;;  %v1477_v1 = vpop.f32.mrf.mxu2  ;;  %v2351_v47 = vsub.f32 %v12866_v52, %v12809_v25  ;;  %v12868_v43 = vld [vmem:[#allocation91_spill] sm:$0xff]  ;;  %v8149_v10 = vmul.f32 %v8056_v36, %v12863_v62  ;;  %v12878_v60 = vld [vmem:[#allocation65_spill] sm:$0xff] }
 0x120   : > { %v1731_v7 = vmax.f32 %v1699_v24, 0.0  ;;  %v1506_v20 = vpop.f32.mrf.mxu3  ;;  %v1478_v44 = vadd.f32 %v1477_v1, %v8017_v18  ;;  %v1422_v55 = vpop.f32.mrf.mxu0  ;;  %v591_v9 = vadd.f32 %v8124_v45, %v12798_v31 }
 0x121   : > { %12865 = vst [vmem:[#allocation50_spill] sm:$0xff] %v8127_v46  ;;  %v1507_v50 = vadd.f32 %v1506_v20, %v8023_v8  ;;  %v1451_v61 = vpop.f32.mrf.mxu1  ;;  %v8136_v13 = vadd.f32 %v1730_v41, %v12867_v48  ;;  %v1423_v40 = vadd.f32 %v1422_v55, %v12869_v54  ;;  %v8145_v20 = vmul.f32 %v7990_v28, %v12857_v5  ;;  %v12876_v46 = vld [vmem:[#allocation45_spill] sm:$0xff] }
 0x122   : > { %v8139_v24 = vadd.f32 %v1731_v7, %v12868_v43  ;;  %v1452_v52 = vadd.f32 %v1451_v61, %v12870_v6  ;;  %v1668_v35 = vadd.f32 %v1636_v22, %v1478_v44  ;;  %v8155_v7 = vld [vmem:[%s12256_s1 + $0x8] sm:$0xff]  ;;  %v623_v55 = vmax.f32 %v591_v9, 0.0 }
 0x123   : > { %v1669_v1 = vadd.f32 %v1637_v12, %v1507_v50  ;;  %12871 = vst [vmem:[#allocation55_spill] sm:$0xff] %v8145_v20  ;;  %v1674_v41 = vadd.f32 %v8027_v38, %v1423_v40  ;;  %v2479_v50 = vrot.slane %v2351_v47, 1  ;;  %v8169_v40 = vmul.f32 %v7890_v26, %v12812_v63  ;;  %v12872_v38 = vld [vmem:[#allocation85_spill] sm:$0xff] }
 0x124   : > { %v1675_v48 = vadd.f32 %v1643_v49, %v1452_v52  ;;  %6164 = vmatmul.msk.f32.gmra.mxu0 %vm817_vm5, %v8155_v7  ;;  %6169 = vmatmul.msk.f32.gmra.mxu1 %vm817_vm5, %v8155_v7  ;;  %v8171_v44 = vmul.f32 %v2351_v47, %v2351_v47  ;;  %v12873_v22 = vmax.f32 %v12872_v38, 0.0  ;;  %v8181_v12 = vmul.f32 %v7906_v56, %v12812_v63 }
 0x125   : > { %6174 = vmatmul.msk.f32.gmra.mxu2 %vm817_vm5, %v8155_v7  ;;  %6179 = vmatmul.msk.f32.gmra.mxu3 %vm817_vm5, %v8155_v7  ;;  %v1706_v52 = vadd.f32 %v1674_v41, %v7474_v51  ;;  %v8185_v9 = vadd.f32 %v1668_v35, %v7399_v4  ;;  %v8188_v26 = vadd.f32 %v1669_v1, %v7399_v4  ;;  %v12875_v35 = vld [vmem:[#allocation26_spill] sm:$0xff] }
 0x126   : > { %v1707_v6 = vadd.f32 %v1675_v48, %v7474_v51  ;;  %v8177_v49 = vadd.f32 %v12873_v22, %v647_v34  ;;  %6197 = vmatpush.msk.msrb.mxu3 %vm709_vm4, %v2479_v50  ;;  %v8192_v47 = vmul.f32 %v7966_v29, %v7160_v19  ;;  %v8196_v34 = vmul.f32 %v7994_v53, %v12812_v63 }
 0x127   : > { %12874 = vst [vmem:[#allocation32_spill] sm:$0xff] %v8188_v26  ;;  %v1738_v43 = vmax.f32 %v1706_v52, 0.0  ;;  %v1480_v56 = vpop.f32.mrf.mxu2  ;;  %v655_v50 = vsub.f32 0.0, %v623_v55  ;;  %v2350_v38 = vsub.f32 %v12875_v35, %v12809_v25  ;;  %v2379_v54 = vrot.slane %v8171_v44, 1  ;;  %v8217_v35 = vld [vmem:[%s6786_s12 + $0x20] sm:$0x7f] }
 0x128   : > { %v1739_v41 = vmax.f32 %v1707_v6, 0.0  ;;  %v1509_v48 = vpop.f32.mrf.mxu3  ;;  %v1481_v1 = vadd.f32 %v1480_v56, %v8060_v15  ;;  %v1425_v61 = vpop.f32.mrf.mxu0  ;;  %v12877_v53 = vrot.slane %v12876_v46, 4  ;;  %12879 = vst [vmem:[#allocation87_spill] sm:$0xff] %v8217_v35 }
 0x129   : > { %v1510_v22 = vadd.f32 %v1509_v48, %v8088_v39  ;;  %v1454_v29 = vpop.f32.mrf.mxu1  ;;  %v8207_v6 = vadd.f32 %v1738_v43, %v7795_v14  ;;  %v1426_v8 = vadd.f32 %v1425_v61, %v12878_v60  ;;  %v2478_v44 = vrot.slane %v2350_v38, 1 }
 0x12a   : > { %v1314_v52 = vadd.f32 %v12877_v53, %v12876_v46  ;;  %v8210_v55 = vadd.f32 %v1739_v41, %v8040_v58  ;;  %v1455_v56 = vadd.f32 %v1454_v29, %v8052_v0  ;;  %v1676_v48 = vadd.f32 %v8066_v57, %v1481_v1  ;;  %v12883_v29 = vld [vmem:[#allocation46_spill] sm:$0xff] }
 0x12b   : > { %v1677_v39 = vadd.f32 %v8105_v23, %v1510_v22  ;;  %v1248_v46 = vmul.f32 %v8217_v35, %v7923_v21  ;;  %v1682_v14 = vadd.f32 %v8099_v33, %v1426_v8  ;;  %v2362_v57 = vmul.f32 %v2350_v38, %v2350_v38  ;;  %v8241_v33 = vld [vmem:[%s6786_s12 + $0x28] sm:$0x7f]  ;;  %6192 = vmatpush.msk.msrb.mxu2 %vm709_vm4, %v2478_v44 }
 0x12c   : > { %v1683_v58 = vadd.f32 %v8109_v27, %v1455_v56  ;;  %6165 = vmatmul.msk.f32.gmra.mxu0 %vm817_vm5, %v7933_v2  ;;  %6170 = vmatmul.msk.f32.gmra.mxu1 %vm817_vm5, %v7933_v2  ;;  %v1315_v0 = vrot.slane %v1314_v52, 2  ;;  %v8234_v8 = vmul.f32 %v7990_v28, %v7160_v19  ;;  %v8238_v27 = vmul.f32 %v8056_v36, %v12812_v63 }
 0x12d   : > { %6175 = vmatmul.msk.f32.gmra.mxu2 %vm817_vm5, %v7933_v2  ;;  %6180 = vmatmul.msk.f32.gmra.mxu3 %vm817_vm5, %v7933_v2  ;;  %12881 = vst [vmem:[#allocation57_spill] sm:$0xff] %v8241_v33  ;;  %v1249_v23 = vmul.f32 %v8241_v33, %v7923_v21  ;;  %v1714_v43 = vadd.f32 %v1682_v14, %v12841_v11  ;;  %v12882_v36 = vmax.f32 %v7783_v17, 0.0  ;;  %v8254_v22 = vperm.slane %v1248_v46, 0  ;;  %v12885_v46 = vld [vmem:[#allocation60_spill] sm:$0xff] }
 0x12e   : > { %12880 = vst [vmem:[#allocation91_spill] sm:$0xff] %v8234_v8  ;;  %v1715_v41 = vadd.f32 %v1683_v58, %v12841_v11  ;;  %v1316_v38 = vadd.f32 %v1315_v0, %v1314_v52  ;;  %v8250_v28 = vadd.f32 %v1676_v48, %v7474_v51  ;;  %v12884_v53 = vrot.slane %v12883_v29, 4 }
 0x12f   : > { %v1231_v1 = vadd.f32 %v12882_v36, %v655_v50  ;;  %v1746_v61 = vmax.f32 %v1714_v43, 0.0  ;;  %v1483_v14 = vpop.f32.mrf.mxu2  ;;  %v2378_v58 = vrot.slane %v2362_v57, 1  ;;  %v8261_v50 = vperm.slane %v1249_v23, 0  ;;  %v12887_v43 = vld [vmem:[#allocation68_spill] sm:$0xff] }
 0x130   : > { %v1321_v56 = vadd.f32 %v12884_v53, %v12883_v29  ;;  %v1747_v60 = vmax.f32 %v1715_v41, 0.0  ;;  %v1512_v26 = vpop.f32.mrf.mxu3  ;;  %v1317_v33 = vrot.slane %v1316_v38, 1  ;;  %v1484_v52 = vadd.f32 %v1483_v14, %v8116_v59  ;;  %v1428_v44 = vpop.f32.mrf.mxu0 }
 0x131   : > { %v1513_v48 = vadd.f32 %v1512_v26, %v8145_v20  ;;  %v1457_v0 = vpop.f32.mrf.mxu1  ;;  %v8264_v36 = vadd.f32 %v1746_v61, %v12885_v46  ;;  %v1429_v41 = vadd.f32 %v1428_v44, %v12887_v43  ;;  %v8276_v23 = vadd.f32 %v1677_v39, %v7474_v51 }
 0x132   : > { %v1322_v17 = vrot.slane %v1321_v56, 2  ;;  %v8267_v29 = vadd.f32 %v1747_v60, %v8177_v49  ;;  %v1458_v57 = vadd.f32 %v1457_v0, %v8124_v45  ;;  %v1684_v53 = vadd.f32 %v8120_v42, %v1484_v52  ;;  %v12894_v60 = vld [vmem:[#allocation27_spill] sm:$0xff]  ;;  %v12896_v52 = vld [vmem:[#allocation29_spill] sm:$0xff] }
 0x133   : > { %v1685_v14 = vadd.f32 %v8149_v10, %v1513_v48  ;;  %v8273_v26 = vadd.f32 %v1317_v33, %v1316_v38  ;;  %12888 = vst [vmem:[#allocation85_spill] sm:$0xff] %v8276_v23  ;;  %v1690_v61 = vadd.f32 %v8169_v40, %v1429_v41  ;;  %v8285_v42 = vsel %vm709_vm4, %v2379_v54, 0.0 }
 0x134   : > { %12886 = vst [vmem:[#allocation64_spill] sm:$0xff] %v8267_v29  ;;  %v1323_v20 = vadd.f32 %v1322_v17, %v1321_v56  ;;  %v1691_v46 = vadd.f32 %v8181_v12, %v1458_v57  ;;  %6166 = vmatmul.msk.f32.gmra.mxu0 %vm817_vm5, %v8001_v3  ;;  %6171 = vmatmul.msk.f32.gmra.mxu1 %vm817_vm5, %v8001_v3  ;;  %v8292_v39 = vsel %vm709_vm4, %v2378_v58, 0.0 }
 0x135   : > { %12889 = vst [vmem:[#allocation45_spill] sm:$0xff] %v8285_v42  ;;  %6176 = vmatmul.msk.f32.gmra.mxu2 %vm817_vm5, %v8001_v3  ;;  %6181 = vmatmul.msk.f32.gmra.mxu3 %vm817_vm5, %v8001_v3  ;;  %v8296_v45 = vmul.f32 %v8254_v22, %v12848_v37  ;;  %v8300_v40 = vmul.f32 %v8261_v50, %v12848_v37 }
 0x136   : > { %12890 = vst [vmem:[#allocation65_spill] sm:$0xff] %v8292_v39  ;;  %v1324_v10 = vrot.slane %v1323_v20, 1  ;;  %v8303_v54 = vadd.f32 %v1684_v53, %v12841_v11  ;;  %v1722_v49 = vadd.f32 %v1690_v61, %v12798_v31  ;;  %v1723_v12 = vadd.f32 %v1691_v46, %v12798_v31 }
 0x137   : > { %12891 = vst [vmem:[#allocation46_spill] sm:$0xff] %v8296_v45  ;;  %v2348_v33 = vsub.f32 %v12894_v60, %v12809_v25  ;;  %v8310_v38 = vadd.f32 %v1685_v14, %v12841_v11  ;;  %v1638_v56 = vmul.f32 %v8273_v26, %v7339_v30  ;;  %v2349_v48 = vsub.f32 %v12896_v52, %v12809_v25  ;;  %v1486_v17 = vpop.f32.mrf.mxu2 }
 0x138   : > { %12892 = vst [vmem:[#allocation60_spill] sm:$0xff] %v8300_v40  ;;  %v8314_v58 = vadd.f32 %v1324_v10, %v1323_v20  ;;  %v1754_v44 = vmax.f32 %v1722_v49, 0.0  ;;  %v1755_v0 = vmax.f32 %v1723_v12, 0.0  ;;  %v1515_v43 = vpop.f32.mrf.mxu3  ;;  %v1487_v53 = vadd.f32 %v1486_v17, %v8192_v47  ;;  %v1535_v61 = vpop.f32.mrf.mxu0 }
 0x139   : > { %12893 = vst [vmem:[#allocation68_spill] sm:$0xff] %v8303_v54  ;;  %v2360_v41 = vmul.f32 %v2348_v33, %v2348_v33  ;;  %v2476_v57 = vrot.slane %v2348_v33, 1  ;;  %v1516_v14 = vadd.f32 %v1515_v43, %v8234_v8  ;;  %v1564_v46 = vpop.f32.mrf.mxu1  ;;  %v2361_v10 = vmul.f32 %v2349_v48, %v2349_v48  ;;  %v8333_v8 = vld [vmem:[%s6786_s12 + $0x30] sm:$0x7f] }
 0x13a   : > { %12895 = vst [vmem:[#allocation110_spill] sm:$0xff] %v8310_v38  ;;  %v1639_v20 = vmul.f32 %v8314_v58, %v7339_v30  ;;  %v8323_v35 = vadd.f32 %v1754_v44, %v7832_v16  ;;  %v8325_v49 = vadd.f32 %v1755_v0, %v1231_v1  ;;  %v1536_v12 = vadd.f32 %v1535_v61, %v8296_v45  ;;  %v12900_v0 = vld [vmem:[#allocation44_spill] sm:$0xff] }
 0x13b   : > { %v1565_v52 = vadd.f32 %v1564_v46, %v8300_v40  ;;  %6182 = vmatpush.msk.msrb.mxu0 %vm709_vm4, %v2476_v57  ;;  %v1692_v33 = vadd.f32 %v8196_v34, %v1487_v53  ;;  %v1693_v17 = vadd.f32 %v8238_v27, %v1516_v14  ;;  %v2376_v43 = vrot.slane %v2360_v41, 1  ;;  %12899 = vst [vmem:[#allocation113_spill] sm:$0xff] %v8333_v8  ;;  %v12913_v34 = vld [vmem:[#allocation52_spill] sm:$0xff] }
 0x13c   : > { %12897 = vst [vmem:[#allocation111_spill] sm:$0xff] %v8323_v35  ;;  %v1250_v29 = vmul.f32 %v8333_v8, %v7923_v21  ;;  %v1670_v16 = vadd.f32 %v1638_v56, %v1536_v12  ;;  %v2377_v44 = vrot.slane %v2361_v10, 1  ;;  %v2477_v1 = vrot.slane %v2349_v48, 1  ;;  %6183 = vmatmul.msk.f32.vlgmr.msrb.gmra.mxu0 %vm817_vm5, %v8080_v32 }
 0x13d   : > { %12898 = vst [vmem:[#allocation112_spill] sm:$0xff] %v8325_v49  ;;  %v12901_v61 = vrot.slane %v12900_v0, 4  ;;  %6193 = vmatmul.msk.f32.vlgmr.msrb.gmra.mxu2 %vm817_vm5, %v8080_v32  ;;  %6198 = vmatmul.msk.f32.vlgmr.msrb.gmra.mxu3 %vm817_vm5, %v8080_v32  ;;  %v8353_v14 = vadd.f32 %v1692_v33, %v12798_v31  ;;  %v1671_v46 = vadd.f32 %v1639_v20, %v1565_v52  ;;  %v8360_v12 = vsel %vm709_vm4, %v2376_v43, 0.0  ;;  %v8373_v20 = vld [vmem:[%s6786_s12 + $0x38] sm:$0x7f] }
 0x13e   : > { %6187 = vmatpush.msk.msrb.mxu1 %vm709_vm4, %v2477_v1  ;;  %v8357_v10 = vadd.f32 %v1693_v17, %v12798_v31  ;;  %12904 = vst [vmem:[#allocation115_spill] sm:$0xff] %v8360_v12  ;;  %v8367_v41 = vadd.f32 %v1670_v16, %v7399_v4  ;;  %v8370_v33 = vsel %vm709_vm4, %v2377_v44, 0.0  ;;  %v1251_v17 = vmul.f32 %v8373_v20, %v7923_v21  ;;  %v12908_v43 = vld [vmem:[#allocation43_spill] sm:$0xff]  ;;  %v12911_v16 = vld [vmem:[#allocation40_spill] sm:$0xff] }
 0x13f   : > { %v1328_v57 = vadd.f32 %v12901_v61, %v12900_v0  ;;  %12902 = vst [vmem:[#allocation44_spill] sm:$0xff] %v8353_v14  ;;  %6188 = vmatmul.msk.f32.vlgmr.msrb.gmra.mxu1 %vm817_vm5, %v8080_v32  ;;  %v8364_v61 = vperm.slane %v1250_v29, 0  ;;  %v1593_v52 = vpop.f32.mrf.mxu2  ;;  %v12909_v1 = vrot.slane %v12908_v43, 4  ;;  %v8386_v44 = vmul.f32 %v8254_v22, %v12911_v16 }
 0x140   : > { %12903 = vst [vmem:[#allocation114_spill] sm:$0xff] %v8357_v10  ;;  %v1622_v48 = vpop.f32.mrf.mxu3  ;;  %v1538_v56 = vpop.f32.mrf.mxu0  ;;  %v1646_v40 = vmul.f32 %v8273_v26, %v12913_v34  ;;  %v8390_v42 = vperm.slane %v1251_v17, 0 }
 0x141   : > { %v1329_v0 = vrot.slane %v1328_v57, 2  ;;  %12905 = vst [vmem:[#allocation116_spill] sm:$0xff] %v8367_v41  ;;  %v1335_v53 = vadd.f32 %v12909_v1, %v12908_v43  ;;  %v8382_v29 = vmul.f32 %v8364_v61, %v12848_v37  ;;  %v1567_v45 = vpop.f32.mrf.mxu1  ;;  %v8394_v43 = vmul.f32 %v8261_v50, %v12911_v16 }
 0x142   : > { %12906 = vst [vmem:[#allocation117_spill] sm:$0xff] %v8370_v33  ;;  %v1539_v38 = vadd.f32 %v1538_v56, %v8386_v44  ;;  %v8405_v17 = vmul.f32 %v8390_v42, %v12848_v37  ;;  %v8412_v8 = vmul.f32 %v8364_v61, %v12911_v16 }
 0x143   : > { %12907 = vst [vmem:[#allocation118_spill] sm:$0xff] %v8373_v20  ;;  %v1330_v27 = vadd.f32 %v1329_v0, %v1328_v57  ;;  %v1336_v21 = vrot.slane %v1335_v53, 2  ;;  %v1647_v57 = vmul.f32 %v8314_v58, %v12913_v34  ;;  %v8399_v0 = vadd.f32 %v1671_v46, %v7399_v4 }
 0x144   : > { %12910 = vst [vmem:[#allocation43_spill] sm:$0xff] %v8382_v29  ;;  %v1594_v39 = vadd.f32 %v1593_v52, %v8382_v29  ;;  %v1568_v20 = vadd.f32 %v1567_v45, %v8394_v43  ;;  %6184 = vmatmul.msk.f32.gmra.mxu0 %vm817_vm5, %v8155_v7  ;;  %v1678_v52 = vadd.f32 %v1646_v40, %v1539_v38 }
 0x145   : > { %12912 = vst [vmem:[#allocation119_spill] sm:$0xff] %v8386_v44  ;;  %v1331_v1 = vrot.slane %v1330_v27, 1  ;;  %v1337_v23 = vadd.f32 %v1336_v21, %v1335_v53  ;;  %6194 = vmatmul.msk.f32.gmra.mxu2 %vm817_vm5, %v8155_v7  ;;  %6199 = vmatmul.msk.f32.gmra.mxu3 %vm817_vm5, %v8155_v7  ;;  %v8423_v45 = vmul.f32 %v8390_v42, %v12911_v16 }
 0x146   : > { %12914 = vst [vmem:[#allocation52_spill] sm:$0xff] %v8394_v43  ;;  %v1679_v21 = vadd.f32 %v1647_v57, %v1568_v20  ;;  %v8428_v46 = vmul.f32 %v8254_v22, %v12857_v5  ;;  %v1623_v57 = vadd.f32 %v1622_v48, %v8405_v17  ;;  %v8445_v53 = vadd.f32 %v1678_v52, %v7474_v51 }
 0x147   : > { %12915 = vst [vmem:[#allocation120_spill] sm:$0xff] %v8399_v0  ;;  %v8415_v49 = vadd.f32 %v1331_v1, %v1330_v27  ;;  %v1338_v56 = vrot.slane %v1337_v23, 1  ;;  %6189 = vmatmul.msk.f32.gmra.mxu1 %vm817_vm5, %v8155_v7  ;;  %v8439_v1 = vmul.f32 %v8261_v50, %v12857_v5  ;;  %v1596_v40 = vpop.f32.mrf.mxu2  ;;  %v1654_v43 = vmul.f32 %v8273_v26, %v12863_v62 }
 0x148   : > { %12916 = vst [vmem:[#allocation121_spill] sm:$0xff] %v8405_v17  ;;  %v1625_v29 = vpop.f32.mrf.mxu3  ;;  %v8450_v33 = vadd.f32 %v1679_v21, %v7474_v51  ;;  %v1597_v12 = vadd.f32 %v1596_v40, %v8412_v8 }
 0x149   : > { %12917 = vst [vmem:[#allocation122_spill] sm:$0xff] %v8412_v8  ;;  %v1640_v38 = vmul.f32 %v8415_v49, %v7339_v30  ;;  %v1648_v27 = vmul.f32 %v8415_v49, %v12913_v34  ;;  %v8441_v20 = vadd.f32 %v1338_v56, %v1337_v23  ;;  %v1626_v14 = vadd.f32 %v1625_v29, %v8423_v45  ;;  %v1541_v23 = vpop.f32.mrf.mxu0  ;;  %v1570_v56 = vpop.f32.mrf.mxu1 }
 0x14a   : > { %12918 = vst [vmem:[#allocation123_spill] sm:$0xff] %v8423_v45  ;;  %v1542_v17 = vadd.f32 %v1541_v23, %v8428_v46  ;;  %v1571_v29 = vadd.f32 %v1570_v56, %v8439_v1  ;;  %v1656_v56 = vmul.f32 %v8415_v49, %v12863_v62 }
 0x14b   : > { %12919 = vst [vmem:[#allocation124_spill] sm:$0xff] %v8428_v46  ;;  %v1672_v44 = vadd.f32 %v1640_v38, %v1594_v39  ;;  %v1641_v48 = vmul.f32 %v8441_v20, %v7339_v30  ;;  %v1649_v52 = vmul.f32 %v8441_v20, %v12913_v34  ;;  %v1655_v39 = vmul.f32 %v8314_v58, %v12863_v62 }
 0x14c   : > { %12920 = vst [vmem:[#allocation125_spill] sm:$0xff] %v8439_v1  ;;  %v1680_v40 = vadd.f32 %v1648_v27, %v1597_v12  ;;  %6185 = vmatmul.msk.f32.gmra.mxu0 %vm817_vm5, %v7933_v2  ;;  %v1686_v46 = vadd.f32 %v1654_v43, %v1542_v17  ;;  %v8477_v12 = vmul.f32 %v8364_v61, %v12857_v5 }
 0x14d   : > { %12921 = vst [vmem:[#allocation126_spill] sm:$0xff] %v8445_v53  ;;  %v8463_v38 = vadd.f32 %v1672_v44, %v7399_v4  ;;  %v1673_v35 = vadd.f32 %v1641_v48, %v1623_v57  ;;  %v1681_v54 = vadd.f32 %v1649_v52, %v1626_v14  ;;  %6195 = vmatmul.msk.f32.gmra.mxu2 %vm817_vm5, %v7933_v2 }
 0x14e   : > { %12922 = vst [vmem:[#allocation127_spill] sm:$0xff] %v8450_v33  ;;  %6200 = vmatmul.msk.f32.gmra.mxu3 %vm817_vm5, %v7933_v2  ;;  %v8481_v44 = vmul.f32 %v8390_v42, %v12857_v5  ;;  %v8485_v27 = vadd.f32 %v1680_v40, %v7474_v51  ;;  %v1687_v43 = vadd.f32 %v1655_v39, %v1571_v29 }
 0x14f   : > { %12923 = vst [vmem:[#allocation128_spill] sm:$0xff] %v8463_v38  ;;  %v8489_v17 = vmul.f32 %v8254_v22, %v7160_v19  ;;  %6190 = vmatmul.msk.f32.gmra.mxu1 %vm817_vm5, %v7933_v2  ;;  %v1657_v48 = vmul.f32 %v8441_v20, %v12863_v62  ;;  %v8500_v52 = vmul.f32 %v8261_v50, %v7160_v19  ;;  %v1599_v40 = vpop.f32.mrf.mxu2 }
 0x150   : > { %12924 = vst [vmem:[#allocation129_spill] sm:$0xff] %v8477_v12  ;;  %v8503_v39 = vadd.f32 %v1673_v35, %v7399_v4  ;;  %v8506_v22 = vadd.f32 %v1681_v54, %v7474_v51  ;;  %v1628_v29 = vpop.f32.mrf.mxu3  ;;  %v1662_v57 = vmul.f32 %v8273_v26, %v12812_v63  ;;  %v1663_v14 = vmul.f32 %v8314_v58, %v12812_v63 }
 0x151   : > { %12925 = vst [vmem:[#allocation130_spill] sm:$0xff] %v8481_v44  ;;  %v8513_v8 = vadd.f32 %v1686_v46, %v12841_v11  ;;  %v1600_v50 = vadd.f32 %v1599_v40, %v8477_v12  ;;  %v1629_v23 = vadd.f32 %v1628_v29, %v8481_v44  ;;  %v1544_v35 = vpop.f32.mrf.mxu0  ;;  %v1573_v45 = vpop.f32.mrf.mxu1  ;;  %v2891_v54 = vsub.f32 %v12809_v25, %v12894_v60 }
 0x152   : > { %12926 = vst [vmem:[#allocation131_spill] sm:$0xff] %v8485_v27  ;;  %v8521_v38 = vadd.f32 %v1687_v43, %v12841_v11  ;;  %v1545_v26 = vadd.f32 %v1544_v35, %v8489_v17  ;;  %v1574_v58 = vadd.f32 %v1573_v45, %v8500_v52  ;;  %v8536_v45 = vmul.f32 %v8364_v61, %v7160_v19 }
 0x153   : > { %12927 = vst [vmem:[#allocation132_spill] sm:$0xff] %v8489_v17  ;;  %v1688_v46 = vadd.f32 %v1656_v56, %v1600_v50  ;;  %v1689_v33 = vadd.f32 %v1657_v48, %v1629_v23  ;;  %v2902_v0 = vmul.f32 %v2891_v54, %v2891_v54  ;;  %v3013_v40 = vrot.slane %v2891_v54, 1  ;;  %v12938_v50 = vld [vmem:[#allocation51_spill] sm:$0xff]  ;;  %v12940_v54 = vld [vmem:[#allocation53_spill] sm:$0xff] }
 0x154   : > { %12928 = vst [vmem:[#allocation133_spill] sm:$0xff] %v8500_v52  ;;  %v1694_v12 = vadd.f32 %v1662_v57, %v1545_v26  ;;  %v1695_v1 = vadd.f32 %v1663_v14, %v1574_v58  ;;  %6186 = vmatmul.msk.f32.gmra.mxu0 %vm817_vm5, %v8001_v3  ;;  %v8540_v23 = vmul.f32 %v8390_v42, %v7160_v19  ;;  %v12935_v14 = vld [vmem:[#allocation23_spill] sm:$0xff]  ;;  %v12939_v35 = vrot.slane %v12938_v50, 4 }
 0x155   : > { %12929 = vst [vmem:[#allocation134_spill] sm:$0xff] %v8503_v39  ;;  %6196 = vmatmul.msk.f32.gmra.mxu2 %vm817_vm5, %v8001_v3  ;;  %v2890_v57 = vsub.f32 %v12935_v14, %v12894_v60  ;;  %v8545_v56 = vadd.f32 %v1688_v46, %v12841_v11  ;;  %v8548_v48 = vadd.f32 %v1689_v33, %v12841_v11  ;;  %v12941_v26 = vrot.slane %v12940_v54, 4 }
 0x156   : > { %12930 = vst [vmem:[#allocation135_spill] sm:$0xff] %v8506_v22  ;;  %6201 = vmatmul.msk.f32.gmra.mxu3 %vm817_vm5, %v8001_v3  ;;  %v1841_v61 = vadd.f32 %v12939_v35, %v12938_v50  ;;  %v2918_v58 = vrot.slane %v2902_v0, 1  ;;  %v1664_v46 = vmul.f32 %v8415_v49, %v12812_v63  ;;  %v1665_v33 = vmul.f32 %v8441_v20, %v12812_v63 }
 0x157   : > { %12931 = vst [vmem:[#allocation136_spill] sm:$0xff] %v8513_v8  ;;  %6217 = vmatpush.msk.msra.mxu3 %vm709_vm4, %v3013_v40  ;;  %v1848_v42 = vadd.f32 %v12941_v26, %v12940_v54  ;;  %6191 = vmatmul.msk.f32.gmra.mxu1 %vm817_vm5, %v8001_v3  ;;  %v2901_v44 = vmul.f32 %v2890_v57, %v2890_v57  ;;  %v1602_v35 = vpop.f32.mrf.mxu2  ;;  %v3012_v26 = vrot.slane %v2890_v57, 1  ;;  %v12956_v8 = vld [vmem:[#allocation47_spill] sm:$0xff] }
 0x158   : > { %12932 = vst [vmem:[#allocation137_spill] sm:$0xff] %v8521_v38  ;;  %v8565_v29 = vadd.f32 %v1694_v12, %v12798_v31  ;;  %v8568_v50 = vadd.f32 %v1695_v1, %v12798_v31  ;;  %v1631_v54 = vpop.f32.mrf.mxu3  ;;  %v1603_v0 = vadd.f32 %v1602_v35, %v8536_v45  ;;  %v1842_v43 = vrot.slane %v1841_v61, 2  ;;  %v12944_v1 = vld [vmem:[#allocation21_spill] sm:$0xff]  ;;  %v12948_v38 = vld [vmem:[#allocation22_spill] sm:$0xff] }
 0x159   : > { %12933 = vst [vmem:[#allocation138_spill] sm:$0xff] %v8536_v45  ;;  %v1632_v21 = vadd.f32 %v1631_v54, %v8540_v23  ;;  %v2917_v49 = vrot.slane %v2901_v44, 1  ;;  %v1969_v22 = vpop.f32.mrf.mxu0  ;;  %v1998_v20 = vpop.f32.mrf.mxu1  ;;  %6212 = vmatpush.msk.msra.mxu2 %vm709_vm4, %v3012_v26  ;;  %v1849_v12 = vrot.slane %v1848_v42, 2  ;;  %v2888_v27 = vsub.f32 %v12944_v1, %v12894_v60 }
 0x15a   : > { %12934 = vst [vmem:[#allocation139_spill] sm:$0xff] %v8540_v23  ;;  %v8578_v57 = vsel %vm709_vm4, %v2918_v58, 0.0  ;;  %v1696_v35 = vadd.f32 %v1664_v46, %v1603_v0  ;;  %v1843_v54 = vadd.f32 %v1842_v43, %v1841_v61  ;;  %v2889_v58 = vsub.f32 %v12948_v38, %v12894_v60 }
 0x15b   : > { %12936 = vst [vmem:[#allocation140_spill] sm:$0xff] %v8545_v56  ;;  %v1697_v45 = vadd.f32 %v1665_v33, %v1632_v21  ;;  %v8582_v23 = vsel %vm709_vm4, %v2917_v49, 0.0  ;;  %v1850_v39 = vadd.f32 %v1849_v12, %v1848_v42  ;;  %v3010_v56 = vrot.slane %v2888_v27, 1  ;;  %v12949_v42 = vld [vmem:[#allocation37_spill] sm:$0xff]  ;;  %v12950_v33 = vld [vmem:[#allocation54_spill] sm:$0xff]  ;;  %v12951_v12 = vld [vmem:[#allocation71_spill] sm:$0xff] }
 0x15c   : > { %12937 = vst [vmem:[#allocation141_spill] sm:$0xff] %v8548_v48  ;;  %v8585_v40 = vadd.f32 %v1696_v35, %v12798_v31  ;;  %v1844_v26 = vrot.slane %v1843_v54, 1  ;;  %v8587_v48 = vmul.f32 %v2888_v27, %v2888_v27  ;;  %v520_v27 = vmul.f32 %v12949_v42, %v12949_v42  ;;  %v12955_v21 = vld [vmem:[#allocation39_spill] sm:$0xff] }
 0x15d   : > { %12942 = vst [vmem:[#allocation51_spill] sm:$0xff] %v8565_v29  ;;  %6213 = vmatmul.msk.f32.vlgmr.msra.gmra.mxu2 %vm817_vm5, %v8080_v32  ;;  %v1851_v61 = vrot.slane %v1850_v39, 1  ;;  %6202 = vmatpush.msk.msra.mxu0 %vm709_vm4, %v3010_v56  ;;  %v1970_v0 = vadd.f32 %v1969_v22, %v12950_v33  ;;  %v1999_v49 = vadd.f32 %v1998_v20, %v8017_v18  ;;  %v3011_v56 = vrot.slane %v2889_v58, 1 }
 0x15e   : > { %12943 = vst [vmem:[#allocation53_spill] sm:$0xff] %v8568_v50  ;;  %6218 = vmatmul.msk.f32.vlgmr.msra.gmra.mxu3 %vm817_vm5, %v8080_v32  ;;  %v8600_v46 = vadd.f32 %v1844_v26, %v1843_v54  ;;  %6203 = vmatmul.msk.f32.vlgmr.msra.gmra.mxu0 %vm817_vm5, %v8080_v32  ;;  %v1144_v35 = vadd.f32 %v12951_v12, %v7399_v4  ;;  %v8611_v43 = vperm.slane %v520_v27, 0  ;;  %v12953_v27 = vld [vmem:[#allocation48_spill] sm:$0xff] }
 0x15f   : > { %12945 = vst [vmem:[#allocation142_spill] sm:$0xff] %v8578_v57  ;;  %v8609_v44 = vadd.f32 %v1851_v61, %v1850_v39  ;;  %v2027_v50 = vpop.f32.mrf.mxu2  ;;  %v8615_v22 = vadd.f32 %v1697_v45, %v12798_v31  ;;  %6207 = vmatpush.msk.msra.mxu1 %vm709_vm4, %v3011_v56  ;;  %v12954_v26 = vrot.slane %v12953_v27, 4  ;;  %v8630_v29 = vmul.f32 %v2889_v58, %v2889_v58 }
 0x160   : > { %12946 = vst [vmem:[#allocation143_spill] sm:$0xff] %v8582_v23  ;;  %v2056_v54 = vpop.f32.mrf.mxu3  ;;  %v2184_v18 = vmul.f32 %v8600_v46, %v7339_v30  ;;  %v536_v61 = vmul.f32 %v8611_v43, %v12848_v37  ;;  %6208 = vmatmul.msk.f32.vlgmr.msra.gmra.mxu1 %vm817_vm5, %v8080_v32  ;;  %v1176_v20 = vmax.f32 %v1144_v35, 0.0  ;;  %v12957_v56 = vrot.slane %v12956_v8, 4  ;;  %v12958_v23 = vld [vmem:[#allocation58_spill] sm:$0xff] }
 0x161   : > { %12947 = vst [vmem:[#allocation144_spill] sm:$0xff] %v8585_v40  ;;  %v1972_v33 = vpop.f32.mrf.mxu0  ;;  %v2001_v12 = vpop.f32.mrf.mxu1  ;;  %v2185_v39 = vmul.f32 %v8609_v44, %v7339_v30  ;;  %v1855_v45 = vadd.f32 %v12954_v26, %v12953_v27  ;;  %v1802_v40 = vmul.f32 %v12955_v21, %v12949_v42  ;;  %v2192_v35 = vmul.f32 %v8600_v46, %v12913_v34 }
 0x162   : > { %12952 = vst [vmem:[#allocation37_spill] sm:$0xff] %v8615_v22  ;;  %v2216_v52 = vadd.f32 %v2184_v18, %v1970_v0  ;;  %v1862_v53 = vadd.f32 %v12957_v56, %v12956_v8  ;;  %v568_v17 = vadd.f32 %v536_v61, %v7399_v4  ;;  %v1973_v26 = vadd.f32 %v1972_v33, %v12958_v23  ;;  %v12979_v22 = vld [vmem:[#allocation68_spill] sm:$0xff] }
 0x163   : > { %v2217_v41 = vadd.f32 %v2185_v39, %v1999_v49  ;;  %v1856_v57 = vrot.slane %v1855_v45, 2  ;;  %v2028_v21 = vadd.f32 %v2027_v50, %v536_v61  ;;  %v8640_v58 = vperm.slane %v1802_v40, 0 }
 0x164   : > { %v2248_v27 = vadd.f32 %v2216_v52, %v7399_v4  ;;  %v1863_v42 = vrot.slane %v1862_v53, 2  ;;  %v600_v0 = vmax.f32 %v568_v17, 0.0  ;;  %v2002_v40 = vadd.f32 %v2001_v12, %v8060_v15 }
 0x165   : > { %6214 = vmatmul.msk.f32.gmra.mxu2 %vm817_vm5, %v8155_v7  ;;  %v2249_v8 = vadd.f32 %v2217_v41, %v7399_v4  ;;  %v1857_v49 = vadd.f32 %v1856_v57, %v1855_v45  ;;  %v8651_v52 = vmul.f32 %v8640_v58, %v12848_v37  ;;  %v2224_v41 = vadd.f32 %v2192_v35, %v1973_v26  ;;  %v12959_v35 = vld [vmem:[#allocation78_spill] sm:$0xff] }
 0x166   : > { %6219 = vmatmul.msk.f32.gmra.mxu3 %vm817_vm5, %v8155_v7  ;;  %v2280_v23 = vmax.f32 %v2248_v27, 0.0  ;;  %v1864_v18 = vadd.f32 %v1863_v42, %v1862_v53  ;;  %6204 = vmatmul.msk.f32.gmra.mxu0 %vm817_vm5, %v8155_v7  ;;  %v632_v33 = vsub.f32 0.0, %v600_v0  ;;  %v2193_v56 = vmul.f32 %v8609_v44, %v12913_v34 }
 0x167   : > { %v2281_v50 = vmax.f32 %v2249_v8, 0.0  ;;  %v1858_v39 = vrot.slane %v1857_v49, 1  ;;  %v2030_v17 = vpop.f32.mrf.mxu2  ;;  %v2057_v53 = vadd.f32 %v2056_v54, %v8651_v52  ;;  %v2256_v26 = vadd.f32 %v2224_v41, %v7474_v51 }
 0x168   : > { %v2059_v57 = vpop.f32.mrf.mxu3  ;;  %v8657_v61 = vadd.f32 %v2280_v23, %v8136_v13  ;;  %v1865_v45 = vrot.slane %v1864_v18, 1  ;;  %v1208_v42 = vadd.f32 %v1176_v20, %v632_v33  ;;  %v2225_v13 = vadd.f32 %v2193_v56, %v2002_v40  ;;  %6209 = vmatmul.msk.f32.gmra.mxu1 %vm817_vm5, %v8155_v7 }
 0x169   : > { %v1975_v27 = vpop.f32.mrf.mxu0  ;;  %v2004_v15 = vpop.f32.mrf.mxu1  ;;  %v8663_v12 = vadd.f32 %v2281_v50, %v8139_v24  ;;  %v8665_v8 = vadd.f32 %v1858_v39, %v1857_v49  ;;  %v544_v54 = vmul.f32 %v8611_v43, %v12911_v16  ;;  %v1152_v23 = vadd.f32 %v12959_v35, %v7474_v51 }
 0x16a   : > { %v8668_v0 = vadd.f32 %v1865_v45, %v1864_v18  ;;  %v12960_v24 = vmax.f32 %v8185_v9, 0.0  ;;  %v2288_v49 = vmax.f32 %v2256_v26, 0.0  ;;  %v2257_v33 = vadd.f32 %v2225_v13, %v7474_v51 }
 0x16b   : > { %v2186_v20 = vmul.f32 %v8665_v8, %v7339_v30  ;;  %v2194_v18 = vmul.f32 %v8665_v8, %v12913_v34  ;;  %v576_v39 = vadd.f32 %v544_v54, %v7474_v51  ;;  %v1184_v41 = vmax.f32 %v1152_v23, 0.0 }
 0x16c   : > { %v1764_v50 = vadd.f32 %v12960_v24, %v1208_v42  ;;  %v2187_v40 = vmul.f32 %v8668_v0, %v7339_v30  ;;  %v8691_v45 = vadd.f32 %v2288_v49, %v8207_v6  ;;  %v2031_v56 = vadd.f32 %v2030_v17, %v544_v54  ;;  %v12962_v17 = vld [vmem:[#allocation62_spill] sm:$0xff] }
 0x16d   : > { %6215 = vmatmul.msk.f32.gmra.mxu2 %vm817_vm5, %v7933_v2  ;;  %v2218_v9 = vadd.f32 %v2186_v20, %v2028_v21  ;;  %v8695_v42 = vmul.f32 %v8640_v58, %v12911_v16  ;;  %v2289_v13 = vmax.f32 %v2257_v33, 0.0  ;;  %v608_v35 = vmax.f32 %v576_v39, 0.0 }
 0x16e   : > { %6220 = vmatmul.msk.f32.gmra.mxu3 %vm817_vm5, %v7933_v2  ;;  %12961 = vst [vmem:[#allocation54_spill] sm:$0xff] %v8691_v45  ;;  %v8697_v26 = vadd.f32 %v2187_v40, %v2057_v53  ;;  %v2195_v23 = vmul.f32 %v8668_v0, %v12913_v34  ;;  %6205 = vmatmul.msk.f32.gmra.mxu0 %vm817_vm5, %v7933_v2  ;;  %v12963_v53 = vrot.slane %v8587_v48, 1 }
 0x16f   : > { %v2250_v21 = vadd.f32 %v2218_v9, %v7399_v4  ;;  %v2226_v24 = vadd.f32 %v2194_v18, %v2031_v56  ;;  %v2060_v6 = vadd.f32 %v2059_v57, %v8695_v42  ;;  %v1976_v54 = vadd.f32 %v1975_v27, %v12962_v17  ;;  %v2033_v20 = vpop.f32.mrf.mxu2 }
 0x170   : > { %v2062_v49 = vpop.f32.mrf.mxu3  ;;  %v8709_v40 = vsel %vm709_vm4, %v12963_v53, 0.0  ;;  %v8712_v33 = vadd.f32 %v2289_v13, %v8210_v55  ;;  %v640_v39 = vsub.f32 0.0, %v608_v35  ;;  %v2200_v2 = vmul.f32 %v8600_v46, %v12863_v62  ;;  %v8724_v13 = vld [vmem:[%s12256_s1 + $0x10] sm:$0xff] }
 0x171   : > { %12964 = vst [vmem:[#allocation71_spill] sm:$0xff] %v8709_v40  ;;  %v1978_v9 = vpop.f32.mrf.mxu0  ;;  %v2007_v18 = vpop.f32.mrf.mxu1  ;;  %v2282_v56 = vmax.f32 %v2250_v21, 0.0  ;;  %v2258_v57 = vadd.f32 %v2226_v24, %v7474_v51  ;;  %v2227_v27 = vadd.f32 %v2195_v23, %v2060_v6  ;;  %v2005_v17 = vadd.f32 %v2004_v15, %v8116_v59  ;;  %6210 = vmatmul.msk.f32.gmra.mxu1 %vm817_vm5, %v8724_v13 }
 0x172   : > { %12965 = vst [vmem:[#allocation48_spill] sm:$0xff] %v8712_v33  ;;  %v1216_v10 = vadd.f32 %v1184_v41, %v640_v39  ;;  %v2232_v53 = vadd.f32 %v2200_v2, %v1976_v54  ;;  %v2201_v55 = vmul.f32 %v8609_v44, %v12863_v62  ;;  %v552_v15 = vmul.f32 %v8611_v43, %v12857_v5 }
 0x173   : > { %v8729_v23 = vadd.f32 %v2282_v56, %v1764_v50  ;;  %v2290_v59 = vmax.f32 %v2258_v57, 0.0  ;;  %v12967_v41 = vmax.f32 %v8250_v28, 0.0  ;;  %v2202_v54 = vmul.f32 %v8665_v8, %v12863_v62 }
 0x174   : > { %v2264_v24 = vadd.f32 %v2232_v53, %v12841_v11  ;;  %v2233_v6 = vadd.f32 %v2201_v55, %v2005_v17  ;;  %v2916_v39 = vrot.slane %v8630_v29, 1  ;;  %v584_v50 = vadd.f32 %v552_v15, %v12841_v11  ;;  %v12970_v55 = vld [vmem:[#allocation67_spill] sm:$0xff] }
 0x175   : > { %12966 = vst [vmem:[#allocation39_spill] sm:$0xff] %v8729_v23  ;;  %v1772_v21 = vadd.f32 %v12967_v41, %v1216_v10  ;;  %6216 = vmatmul.msk.f32.gmra.mxu2 %vm817_vm5, %v8001_v3  ;;  %v2034_v2 = vadd.f32 %v2033_v20, %v552_v15  ;;  %v8744_v56 = vmul.f32 %v8640_v58, %v12857_v5  ;;  %v12980_v40 = vmax.f32 %v12979_v22, 0.0 }
 0x176   : > { %6221 = vmatmul.msk.f32.gmra.mxu3 %vm817_vm5, %v8001_v3  ;;  %v2296_v10 = vmax.f32 %v2264_v24, 0.0  ;;  %v2265_v57 = vadd.f32 %v2233_v6, %v12841_v11  ;;  %v2203_v17 = vmul.f32 %v8668_v0, %v12863_v62  ;;  %6206 = vmatmul.msk.f32.gmra.mxu0 %vm817_vm5, %v8001_v3  ;;  %v616_v29 = vmax.f32 %v584_v50, 0.0 }
 0x177   : > { %12968 = vst [vmem:[#allocation47_spill] sm:$0xff] %v8744_v56  ;;  %v8748_v28 = vadd.f32 %v2290_v59, %v1772_v21  ;;  %v2234_v20 = vadd.f32 %v2202_v54, %v2034_v2  ;;  %v2063_v53 = vadd.f32 %v2062_v49, %v8744_v56  ;;  %v1979_v15 = vadd.f32 %v1978_v9, %v12970_v55  ;;  %v2036_v41 = vpop.f32.mrf.mxu2  ;;  %v12972_v2 = vld [vmem:[#allocation64_spill] sm:$0xff] }
 0x178   : > { %v2065_v48 = vpop.f32.mrf.mxu3  ;;  %v8758_v59 = vadd.f32 %v2296_v10, %v8264_v36  ;;  %v2297_v21 = vmax.f32 %v2265_v57, 0.0  ;;  %v2208_v24 = vmul.f32 %v8600_v46, %v12812_v63  ;;  %v2008_v6 = vadd.f32 %v2007_v18, %v8192_v47  ;;  %v8776_v46 = vld [vmem:[%s12256_s1 + $0x18] sm:$0xff]  ;;  %v12974_v47 = vld [vmem:[#allocation25_spill] sm:$0xff] }
 0x179   : > { %12969 = vst [vmem:[#allocation58_spill] sm:$0xff] %v8748_v28  ;;  %v8763_v35 = vpop.f32.mrf.mxu0  ;;  %v8765_v3 = vpop.f32.mrf.mxu1  ;;  %v648_v54 = vsub.f32 0.0, %v616_v29  ;;  %v2266_v49 = vadd.f32 %v2234_v20, %v12841_v11  ;;  %v2235_v50 = vadd.f32 %v2203_v17, %v2063_v53  ;;  %v2209_v9 = vmul.f32 %v8609_v44, %v12812_v63  ;;  %6211 = vmatmul.msk.f32.gmra.mxu1 %vm817_vm5, %v8776_v46  ;;  %v12976_v17 = vld [vmem:[#allocation89_spill] sm:$0xff] }
 0x17a   : > { %12971 = vst [vmem:[#allocation78_spill] sm:$0xff] %v8758_v59  ;;  %v8771_v36 = vadd.f32 %v2297_v21, %v12972_v2  ;;  %v2240_v10 = vadd.f32 %v2208_v24, %v1979_v15  ;;  %v2895_v18 = vsub.f32 %v12974_v47, %v12894_v60  ;;  %v560_v57 = vmul.f32 %v8611_v43, %v7160_v19 }
 0x17b   : > { %v8785_v44 = vsel %vm709_vm4, %v2916_v39, 0.0  ;;  %v12977_v29 = vmax.f32 %v12976_v17, 0.0  ;;  %v2298_v53 = vmax.f32 %v2266_v49, 0.0  ;;  %v2241_v55 = vadd.f32 %v2209_v9, %v2008_v6 }
 0x17c   : > { %12973 = vst [vmem:[#allocation62_spill] sm:$0xff] %v8771_v36  ;;  %v8791_v15 = vadd.f32 %v8697_v26, %v7399_v4  ;;  %v2272_v21 = vadd.f32 %v2240_v10, %v12798_v31  ;;  %v3017_v24 = vrot.slane %v2895_v18, 1  ;;  %v592_v2 = vadd.f32 %v560_v57, %v12798_v31 }
 0x17d   : > { %12975 = vst [vmem:[#allocation67_spill] sm:$0xff] %v8785_v44  ;;  %v1224_v20 = vadd.f32 %v12977_v29, %v648_v54  ;;  %v2273_v39 = vadd.f32 %v2241_v55, %v12798_v31  ;;  %v2906_v47 = vmul.f32 %v2895_v18, %v2895_v18  ;;  %v2037_v36 = vadd.f32 %v2036_v41, %v560_v57  ;;  %v12985_v18 = vld [vmem:[#allocation111_spill] sm:$0xff] }
 0x17e   : > { %12978 = vst [vmem:[#allocation64_spill] sm:$0xff] %v8791_v15  ;;  %v8799_v54 = vadd.f32 %v2227_v27, %v7474_v51  ;;  %v2304_v6 = vmax.f32 %v2272_v21, 0.0  ;;  %6237 = vmatpush.msk.msrb.mxu3 %vm709_vm4, %v3017_v24  ;;  %v624_v26 = vmax.f32 %v592_v2, 0.0  ;;  %v2210_v49 = vmul.f32 %v8665_v8, %v12812_v63  ;;  %v12989_v21 = vld [vmem:[#allocation26_spill] sm:$0xff] }
 0x17f   : > { %v1780_v43 = vadd.f32 %v12980_v40, %v1224_v20  ;;  %v2305_v10 = vmax.f32 %v2273_v39, 0.0  ;;  %v8808_v22 = vmul.f32 %v8640_v58, %v7160_v19  ;;  %v2211_v40 = vmul.f32 %v8668_v0, %v12812_v63  ;;  %6238 = vmatmul.msk.f32.vlgmr.msrb.gmra.mxu3 %vm817_vm5, %v8080_v32  ;;  %v8814_v27 = vpop.f32.mrf.mxu2  ;;  %v12987_v0 = vld [vmem:[#allocation112_spill] sm:$0xff] }
 0x180   : > { %12981 = vst [vmem:[#allocation89_spill] sm:$0xff] %v8799_v54  ;;  %v8816_v41 = vpop.f32.mrf.mxu3  ;;  %v8819_v8 = vadd.f32 %v2235_v50, %v12841_v11  ;;  %v8822_v57 = vadd.f32 %v2304_v6, %v12985_v18  ;;  %v656_v17 = vsub.f32 0.0, %v624_v26  ;;  %v2242_v58 = vadd.f32 %v2210_v49, %v2037_v36  ;;  %v12990_v50 = vld [vmem:[#allocation69_spill] sm:$0xff]  ;;  %v6518_v6 = vld [vmem:[%s6786_s12 + $0x10] sm:$0x7f]  ;;  %v12992_v36 = vld [vmem:[#allocation87_spill] sm:$0xff] }
 0x181   : > { %v8804_v9 = vadd.f32 %v2298_v53, %v1780_v43  ;;  %12983 = vst [vmem:[#allocation145_spill] sm:$0xff] %v8808_v22  ;;  %v8824_v29 = vpop.f32.mrf.mxu0  ;;  %v8826_v20 = vpop.f32.mrf.mxu1  ;;  %v8829_v53 = vadd.f32 %v2305_v10, %v12987_v0  ;;  %v2922_v32 = vrot.slane %v2906_v47, 1  ;;  %v2066_v55 = vadd.f32 %v2065_v48, %v8808_v22  ;;  %v12993_v49 = vld [vmem:[#allocation76_spill] sm:$0xff]  ;;  %v12995_v48 = vld [vmem:[#allocation57_spill] sm:$0xff] }
 0x182   : > { %12984 = vst [vmem:[#allocation146_spill] sm:$0xff] %v8819_v8  ;;  %v2894_v24 = vsub.f32 %v12989_v21, %v12894_v60  ;;  %v12991_v2 = vmax.f32 %v12990_v50, 0.0  ;;  %v2274_v39 = vadd.f32 %v2242_v58, %v12798_v31  ;;  %v1803_v26 = vmul.f32 %v6518_v6, %v12992_v36  ;;  %v12996_v22 = vld [vmem:[#allocation44_spill] sm:$0xff]  ;;  %v13006_v8 = vld [vmem:[#allocation73_spill] sm:$0xff] }
 0x183   : > { %12982 = vst [vmem:[#allocation68_spill] sm:$0xff] %v8804_v9  ;;  %v12994_v18 = vrot.slane %v12993_v49, 4  ;;  %v2243_v10 = vadd.f32 %v2211_v40, %v2066_v55  ;;  %v12997_v21 = vmax.f32 %v12996_v22, 0.0  ;;  %v8851_v36 = vsel %vm709_vm4, %v2922_v32, 0.0  ;;  %v12999_v40 = vld [vmem:[#allocation80_spill] sm:$0xff] }
 0x184   : > { %12986 = vst [vmem:[#allocation111_spill] sm:$0xff] %v8822_v57  ;;  %v1232_v43 = vadd.f32 %v12991_v2, %v656_v17  ;;  %v8842_v0 = vmul.f32 %v2894_v24, %v2894_v24  ;;  %v3016_v47 = vrot.slane %v2894_v24, 1  ;;  %v2306_v50 = vmax.f32 %v2274_v39, 0.0  ;;  %v8870_v32 = vld [vmem:[%s12256_s1] sm:$0xff] }
 0x185   : > { %12988 = vst [vmem:[#allocation112_spill] sm:$0xff] %v8829_v53  ;;  %v1869_v57 = vadd.f32 %v12994_v18, %v12993_v49  ;;  %v1804_v53 = vmul.f32 %v6518_v6, %v12995_v48  ;;  %v8847_v2 = vperm.slane %v1803_v26, 0  ;;  %v13000_v55 = vrot.slane %v12999_v40, 4  ;;  %v13005_v48 = vld [vmem:[#allocation113_spill] sm:$0xff] }
 0x186   : > { %v1788_v9 = vadd.f32 %v12997_v21, %v1232_v43  ;;  %12998 = vst [vmem:[#allocation69_spill] sm:$0xff] %v8851_v36  ;;  %6232 = vmatpush.msk.msrb.mxu2 %vm709_vm4, %v3016_v47  ;;  %v2892_v43 = vsub.f32 %v12894_v60, %v12894_v60  ;;  %v1805_v36 = vmul.f32 %v6518_v6, %v13005_v48  ;;  %v13007_v59 = vrot.slane %v13006_v8, 4 }
 0x187   : > { %v1870_v17 = vrot.slane %v1869_v57, 2  ;;  %v1876_v24 = vadd.f32 %v13000_v55, %v12999_v40  ;;  %v8857_v49 = vperm.slane %v1804_v53, 0  ;;  %v8863_v21 = vmul.f32 %v8847_v2, %v12848_v37  ;;  %6233 = vmatmul.msk.f32.vlgmr.msrb.gmra.mxu2 %vm817_vm5, %v8870_v32  ;;  %6239 = vmatmul.msk.f32.gmra.mxu3 %vm817_vm5, %v8155_v7  ;;  %v13004_v53 = vld [vmem:[#allocation29_spill] sm:$0xff] }
 0x188   : > { %v8859_v18 = vadd.f32 %v2306_v50, %v1788_v9  ;;  %v8879_v26 = vpop.f32.mrf.mxu2  ;;  %v8881_v47 = vpop.f32.mrf.mxu3  ;;  %v2921_v50 = vrot.slane %v8842_v0, 1  ;;  %v2903_v40 = vmul.f32 %v2892_v43, %v2892_v43  ;;  %v3014_v7 = vrot.slane %v2892_v43, 1  ;;  %v13008_v43 = vld [vmem:[#allocation118_spill] sm:$0xff] }
 0x189   : > { %v1871_v22 = vadd.f32 %v1870_v17, %v1869_v57  ;;  %13002 = vst [vmem:[#allocation76_spill] sm:$0xff] %v8863_v21  ;;  %v1877_v39 = vrot.slane %v1876_v24, 2  ;;  %v8885_v55 = vpop.f32.mrf.mxu0  ;;  %v8887_v58 = vpop.f32.mrf.mxu1  ;;  %v8891_v57 = vmul.f32 %v8857_v49, %v12848_v37  ;;  %v2893_v44 = vsub.f32 %v13004_v53, %v12894_v60 }
 0x18a   : > { %13001 = vst [vmem:[#allocation87_spill] sm:$0xff] %v8859_v18  ;;  %v2086_v0 = vadd.f32 %v8763_v35, %v8863_v21  ;;  %v1883_v54 = vadd.f32 %v13007_v59, %v13006_v8  ;;  %6222 = vmatpush.msk.msrb.mxu0 %vm709_vm4, %v3014_v7  ;;  %v1806_v28 = vmul.f32 %v6518_v6, %v13008_v43  ;;  %v8909_v48 = vperm.slane %v1805_v36, 0 }
 0x18b   : > { %v1872_v17 = vrot.slane %v1871_v22, 1  ;;  %v1878_v9 = vadd.f32 %v1877_v39, %v1876_v24  ;;  %13003 = vst [vmem:[#allocation57_spill] sm:$0xff] %v8891_v57  ;;  %v2904_v39 = vmul.f32 %v2893_v44, %v2893_v44  ;;  %v3015_v56 = vrot.slane %v2893_v44, 1  ;;  %6223 = vmatmul.msk.f32.vlgmr.msrb.gmra.mxu0 %vm817_vm5, %v8870_v32  ;;  %v13009_v44 = vld [vmem:[#allocation70_spill] sm:$0xff] }
 0x18c   : > { %v1884_v35 = vrot.slane %v1883_v54, 2  ;;  %v2115_v59 = vadd.f32 %v8765_v3, %v8891_v57  ;;  %v13010_v6 = vrot.slane %v13009_v44, 4  ;;  %v8948_v43 = vsel %vm709_vm4, %v2921_v50, 0.0 }
 0x18d   : > { %v8895_v18 = vadd.f32 %v1872_v17, %v1871_v22  ;;  %v1879_v24 = vrot.slane %v1878_v9, 1  ;;  %v2919_v17 = vrot.slane %v2903_v40, 1  ;;  %v2920_v8 = vrot.slane %v2904_v39, 1  ;;  %6227 = vmatpush.msk.msrb.mxu1 %vm709_vm4, %v3015_v56  ;;  %v8933_v56 = vld [vmem:[%s12256_s1 + $0x8] sm:$0xff]  ;;  %13013 = vst [vmem:[#allocation113_spill] sm:$0xff] %v8948_v43  ;;  %v13061_v43 = vld [vmem:[#allocation48_spill] sm:$0xff] }
 0x18e   : > { %v1890_v7 = vadd.f32 %v13010_v6, %v13009_v44  ;;  %v8920_v40 = vadd.f32 %v2243_v10, %v12798_v31  ;;  %6228 = vmatmul.msk.f32.vlgmr.msrb.gmra.mxu1 %vm817_vm5, %v8870_v32  ;;  %v1885_v36 = vadd.f32 %v1884_v35, %v1883_v54  ;;  %v8941_v54 = vmul.f32 %v8847_v2, %v12911_v16 }
 0x18f   : > { %v2188_v22 = vmul.f32 %v8895_v18, %v7339_v30  ;;  %v8911_v21 = vadd.f32 %v1879_v24, %v1878_v9  ;;  %v8926_v9 = vmul.f32 %v8909_v48, %v12848_v37  ;;  %v8928_v24 = vperm.slane %v1806_v28, 0  ;;  %6234 = vmatmul.msk.f32.gmra.mxu2 %vm817_vm5, %v8933_v56  ;;  %6240 = vmatmul.msk.f32.gmra.mxu3 %vm817_vm5, %v8724_v13 }
 0x190   : > { %v1891_v39 = vrot.slane %v1890_v7, 2  ;;  %13012 = vst [vmem:[#allocation80_spill] sm:$0xff] %v8941_v54  ;;  %v8945_v28 = vpop.f32.mrf.mxu2  ;;  %v8951_v35 = vsel %vm709_vm4, %v2919_v17, 0.0  ;;  %v8956_v44 = vpop.f32.mrf.mxu3  ;;  %v2089_v15 = vadd.f32 %v8824_v29, %v8941_v54 }
 0x191   : > { %13011 = vst [vmem:[#allocation44_spill] sm:$0xff] %v8926_v9  ;;  %v2220_v3 = vadd.f32 %v2188_v22, %v2086_v0  ;;  %v2189_v10 = vmul.f32 %v8911_v21, %v7339_v30  ;;  %v8954_v0 = vsel %vm709_vm4, %v2920_v8, 0.0  ;;  %v1886_v22 = vrot.slane %v1885_v36, 1  ;;  %v8964_v50 = vpop.f32.mrf.mxu0  ;;  %v8966_v23 = vpop.f32.mrf.mxu1 }
 0x192   : > { %13014 = vst [vmem:[#allocation73_spill] sm:$0xff] %v8951_v35  ;;  %v1892_v57 = vadd.f32 %v1891_v39, %v1890_v7  ;;  %v8960_v60 = vmul.f32 %v8928_v24, %v12848_v37  ;;  %v2144_v8 = vadd.f32 %v8814_v27, %v8926_v9  ;;  %v8976_v7 = vmul.f32 %v8857_v49, %v12911_v16  ;;  %v13063_v35 = vld [vmem:[#allocation39_spill] sm:$0xff] }
 0x193   : > { %13015 = vst [vmem:[#allocation118_spill] sm:$0xff] %v8954_v0  ;;  %v2221_v6 = vadd.f32 %v2189_v10, %v2115_v59  ;;  %v8968_v17 = vadd.f32 %v1886_v22, %v1885_v36  ;;  %v2196_v59 = vmul.f32 %v8895_v18, %v12913_v34  ;;  %v8979_v10 = vadd.f32 %v2220_v3, %v7399_v4 }
 0x194   : > { %13016 = vst [vmem:[#allocation70_spill] sm:$0xff] %v8960_v60  ;;  %v1893_v39 = vrot.slane %v1892_v57, 1  ;;  %v2197_v36 = vmul.f32 %v8911_v21, %v12913_v34  ;;  %v2118_v9 = vadd.f32 %v8826_v20, %v8976_v7  ;;  %6224 = vmatmul.msk.f32.gmra.mxu0 %vm817_vm5, %v8933_v56  ;;  %v8994_v3 = vmul.f32 %v8909_v48, %v12911_v16 }
 0x195   : > { %13017 = vst [vmem:[#allocation147_spill] sm:$0xff] %v8976_v7  ;;  %v8982_v29 = vadd.f32 %v2221_v6, %v7399_v4  ;;  %v2190_v27 = vmul.f32 %v8968_v17, %v7339_v30  ;;  %v2228_v22 = vadd.f32 %v2196_v59, %v2089_v15  ;;  %v2173_v54 = vadd.f32 %v8816_v41, %v8960_v60 }
 0x196   : > { %13018 = vst [vmem:[#allocation148_spill] sm:$0xff] %v8979_v10  ;;  %v8996_v6 = vadd.f32 %v1893_v39, %v1892_v57  ;;  %v2198_v33 = vmul.f32 %v8968_v17, %v12913_v34  ;;  %v9004_v15 = vmul.f32 %v8928_v24, %v12911_v16  ;;  %v2229_v7 = vadd.f32 %v2197_v36, %v2118_v9 }
 0x197   : > { %13019 = vst [vmem:[#allocation149_spill] sm:$0xff] %v8982_v29  ;;  %v2222_v20 = vadd.f32 %v2190_v27, %v2144_v8  ;;  %v9007_v59 = vadd.f32 %v2228_v22, %v7474_v51  ;;  %6229 = vmatmul.msk.f32.gmra.mxu1 %vm817_vm5, %v8933_v56  ;;  %v2147_v57 = vadd.f32 %v8879_v26, %v8994_v3 }
 0x198   : > { %13020 = vst [vmem:[#allocation150_spill] sm:$0xff] %v8994_v3  ;;  %v2191_v41 = vmul.f32 %v8996_v6, %v7339_v30  ;;  %v2176_v39 = vadd.f32 %v8881_v47, %v9004_v15  ;;  %v2199_v60 = vmul.f32 %v8996_v6, %v12913_v34  ;;  %v9021_v8 = vmul.f32 %v8847_v2, %v12857_v5  ;;  %v2152_v9 = vpop.f32.mrf.mxu2  ;;  %v2181_v36 = vpop.f32.mrf.mxu3 }
 0x199   : > { %13021 = vst [vmem:[#allocation151_spill] sm:$0xff] %v9004_v15  ;;  %6235 = vmatmul.msk.f32.gmra.mxu2 %vm817_vm5, %v8724_v13  ;;  %v9029_v22 = vadd.f32 %v2222_v20, %v7399_v4  ;;  %6241 = vmatmul.msk.f32.gmra.mxu3 %vm817_vm5, %v8776_v46  ;;  %v9035_v3 = vadd.f32 %v2229_v7, %v7474_v51 }
 0x19a   : > { %13022 = vst [vmem:[#allocation152_spill] sm:$0xff] %v9007_v59  ;;  %v2223_v15 = vadd.f32 %v2191_v41, %v2173_v54  ;;  %v2230_v45 = vadd.f32 %v2198_v33, %v2147_v57  ;;  %v2092_v26 = vadd.f32 %v8885_v55, %v9021_v8  ;;  %v2204_v27 = vmul.f32 %v8895_v18, %v12863_v62  ;;  %v9050_v57 = vpop.f32.mrf.mxu0  ;;  %v9052_v41 = vpop.f32.mrf.mxu1 }
 0x19b   : > { %13023 = vst [vmem:[#allocation153_spill] sm:$0xff] %v9021_v8  ;;  %v9044_v20 = vmul.f32 %v8857_v49, %v12857_v5  ;;  %v2231_v7 = vadd.f32 %v2199_v60, %v2176_v39  ;;  %v2205_v33 = vmul.f32 %v8911_v21, %v12863_v62  ;;  %v9061_v47 = vmul.f32 %v8909_v48, %v12857_v5 }
 0x19c   : > { %13024 = vst [vmem:[#allocation154_spill] sm:$0xff] %v9029_v22  ;;  %6225 = vmatmul.msk.f32.gmra.mxu0 %vm817_vm5, %v8724_v13  ;;  %v2206_v60 = vmul.f32 %v8968_v17, %v12863_v62  ;;  %v9066_v39 = vadd.f32 %v2223_v15, %v7399_v4  ;;  %v9070_v55 = vadd.f32 %v2230_v45, %v7474_v51 }
 0x19d   : > { %13025 = vst [vmem:[#allocation155_spill] sm:$0xff] %v9035_v3  ;;  %v2121_v16 = vadd.f32 %v8887_v58, %v9044_v20  ;;  %v9074_v58 = vmul.f32 %v8928_v24, %v12857_v5  ;;  %v2236_v22 = vadd.f32 %v2204_v27, %v2092_v26  ;;  %v2150_v29 = vadd.f32 %v8945_v28, %v9061_v47 }
 0x19e   : > { %13026 = vst [vmem:[#allocation156_spill] sm:$0xff] %v9044_v20  ;;  %v2207_v15 = vmul.f32 %v8996_v6, %v12863_v62  ;;  %v9084_v54 = vmul.f32 %v8847_v2, %v7160_v19  ;;  %v2212_v26 = vmul.f32 %v8895_v18, %v12812_v63  ;;  %v9092_v27 = vmul.f32 %v8857_v49, %v7160_v19 }
 0x19f   : > { %13027 = vst [vmem:[#allocation157_spill] sm:$0xff] %v9061_v47  ;;  %6230 = vmatmul.msk.f32.gmra.mxu1 %vm817_vm5, %v8724_v13  ;;  %v2237_v45 = vadd.f32 %v2205_v33, %v2121_v16  ;;  %v2179_v3 = vadd.f32 %v8956_v44, %v9074_v58  ;;  %v9099_v47 = vadd.f32 %v2231_v7, %v7474_v51 }
 0x1a0   : > { %13028 = vst [vmem:[#allocation158_spill] sm:$0xff] %v9066_v39  ;;  %v9096_v28 = vpop.f32.mrf.mxu2  ;;  %v2238_v2 = vadd.f32 %v2206_v60, %v2150_v29  ;;  %v2095_v16 = vadd.f32 %v8964_v50, %v9084_v54  ;;  %v2213_v44 = vmul.f32 %v8911_v21, %v12812_v63  ;;  %v2124_v49 = vadd.f32 %v8966_v23, %v9092_v27 }
 0x1a1   : > { %13029 = vst [vmem:[#allocation159_spill] sm:$0xff] %v9070_v55  ;;  %6236 = vmatmul.msk.f32.gmra.mxu2 %vm817_vm5, %v8776_v46  ;;  %v2239_v18 = vadd.f32 %v2207_v15, %v2179_v3  ;;  %v3429_v33 = vsub.f32 %v12809_v25, %v13004_v53  ;;  %v9115_v29 = vadd.f32 %v2236_v22, %v12841_v11 }
 0x1a2   : > { %13030 = vst [vmem:[#allocation160_spill] sm:$0xff] %v9074_v58  ;;  %v9111_v58 = vmul.f32 %v8909_v48, %v7160_v19  ;;  %v2244_v50 = vadd.f32 %v2212_v26, %v2095_v16  ;;  %v2214_v21 = vmul.f32 %v8968_v17, %v12812_v63  ;;  %v9120_v3 = vadd.f32 %v2237_v45, %v12841_v11  ;;  %v9135_v45 = vpop.f32.mrf.mxu3  ;;  %v13041_v26 = vld [vmem:[#allocation104_spill] sm:$0xff] }
 0x1a3   : > { %13031 = vst [vmem:[#allocation161_spill] sm:$0xff] %v9084_v54  ;;  %v9123_v23 = vadd.f32 %v2238_v2, %v12841_v11  ;;  %v3439_v60 = vmul.f32 %v3429_v33, %v3429_v33  ;;  %v3545_v15 = vrot.slane %v3429_v33, 1  ;;  %v9126_v48 = vadd.f32 %v2239_v18, %v12841_v11  ;;  %v9145_v18 = vpop.f32.mrf.mxu0 }
 0x1a4   : > { %13032 = vst [vmem:[#allocation162_spill] sm:$0xff] %v9092_v27  ;;  %v2245_v27 = vadd.f32 %v2213_v44, %v2124_v49  ;;  %6226 = vmatmul.msk.f32.gmra.mxu0 %vm817_vm5, %v8776_v46  ;;  %v2153_v22 = vadd.f32 %v2152_v9, %v9111_v58  ;;  %v9133_v17 = vmul.f32 %v8928_v24, %v7160_v19  ;;  %v9147_v9 = vpop.f32.mrf.mxu1  ;;  %v13042_v7 = vrot.slane %v13041_v26, 4 }
 0x1a5   : > { %13033 = vst [vmem:[#allocation163_spill] sm:$0xff] %v9099_v47  ;;  %v9140_v16 = vadd.f32 %v2244_v50, %v12798_v31  ;;  %6257 = vmatpush.msk.msra.mxu3 %vm709_vm4, %v3545_v15  ;;  %v2215_v44 = vmul.f32 %v8996_v6, %v12812_v63  ;;  %v3455_v24 = vrot.slane %v3439_v60, 1  ;;  %v3428_v50 = vsub.f32 %v12935_v14, %v13004_v53  ;;  %v13044_v6 = vld [vmem:[#allocation106_spill] sm:$0xff] }
 0x1a6   : > { %13034 = vst [vmem:[#allocation164_spill] sm:$0xff] %v9111_v58  ;;  %v2246_v49 = vadd.f32 %v2214_v21, %v2153_v22  ;;  %v2182_v33 = vadd.f32 %v2181_v36, %v9133_v17  ;;  %6258 = vmatmul.msk.f32.vlgmr.msra.gmra.mxu3 %vm817_vm5, %v8870_v32  ;;  %v2390_v47 = vadd.f32 %v13042_v7, %v13041_v26  ;;  %v13045_v2 = vrot.slane %v13044_v6, 4  ;;  %v13048_v36 = vld [vmem:[#allocation99_spill] sm:$0xff] }
 0x1a7   : > { %13035 = vst [vmem:[#allocation165_spill] sm:$0xff] %v9115_v29  ;;  %6231 = vmatmul.msk.f32.gmra.mxu1 %vm817_vm5, %v8776_v46  ;;  %v9166_v21 = vadd.f32 %v2245_v27, %v12798_v31  ;;  %v3438_v39 = vmul.f32 %v3428_v50, %v3428_v50  ;;  %v3544_v15 = vrot.slane %v3428_v50, 1  ;;  %v9173_v58 = vsel %vm709_vm4, %v3455_v24, 0.0 }
 0x1a8   : > { %13036 = vst [vmem:[#allocation166_spill] sm:$0xff] %v9120_v3  ;;  %v9162_v60 = vpop.f32.mrf.mxu2  ;;  %v2247_v22 = vadd.f32 %v2215_v44, %v2182_v33  ;;  %v2391_v55 = vrot.slane %v2390_v47, 2  ;;  %v9176_v7 = vadd.f32 %v2246_v49, %v12798_v31  ;;  %v3426_v27 = vsub.f32 %v12944_v1, %v13004_v53 }
 0x1a9   : > { %13037 = vst [vmem:[#allocation167_spill] sm:$0xff] %v9123_v23  ;;  %v2397_v23 = vadd.f32 %v13045_v2, %v13044_v6  ;;  %v3454_v26 = vrot.slane %v3438_v39, 1  ;;  %6252 = vmatpush.msk.msra.mxu2 %vm709_vm4, %v3544_v15  ;;  %v9183_v50 = vsub.f32 %v12948_v38, %v13004_v53  ;;  %v13049_v2 = vrot.slane %v13048_v36, 4  ;;  %v13051_v39 = vld [vmem:[#allocation56_spill] sm:$0xff] }
 0x1aa   : > { %13038 = vst [vmem:[#allocation168_spill] sm:$0xff] %v9126_v48  ;;  %v2392_v44 = vadd.f32 %v2391_v55, %v2390_v47  ;;  %v9190_v49 = vadd.f32 %v2247_v22, %v12798_v31  ;;  %v3542_v48 = vrot.slane %v3426_v27, 1  ;;  %6253 = vmatmul.msk.f32.vlgmr.msra.gmra.mxu2 %vm817_vm5, %v8870_v32  ;;  %v9197_v3 = vmul.f32 %v3426_v27, %v3426_v27  ;;  %v9208_v6 = vpop.f32.mrf.mxu3 }
 0x1ab   : > { %13039 = vst [vmem:[#allocation169_spill] sm:$0xff] %v9133_v17  ;;  %v2398_v33 = vrot.slane %v2397_v23, 2  ;;  %v2404_v24 = vadd.f32 %v13049_v2, %v13048_v36  ;;  %v2514_v17 = vadd.f32 %v9050_v57, %v13051_v39  ;;  %v9200_v36 = vsel %vm709_vm4, %v3454_v26, 0.0  ;;  %v13053_v2 = vld [vmem:[#allocation35_spill] sm:$0xff] }
 0x1ac   : > { %13040 = vst [vmem:[#allocation170_spill] sm:$0xff] %v9140_v16  ;;  %v2393_v55 = vrot.slane %v2392_v44, 1  ;;  %v2543_v22 = vadd.f32 %v9052_v41, %v13053_v2  ;;  %6242 = vmatpush.msk.msra.mxu0 %vm709_vm4, %v3542_v48  ;;  %v3543_v57 = vrot.slane %v9183_v50, 1  ;;  %v9216_v26 = vld [vmem:[%s6786_s12 + $0x18] sm:$0x7f]  ;;  %v9220_v48 = vpop.f32.mrf.mxu0  ;;  %v9222_v2 = vpop.f32.mrf.mxu1  ;;  %v2575_v10 = vadd.f32 %v9162_v60, %v8695_v42 }
 0x1ad   : > { %13043 = vst [vmem:[#allocation104_spill] sm:$0xff] %v9166_v21  ;;  %v2399_v15 = vadd.f32 %v2398_v33, %v2397_v23  ;;  %v2405_v39 = vrot.slane %v2404_v24, 2  ;;  %6243 = vmatmul.msk.f32.vlgmr.msra.gmra.mxu0 %vm817_vm5, %v8870_v32  ;;  %v521_v41 = vmul.f32 %v9216_v26, %v9216_v26 }
 0x1ae   : > { %13046 = vst [vmem:[#allocation106_spill] sm:$0xff] %v9173_v58  ;;  %6259 = vmatmul.msk.f32.gmra.mxu3 %vm817_vm5, %v8933_v56  ;;  %v9211_v27 = vadd.f32 %v2393_v55, %v2392_v44  ;;  %6247 = vmatpush.msk.msra.mxu1 %vm709_vm4, %v3543_v57  ;;  %v13054_v44 = vld [vmem:[#allocation72_spill] sm:$0xff]  ;;  %v2572_v57 = vadd.f32 %v9096_v28, %v8651_v52  ;;  %v13058_v52 = vld [vmem:[#allocation33_spill] sm:$0xff] }
 0x1af   : > { %13047 = vst [vmem:[#allocation171_spill] sm:$0xff] %v9176_v7  ;;  %v2400_v33 = vrot.slane %v2399_v15, 1  ;;  %v2406_v23 = vadd.f32 %v2405_v39, %v2404_v24  ;;  %v1145_v55 = vadd.f32 %v13054_v44, %v7399_v4  ;;  %v13055_v7 = vld [vmem:[#allocation97_spill] sm:$0xff]  ;;  %6248 = vmatmul.msk.f32.vlgmr.msra.gmra.mxu1 %vm817_vm5, %v8870_v32  ;;  %v9243_v39 = vperm.slane %v521_v41, 0 }
 0x1b0   : > { %13050 = vst [vmem:[#allocation99_spill] sm:$0xff] %v9190_v49  ;;  %v13056_v21 = vrot.slane %v13055_v7, 4  ;;  %v9231_v58 = vpop.f32.mrf.mxu2  ;;  %v2728_v29 = vmul.f32 %v9211_v27, %v7339_v30  ;;  %v13057_v49 = vld [vmem:[#allocation59_spill] sm:$0xff]  ;;  %v2546_v28 = vadd.f32 %v9147_v9, %v13058_v52 }
 0x1b1   : > { %13052 = vst [vmem:[#allocation56_spill] sm:$0xff] %v9200_v36  ;;  %v9236_v59 = vadd.f32 %v2400_v33, %v2399_v15  ;;  %v2407_v24 = vrot.slane %v2406_v23, 1  ;;  %v2517_v15 = vadd.f32 %v9145_v18, %v13057_v49  ;;  %v537_v47 = vmul.f32 %v9243_v39, %v12848_v37 }
 0x1b2   : > { %v2411_v20 = vadd.f32 %v13056_v21, %v13055_v7  ;;  %v1177_v21 = vmax.f32 %v1145_v55, 0.0  ;;  %v2760_v7 = vadd.f32 %v2728_v29, %v2514_v17  ;;  %v2736_v36 = vmul.f32 %v9211_v27, %v12913_v34  ;;  %6254 = vmatmul.msk.f32.gmra.mxu2 %vm817_vm5, %v8933_v56 }
 0x1b3   : > { %v2729_v44 = vmul.f32 %v9236_v59, %v7339_v30  ;;  %v9249_v33 = vadd.f32 %v2407_v24, %v2406_v23  ;;  %v2737_v18 = vmul.f32 %v9236_v59, %v12913_v34  ;;  %v569_v23 = vadd.f32 %v537_v47, %v7399_v4 }
 0x1b4   : > { %v2412_v16 = vrot.slane %v2411_v20, 2  ;;  %v2792_v29 = vadd.f32 %v2760_v7, %v7399_v4  ;;  %v2601_v55 = vadd.f32 %v9135_v45, %v537_v47  ;;  %v2768_v24 = vadd.f32 %v2736_v36, %v2517_v15  ;;  %v9274_v45 = vpop.f32.mrf.mxu3 }
 0x1b5   : > { %v2761_v17 = vadd.f32 %v2729_v44, %v2543_v22  ;;  %v2730_v49 = vmul.f32 %v9249_v33, %v7339_v30  ;;  %v2769_v22 = vadd.f32 %v2737_v18, %v2546_v28  ;;  %6244 = vmatmul.msk.f32.gmra.mxu0 %vm817_vm5, %v8933_v56  ;;  %v2738_v60 = vmul.f32 %v9249_v33, %v12913_v34 }
 0x1b6   : > { %v2413_v41 = vadd.f32 %v2412_v16, %v2411_v20  ;;  %6260 = vmatmul.msk.f32.gmra.mxu3 %vm817_vm5, %v8724_v13  ;;  %v2824_v9 = vmax.f32 %v2792_v29, 0.0  ;;  %v601_v16 = vmax.f32 %v569_v23, 0.0  ;;  %v2800_v44 = vadd.f32 %v2768_v24, %v7474_v51  ;;  %v9284_v29 = vpop.f32.mrf.mxu1  ;;  %v13059_v24 = vld [vmem:[#allocation40_spill] sm:$0xff] }
 0x1b7   : > { %v2793_v52 = vadd.f32 %v2761_v17, %v7399_v4  ;;  %v2762_v20 = vadd.f32 %v2730_v49, %v2572_v57  ;;  %v2801_v28 = vadd.f32 %v2769_v22, %v7474_v51  ;;  %6249 = vmatmul.msk.f32.gmra.mxu1 %vm817_vm5, %v8933_v56  ;;  %v2522_v57 = vpop.f32.mrf.mxu0  ;;  %v13060_v22 = vld [vmem:[#allocation54_spill] sm:$0xff] }
 0x1b8   : > { %v2414_v7 = vrot.slane %v2413_v41, 1  ;;  %v9277_v47 = vadd.f32 %v2824_v9, %v8657_v61  ;;  %v633_v18 = vsub.f32 0.0, %v601_v16  ;;  %v2832_v42 = vmax.f32 %v2800_v44, 0.0  ;;  %v9289_v61 = vpop.f32.mrf.mxu2 }
 0x1b9   : > { %v2825_v36 = vmax.f32 %v2793_v52, 0.0  ;;  %v2794_v17 = vadd.f32 %v2762_v20, %v7399_v4  ;;  %v2833_v23 = vmax.f32 %v2801_v28, 0.0  ;;  %v545_v9 = vmul.f32 %v9243_v39, %v13059_v24  ;;  %v13062_v28 = vld [vmem:[#allocation79_spill] sm:$0xff] }
 0x1ba   : > { %v9279_v15 = vadd.f32 %v2414_v7, %v2413_v41  ;;  %v1209_v7 = vadd.f32 %v1177_v21, %v633_v18  ;;  %v9299_v20 = vadd.f32 %v2832_v42, %v13060_v22  ;;  %v2770_v16 = vadd.f32 %v2738_v60, %v2575_v10  ;;  %6255 = vmatmul.msk.f32.gmra.mxu2 %vm817_vm5, %v8724_v13  ;;  %v13065_v21 = vld [vmem:[#allocation32_spill] sm:$0xff]  ;;  %v13069_v22 = vld [vmem:[#allocation61_spill] sm:$0xff] }
 0x1bb   : > { %v9292_v41 = vadd.f32 %v2825_v36, %v8663_v12  ;;  %v2826_v52 = vmax.f32 %v2794_v17, 0.0  ;;  %v9304_v12 = vadd.f32 %v2833_v23, %v13061_v43  ;;  %v577_v36 = vadd.f32 %v545_v9, %v7474_v51 }
 0x1bc   : > { %v2731_v49 = vmul.f32 %v9279_v15, %v7339_v30  ;;  %v1153_v0 = vadd.f32 %v13062_v28, %v7474_v51  ;;  %v13066_v17 = vmax.f32 %v13065_v21, 0.0  ;;  %v2802_v10 = vadd.f32 %v2770_v16, %v7474_v51  ;;  %v13071_v21 = vld [vmem:[#allocation58_spill] sm:$0xff] }
 0x1bd   : > { %v9310_v54 = vadd.f32 %v2826_v52, %v13063_v35  ;;  %v2604_v42 = vadd.f32 %v9208_v6, %v545_v9  ;;  %6245 = vmatmul.msk.f32.gmra.mxu0 %vm817_vm5, %v8724_v13  ;;  %v13067_v35 = vld [vmem:[#allocation64_spill] sm:$0xff]  ;;  %v2520_v6 = vadd.f32 %v9220_v48, %v13069_v22  ;;  %v2744_v9 = vmul.f32 %v9211_v27, %v12863_v62  ;;  %v13073_v48 = vld [vmem:[#allocation47_spill] sm:$0xff] }
 0x1be   : > { %v2763_v44 = vadd.f32 %v2731_v49, %v2601_v55  ;;  %v1765_v18 = vadd.f32 %v13066_v17, %v1209_v7  ;;  %6261 = vmatmul.msk.f32.gmra.mxu3 %vm817_vm5, %v8776_v46  ;;  %v609_v55 = vmax.f32 %v577_v36, 0.0  ;;  %v1185_v60 = vmax.f32 %v1153_v0, 0.0  ;;  %v13070_v0 = vld [vmem:[#allocation55_spill] sm:$0xff] }
 0x1bf   : > { %13064 = vst [vmem:[#allocation35_spill] sm:$0xff] %v9310_v54  ;;  %v2739_v49 = vmul.f32 %v9279_v15, %v12913_v34  ;;  %v13068_v23 = vmax.f32 %v13067_v35, 0.0  ;;  %v2834_v7 = vmax.f32 %v2802_v10, 0.0  ;;  %v2549_v28 = vadd.f32 %v9222_v2, %v13070_v0  ;;  %6250 = vmatmul.msk.f32.gmra.mxu1 %vm817_vm5, %v8724_v13  ;;  %v13077_v0 = vld [vmem:[#allocation66_spill] sm:$0xff] }
 0x1c0   : > { %v2795_v43 = vadd.f32 %v2763_v44, %v7399_v4  ;;  %v641_v44 = vsub.f32 0.0, %v609_v55  ;;  %v2745_v10 = vmul.f32 %v9236_v59, %v12863_v62  ;;  %v2578_v35 = vadd.f32 %v9231_v58, %v13073_v48  ;;  %v9347_v55 = vpop.f32.mrf.mxu0 }
 0x1c1   : > { %v2315_v52 = vadd.f32 %v13068_v23, %v1765_v18  ;;  %v2771_v36 = vadd.f32 %v2739_v49, %v2604_v42  ;;  %v9334_v17 = vadd.f32 %v2834_v7, %v13071_v21  ;;  %v2776_v18 = vadd.f32 %v2744_v9, %v2520_v6  ;;  %v9340_v23 = vpop.f32.mrf.mxu3  ;;  %v9349_v49 = vpop.f32.mrf.mxu1  ;;  %v13075_v6 = vld [vmem:[#allocation85_spill] sm:$0xff] }
 0x1c2   : > { %v2827_v16 = vmax.f32 %v2795_v43, 0.0  ;;  %v1217_v42 = vadd.f32 %v1185_v60, %v641_v44  ;;  %v2746_v13 = vmul.f32 %v9249_v33, %v12863_v62  ;;  %v2777_v22 = vadd.f32 %v2745_v10, %v2549_v28  ;;  %6256 = vmatmul.msk.f32.gmra.mxu2 %vm817_vm5, %v8776_v46  ;;  %v9358_v60 = vpop.f32.mrf.mxu2 }
 0x1c3   : > { %13072 = vst [vmem:[#allocation72_spill] sm:$0xff] %v9334_v17  ;;  %v2803_v2 = vadd.f32 %v2771_v36, %v7474_v51  ;;  %v2808_v7 = vadd.f32 %v2776_v18, %v12841_v11  ;;  %v553_v58 = vmul.f32 %v9243_v39, %v12857_v5  ;;  %v13076_v9 = vmax.f32 %v13075_v6, 0.0 }
 0x1c4   : > { %v9342_v43 = vadd.f32 %v2827_v16, %v2315_v52  ;;  %v2747_v52 = vmul.f32 %v9279_v15, %v12863_v62  ;;  %v2778_v36 = vadd.f32 %v2746_v13, %v2578_v35  ;;  %v2523_v21 = vadd.f32 %v2522_v57, %v13077_v0  ;;  %v13081_v57 = vld [vmem:[#allocation78_spill] sm:$0xff] }
 0x1c5   : > { %v1773_v16 = vadd.f32 %v13076_v9, %v1217_v42  ;;  %v2835_v44 = vmax.f32 %v2803_v2, 0.0  ;;  %v2840_v18 = vmax.f32 %v2808_v7, 0.0  ;;  %v2809_v28 = vadd.f32 %v2777_v22, %v12841_v11  ;;  %v13080_v42 = vld [vmem:[#allocation91_spill] sm:$0xff]  ;;  %6246 = vmatmul.msk.f32.gmra.mxu0 %vm817_vm5, %v8776_v46 }
 0x1c6   : > { %13074 = vst [vmem:[#allocation97_spill] sm:$0xff] %v9342_v43  ;;  %v585_v10 = vadd.f32 %v553_v58, %v12841_v11  ;;  %v2607_v48 = vadd.f32 %v9274_v45, %v553_v58  ;;  %v13078_v43 = vld [vmem:[#allocation89_spill] sm:$0xff]  ;;  %v2810_v8 = vadd.f32 %v2778_v36, %v12841_v11  ;;  %v2752_v6 = vmul.f32 %v9211_v27, %v12812_v63  ;;  %v13084_v27 = vld [vmem:[#allocation62_spill] sm:$0xff] }
 0x1c7   : > { %v13079_v17 = vmax.f32 %v13078_v43, 0.0  ;;  %v2552_v35 = vadd.f32 %v9284_v29, %v13080_v42  ;;  %v9376_v2 = vadd.f32 %v2840_v18, %v13081_v57  ;;  %v2841_v13 = vmax.f32 %v2809_v28, 0.0  ;;  %6251 = vmatmul.msk.f32.gmra.mxu1 %vm817_vm5, %v8776_v46  ;;  %v13086_v36 = vld [vmem:[#allocation25_spill] sm:$0xff] }
 0x1c8   : > { %v617_v7 = vmax.f32 %v585_v10, 0.0  ;;  %v2779_v45 = vadd.f32 %v2747_v52, %v2607_v48  ;;  %v2784_v43 = vadd.f32 %v2752_v6, %v2523_v21  ;;  %v2753_v58 = vmul.f32 %v9236_v59, %v12812_v63  ;;  %v13087_v52 = vld [vmem:[#allocation68_spill] sm:$0xff]  ;;  %v13089_v21 = vld [vmem:[#allocation145_spill] sm:$0xff] }
 0x1c9   : > { %v2323_v54 = vadd.f32 %v13079_v17, %v1773_v16  ;;  %13082 = vst [vmem:[#allocation59_spill] sm:$0xff] %v9376_v2  ;;  %v2842_v17 = vmax.f32 %v2810_v8, 0.0  ;;  %v9385_v29 = vadd.f32 %v2841_v13, %v13084_v27  ;;  %v3433_v0 = vsub.f32 %v13086_v36, %v13004_v53  ;;  %v13092_v10 = vld [vmem:[#allocation92_spill] sm:$0xff]  ;;  %v9405_v57 = vpop.f32.mrf.mxu3 }
 0x1ca   : > { %v649_v9 = vsub.f32 0.0, %v617_v7  ;;  %v2811_v16 = vadd.f32 %v2779_v45, %v12841_v11  ;;  %v2816_v8 = vadd.f32 %v2784_v43, %v12798_v31  ;;  %v2581_v59 = vadd.f32 %v9289_v61, %v13089_v21  ;;  %v9412_v7 = vpop.f32.mrf.mxu0  ;;  %v9414_v45 = vpop.f32.mrf.mxu1 }
 0x1cb   : > { %v9378_v22 = vadd.f32 %v2835_v44, %v2323_v54  ;;  %13085 = vst [vmem:[#allocation54_spill] sm:$0xff] %v9385_v29  ;;  %v9391_v54 = vadd.f32 %v2842_v17, %v13087_v52  ;;  %v2785_v44 = vadd.f32 %v2753_v58, %v2552_v35  ;;  %v13090_v46 = vrot.slane %v9197_v3, 1 }
 0x1cc   : > { %v3437_v28 = vmul.f32 %v9183_v50, %v9183_v50  ;;  %v13093_v48 = vmax.f32 %v13092_v10, 0.0  ;;  %v3549_v42 = vrot.slane %v3433_v0, 1  ;;  %v2848_v13 = vmax.f32 %v2816_v8, 0.0  ;;  %v13094_v50 = vld [vmem:[#allocation110_spill] sm:$0xff]  ;;  %v13097_v8 = vld [vmem:[#allocation111_spill] sm:$0xff] }
 0x1cd   : > { %13083 = vst [vmem:[#allocation33_spill] sm:$0xff] %v9378_v22  ;;  %v9399_v18 = vsel %vm709_vm4, %v13090_v46, 0.0  ;;  %v2817_v35 = vadd.f32 %v2785_v44, %v12798_v31  ;;  %v2754_v61 = vmul.f32 %v9249_v33, %v12812_v63  ;;  %v561_v3 = vmul.f32 %v9243_v39, %v7160_v19  ;;  %v9423_v33 = vpop.f32.mrf.mxu2  ;;  %v13099_v10 = vld [vmem:[#allocation146_spill] sm:$0xff] }
 0x1ce   : > { %13088 = vst [vmem:[#allocation48_spill] sm:$0xff] %v9391_v54  ;;  %v1225_v6 = vadd.f32 %v13093_v48, %v649_v9  ;;  %v13095_v17 = vmax.f32 %v13094_v50, 0.0  ;;  %v2843_v58 = vmax.f32 %v2811_v16, 0.0  ;;  %6277 = vmatpush.msk.msrb.mxu3 %vm709_vm4, %v3549_v42  ;;  %v2755_v27 = vmul.f32 %v9279_v15, %v12812_v63  ;;  %v13096_v9 = vld [vmem:[#allocation26_spill] sm:$0xff]  ;;  %v13101_v50 = vld [vmem:[#allocation112_spill] sm:$0xff] }
 0x1cf   : > { %13091 = vst [vmem:[#allocation79_spill] sm:$0xff] %v9399_v18  ;;  %v3432_v52 = vsub.f32 %v13096_v9, %v13004_v53  ;;  %v9426_v39 = vadd.f32 %v2848_v13, %v13097_v8  ;;  %v2849_v44 = vmax.f32 %v2817_v35, 0.0  ;;  %v2786_v21 = vadd.f32 %v2754_v61, %v2581_v59  ;;  %6278 = vmatmul.msk.f32.vlgmr.msrb.gmra.mxu3 %vm817_vm5, %v8870_v32 }
 0x1d0   : > { %v1781_v43 = vadd.f32 %v13095_v17, %v1225_v6  ;;  %v593_v46 = vadd.f32 %v561_v3, %v12798_v31  ;;  %v3453_v16 = vrot.slane %v3437_v28, 1  ;;  %v13100_v48 = vmax.f32 %v13099_v10, 0.0 }
 0x1d1   : > { %13098 = vst [vmem:[#allocation39_spill] sm:$0xff] %v9426_v39  ;;  %v3443_v6 = vmul.f32 %v3433_v0, %v3433_v0  ;;  %v2610_v42 = vadd.f32 %v9340_v23, %v561_v3  ;;  %v9435_v17 = vadd.f32 %v2849_v44, %v13101_v50  ;;  %v2818_v13 = vadd.f32 %v2786_v21, %v12798_v31  ;;  %v13105_v0 = vld [vmem:[#allocation115_spill] sm:$0xff] }
 0x1d2   : > { %v2331_v15 = vadd.f32 %v13100_v48, %v1781_v43  ;;  %v625_v59 = vmax.f32 %v593_v46, 0.0  ;;  %v3442_v35 = vmul.f32 %v3432_v52, %v3432_v52  ;;  %v3548_v28 = vrot.slane %v3432_v52, 1  ;;  %v9442_v43 = vld [vmem:[%s6786_s12 + $0x20] sm:$0x7f]  ;;  %v13108_v52 = vld [vmem:[#allocation117_spill] sm:$0xff]  ;;  %v13110_v50 = vld [vmem:[#allocation87_spill] sm:$0xff]  ;;  %v9470_v61 = vpop.f32.mrf.mxu1 }
 0x1d3   : > { %13102 = vst [vmem:[#allocation32_spill] sm:$0xff] %v9435_v17  ;;  %v2787_v39 = vadd.f32 %v2755_v27, %v2610_v42  ;;  %v2850_v54 = vmax.f32 %v2818_v13, 0.0  ;;  %v2352_v23 = vmul.f32 %v9442_v43, %v9216_v26  ;;  %v13106_v3 = vrot.slane %v13105_v0, 4  ;;  %v9459_v42 = vpop.f32.mrf.mxu3 }
 0x1d4   : > { %v9439_v8 = vadd.f32 %v2843_v58, %v2331_v15  ;;  %v657_v10 = vsub.f32 0.0, %v625_v59  ;;  %13104 = vst [vmem:[#allocation61_spill] sm:$0xff] %v9442_v43  ;;  %v3459_v21 = vrot.slane %v3443_v6, 1  ;;  %6272 = vmatpush.msk.msrb.mxu2 %vm709_vm4, %v3548_v28  ;;  %v9452_v58 = vld [vmem:[%s6786_s12 + $0x28] sm:$0x7f]  ;;  %v13109_v48 = vrot.slane %v13108_v52, 4  ;;  %v9468_v28 = vpop.f32.mrf.mxu0 }
 0x1d5   : > { %v2418_v44 = vadd.f32 %v13106_v3, %v13105_v0  ;;  %v2819_v46 = vadd.f32 %v2787_v39, %v12798_v31  ;;  %13107 = vst [vmem:[#allocation55_spill] sm:$0xff] %v9452_v58  ;;  %v2353_v27 = vmul.f32 %v9452_v58, %v9216_v26  ;;  %v9462_v13 = vadd.f32 %v2850_v54, %v13110_v50  ;;  %v13112_v59 = vld [vmem:[#allocation94_spill] sm:$0xff] }
 0x1d6   : > { %13103 = vst [vmem:[#allocation64_spill] sm:$0xff] %v9439_v8  ;;  %v2425_v15 = vadd.f32 %v13109_v48, %v13108_v52  ;;  %v13113_v6 = vmax.f32 %v13112_v59, 0.0  ;;  %v3458_v39 = vrot.slane %v3442_v35, 1  ;;  %6273 = vmatmul.msk.f32.vlgmr.msrb.gmra.mxu2 %vm817_vm5, %v8870_v32  ;;  %v9472_v52 = vperm.slane %v2352_v23, 0  ;;  %v13114_v54 = vld [vmem:[#allocation114_spill] sm:$0xff]  ;;  %v13116_v35 = vld [vmem:[#allocation27_spill] sm:$0xff] }
 0x1d7   : > { %13111 = vst [vmem:[#allocation58_spill] sm:$0xff] %v9462_v13  ;;  %v2419_v3 = vrot.slane %v2418_v44, 2  ;;  %v2851_v18 = vmax.f32 %v2819_v46, 0.0  ;;  %v9474_v58 = vperm.slane %v2353_v27, 0  ;;  %v13115_v50 = vmax.f32 %v13114_v54, 0.0  ;;  %6279 = vmatmul.msk.f32.gmra.mxu3 %vm817_vm5, %v8933_v56 }
 0x1d8   : > { %v1233_v0 = vadd.f32 %v13113_v6, %v657_v10  ;;  %v2426_v48 = vrot.slane %v2425_v15, 2  ;;  %v3430_v6 = vsub.f32 %v13116_v35, %v13004_v53  ;;  %v3431_v13 = vsub.f32 %v13004_v53, %v13004_v53  ;;  %v9492_v54 = vld [vmem:[%s6786_s12 + $0x30] sm:$0x7f] }
 0x1d9   : > { %v2420_v10 = vadd.f32 %v2419_v3, %v2418_v44  ;;  %v9485_v46 = vsel %vm709_vm4, %v3453_v16, 0.0  ;;  %v9489_v23 = vmul.f32 %v9472_v52, %v12848_v37  ;;  %13118 = vst [vmem:[#allocation85_spill] sm:$0xff] %v9492_v54  ;;  %v2354_v44 = vmul.f32 %v9492_v54, %v9216_v26 }
 0x1da   : > { %v1789_v59 = vadd.f32 %v13115_v50, %v1233_v0  ;;  %13117 = vst [vmem:[#allocation47_spill] sm:$0xff] %v9485_v46  ;;  %v2427_v27 = vadd.f32 %v2426_v48, %v2425_v15  ;;  %v9496_v0 = vpop.f32.mrf.mxu2  ;;  %v13119_v3 = vmax.f32 %v8920_v40, 0.0  ;;  %v3440_v35 = vmul.f32 %v3430_v6, %v3430_v6 }
 0x1db   : > { %v2421_v53 = vrot.slane %v2420_v10, 1  ;;  %v3546_v17 = vrot.slane %v3430_v6, 1  ;;  %v9501_v16 = vsel %vm709_vm4, %v3459_v21, 0.0  ;;  %v9504_v43 = vsel %vm709_vm4, %v3458_v39, 0.0  ;;  %v13124_v6 = vld [vmem:[#allocation65_spill] sm:$0xff] }
 0x1dc   : > { %v2339_v50 = vadd.f32 %v13119_v3, %v1789_v59  ;;  %13120 = vst [vmem:[#allocation66_spill] sm:$0xff] %v9501_v16  ;;  %v2428_v15 = vrot.slane %v2427_v27, 1  ;;  %v9508_v48 = vmul.f32 %v9474_v58, %v12848_v37  ;;  %v2630_v40 = vadd.f32 %v9347_v55, %v9489_v23 }
 0x1dd   : > { %13121 = vst [vmem:[#allocation89_spill] sm:$0xff] %v9504_v43  ;;  %v9512_v8 = vadd.f32 %v2421_v53, %v2420_v10  ;;  %6262 = vmatpush.msk.msrb.mxu0 %vm709_vm4, %v3546_v17  ;;  %v3547_v21 = vrot.slane %v3431_v13, 1  ;;  %v9519_v39 = vmul.f32 %v3431_v13, %v3431_v13  ;;  %v13125_v3 = vrot.slane %v13124_v6, 4  ;;  %v9528_v53 = vpop.f32.mrf.mxu3  ;;  %v9534_v10 = vld [vmem:[%s6786_s12 + $0x38] sm:$0x7f] }
 0x1de   : > { %13122 = vst [vmem:[#allocation91_spill] sm:$0xff] %v9508_v48  ;;  %v9510_v54 = vadd.f32 %v2851_v18, %v2339_v50  ;;  %v9517_v59 = vadd.f32 %v2428_v15, %v2427_v27  ;;  %6263 = vmatmul.msk.f32.vlgmr.msrb.gmra.mxu0 %vm817_vm5, %v8870_v32  ;;  %v9526_v50 = vperm.slane %v2354_v44, 0  ;;  %v3456_v17 = vrot.slane %v3440_v35, 1  ;;  %v13127_v27 = vld [vmem:[#allocation45_spill] sm:$0xff]  ;;  %6274 = vmatmul.msk.f32.gmra.mxu2 %vm817_vm5, %v8933_v56  ;;  %v9543_v44 = vpop.f32.mrf.mxu0 }
 0x1df   : > { %v2432_v18 = vadd.f32 %v13125_v3, %v13124_v6  ;;  %v2732_v55 = vmul.f32 %v9512_v8, %v7339_v30  ;;  %6267 = vmatpush.msk.msrb.mxu1 %vm709_vm4, %v3547_v21  ;;  %13126 = vst [vmem:[#allocation62_spill] sm:$0xff] %v9534_v10  ;;  %v2355_v13 = vmul.f32 %v9534_v10, %v9216_v26  ;;  %v13128_v15 = vrot.slane %v13127_v27, 4  ;;  %v9557_v6 = vld [vmem:[%s12256_s1 + $0x10] sm:$0xff] }
 0x1e0   : > { %13123 = vst [vmem:[#allocation78_spill] sm:$0xff] %v9510_v54  ;;  %v2659_v35 = vadd.f32 %v9349_v49, %v9508_v48  ;;  %v2733_v21 = vmul.f32 %v9517_v59, %v7339_v30  ;;  %6268 = vmatmul.msk.f32.vlgmr.msrb.gmra.mxu1 %vm817_vm5, %v8870_v32  ;;  %6280 = vmatmul.msk.f32.gmra.mxu3 %vm817_vm5, %v9557_v6  ;;  %v9561_v49 = vpop.f32.mrf.mxu1 }
 0x1e1   : > { %v2439_v54 = vadd.f32 %v13128_v15, %v13127_v27  ;;  %v2433_v26 = vrot.slane %v2432_v18, 2  ;;  %v2764_v15 = vadd.f32 %v2732_v55, %v2630_v40  ;;  %v9565_v32 = vmul.f32 %v9526_v50, %v12848_v37 }
 0x1e2   : > { %v9567_v3 = vperm.slane %v2355_v13, 0  ;;  %v9571_v40 = vmul.f32 %v9472_v52, %v13059_v24  ;;  %v9574_v55 = vsel %vm709_vm4, %v3456_v17, 0.0  ;;  %v3457_v27 = vrot.slane %v9519_v39, 1  ;;  %v9585_v29 = vpop.f32.mrf.mxu2 }
 0x1e3   : > { %v2440_v10 = vrot.slane %v2439_v54, 2  ;;  %v2434_v48 = vadd.f32 %v2433_v26, %v2432_v18  ;;  %13129 = vst [vmem:[#allocation68_spill] sm:$0xff] %v9565_v32  ;;  %v2740_v43 = vmul.f32 %v9512_v8, %v12913_v34  ;;  %v2765_v18 = vadd.f32 %v2733_v21, %v2659_v35 }
 0x1e4   : > { %13130 = vst [vmem:[#allocation145_spill] sm:$0xff] %v9574_v55  ;;  %v9581_v46 = vmul.f32 %v9567_v3, %v12848_v37  ;;  %v2633_v13 = vadd.f32 %v9412_v7, %v9571_v40  ;;  %v9588_v17 = vadd.f32 %v2764_v15, %v7399_v4  ;;  %v2741_v39 = vmul.f32 %v9517_v59, %v12913_v34  ;;  %v13166_v55 = vld [vmem:[#allocation76_spill] sm:$0xff] }
 0x1e5   : > { %v2441_v16 = vadd.f32 %v2440_v10, %v2439_v54  ;;  %v2435_v26 = vrot.slane %v2434_v48, 1  ;;  %v9592_v54 = vmul.f32 %v9474_v58, %v13059_v24  ;;  %v2688_v35 = vadd.f32 %v9358_v60, %v9565_v32  ;;  %v9618_v60 = vpop.f32.mrf.mxu3 }
 0x1e6   : > { %13131 = vst [vmem:[#allocation92_spill] sm:$0xff] %v9581_v46  ;;  %v2717_v7 = vadd.f32 %v9405_v57, %v9581_v46  ;;  %v2772_v21 = vadd.f32 %v2740_v43, %v2633_v13  ;;  %6264 = vmatmul.msk.f32.gmra.mxu0 %vm817_vm5, %v8933_v56  ;;  %v9610_v2 = vmul.f32 %v9526_v50, %v13059_v24  ;;  %v9646_v46 = vpop.f32.mrf.mxu0  ;;  %v9649_v32 = vsel %vm709_vm4, %v3457_v27, 0.0 }
 0x1e7   : > { %v2442_v36 = vrot.slane %v2441_v16, 1  ;;  %13132 = vst [vmem:[#allocation110_spill] sm:$0xff] %v9592_v54  ;;  %v9596_v10 = vadd.f32 %v2435_v26, %v2434_v48  ;;  %v2662_v37 = vadd.f32 %v9414_v45, %v9592_v54  ;;  %v9614_v48 = vmul.f32 %v9567_v3, %v13059_v24  ;;  %6275 = vmatmul.msk.f32.gmra.mxu2 %vm817_vm5, %v9557_v6 }
 0x1e8   : > { %13133 = vst [vmem:[#allocation111_spill] sm:$0xff] %v9610_v2  ;;  %v9621_v57 = vadd.f32 %v2765_v18, %v7399_v4  ;;  %6269 = vmatmul.msk.f32.gmra.mxu1 %vm817_vm5, %v8933_v56  ;;  %v9631_v43 = vmul.f32 %v9472_v52, %v12857_v5  ;;  %v2691_v18 = vadd.f32 %v9423_v33, %v9610_v2  ;;  %v9642_v56 = vld [vmem:[%s12256_s1 + $0x18] sm:$0xff]  ;;  %v9660_v24 = vpop.f32.mrf.mxu1 }
 0x1e9   : > { %v9604_v15 = vadd.f32 %v2442_v36, %v2441_v16  ;;  %13134 = vst [vmem:[#allocation146_spill] sm:$0xff] %v9614_v48  ;;  %v2734_v36 = vmul.f32 %v9596_v10, %v7339_v30  ;;  %v2742_v45 = vmul.f32 %v9596_v10, %v12913_v34  ;;  %v2773_v26 = vadd.f32 %v2741_v39, %v2662_v37 }
 0x1ea   : > { %13135 = vst [vmem:[#allocation112_spill] sm:$0xff] %v9621_v57  ;;  %v2720_v13 = vadd.f32 %v9459_v42, %v9614_v48  ;;  %6281 = vmatmul.msk.f32.gmra.mxu3 %vm817_vm5, %v9642_v56  ;;  %v9652_v39 = vadd.f32 %v2772_v21, %v7474_v51  ;;  %v2636_v27 = vadd.f32 %v9468_v28, %v9631_v43  ;;  %v9687_v42 = vpop.f32.mrf.mxu2 }
 0x1eb   : > { %v2735_v16 = vmul.f32 %v9604_v15, %v7339_v30  ;;  %13136 = vst [vmem:[#allocation115_spill] sm:$0xff] %v9649_v32  ;;  %v2766_v37 = vadd.f32 %v2734_v36, %v2688_v35  ;;  %v2743_v33 = vmul.f32 %v9604_v15, %v12913_v34  ;;  %v9658_v2 = vadd.f32 %v2773_v26, %v7474_v51 }
 0x1ec   : > { %v2774_v54 = vadd.f32 %v2742_v45, %v2691_v18  ;;  %v2748_v35 = vmul.f32 %v9512_v8, %v12863_v62  ;;  %v9671_v21 = vmul.f32 %v9474_v58, %v12857_v5  ;;  %v2749_v28 = vmul.f32 %v9517_v59, %v12863_v62 }
 0x1ed   : > { %v2767_v48 = vadd.f32 %v2735_v16, %v2717_v7  ;;  %13137 = vst [vmem:[#allocation117_spill] sm:$0xff] %v9658_v2  ;;  %v9663_v22 = vadd.f32 %v2766_v37, %v7399_v4  ;;  %v2775_v16 = vadd.f32 %v2743_v33, %v2720_v13  ;;  %v9685_v37 = vmul.f32 %v9526_v50, %v12857_v5 }
 0x1ee   : > { %13139 = vst [vmem:[#allocation94_spill] sm:$0xff] %v9671_v21  ;;  %v2665_v18 = vadd.f32 %v9470_v61, %v9671_v21  ;;  %6265 = vmatmul.msk.f32.gmra.mxu0 %vm817_vm5, %v9557_v6  ;;  %v9694_v33 = vadd.f32 %v2774_v54, %v7474_v51  ;;  %v2750_v61 = vmul.f32 %v9596_v10, %v12863_v62 }
 0x1ef   : > { %13138 = vst [vmem:[#allocation87_spill] sm:$0xff] %v9663_v22  ;;  %v9690_v36 = vadd.f32 %v2767_v48, %v7399_v4  ;;  %6276 = vmatmul.msk.f32.gmra.mxu2 %vm817_vm5, %v9642_v56  ;;  %v2780_v26 = vadd.f32 %v2748_v35, %v2636_v27  ;;  %v2694_v48 = vadd.f32 %v9496_v0, %v9685_v37  ;;  %v9720_v35 = vpop.f32.mrf.mxu3 }
 0x1f0   : > { %13140 = vst [vmem:[#allocation114_spill] sm:$0xff] %v9685_v37  ;;  %6270 = vmatmul.msk.f32.gmra.mxu1 %vm817_vm5, %v9557_v6  ;;  %v9707_v13 = vmul.f32 %v9567_v3, %v12857_v5  ;;  %v9710_v54 = vadd.f32 %v2775_v16, %v7474_v51  ;;  %v2751_v7 = vmul.f32 %v9604_v15, %v12863_v62  ;;  %v9748_v32 = vpop.f32.mrf.mxu1 }
 0x1f1   : > { %13141 = vst [vmem:[#allocation65_spill] sm:$0xff] %v9690_v36  ;;  %v9716_v45 = vmul.f32 %v9472_v52, %v7160_v19  ;;  %v2756_v27 = vmul.f32 %v9512_v8, %v12812_v63  ;;  %v2781_v0 = vadd.f32 %v2749_v28, %v2665_v18  ;;  %v2782_v22 = vadd.f32 %v2750_v61, %v2694_v48  ;;  %v9738_v28 = vpop.f32.mrf.mxu0 }
 0x1f2   : > { %13142 = vst [vmem:[#allocation45_spill] sm:$0xff] %v9694_v33  ;;  %v2723_v57 = vadd.f32 %v9528_v53, %v9707_v13  ;;  %v9726_v16 = vmul.f32 %v9474_v58, %v7160_v19  ;;  %v2757_v52 = vmul.f32 %v9517_v59, %v12812_v63  ;;  %v3961_v8 = vsub.f32 %v12809_v25, %v13096_v9 }
 0x1f3   : > { %13143 = vst [vmem:[#allocation172_spill] sm:$0xff] %v9707_v13  ;;  %v2639_v2 = vadd.f32 %v9543_v44, %v9716_v45  ;;  %v9736_v18 = vmul.f32 %v9526_v50, %v7160_v19  ;;  %v9742_v58 = vadd.f32 %v2780_v26, %v12841_v11  ;;  %v9751_v50 = vadd.f32 %v2781_v0, %v12841_v11 }
 0x1f4   : > { %13144 = vst [vmem:[#allocation173_spill] sm:$0xff] %v9710_v54  ;;  %v2783_v61 = vadd.f32 %v2751_v7, %v2723_v57  ;;  %v2668_v44 = vadd.f32 %v9561_v49, %v9726_v16  ;;  %v3970_v59 = vmul.f32 %v3961_v8, %v3961_v8  ;;  %v4071_v13 = vrot.slane %v3961_v8, 1  ;;  %v9760_v49 = vpop.f32.mrf.mxu2 }
 0x1f5   : > { %13145 = vst [vmem:[#allocation174_spill] sm:$0xff] %v9726_v16  ;;  %v2788_v48 = vadd.f32 %v2756_v27, %v2639_v2  ;;  %v2697_v37 = vadd.f32 %v9585_v29, %v9736_v18  ;;  %v9754_v53 = vadd.f32 %v2782_v22, %v12841_v11  ;;  %v2758_v2 = vmul.f32 %v9596_v10, %v12812_v63 }
 0x1f6   : > { %13146 = vst [vmem:[#allocation175_spill] sm:$0xff] %v9736_v18  ;;  %v2789_v26 = vadd.f32 %v2757_v52, %v2668_v44  ;;  %6266 = vmatmul.msk.f32.gmra.mxu0 %vm817_vm5, %v9642_v56  ;;  %v9763_v57 = vadd.f32 %v2783_v61, %v12841_v11  ;;  %v3986_v29 = vrot.slane %v3970_v59, 1  ;;  %6297 = vmatpush.msk.msra.mxu3 %vm709_vm4, %v4071_v13 }
 0x1f7   : > { %13147 = vst [vmem:[#allocation176_spill] sm:$0xff] %v9751_v50  ;;  %v9768_v7 = vmul.f32 %v9567_v3, %v7160_v19  ;;  %v2759_v22 = vmul.f32 %v9604_v15, %v12812_v63  ;;  %v9774_v0 = vadd.f32 %v2788_v48, %v12798_v31  ;;  %v2790_v10 = vadd.f32 %v2758_v2, %v2697_v37  ;;  %v9783_v3 = vld [vmem:[%s12256_s1] sm:$0xff]  ;;  %v13152_v37 = vld [vmem:[#allocation71_spill] sm:$0xff]  ;;  %v9801_v36 = vpop.f32.mrf.mxu3 }
 0x1f8   : > { %13148 = vst [vmem:[#allocation177_spill] sm:$0xff] %v9754_v53  ;;  %6271 = vmatmul.msk.f32.gmra.mxu1 %vm817_vm5, %v9642_v56  ;;  %v3960_v52 = vsub.f32 %v12935_v14, %v13096_v9  ;;  %6298 = vmatmul.msk.f32.vlgmr.msra.gmra.mxu3 %vm817_vm5, %v9783_v3  ;;  %v9789_v13 = vadd.f32 %v2789_v26, %v12798_v31  ;;  %v13153_v61 = vrot.slane %v13152_v37, 4  ;;  %v9799_v2 = vsel %vm709_vm4, %v3986_v29, 0.0  ;;  %v13156_v48 = vld [vmem:[#allocation67_spill] sm:$0xff]  ;;  %v9832_v53 = vpop.f32.mrf.mxu1 }
 0x1f9   : > { %13149 = vst [vmem:[#allocation178_spill] sm:$0xff] %v9763_v57  ;;  %v2726_v8 = vadd.f32 %v9618_v60, %v9768_v7  ;;  %v9804_v26 = vadd.f32 %v2790_v10, %v12798_v31  ;;  %v13157_v59 = vrot.slane %v13156_v48, 4  ;;  %v3959_v10 = vsub.f32 %v12948_v38, %v13096_v9 }
 0x1fa   : > { %13150 = vst [vmem:[#allocation179_spill] sm:$0xff] %v9768_v7  ;;  %v2933_v44 = vadd.f32 %v13153_v61, %v13152_v37  ;;  %v3969_v27 = vmul.f32 %v3960_v52, %v3960_v52  ;;  %v4070_v54 = vrot.slane %v3960_v52, 1  ;;  %v9818_v52 = vpop.f32.mrf.mxu0  ;;  %v13161_v61 = vld [vmem:[#allocation74_spill] sm:$0xff] }
 0x1fb   : > { %13151 = vst [vmem:[#allocation180_spill] sm:$0xff] %v9789_v13  ;;  %v2791_v15 = vadd.f32 %v2759_v22, %v2726_v8  ;;  %v2940_v29 = vadd.f32 %v13157_v59, %v13156_v48  ;;  %v3958_v22 = vsub.f32 %v12944_v1, %v13096_v9  ;;  %v13158_v48 = vld [vmem:[#allocation143_spill] sm:$0xff]  ;;  %v3052_v57 = vadd.f32 %v9646_v46, %v13161_v61  ;;  %v13162_v46 = vld [vmem:[#allocation46_spill] sm:$0xff] }
 0x1fc   : > { %13154 = vst [vmem:[#allocation71_spill] sm:$0xff] %v9799_v2  ;;  %v2934_v60 = vrot.slane %v2933_v44, 2  ;;  %6292 = vmatpush.msk.msra.mxu2 %vm709_vm4, %v4070_v54  ;;  %v3985_v37 = vrot.slane %v3969_v27, 1  ;;  %v13159_v59 = vrot.slane %v13158_v48, 4  ;;  %v9834_v27 = vpop.f32.mrf.mxu2  ;;  %v4069_v2 = vrot.slane %v3959_v10, 1 }
 0x1fd   : > { %13155 = vst [vmem:[#allocation181_spill] sm:$0xff] %v9804_v26  ;;  %v2941_v33 = vrot.slane %v2940_v29, 2  ;;  %6293 = vmatmul.msk.f32.vlgmr.msra.gmra.mxu2 %vm817_vm5, %v9783_v3  ;;  %v9836_v18 = vmul.f32 %v3958_v22, %v3958_v22  ;;  %v4068_v13 = vrot.slane %v3958_v22, 1  ;;  %v3081_v61 = vadd.f32 %v9660_v24, %v13162_v46 }
 0x1fe   : > { %v2935_v7 = vadd.f32 %v2934_v60, %v2933_v44  ;;  %v2947_v54 = vadd.f32 %v13159_v59, %v13158_v48  ;;  %v9828_v60 = vadd.f32 %v2791_v15, %v12798_v31  ;;  %v9841_v48 = vld [vmem:[%s12256_s1 + $0x8] sm:$0xff]  ;;  %v13163_v44 = vld [vmem:[#allocation142_spill] sm:$0xff]  ;;  %v9853_v22 = vsel %vm709_vm4, %v3985_v37, 0.0  ;;  %6287 = vmatpush.msk.msra.mxu1 %vm709_vm4, %v4069_v2 }
 0x1ff   : > { %v2942_v8 = vadd.f32 %v2941_v33, %v2940_v29  ;;  %v13164_v33 = vrot.slane %v13163_v44, 4  ;;  %13165 = vst [vmem:[#allocation143_spill] sm:$0xff] %v9853_v22  ;;  %6282 = vmatpush.msk.msra.mxu0 %vm709_vm4, %v4068_v13 }
 0x200   : > { %13160 = vst [vmem:[#allocation67_spill] sm:$0xff] %v9828_v60  ;;  %v2936_v50 = vrot.slane %v2935_v7, 1  ;;  %6299 = vmatmul.msk.f32.gmra.mxu3 %vm817_vm5, %v9841_v48  ;;  %v2948_v59 = vrot.slane %v2947_v54, 2  ;;  %6283 = vmatmul.msk.f32.vlgmr.msra.gmra.mxu0 %vm817_vm5, %v9783_v3  ;;  %v3139_v60 = vadd.f32 %v9720_v35, %v9489_v23 }
 0x201   : > { %v2954_v29 = vadd.f32 %v13164_v33, %v13163_v44  ;;  %v2943_v26 = vrot.slane %v2942_v8, 1  ;;  %6288 = vmatmul.msk.f32.vlgmr.msra.gmra.mxu1 %vm817_vm5, %v9783_v3  ;;  %v9875_v44 = vpop.f32.mrf.mxu3 }
 0x202   : > { %v9845_v15 = vadd.f32 %v2936_v50, %v2935_v7  ;;  %v3110_v50 = vadd.f32 %v9687_v42, %v13166_v55  ;;  %v13167_v7 = vld [vmem:[#allocation30_spill] sm:$0xff]  ;;  %v2949_v13 = vadd.f32 %v2948_v59, %v2947_v54  ;;  %v9871_v42 = vmul.f32 %v3959_v10, %v3959_v10  ;;  %v9892_v35 = vpop.f32.mrf.mxu0 }
 0x203   : > { %v3055_v16 = vadd.f32 %v9738_v28, %v13167_v7  ;;  %v2955_v37 = vrot.slane %v2954_v29, 2  ;;  %v9868_v2 = vadd.f32 %v2943_v26, %v2942_v8  ;;  %v13168_v8 = vld [vmem:[#allocation119_spill] sm:$0xff] }
 0x204   : > { %v3266_v46 = vmul.f32 %v9845_v15, %v7339_v30  ;;  %v3274_v28 = vmul.f32 %v9845_v15, %v12913_v34  ;;  %v2950_v7 = vrot.slane %v2949_v13, 1  ;;  %v3084_v59 = vadd.f32 %v9748_v32, %v13168_v8 }
 0x205   : > { %v2956_v24 = vadd.f32 %v2955_v37, %v2954_v29  ;;  %v3267_v54 = vmul.f32 %v9868_v2, %v7339_v30  ;;  %v3275_v10 = vmul.f32 %v9868_v2, %v12913_v34  ;;  %6294 = vmatmul.msk.f32.gmra.mxu2 %vm817_vm5, %v9841_v48  ;;  %v13169_v37 = vld [vmem:[#allocation80_spill] sm:$0xff]  ;;  %v3142_v8 = vadd.f32 %v9801_v36, %v9571_v40  ;;  %v13170_v36 = vld [vmem:[#allocation86_spill] sm:$0xff] }
 0x206   : > { %v3298_v33 = vadd.f32 %v3266_v46, %v3052_v57  ;;  %v3306_v26 = vadd.f32 %v3274_v28, %v3055_v16  ;;  %v9888_v46 = vadd.f32 %v2950_v7, %v2949_v13  ;;  %v3113_v23 = vadd.f32 %v9760_v49, %v13169_v37  ;;  %v3089_v7 = vpop.f32.mrf.mxu1 }
 0x207   : > { %v2957_v29 = vrot.slane %v2956_v24, 1  ;;  %v3299_v16 = vadd.f32 %v3267_v54, %v3081_v61  ;;  %v3307_v32 = vadd.f32 %v3275_v10, %v3084_v59  ;;  %v9905_v61 = vpop.f32.mrf.mxu2  ;;  %v3058_v59 = vadd.f32 %v9818_v52, %v13170_v36 }
 0x208   : > { %v3330_v57 = vadd.f32 %v3298_v33, %v7399_v4  ;;  %v3338_v28 = vadd.f32 %v3306_v26, %v7474_v51  ;;  %6300 = vmatmul.msk.f32.gmra.mxu3 %vm817_vm5, %v9557_v6  ;;  %v3268_v13 = vmul.f32 %v9888_v46, %v7339_v30  ;;  %v3276_v49 = vmul.f32 %v9888_v46, %v12913_v34 }
 0x209   : > { %v9901_v33 = vadd.f32 %v2957_v29, %v2956_v24  ;;  %v3331_v54 = vadd.f32 %v3299_v16, %v7399_v4  ;;  %v3339_v40 = vadd.f32 %v3307_v32, %v7474_v51  ;;  %6284 = vmatmul.msk.f32.gmra.mxu0 %vm817_vm5, %v9841_v48  ;;  %6289 = vmatmul.msk.f32.gmra.mxu1 %vm817_vm5, %v9841_v48 }
 0x20a   : > { %v3362_v55 = vmax.f32 %v3330_v57, 0.0  ;;  %v3370_v26 = vmax.f32 %v3338_v28, 0.0  ;;  %v3300_v57 = vadd.f32 %v3268_v13, %v3110_v50  ;;  %v3308_v28 = vadd.f32 %v3276_v49, %v3113_v23 }
 0x20b   : > { %v3269_v29 = vmul.f32 %v9901_v33, %v7339_v30  ;;  %v3363_v37 = vmax.f32 %v3331_v54, 0.0  ;;  %v3371_v52 = vmax.f32 %v3339_v40, 0.0  ;;  %v3277_v50 = vmul.f32 %v9901_v33, %v12913_v34  ;;  %v13175_v54 = vld [vmem:[#allocation124_spill] sm:$0xff] }
 0x20c   : > { %v9912_v10 = vadd.f32 %v3362_v55, %v9277_v47  ;;  %v9922_v16 = vadd.f32 %v3370_v26, %v9299_v20  ;;  %v3332_v47 = vadd.f32 %v3300_v57, %v7399_v4  ;;  %v3282_v32 = vmul.f32 %v9845_v15, %v12863_v62 }
 0x20d   : > { %v3301_v55 = vadd.f32 %v3269_v29, %v3139_v60  ;;  %v9930_v13 = vadd.f32 %v3363_v37, %v9292_v41  ;;  %v9933_v36 = vadd.f32 %v3371_v52, %v9304_v12  ;;  %v3340_v20 = vadd.f32 %v3308_v28, %v7474_v51  ;;  %6295 = vmatmul.msk.f32.gmra.mxu2 %vm817_vm5, %v9557_v6  ;;  %v3147_v60 = vpop.f32.mrf.mxu3  ;;  %v13176_v12 = vld [vmem:[#allocation153_spill] sm:$0xff] }
 0x20e   : > { %13171 = vst [vmem:[#allocation74_spill] sm:$0xff] %v9912_v10  ;;  %v3087_v23 = vadd.f32 %v9832_v53, %v13175_v54  ;;  %v3364_v49 = vmax.f32 %v3332_v47, 0.0  ;;  %v3309_v40 = vadd.f32 %v3277_v50, %v3142_v8  ;;  %v3314_v57 = vadd.f32 %v3282_v32, %v3058_v59  ;;  %v13177_v53 = vld [vmem:[#allocation35_spill] sm:$0xff]  ;;  %v13179_v50 = vld [vmem:[#allocation72_spill] sm:$0xff] }
 0x20f   : > { %13172 = vst [vmem:[#allocation46_spill] sm:$0xff] %v9922_v16  ;;  %v3333_v26 = vadd.f32 %v3301_v55, %v7399_v4  ;;  %v3372_v29 = vmax.f32 %v3340_v20, 0.0  ;;  %v3283_v41 = vmul.f32 %v9868_v2, %v12863_v62  ;;  %v3116_v37 = vadd.f32 %v9834_v27, %v13176_v12  ;;  %v9954_v55 = vpop.f32.mrf.mxu0  ;;  %v13181_v12 = vld [vmem:[#allocation97_spill] sm:$0xff] }
 0x210   : > { %13173 = vst [vmem:[#allocation142_spill] sm:$0xff] %v9930_v13  ;;  %v3284_v52 = vmul.f32 %v9888_v46, %v12863_v62  ;;  %6301 = vmatmul.msk.f32.gmra.mxu3 %vm817_vm5, %v9642_v56  ;;  %v9950_v28 = vadd.f32 %v3364_v49, %v13177_v53  ;;  %v3341_v8 = vadd.f32 %v3309_v40, %v7474_v51  ;;  %v9970_v40 = vpop.f32.mrf.mxu1 }
 0x211   : > { %13174 = vst [vmem:[#allocation76_spill] sm:$0xff] %v9933_v36  ;;  %v3365_v47 = vmax.f32 %v3333_v26, 0.0  ;;  %v3346_v59 = vadd.f32 %v3314_v57, %v12841_v11  ;;  %v9957_v32 = vadd.f32 %v3372_v29, %v13179_v50  ;;  %v3315_v27 = vadd.f32 %v3283_v41, %v3087_v23  ;;  %6285 = vmatmul.msk.f32.gmra.mxu0 %vm817_vm5, %v9557_v6  ;;  %v9972_v23 = vpop.f32.mrf.mxu2  ;;  %v13183_v57 = vld [vmem:[#allocation28_spill] sm:$0xff] }
 0x212   : > { %13178 = vst [vmem:[#allocation30_spill] sm:$0xff] %v9950_v28  ;;  %v3316_v20 = vadd.f32 %v3284_v52, %v3116_v37  ;;  %v3145_v54 = vadd.f32 %v9875_v44, %v9631_v43  ;;  %v3373_v49 = vmax.f32 %v3341_v8, 0.0  ;;  %6290 = vmatmul.msk.f32.gmra.mxu1 %vm817_vm5, %v9557_v6  ;;  %v3285_v26 = vmul.f32 %v9901_v33, %v12863_v62  ;;  %v13184_v37 = vld [vmem:[#allocation33_spill] sm:$0xff]  ;;  %v13188_v50 = vld [vmem:[#allocation132_spill] sm:$0xff] }
 0x213   : > { %13180 = vst [vmem:[#allocation119_spill] sm:$0xff] %v9957_v32  ;;  %v9962_v24 = vadd.f32 %v3365_v47, %v13181_v12  ;;  %v3378_v53 = vmax.f32 %v3346_v59, 0.0  ;;  %v3347_v43 = vadd.f32 %v3315_v27, %v12841_v11  ;;  %v3061_v29 = vadd.f32 %v9892_v35, %v13183_v57  ;;  %v13186_v47 = vld [vmem:[#allocation59_spill] sm:$0xff]  ;;  %v13189_v35 = vld [vmem:[#allocation25_spill] sm:$0xff] }
 0x214   : > { %v3348_v44 = vadd.f32 %v3316_v20, %v12841_v11  ;;  %v3290_v41 = vmul.f32 %v9845_v15, %v12812_v63  ;;  %v9981_v52 = vadd.f32 %v3373_v49, %v13184_v37  ;;  %v3317_v59 = vadd.f32 %v3285_v26, %v3145_v54  ;;  %v13190_v57 = vld [vmem:[#allocation161_spill] sm:$0xff]  ;;  %v13191_v54 = vld [vmem:[#allocation54_spill] sm:$0xff]  ;;  %v13210_v32 = vld [vmem:[#allocation55_spill] sm:$0xff] }
 0x215   : > { %13182 = vst [vmem:[#allocation80_spill] sm:$0xff] %v9962_v24  ;;  %v9984_v8 = vadd.f32 %v3378_v53, %v13186_v47  ;;  %v3090_v12 = vadd.f32 %v3089_v7, %v13188_v50  ;;  %v3379_v24 = vmax.f32 %v3347_v43, 0.0  ;;  %v3291_v20 = vmul.f32 %v9868_v2, %v12812_v63  ;;  %6296 = vmatmul.msk.f32.gmra.mxu2 %vm817_vm5, %v9642_v56  ;;  %v13193_v43 = vld [vmem:[#allocation48_spill] sm:$0xff] }
 0x216   : > { %13185 = vst [vmem:[#allocation86_spill] sm:$0xff] %v9981_v52  ;;  %v3380_v28 = vmax.f32 %v3348_v44, 0.0  ;;  %v3322_v27 = vadd.f32 %v3290_v41, %v3061_v29  ;;  %v3349_v15 = vadd.f32 %v3317_v59, %v12841_v11  ;;  %v3965_v49 = vsub.f32 %v13189_v35, %v13096_v9  ;;  %v10005_v41 = vpop.f32.mrf.mxu3 }
 0x217   : > { %13187 = vst [vmem:[#allocation124_spill] sm:$0xff] %v9984_v8  ;;  %v3119_v53 = vadd.f32 %v9905_v61, %v13190_v57  ;;  %v3292_v7 = vmul.f32 %v9888_v46, %v12812_v63  ;;  %v9999_v26 = vadd.f32 %v3379_v24, %v13191_v54  ;;  %v3323_v29 = vadd.f32 %v3291_v20, %v3090_v12  ;;  %v13197_v12 = vld [vmem:[#allocation64_spill] sm:$0xff] }
 0x218   : > { %v10002_v44 = vadd.f32 %v3380_v28, %v13193_v43  ;;  %v3354_v2 = vadd.f32 %v3322_v27, %v12798_v31  ;;  %v3381_v37 = vmax.f32 %v3349_v15, 0.0  ;;  %v3974_v47 = vmul.f32 %v3965_v49, %v3965_v49 }
 0x219   : > { %13192 = vst [vmem:[#allocation153_spill] sm:$0xff] %v9999_v26  ;;  %v4075_v59 = vrot.slane %v3965_v49, 1  ;;  %v3324_v50 = vadd.f32 %v3292_v7, %v3119_v53  ;;  %v3355_v61 = vadd.f32 %v3323_v29, %v12798_v31  ;;  %v3148_v46 = vadd.f32 %v3147_v60, %v9716_v45  ;;  %6286 = vmatmul.msk.f32.gmra.mxu0 %vm817_vm5, %v9642_v56  ;;  %v13201_v53 = vld [vmem:[#allocation61_spill] sm:$0xff] }
 0x21a   : > { %13194 = vst [vmem:[#allocation35_spill] sm:$0xff] %v10002_v44  ;;  %v3386_v52 = vmax.f32 %v3354_v2, 0.0  ;;  %v3293_v24 = vmul.f32 %v9901_v33, %v12812_v63  ;;  %v13195_v28 = vrot.slane %v9836_v18, 1  ;;  %v10017_v27 = vadd.f32 %v3381_v37, %v13197_v12  ;;  %6291 = vmatmul.msk.f32.gmra.mxu1 %vm817_vm5, %v9642_v56  ;;  %v10026_v33 = vpop.f32.mrf.mxu0  ;;  %v13199_v18 = vld [vmem:[#allocation39_spill] sm:$0xff] }
 0x21b   : > { %v3356_v20 = vadd.f32 %v3324_v50, %v12798_v31  ;;  %v3964_v45 = vsub.f32 %v13096_v9, %v13096_v9  ;;  %v3387_v15 = vmax.f32 %v3355_v61, 0.0  ;;  %6317 = vmatpush.msk.msrb.mxu3 %vm709_vm4, %v4075_v59  ;;  %v522_v7 = vmul.f32 %v13201_v53, %v13201_v53  ;;  %v10043_v50 = vpop.f32.mrf.mxu2  ;;  %v13204_v59 = vld [vmem:[#allocation32_spill] sm:$0xff] }
 0x21c   : > { %v10014_v57 = vsel %vm709_vm4, %v13195_v28, 0.0  ;;  %13198 = vst [vmem:[#allocation97_spill] sm:$0xff] %v10017_v27  ;;  %v10029_v60 = vadd.f32 %v3386_v52, %v13199_v18  ;;  %v3325_v49 = vadd.f32 %v3293_v24, %v3148_v46  ;;  %v13202_v54 = vrot.slane %v9871_v42, 1  ;;  %6318 = vmatmul.msk.f32.vlgmr.msrb.gmra.mxu3 %vm817_vm5, %v9783_v3  ;;  %v10041_v52 = vpop.f32.mrf.mxu1  ;;  %v13206_v28 = vld [vmem:[#allocation58_spill] sm:$0xff] }
 0x21d   : > { %13196 = vst [vmem:[#allocation72_spill] sm:$0xff] %v10014_v57  ;;  %v3388_v2 = vmax.f32 %v3356_v20, 0.0  ;;  %v3973_v29 = vmul.f32 %v3964_v45, %v3964_v45  ;;  %v4074_v37 = vrot.slane %v3964_v45, 1  ;;  %v10046_v61 = vadd.f32 %v3387_v15, %v13204_v59  ;;  %v13208_v45 = vld [vmem:[#allocation73_spill] sm:$0xff]  ;;  %v13211_v59 = vld [vmem:[#allocation38_spill] sm:$0xff] }
 0x21e   : > { %13200 = vst [vmem:[#allocation28_spill] sm:$0xff] %v10029_v60  ;;  %v10037_v43 = vsel %vm709_vm4, %v13202_v54, 0.0  ;;  %v3990_v46 = vrot.slane %v3974_v47, 1  ;;  %v3357_v24 = vadd.f32 %v3325_v49, %v12798_v31  ;;  %v10049_v42 = vperm.slane %v522_v7, 0  ;;  %v13212_v49 = vld [vmem:[#allocation118_spill] sm:$0xff]  ;;  %v10082_v36 = vpop.f32.mrf.mxu3 }
 0x21f   : > { %13203 = vst [vmem:[#allocation33_spill] sm:$0xff] %v10037_v43  ;;  %v10052_v12 = vadd.f32 %v3388_v2, %v13206_v28  ;;  %v3989_v20 = vrot.slane %v3973_v29, 1  ;;  %6312 = vmatpush.msk.msrb.mxu2 %vm709_vm4, %v4074_v37  ;;  %v13209_v18 = vrot.slane %v13208_v45, 4  ;;  %v2896_v27 = vmul.f32 %v13210_v32, %v13201_v53  ;;  %v13214_v2 = vld [vmem:[#allocation27_spill] sm:$0xff]  ;;  %v13215_v32 = vld [vmem:[#allocation29_spill] sm:$0xff] }
 0x220   : > { %13205 = vst [vmem:[#allocation59_spill] sm:$0xff] %v10046_v61  ;;  %v3389_v15 = vmax.f32 %v3357_v24, 0.0  ;;  %v538_v47 = vmul.f32 %v10049_v42, %v13211_v59  ;;  %v13213_v7 = vrot.slane %v13212_v49, 4  ;;  %v3962_v29 = vsub.f32 %v13214_v2, %v13096_v9  ;;  %6313 = vmatmul.msk.f32.vlgmr.msrb.gmra.mxu2 %vm817_vm5, %v9783_v3  ;;  %v13222_v43 = vld [vmem:[#allocation113_spill] sm:$0xff] }
 0x221   : > { %13207 = vst [vmem:[#allocation132_spill] sm:$0xff] %v10052_v12  ;;  %v2961_v54 = vadd.f32 %v13209_v18, %v13208_v45  ;;  %v10070_v45 = vperm.slane %v2896_v27, 0  ;;  %v3963_v24 = vsub.f32 %v13215_v32, %v13096_v9  ;;  %v10076_v13 = vsel %vm709_vm4, %v3990_v46, 0.0  ;;  %v13227_v32 = vld [vmem:[#allocation116_spill] sm:$0xff]  ;;  %v13229_v12 = vld [vmem:[#allocation69_spill] sm:$0xff] }
 0x222   : > { %v2968_v44 = vadd.f32 %v13213_v7, %v13212_v49  ;;  %13216 = vst [vmem:[#allocation161_spill] sm:$0xff] %v10076_v13  ;;  %v13217_v49 = vld [vmem:[#allocation78_spill] sm:$0xff]  ;;  %v570_v10 = vadd.f32 %v538_v47, %v7399_v4  ;;  %v10086_v27 = vsel %vm709_vm4, %v3989_v20, 0.0  ;;  %v4072_v46 = vrot.slane %v3962_v29, 1  ;;  %v10095_v37 = vpop.f32.mrf.mxu0  ;;  %v13225_v20 = vld [vmem:[#allocation95_spill] sm:$0xff] }
 0x223   : > { %v2962_v28 = vrot.slane %v2961_v54, 2  ;;  %v10079_v7 = vadd.f32 %v3389_v15, %v13217_v49  ;;  %13219 = vst [vmem:[#allocation48_spill] sm:$0xff] %v10086_v27  ;;  %v10090_v18 = vmul.f32 %v10070_v45, %v13211_v59  ;;  %v4073_v22 = vrot.slane %v3963_v24, 1 }
 0x224   : > { %v2969_v26 = vrot.slane %v2968_v44, 2  ;;  %v602_v8 = vmax.f32 %v570_v10, 0.0  ;;  %6319 = vmatmul.msk.f32.gmra.mxu3 %vm817_vm5, %v9841_v48  ;;  %6302 = vmatpush.msk.msrb.mxu0 %vm709_vm4, %v4072_v46  ;;  %v13221_v10 = vld [vmem:[#allocation85_spill] sm:$0xff]  ;;  %v13223_v15 = vrot.slane %v13222_v43, 4  ;;  %v10114_v46 = vpop.f32.mrf.mxu1 }
 0x225   : > { %13218 = vst [vmem:[#allocation54_spill] sm:$0xff] %v10079_v7  ;;  %v2963_v16 = vadd.f32 %v2962_v28, %v2961_v54  ;;  %v3971_v7 = vmul.f32 %v3962_v29, %v3962_v29  ;;  %6307 = vmatpush.msk.msrb.mxu1 %vm709_vm4, %v4073_v22  ;;  %v2897_v28 = vmul.f32 %v13221_v10, %v13201_v53  ;;  %v13224_v22 = vld [vmem:[#allocation62_spill] sm:$0xff]  ;;  %v10116_v10 = vpop.f32.mrf.mxu2 }
 0x226   : > { %13220 = vst [vmem:[#allocation64_spill] sm:$0xff] %v10090_v18  ;;  %v2970_v57 = vadd.f32 %v2969_v26, %v2968_v44  ;;  %v634_v54 = vsub.f32 0.0, %v602_v8  ;;  %v2975_v26 = vadd.f32 %v13223_v15, %v13222_v43  ;;  %v3168_v29 = vadd.f32 %v9954_v55, %v538_v47  ;;  %6303 = vmatmul.msk.f32.vlgmr.msrb.gmra.mxu0 %vm817_vm5, %v9783_v3 }
 0x227   : > { %v2964_v49 = vrot.slane %v2963_v16, 1  ;;  %6308 = vmatmul.msk.f32.vlgmr.msrb.gmra.mxu1 %vm817_vm5, %v9783_v3  ;;  %v2898_v8 = vmul.f32 %v13224_v22, %v13201_v53  ;;  %v13226_v43 = vmax.f32 %v13225_v20, 0.0  ;;  %v3197_v55 = vadd.f32 %v9970_v40, %v10090_v18 }
 0x228   : > { %v2971_v13 = vrot.slane %v2970_v57, 1  ;;  %v10122_v47 = vmul.f32 %v3963_v24, %v3963_v24  ;;  %v2976_v15 = vrot.slane %v2975_v26, 2  ;;  %6314 = vmatmul.msk.f32.gmra.mxu2 %vm817_vm5, %v9841_v48  ;;  %v3987_v22 = vrot.slane %v3971_v7, 1 }
 0x229   : > { %v10105_v44 = vadd.f32 %v2964_v49, %v2963_v16  ;;  %v1210_v16 = vadd.f32 %v13226_v43, %v634_v54  ;;  %v10130_v27 = vperm.slane %v2897_v28, 0  ;;  %v13228_v20 = vmax.f32 %v13227_v32, 0.0  ;;  %v13233_v32 = vld [vmem:[#allocation148_spill] sm:$0xff] }
 0x22a   : > { %v10128_v53 = vadd.f32 %v2971_v13, %v2970_v57  ;;  %v2977_v43 = vadd.f32 %v2976_v15, %v2975_v26  ;;  %v13230_v40 = vrot.slane %v13229_v12, 4  ;;  %v10137_v18 = vperm.slane %v2898_v8, 0  ;;  %v13232_v57 = vld [vmem:[#allocation40_spill] sm:$0xff]  ;;  %v10150_v8 = vpop.f32.mrf.mxu3 }
 0x22b   : > { %v3270_v49 = vmul.f32 %v10105_v44, %v7339_v30  ;;  %v1766_v54 = vadd.f32 %v13228_v20, %v1210_v16  ;;  %v10143_v13 = vmul.f32 %v10130_v27, %v13211_v59  ;;  %v546_v7 = vmul.f32 %v10049_v42, %v13232_v57 }
 0x22c   : > { %v2982_v24 = vadd.f32 %v13230_v40, %v13229_v12  ;;  %v3271_v61 = vmul.f32 %v10128_v53, %v7339_v30  ;;  %v13234_v28 = vmax.f32 %v13233_v32, 0.0  ;;  %v3988_v16 = vrot.slane %v10122_v47, 1  ;;  %6320 = vmatmul.msk.f32.gmra.mxu3 %vm817_vm5, %v9557_v6  ;;  %v10176_v38 = vpop.f32.mrf.mxu1 }
 0x22d   : > { %v3302_v2 = vadd.f32 %v3270_v49, %v3168_v29  ;;  %13231 = vst [vmem:[#allocation39_spill] sm:$0xff] %v10143_v13  ;;  %v2978_v15 = vrot.slane %v2977_v43, 1  ;;  %v10154_v49 = vsel %vm709_vm4, %v3987_v22, 0.0  ;;  %v10158_v20 = vmul.f32 %v10137_v18, %v13211_v59 }
 0x22e   : > { %v2316_v26 = vadd.f32 %v13234_v28, %v1766_v54  ;;  %v2983_v12 = vrot.slane %v2982_v24, 2  ;;  %v578_v40 = vadd.f32 %v546_v7, %v7474_v51  ;;  %v10163_v54 = vpop.f32.mrf.mxu0  ;;  %v13236_v47 = vmax.f32 %v9588_v17, 0.0  ;;  %6304 = vmatmul.msk.f32.gmra.mxu0 %vm817_vm5, %v9841_v48 }
 0x22f   : > { %v3334_v29 = vadd.f32 %v3302_v2, %v7399_v4  ;;  %13235 = vst [vmem:[#allocation61_spill] sm:$0xff] %v10158_v20  ;;  %v10167_v28 = vadd.f32 %v2978_v15, %v2977_v43  ;;  %v3226_v2 = vadd.f32 %v9972_v23, %v10143_v13  ;;  %v3303_v9 = vadd.f32 %v3271_v61, %v3197_v55 }
 0x230   : > { %v2860_v32 = vadd.f32 %v13236_v47, %v2316_v26  ;;  %v2984_v22 = vadd.f32 %v2983_v12, %v2982_v24  ;;  %v610_v59 = vmax.f32 %v578_v40, 0.0  ;;  %v3171_v21 = vadd.f32 %v10026_v33, %v546_v7  ;;  %6309 = vmatmul.msk.f32.gmra.mxu1 %vm817_vm5, %v9841_v48  ;;  %6315 = vmatmul.msk.f32.gmra.mxu2 %vm817_vm5, %v9557_v6  ;;  %v10194_v26 = vpop.f32.mrf.mxu2  ;;  %v13238_v47 = vld [vmem:[#allocation102_spill] sm:$0xff] }
 0x231   : > { %v3366_v60 = vmax.f32 %v3334_v29, 0.0  ;;  %v3272_v17 = vmul.f32 %v10167_v28, %v7339_v30  ;;  %v3278_v23 = vmul.f32 %v10105_v44, %v12913_v34  ;;  %v10184_v61 = vmul.f32 %v10070_v45, %v13232_v57 }
 0x232   : > { %v2985_v43 = vrot.slane %v2984_v22, 1  ;;  %v3255_v55 = vadd.f32 %v10005_v41, %v10158_v20  ;;  %v642_v24 = vsub.f32 0.0, %v610_v59  ;;  %v3279_v7 = vmul.f32 %v10128_v53, %v12913_v34 }
 0x233   : > { %v10188_v33 = vadd.f32 %v3366_v60, %v2860_v32  ;;  %v3304_v15 = vadd.f32 %v3272_v17, %v3226_v2  ;;  %v3310_v29 = vadd.f32 %v3278_v23, %v3171_v21  ;;  %v3200_v40 = vadd.f32 %v10041_v52, %v10184_v61 }
 0x234   : > { %v10196_v12 = vadd.f32 %v2985_v43, %v2984_v22  ;;  %v13239_v13 = vmax.f32 %v13238_v47, 0.0  ;;  %v10204_v32 = vmul.f32 %v10130_v27, %v13232_v57  ;;  %v3280_v41 = vmul.f32 %v10167_v28, %v12913_v34  ;;  %v13243_v22 = vld [vmem:[#allocation126_spill] sm:$0xff]  ;;  %6321 = vmatmul.msk.f32.gmra.mxu3 %vm817_vm5, %v9642_v56 }
 0x235   : > { %13237 = vst [vmem:[#allocation32_spill] sm:$0xff] %v10188_v33  ;;  %v10210_v59 = vmul.f32 %v10137_v18, %v13232_v57  ;;  %v10213_v2 = vadd.f32 %v3303_v9, %v7399_v4  ;;  %v3342_v52 = vadd.f32 %v3310_v29, %v7474_v51  ;;  %v13244_v17 = vmax.f32 %v13243_v22, 0.0 }
 0x236   : > { %v1218_v60 = vadd.f32 %v13239_v13, %v642_v24  ;;  %13240 = vst [vmem:[#allocation58_spill] sm:$0xff] %v10204_v32  ;;  %v3273_v21 = vmul.f32 %v10196_v12, %v7339_v30  ;;  %v3311_v13 = vadd.f32 %v3279_v7, %v3200_v40  ;;  %v3229_v23 = vadd.f32 %v10043_v50, %v10204_v32  ;;  %v13246_v50 = vld [vmem:[#allocation152_spill] sm:$0xff] }
 0x237   : > { %13241 = vst [vmem:[#allocation73_spill] sm:$0xff] %v10210_v59  ;;  %v3258_v24 = vadd.f32 %v10082_v36, %v10210_v59  ;;  %v3281_v47 = vmul.f32 %v10196_v12, %v12913_v34  ;;  %v10229_v9 = vsel %vm709_vm4, %v3988_v16, 0.0  ;;  %v10232_v7 = vadd.f32 %v3304_v15, %v7399_v4  ;;  %6305 = vmatmul.msk.f32.gmra.mxu0 %vm817_vm5, %v9557_v6  ;;  %v10245_v16 = vpop.f32.mrf.mxu0 }
 0x238   : > { %13242 = vst [vmem:[#allocation55_spill] sm:$0xff] %v10213_v2  ;;  %v1774_v43 = vadd.f32 %v13244_v17, %v1218_v60  ;;  %v3305_v29 = vadd.f32 %v3273_v21, %v3255_v55  ;;  %v3374_v40 = vmax.f32 %v3342_v52, 0.0  ;;  %v10234_v60 = vpop.f32.mrf.mxu3  ;;  %v13247_v22 = vmax.f32 %v13246_v50, 0.0  ;;  %6310 = vmatmul.msk.f32.gmra.mxu1 %vm817_vm5, %v9557_v6  ;;  %6316 = vmatmul.msk.f32.gmra.mxu2 %vm817_vm5, %v9642_v56 }
 0x239   : > { %13245 = vst [vmem:[#allocation118_spill] sm:$0xff] %v10232_v7  ;;  %v10239_v36 = vadd.f32 %v3311_v13, %v7474_v51  ;;  %v3312_v33 = vadd.f32 %v3280_v41, %v3229_v23  ;;  %v554_v59 = vmul.f32 %v10049_v42, %v12857_v5  ;;  %v3313_v15 = vadd.f32 %v3281_v47, %v3258_v24  ;;  %v10263_v47 = vpop.f32.mrf.mxu1 }
 0x23a   : > { %v2324_v17 = vadd.f32 %v13247_v22, %v1774_v43  ;;  %v3286_v21 = vmul.f32 %v10105_v44, %v12863_v62  ;;  %v10252_v52 = vmul.f32 %v10070_v45, %v12857_v5  ;;  %v13249_v43 = vmax.f32 %v9652_v39, 0.0 }
 0x23b   : > { %13248 = vst [vmem:[#allocation78_spill] sm:$0xff] %v10239_v36  ;;  %v586_v24 = vadd.f32 %v554_v59, %v12841_v11  ;;  %v10266_v50 = vadd.f32 %v3305_v29, %v7399_v4  ;;  %v3174_v22 = vadd.f32 %v10095_v37, %v554_v59  ;;  %v3287_v41 = vmul.f32 %v10128_v53, %v12863_v62 }
 0x23c   : > { %v2868_v23 = vadd.f32 %v13249_v43, %v2324_v17  ;;  %v3203_v6 = vadd.f32 %v10114_v46, %v10252_v52  ;;  %v10277_v43 = vpop.f32.mrf.mxu2  ;;  %v10280_v29 = vadd.f32 %v3312_v33, %v7474_v51  ;;  %v10283_v37 = vadd.f32 %v3313_v15, %v7474_v51 }
 0x23d   : > { %13250 = vst [vmem:[#allocation85_spill] sm:$0xff] %v10266_v50  ;;  %v618_v17 = vmax.f32 %v586_v24, 0.0  ;;  %v3318_v59 = vadd.f32 %v3286_v21, %v3174_v22  ;;  %v10287_v46 = vmul.f32 %v10130_v27, %v12857_v5  ;;  %v3288_v21 = vmul.f32 %v10167_v28, %v12863_v62  ;;  %v13256_v22 = vld [vmem:[#allocation42_spill] sm:$0xff] }
 0x23e   : > { %v10274_v55 = vadd.f32 %v3374_v40, %v2868_v23  ;;  %13252 = vst [vmem:[#allocation62_spill] sm:$0xff] %v10280_v29  ;;  %v3319_v13 = vadd.f32 %v3287_v41, %v3203_v6  ;;  %v10291_v40 = vmul.f32 %v10137_v18, %v12857_v5  ;;  %v562_v23 = vmul.f32 %v10049_v42, %v7160_v19  ;;  %v5006_v50 = vld [vmem:[%s12262_s7 + $0x10] sm:$0xff] }
 0x23f   : > { %13253 = vst [vmem:[#allocation95_spill] sm:$0xff] %v10283_v37  ;;  %v650_v2 = vsub.f32 0.0, %v618_v17  ;;  %v3232_v15 = vadd.f32 %v10116_v10, %v10287_v46  ;;  %v3294_v24 = vmul.f32 %v10105_v44, %v12812_v63  ;;  %v13257_v41 = vmax.f32 %v13256_v22, 0.0  ;;  %6306 = vmatmul.msk.f32.gmra.mxu0 %vm817_vm5, %v9642_v56  ;;  %v10330_v7 = vpop.f32.mrf.mxu0  ;;  %5020 = vperm.xlu1 %6501, %v5006_v50   ;;  %v13264_v50 = vld [vmem:[#allocation63_spill] sm:$0xff] }
 0x240   : > { %13251 = vst [vmem:[#allocation113_spill] sm:$0xff] %v10274_v55  ;;  %v3350_v17 = vadd.f32 %v3318_v59, %v12841_v11  ;;  %v594_v39 = vadd.f32 %v562_v23, %v12798_v31  ;;  %v3177_v42 = vadd.f32 %v10163_v54, %v562_v23  ;;  %v3261_v33 = vadd.f32 %v10150_v8, %v10291_v40  ;;  %v10320_v59 = vpop.f32.mrf.mxu3  ;;  %v13258_v54 = vld [vmem:[#allocation136_spill] sm:$0xff] }
 0x241   : > { %13254 = vst [vmem:[#allocation116_spill] sm:$0xff] %v10287_v46  ;;  %v1226_v6 = vadd.f32 %v13257_v41, %v650_v2  ;;  %v3289_v44 = vmul.f32 %v10196_v12, %v12863_v62  ;;  %v10316_v2 = vmul.f32 %v10070_v45, %v7160_v19  ;;  %6311 = vmatmul.msk.f32.gmra.mxu1 %vm817_vm5, %v9642_v56  ;;  %v13259_v23 = vmax.f32 %v13258_v54, 0.0  ;;  %v10332_v45 = vpop.f32.mrf.mxu1  ;;  %v5007_v56 = vld [vmem:[%s12262_s7 + $0x18] sm:$0xff] }
 0x242   : > { %13255 = vst [vmem:[#allocation69_spill] sm:$0xff] %v10291_v40  ;;  %v10325_v41 = vadd.f32 %v3319_v13, %v12841_v11  ;;  %v626_v10 = vmax.f32 %v594_v39, 0.0  ;;  %v3326_v8 = vadd.f32 %v3294_v24, %v3177_v42  ;;  %v3320_v29 = vadd.f32 %v3288_v21, %v3232_v15  ;;  %v13261_v42 = vld [vmem:[#allocation165_spill] sm:$0xff]  ;;  %5025 = vperm.xlu0 %6500, %v5007_v56  }
 0x243   : > { %v1782_v22 = vadd.f32 %v13259_v23, %v1226_v6  ;;  %v3206_v6 = vadd.f32 %v10176_v38, %v10316_v2  ;;  %v3295_v13 = vmul.f32 %v10128_v53, %v12812_v63  ;;  %v4487_v39 = vsub.f32 %v12809_v25, %v13189_v35 }
 0x244   : > { %13260 = vst [vmem:[#allocation148_spill] sm:$0xff] %v10325_v41  ;;  %v13262_v54 = vmax.f32 %v13261_v42, 0.0  ;;  %v3382_v36 = vmax.f32 %v3350_v17, 0.0  ;;  %v658_v55 = vsub.f32 0.0, %v626_v10  ;;  %v10346_v40 = vpop.f32.mrf.mxu2  ;;  %v3321_v15 = vadd.f32 %v3289_v44, %v3261_v33  ;;  %v13304_v41 = vld [vmem:[#allocation125_spill] sm:$0xff] }
 0x245   : > { %v3327_v21 = vadd.f32 %v3295_v13, %v3206_v6  ;;  %v4495_v38 = vmul.f32 %v4487_v39, %v4487_v39  ;;  %v4591_v20 = vrot.slane %v4487_v39, 1  ;;  %v13263_v53 = vmax.f32 %v9742_v58, 0.0 }
 0x246   : > { %v2332_v23 = vadd.f32 %v13262_v54, %v1782_v22  ;;  %v13265_v32 = vmax.f32 %v13264_v50, 0.0  ;;  %v3358_v42 = vadd.f32 %v3326_v8, %v12798_v31  ;;  %v10355_v17 = vadd.f32 %v3320_v29, %v12841_v11  ;;  %v13269_v22 = vld [vmem:[#allocation51_spill] sm:$0xff]  ;;  %v13273_v8 = vld [vmem:[#allocation170_spill] sm:$0xff] }
 0x247   : > { %v4511_v10 = vrot.slane %v4495_v38, 1  ;;  %6337 = vmatpush.msk.msra.mxu3 %vm709_vm4, %v4591_v20  ;;  %v10360_v33 = vmul.f32 %v10130_v27, %v7160_v19  ;;  %v3296_v58 = vmul.f32 %v10167_v28, %v12812_v63  ;;  %v13270_v56 = vmax.f32 %v13269_v22, 0.0  ;;  %v5004_v27 = vld [vmem:[%s12262_s7] sm:$0xff]  ;;  %v13275_v54 = vld [vmem:[#allocation79_spill] sm:$0xff] }
 0x248   : > { %v2876_v46 = vadd.f32 %v13263_v53, %v2332_v23  ;;  %v1234_v24 = vadd.f32 %v13265_v32, %v658_v55  ;;  %13266 = vst [vmem:[#allocation102_spill] sm:$0xff] %v10355_v17  ;;  %v10370_v55 = vmul.f32 %v10137_v18, %v7160_v19  ;;  %v3297_v29 = vmul.f32 %v10196_v12, %v12812_v63  ;;  %v10389_v12 = vpop.f32.mrf.mxu3 }
 0x249   : > { %13267 = vst [vmem:[#allocation126_spill] sm:$0xff] %v10360_v33  ;;  %6338 = vmatmul.msk.f32.vlgmr.msra.gmra.mxu3 %vm817_vm5, %v9783_v3  ;;  %v10380_v20 = vadd.f32 %v3321_v15, %v12841_v11  ;;  %v10383_v28 = vadd.f32 %v3327_v21, %v12798_v31  ;;  %v3235_v18 = vadd.f32 %v10194_v26, %v10360_v33  ;;  %v13274_v6 = vmax.f32 %v13273_v8, 0.0  ;;  %v10401_v15 = vpop.f32.mrf.mxu0  ;;  %v10403_v21 = vpop.f32.mrf.mxu1  ;;  %v13279_v8 = vld [vmem:[#allocation47_spill] sm:$0xff] }
 0x24a   : > { %v10364_v44 = vadd.f32 %v3382_v36, %v2876_v46  ;;  %v1790_v32 = vadd.f32 %v13270_v56, %v1234_v24  ;;  %13271 = vst [vmem:[#allocation42_spill] sm:$0xff] %v10370_v55  ;;  %v4486_v36 = vsub.f32 %v12935_v14, %v13189_v35  ;;  %v5031_v46 = vld [vmem:[%s12263_s8 + $0x18] sm:$0xff]  ;;  %v3390_v39 = vmax.f32 %v3358_v42, 0.0  ;;  %5010 = vperm.xlu1 %6501, %v5004_v27  }
 0x24b   : > { %13272 = vst [vmem:[#allocation136_spill] sm:$0xff] %v10380_v20  ;;  %v3264_v24 = vadd.f32 %v10234_v60, %v10370_v55  ;;  %v13276_v23 = vrot.slane %v13275_v54, 4  ;;  %v10406_v38 = vsel %vm709_vm4, %v4511_v10, 0.0  ;;  %v3328_v53 = vadd.f32 %v3296_v58, %v3235_v18  ;;  %5049 = vperm.xlu0 %6500, %v5031_v46   ;;  %v13286_v10 = vld [vmem:[#allocation56_spill] sm:$0xff] }
 0x24c   : > { %13268 = vst [vmem:[#allocation152_spill] sm:$0xff] %v10364_v44  ;;  %v2340_v13 = vadd.f32 %v13274_v6, %v1790_v32  ;;  %v4494_v50 = vmul.f32 %v4486_v36, %v4486_v36  ;;  %v4590_v22 = vrot.slane %v4486_v36, 1  ;;  %v13278_v42 = vmax.f32 %v9774_v0, 0.0 }
 0x24d   : > { %v3470_v26 = vadd.f32 %v13276_v23, %v13275_v54  ;;  %13277 = vst [vmem:[#allocation165_spill] sm:$0xff] %v10406_v38  ;;  %v3329_v32 = vadd.f32 %v3297_v29, %v3264_v24  ;;  %v13280_v6 = vrot.slane %v13279_v8, 4  ;;  %v10413_v23 = vpop.f32.mrf.mxu2  ;;  %v4484_v0 = vsub.f32 %v12944_v1, %v13189_v35 }
 0x24e   : > { %v2884_v56 = vadd.f32 %v13278_v42, %v2340_v13  ;;  %6332 = vmatpush.msk.msra.mxu2 %vm709_vm4, %v4590_v22  ;;  %v10424_v27 = vadd.f32 %v3328_v53, %v12798_v31  ;;  %v4510_v13 = vrot.slane %v4494_v50, 1  ;;  %v13284_v53 = vld [vmem:[#allocation60_spill] sm:$0xff] }
 0x24f   : > { %v3471_v60 = vrot.slane %v3470_v26, 2  ;;  %v3477_v54 = vadd.f32 %v13280_v6, %v13279_v8  ;;  %6333 = vmatmul.msk.f32.vlgmr.msra.gmra.mxu2 %vm817_vm5, %v9783_v3  ;;  %v4492_v24 = vmul.f32 %v4484_v0, %v4484_v0  ;;  %v4588_v42 = vrot.slane %v4484_v0, 1  ;;  %v13283_v6 = vld [vmem:[#allocation75_spill] sm:$0xff] }
 0x250   : > { %v10421_v29 = vadd.f32 %v3390_v39, %v2884_v56  ;;  %13281 = vst [vmem:[#allocation63_spill] sm:$0xff] %v10424_v27  ;;  %v10430_v22 = vadd.f32 %v3329_v32, %v12798_v31  ;;  %v3584_v39 = vadd.f32 %v10245_v16, %v13283_v6  ;;  %v3613_v50 = vadd.f32 %v10263_v47, %v13284_v53  ;;  %v13285_v32 = vld [vmem:[#allocation22_spill] sm:$0xff]  ;;  %v5029_v6 = vld [vmem:[%s12263_s8 + $0x8] sm:$0xff] }
 0x251   : > { %v3472_v18 = vadd.f32 %v3471_v60, %v3470_v26  ;;  %v3478_v36 = vrot.slane %v3477_v54, 2  ;;  %6339 = vmatmul.msk.f32.gmra.mxu3 %vm817_vm5, %v9841_v48  ;;  %v5028_v26 = vld [vmem:[%s12263_s8] sm:$0xff]  ;;  %v4508_v60 = vrot.slane %v4492_v24, 1  ;;  %6322 = vmatpush.msk.msra.mxu0 %vm709_vm4, %v4588_v42  ;;  %v4485_v0 = vsub.f32 %v13285_v32, %v13189_v35  ;;  %v13288_v24 = vld [vmem:[#allocation106_spill] sm:$0xff]  ;;  %v10460_v58 = vpop.f32.mrf.mxu0  ;;  %v10470_v37 = vpop.f32.mrf.mxu1 }
 0x252   : > { %13282 = vst [vmem:[#allocation51_spill] sm:$0xff] %v10430_v22  ;;  %v13287_v16 = vrot.slane %v13286_v10, 4  ;;  %6323 = vmatmul.msk.f32.vlgmr.msra.gmra.mxu0 %vm817_vm5, %v9783_v3  ;;  %v13289_v42 = vrot.slane %v13288_v24, 4  ;;  %5034 = vperm.xlu1 %6501, %v5028_v26   ;;  %v13292_v26 = vld [vmem:[#allocation82_spill] sm:$0xff]  ;;  %v13293_v22 = vld [vmem:[#allocation52_spill] sm:$0xff] }
 0x253   : > { %v3473_v8 = vrot.slane %v3472_v18, 1  ;;  %v3479_v56 = vadd.f32 %v3478_v36, %v3477_v54  ;;  %v10447_v36 = vpop.f32.mrf.mxu3  ;;  %v4589_v14 = vrot.slane %v4485_v0, 1  ;;  %5039 = vperm.xlu0 %6500, %v5029_v6  }
 0x254   : > { %v3484_v54 = vadd.f32 %v13287_v16, %v13286_v10  ;;  %v3491_v53 = vadd.f32 %v13289_v42, %v13288_v24  ;;  %v10463_v10 = vsel %vm709_vm4, %v4510_v13, 0.0  ;;  %v4493_v16 = vmul.f32 %v4485_v0, %v4485_v0 }
 0x255   : > { %v10453_v46 = vadd.f32 %v3473_v8, %v3472_v18  ;;  %v3480_v47 = vrot.slane %v3479_v56, 1  ;;  %13290 = vst [vmem:[#allocation170_spill] sm:$0xff] %v10463_v10  ;;  %v10472_v24 = vpop.f32.mrf.mxu2  ;;  %v10475_v13 = vsel %vm709_vm4, %v4508_v60, 0.0  ;;  %6327 = vmatpush.msk.msra.mxu1 %vm709_vm4, %v4589_v14  ;;  %v3587_v42 = vadd.f32 %v10330_v7, %v13292_v26  ;;  %v13341_v10 = vld [vmem:[#allocation66_spill] sm:$0xff] }
 0x256   : > { %v3485_v1 = vrot.slane %v3484_v54, 2  ;;  %v3492_v32 = vrot.slane %v3491_v53, 2  ;;  %13291 = vst [vmem:[#allocation79_spill] sm:$0xff] %v10475_v13  ;;  %6328 = vmatmul.msk.f32.vlgmr.msra.gmra.mxu1 %vm817_vm5, %v9783_v3  ;;  %v3616_v60 = vadd.f32 %v10332_v45, %v13293_v22  ;;  %v10498_v45 = vld [vmem:[%s12256_s1 + $0x10] sm:$0xff] }
 0x257   : > { %v3798_v8 = vmul.f32 %v10453_v46, %v7339_v30  ;;  %v10468_v25 = vadd.f32 %v3480_v47, %v3479_v56  ;;  %v3806_v18 = vmul.f32 %v10453_v46, %v12913_v34  ;;  %v4509_v47 = vrot.slane %v4493_v16, 1  ;;  %6334 = vmatmul.msk.f32.gmra.mxu2 %vm817_vm5, %v9841_v48  ;;  %v13294_v16 = vld [vmem:[#allocation57_spill] sm:$0xff] }
 0x258   : > { %v3486_v0 = vadd.f32 %v3485_v1, %v3484_v54  ;;  %v3493_v6 = vadd.f32 %v3492_v32, %v3491_v53  ;;  %v3642_v17 = vadd.f32 %v10277_v43, %v13294_v16 }
 0x259   : > { %v3799_v56 = vmul.f32 %v10468_v25, %v7339_v30  ;;  %v3830_v20 = vadd.f32 %v3798_v8, %v3584_v39  ;;  %v3838_v1 = vadd.f32 %v3806_v18, %v3587_v42  ;;  %v3807_v7 = vmul.f32 %v10468_v25, %v12913_v34  ;;  %6340 = vmatmul.msk.f32.gmra.mxu3 %vm817_vm5, %v10498_v45  ;;  %v13295_v39 = vld [vmem:[#allocation91_spill] sm:$0xff] }
 0x25a   : > { %v3487_v14 = vrot.slane %v3486_v0, 1  ;;  %v3494_v3 = vrot.slane %v3493_v6, 1  ;;  %v3671_v32 = vadd.f32 %v10320_v59, %v13295_v39  ;;  %v13296_v18 = vld [vmem:[#allocation147_spill] sm:$0xff]  ;;  %v10512_v42 = vsel %vm709_vm4, %v4509_v47, 0.0  ;;  %6324 = vmatmul.msk.f32.gmra.mxu0 %vm817_vm5, %v9841_v48 }
 0x25b   : > { %v3831_v26 = vadd.f32 %v3799_v56, %v3613_v50  ;;  %v3839_v53 = vadd.f32 %v3807_v7, %v3616_v60  ;;  %v3645_v50 = vadd.f32 %v10346_v40, %v13296_v18  ;;  %v10508_v8 = vpop.f32.mrf.mxu3  ;;  %13297 = vst [vmem:[#allocation47_spill] sm:$0xff] %v10512_v42  ;;  %v10521_v59 = vadd.f32 %v3830_v20, %v7399_v4  ;;  %v13302_v20 = vld [vmem:[#allocation31_spill] sm:$0xff] }
 0x25c   : > { %v10502_v22 = vadd.f32 %v3487_v14, %v3486_v0  ;;  %v10514_v56 = vadd.f32 %v3494_v3, %v3493_v6  ;;  %v13298_v0 = vld [vmem:[#allocation110_spill] sm:$0xff]  ;;  %v10526_v60 = vadd.f32 %v3838_v1, %v7474_v51  ;;  %v3590_v16 = vadd.f32 %v10401_v15, %v13302_v20  ;;  %v10539_v3 = vpop.f32.mrf.mxu0 }
 0x25d   : > { %v3674_v14 = vadd.f32 %v10389_v12, %v13298_v0  ;;  %13299 = vst [vmem:[#allocation75_spill] sm:$0xff] %v10521_v59  ;;  %v10531_v6 = vadd.f32 %v3831_v26, %v7399_v4  ;;  %v10542_v1 = vadd.f32 %v3839_v53, %v7474_v51  ;;  %v3814_v26 = vmul.f32 %v10453_v46, %v12863_v62  ;;  %v10546_v0 = vpop.f32.mrf.mxu2  ;;  %v13310_v53 = vld [vmem:[#allocation94_spill] sm:$0xff] }
 0x25e   : > { %v3800_v40 = vmul.f32 %v10502_v22, %v7339_v30  ;;  %13300 = vst [vmem:[#allocation60_spill] sm:$0xff] %v10526_v60  ;;  %v3808_v47 = vmul.f32 %v10502_v22, %v12913_v34  ;;  %v3801_v7 = vmul.f32 %v10514_v56, %v7339_v30  ;;  %v3809_v12 = vmul.f32 %v10514_v56, %v12913_v34 }
 0x25f   : > { %13301 = vst [vmem:[#allocation56_spill] sm:$0xff] %v10531_v6  ;;  %6329 = vmatmul.msk.f32.gmra.mxu1 %vm817_vm5, %v9841_v48  ;;  %v3619_v15 = vadd.f32 %v10403_v21, %v13304_v41  ;;  %6335 = vmatmul.msk.f32.gmra.mxu2 %vm817_vm5, %v10498_v45  ;;  %v13307_v48 = vld [vmem:[#allocation156_spill] sm:$0xff]  ;;  %v3677_v20 = vadd.f32 %v10447_v36, %v13310_v53  ;;  %v5005_v53 = vld [vmem:[%s12262_s7 + $0x8] sm:$0xff]  ;;  %v10697_v6 = vld [vmem:[%s6786_s12 + $0x30] sm:$0x7f] }
 0x260   : > { %v3832_v39 = vadd.f32 %v3800_v40, %v3642_v17  ;;  %13303 = vst [vmem:[#allocation106_spill] sm:$0xff] %v10542_v1  ;;  %v3840_v18 = vadd.f32 %v3808_v47, %v3645_v50  ;;  %v3833_v54 = vadd.f32 %v3801_v7, %v3671_v32  ;;  %v3841_v43 = vadd.f32 %v3809_v12, %v3674_v14  ;;  %v10554_v40 = vpop.f32.mrf.mxu1  ;;  %v10576_v12 = vld [vmem:[%s12256_s1 + $0x18] sm:$0xff] }
 0x261   : > { %v3815_v17 = vmul.f32 %v10468_v25, %v12863_v62  ;;  %v3648_v32 = vadd.f32 %v10413_v23, %v13307_v48  ;;  %v3846_v14 = vadd.f32 %v3814_v26, %v3590_v16  ;;  %v3816_v7 = vmul.f32 %v10502_v22, %v12863_v62  ;;  %6341 = vmatmul.msk.f32.gmra.mxu3 %vm817_vm5, %v10576_v12 }
 0x262   : > { %v10558_v50 = vadd.f32 %v3832_v39, %v7399_v4  ;;  %v10561_v47 = vadd.f32 %v3840_v18, %v7474_v51  ;;  %v10569_v21 = vadd.f32 %v3833_v54, %v7399_v4  ;;  %v10586_v26 = vadd.f32 %v3841_v43, %v7474_v51  ;;  %6325 = vmatmul.msk.f32.gmra.mxu0 %vm817_vm5, %v10498_v45 }
 0x263   : > { %v3847_v54 = vadd.f32 %v3815_v17, %v3619_v15  ;;  %v3848_v48 = vadd.f32 %v3816_v7, %v3648_v32  ;;  %v10590_v41 = vpop.f32.mrf.mxu3  ;;  %v3817_v39 = vmul.f32 %v10514_v56, %v12863_v62  ;;  %v13311_v15 = vld [vmem:[#allocation34_spill] sm:$0xff]  ;;  %v3822_v16 = vmul.f32 %v10453_v46, %v12812_v63  ;;  %v13313_v32 = vld [vmem:[#allocation133_spill] sm:$0xff]  ;;  %5015 = vperm.xlu2 %6502, %v5005_v53  }
 0x264   : > { %13305 = vst [vmem:[#allocation82_spill] sm:$0xff] %v10558_v50  ;;  %v3593_v17 = vadd.f32 %v10460_v58, %v13311_v15  ;;  %v10602_v18 = vadd.f32 %v3846_v14, %v12841_v11  ;;  %v3622_v7 = vadd.f32 %v10470_v37, %v13313_v32  ;;  %v3823_v36 = vmul.f32 %v10468_v25, %v12812_v63  ;;  %v10611_v23 = vpop.f32.mrf.mxu0  ;;  %v13315_v15 = vld [vmem:[#allocation162_spill] sm:$0xff] }
 0x265   : > { %13306 = vst [vmem:[#allocation52_spill] sm:$0xff] %v10561_v47  ;;  %v10614_v58 = vadd.f32 %v3847_v54, %v12841_v11  ;;  %v4491_v14 = vsub.f32 %v13189_v35, %v13189_v35  ;;  %v3651_v43 = vadd.f32 %v10472_v24, %v13315_v15  ;;  %v10623_v25 = vadd.f32 %v3848_v48, %v12841_v11  ;;  %v13317_v54 = vld [vmem:[#allocation174_spill] sm:$0xff]  ;;  %v10635_v48 = vpop.f32.mrf.mxu2 }
 0x266   : > { %13308 = vst [vmem:[#allocation57_spill] sm:$0xff] %v10569_v21  ;;  %v3854_v46 = vadd.f32 %v3822_v16, %v3593_v17  ;;  %v3855_v37 = vadd.f32 %v3823_v36, %v3622_v7  ;;  %v3824_v32 = vmul.f32 %v10502_v22, %v12812_v63  ;;  %v3680_v16 = vadd.f32 %v10508_v8, %v13317_v54  ;;  %v13318_v8 = vld [vmem:[#allocation26_spill] sm:$0xff] }
 0x267   : > { %13309 = vst [vmem:[#allocation91_spill] sm:$0xff] %v10586_v26  ;;  %6330 = vmatmul.msk.f32.gmra.mxu1 %vm817_vm5, %v10498_v45  ;;  %v3849_v55 = vadd.f32 %v3817_v39, %v3677_v20  ;;  %6336 = vmatmul.msk.f32.gmra.mxu2 %vm817_vm5, %v10576_v12  ;;  %v4595_v53 = vrot.slane %v4491_v14, 1  ;;  %v3825_v22 = vmul.f32 %v10514_v56, %v12812_v63  ;;  %v13327_v26 = vld [vmem:[#allocation115_spill] sm:$0xff] }
 0x268   : > { %13312 = vst [vmem:[#allocation147_spill] sm:$0xff] %v10602_v18  ;;  %v10629_v17 = vpop.f32.mrf.mxu1  ;;  %v3886_v24 = vadd.f32 %v3854_v46, %v12798_v31  ;;  %v3887_v7 = vadd.f32 %v3855_v37, %v12798_v31  ;;  %v3856_v36 = vadd.f32 %v3824_v32, %v3651_v43  ;;  %v4490_v15 = vsub.f32 %v13318_v8, %v13189_v35  ;;  %v13319_v46 = vld [vmem:[#allocation145_spill] sm:$0xff] }
 0x269   : > { %13314 = vst [vmem:[#allocation110_spill] sm:$0xff] %v10614_v58  ;;  %6357 = vmatpush.msk.msrb.mxu3 %vm709_vm4, %v4595_v53  ;;  %v13320_v44 = vrot.slane %v13319_v46, 4  ;;  %v3857_v32 = vadd.f32 %v3825_v22, %v3680_v16  ;;  %v5030_v16 = vld [vmem:[%s12263_s8 + $0x10] sm:$0xff]  ;;  %v13323_v22 = vld [vmem:[#allocation59_spill] sm:$0xff]  ;;  %v10673_v54 = vmul.f32 %v4491_v14, %v4491_v14  ;;  %v13328_v47 = vrot.slane %v13327_v26, 4 }
 0x26a   : > { %13316 = vst [vmem:[#allocation31_spill] sm:$0xff] %v10623_v25  ;;  %v3918_v39 = vmax.f32 %v3886_v24, 0.0  ;;  %v3919_v43 = vmax.f32 %v3887_v7, 0.0  ;;  %6326 = vmatmul.msk.f32.gmra.mxu0 %vm817_vm5, %v10576_v12  ;;  %v3888_v56 = vadd.f32 %v3856_v36, %v12798_v31  ;;  %v10655_v24 = vld [vmem:[%s12256_s1] sm:$0xff]  ;;  %v4594_v37 = vrot.slane %v4490_v15, 1  ;;  %v13337_v58 = vld [vmem:[#allocation38_spill] sm:$0xff] }
 0x26b   : > { %v3498_v21 = vadd.f32 %v13320_v44, %v13319_v46  ;;  %6358 = vmatmul.msk.f32.vlgmr.msrb.gmra.mxu3 %vm817_vm5, %v10655_v24  ;;  %v10659_v53 = vpop.f32.mrf.mxu3  ;;  %v10662_v44 = vadd.f32 %v3849_v55, %v12841_v11  ;;  %v13322_v7 = vld [vmem:[#allocation28_spill] sm:$0xff]  ;;  %13325 = vst [vmem:[#allocation94_spill] sm:$0xff] %v10673_v54  ;;  %v3889_v50 = vadd.f32 %v3857_v32, %v12798_v31  ;;  %v13332_v32 = vld [vmem:[#allocation29_spill] sm:$0xff] }
 0x26c   : > { %v10665_v46 = vadd.f32 %v3918_v39, %v13322_v7  ;;  %v10671_v20 = vadd.f32 %v3919_v43, %v13323_v22  ;;  %v3920_v8 = vmax.f32 %v3888_v56, 0.0  ;;  %6352 = vmatpush.msk.msrb.mxu2 %vm709_vm4, %v4594_v37  ;;  %v10678_v39 = vld [vmem:[%s6786_s12 + $0x28] sm:$0x7f]  ;;  %v3505_v25 = vadd.f32 %v13328_v47, %v13327_v26  ;;  %v13329_v43 = vld [vmem:[#allocation27_spill] sm:$0xff]  ;;  %v10687_v14 = vpop.f32.mrf.mxu0  ;;  %v13330_v56 = vld [vmem:[#allocation132_spill] sm:$0xff]  ;;  %5044 = vperm.xlu2 %6502, %v5030_v16  }
 0x26d   : > { %13321 = vst [vmem:[#allocation125_spill] sm:$0xff] %v10662_v44  ;;  %v3499_v36 = vrot.slane %v3498_v21, 2  ;;  %v523_v7 = vmul.f32 %v10678_v39, %v10678_v39  ;;  %v4488_v22 = vsub.f32 %v13329_v43, %v13189_v35  ;;  %v3434_v47 = vmul.f32 %v10697_v6, %v10678_v39  ;;  %v10719_v38 = vpop.f32.mrf.mxu2 }
 0x26e   : > { %13324 = vst [vmem:[#allocation156_spill] sm:$0xff] %v10671_v20  ;;  %v10692_v37 = vadd.f32 %v3920_v8, %v13330_v56  ;;  %v10701_v26 = vmul.f32 %v4490_v15, %v4490_v15  ;;  %v3506_v1 = vrot.slane %v3505_v25, 2  ;;  %v13334_v56 = vld [vmem:[#allocation54_spill] sm:$0xff]  ;;  %v13336_v15 = vld [vmem:[#allocation64_spill] sm:$0xff]  ;;  %v10730_v8 = vld [vmem:[%s6786_s12 + $0x38] sm:$0x7f] }
 0x26f   : > { %v3500_v55 = vadd.f32 %v3499_v36, %v3498_v21  ;;  %13326 = vst [vmem:[#allocation34_spill] sm:$0xff] %v10678_v39  ;;  %6331 = vmatmul.msk.f32.gmra.mxu1 %vm817_vm5, %v10576_v12  ;;  %v3921_v21 = vmax.f32 %v3889_v50, 0.0  ;;  %v4489_v36 = vsub.f32 %v13332_v32, %v13189_v35  ;;  %v10703_v59 = vperm.slane %v523_v7, 0  ;;  %6353 = vmatmul.msk.f32.vlgmr.msrb.gmra.mxu2 %vm817_vm5, %v10655_v24 }
 0x270   : > { %13331 = vst [vmem:[#allocation133_spill] sm:$0xff] %v10692_v37  ;;  %v10707_v50 = vpop.f32.mrf.mxu1  ;;  %v4592_v32 = vrot.slane %v4488_v22, 1  ;;  %v3700_v7 = vadd.f32 %v10539_v3, %v13336_v15  ;;  %v3507_v27 = vadd.f32 %v3506_v1, %v3505_v25  ;;  %v3435_v3 = vmul.f32 %v10730_v8, %v10678_v39 }
 0x271   : > { %13333 = vst [vmem:[#allocation162_spill] sm:$0xff] %v10701_v26  ;;  %v3501_v43 = vrot.slane %v3500_v55, 1  ;;  %v10711_v35 = vadd.f32 %v3921_v21, %v13334_v56  ;;  %v4593_v60 = vrot.slane %v4489_v36, 1  ;;  %v539_v18 = vmul.f32 %v10703_v59, %v13337_v58  ;;  %v13338_v21 = vld [vmem:[#allocation89_spill] sm:$0xff] }
 0x272   : > { %6342 = vmatpush.msk.msrb.mxu0 %vm709_vm4, %v4592_v32  ;;  %v13339_v56 = vrot.slane %v13338_v21, 4  ;;  %13340 = vst [vmem:[#allocation145_spill] sm:$0xff] %v10730_v8  ;;  %v3508_v15 = vrot.slane %v3507_v27, 1  ;;  %v13342_v25 = vrot.slane %v13341_v10, 4  ;;  %v10751_v54 = vperm.slane %v3435_v3, 0 }
 0x273   : > { %13335 = vst [vmem:[#allocation174_spill] sm:$0xff] %v10711_v35  ;;  %v10713_v16 = vadd.f32 %v3501_v43, %v3500_v55  ;;  %6347 = vmatpush.msk.msrb.mxu1 %vm709_vm4, %v4593_v60  ;;  %v10727_v43 = vperm.slane %v3434_v47, 0  ;;  %v10734_v1 = vpop.f32.mrf.mxu3  ;;  %v571_v60 = vadd.f32 %v539_v18, %v7399_v4  ;;  %6343 = vmatmul.msk.f32.vlgmr.msrb.gmra.mxu0 %vm817_vm5, %v10655_v24  ;;  %v6536_v47 = vld [vmem:[%s12256_s1 + $0x8] sm:$0xff] }
 0x274   : > { %v3512_v55 = vadd.f32 %v13339_v56, %v13338_v21  ;;  %6359 = vmatmul.msk.f32.gmra.mxu3 %vm817_vm5, %v6536_v47  ;;  %v10746_v21 = vmul.f32 %v4488_v22, %v4488_v22  ;;  %v3519_v44 = vadd.f32 %v13342_v25, %v13341_v10  ;;  %v10753_v42 = vadd.f32 %v3508_v15, %v3507_v27 }
 0x275   : > { %v3802_v32 = vmul.f32 %v10713_v16, %v7339_v30  ;;  %v603_v39 = vmax.f32 %v571_v60, 0.0  ;;  %v10757_v13 = vmul.f32 %v10727_v43, %v13337_v58  ;;  %v3729_v33 = vadd.f32 %v10554_v40, %v539_v18  ;;  %v10773_v40 = vpop.f32.mrf.mxu0  ;;  %v13346_v60 = vld [vmem:[#allocation96_spill] sm:$0xff] }
 0x276   : > { %v3513_v56 = vrot.slane %v3512_v55, 2  ;;  %v3520_v35 = vrot.slane %v3519_v44, 2  ;;  %v10764_v10 = vmul.f32 %v10751_v54, %v13337_v58  ;;  %v3803_v27 = vmul.f32 %v10753_v42, %v7339_v30 }
 0x277   : > { %v3834_v26 = vadd.f32 %v3802_v32, %v3700_v7  ;;  %6348 = vmatmul.msk.f32.vlgmr.msrb.gmra.mxu1 %vm817_vm5, %v10655_v24  ;;  %v635_v3 = vsub.f32 0.0, %v603_v39  ;;  %v3703_v7 = vadd.f32 %v10611_v23, %v10184_v61  ;;  %v3810_v25 = vmul.f32 %v10713_v16, %v12913_v34  ;;  %6354 = vmatmul.msk.f32.gmra.mxu2 %vm817_vm5, %v6536_v47 }
 0x278   : > { %v3514_v22 = vadd.f32 %v3513_v56, %v3512_v55  ;;  %13343 = vst [vmem:[#allocation28_spill] sm:$0xff] %v10764_v10  ;;  %v10775_v18 = vmul.f32 %v4489_v36, %v4489_v36  ;;  %v3521_v55 = vadd.f32 %v3520_v35, %v3519_v44  ;;  %v547_v39 = vmul.f32 %v10703_v59, %v13232_v57  ;;  %v10788_v58 = vpop.f32.mrf.mxu1 }
 0x279   : > { %v10780_v32 = vadd.f32 %v3834_v26, %v7399_v4  ;;  %v13347_v15 = vmax.f32 %v13346_v60, 0.0  ;;  %v3758_v23 = vadd.f32 %v10546_v0, %v10757_v13  ;;  %v3787_v56 = vadd.f32 %v10590_v41, %v10764_v10  ;;  %v13348_v26 = vld [vmem:[#allocation120_spill] sm:$0xff]  ;;  %v10799_v41 = vpop.f32.mrf.mxu2 }
 0x27a   : > { %13344 = vst [vmem:[#allocation59_spill] sm:$0xff] %v10775_v18  ;;  %v3515_v24 = vrot.slane %v3514_v22, 1  ;;  %v3522_v35 = vrot.slane %v3521_v55, 1  ;;  %v579_v44 = vadd.f32 %v547_v39, %v7474_v51  ;;  %v3732_v8 = vadd.f32 %v10629_v17, %v547_v39 }
 0x27b   : > { %13345 = vst [vmem:[#allocation115_spill] sm:$0xff] %v10780_v32  ;;  %v1211_v61 = vadd.f32 %v13347_v15, %v635_v3  ;;  %v13349_v37 = vmax.f32 %v13348_v26, 0.0  ;;  %v3835_v60 = vadd.f32 %v3803_v27, %v3729_v33  ;;  %v3842_v3 = vadd.f32 %v3810_v25, %v3703_v7  ;;  %6344 = vmatmul.msk.f32.gmra.mxu0 %vm817_vm5, %v6536_v47  ;;  %v10801_v15 = vpop.f32.mrf.mxu3  ;;  %v13350_v33 = vld [vmem:[#allocation149_spill] sm:$0xff] }
 0x27c   : > { %v10790_v36 = vadd.f32 %v3515_v24, %v3514_v22  ;;  %v3811_v0 = vmul.f32 %v10753_v42, %v12913_v34  ;;  %v10805_v24 = vadd.f32 %v3522_v35, %v3521_v55  ;;  %v611_v17 = vmax.f32 %v579_v44, 0.0  ;;  %6360 = vmatmul.msk.f32.gmra.mxu3 %vm817_vm5, %v10498_v45  ;;  %v13372_v32 = vld [vmem:[#allocation137_spill] sm:$0xff] }
 0x27d   : > { %v1767_v20 = vadd.f32 %v13349_v37, %v1211_v61  ;;  %v10809_v37 = vmul.f32 %v10727_v43, %v13232_v57  ;;  %v13351_v27 = vmax.f32 %v13350_v33, 0.0  ;;  %v10825_v10 = vadd.f32 %v3835_v60, %v7399_v4  ;;  %v13356_v60 = vld [vmem:[#allocation103_spill] sm:$0xff] }
 0x27e   : > { %v3804_v22 = vmul.f32 %v10790_v36, %v7339_v30  ;;  %v3843_v61 = vadd.f32 %v3811_v0, %v3732_v8  ;;  %v3805_v55 = vmul.f32 %v10805_v24, %v7339_v30  ;;  %v643_v35 = vsub.f32 0.0, %v611_v17 }
 0x27f   : > { %v10815_v7 = vadd.f32 %v13351_v27, %v1767_v20  ;;  %6349 = vmatmul.msk.f32.gmra.mxu1 %vm817_vm5, %v6536_v47  ;;  %v3761_v44 = vadd.f32 %v10635_v48, %v10809_v37  ;;  %13353 = vst [vmem:[#allocation54_spill] sm:$0xff] %v10825_v10  ;;  %v3812_v20 = vmul.f32 %v10790_v36, %v12913_v34  ;;  %v13357_v0 = vmax.f32 %v13356_v60, 0.0 }
 0x280   : > { %v3836_v26 = vadd.f32 %v3804_v22, %v3758_v23  ;;  %v10831_v33 = vmul.f32 %v10751_v54, %v13232_v57  ;;  %v3813_v8 = vmul.f32 %v10805_v24, %v12913_v34  ;;  %6355 = vmatmul.msk.f32.gmra.mxu2 %vm817_vm5, %v10498_v45  ;;  %v3837_v23 = vadd.f32 %v3805_v55, %v3787_v56  ;;  %v10853_v47 = vpop.f32.mrf.mxu1  ;;  %v13360_v56 = vld [vmem:[#allocation127_spill] sm:$0xff] }
 0x281   : > { %13352 = vst [vmem:[#allocation132_spill] sm:$0xff] %v10815_v7  ;;  %v10839_v48 = vadd.f32 %v3842_v3, %v7474_v51  ;;  %v1219_v22 = vadd.f32 %v13357_v0, %v643_v35  ;;  %v10847_v27 = vadd.f32 %v3843_v61, %v7474_v51  ;;  %v3844_v39 = vadd.f32 %v3812_v20, %v3761_v44  ;;  %v10851_v7 = vpop.f32.mrf.mxu0  ;;  %v10872_v0 = vpop.f32.mrf.mxu2 }
 0x282   : > { %13354 = vst [vmem:[#allocation64_spill] sm:$0xff] %v10831_v33  ;;  %v10844_v17 = vadd.f32 %v3836_v26, %v7399_v4  ;;  %v3790_v25 = vadd.f32 %v10659_v53, %v10831_v33  ;;  %v13361_v3 = vmax.f32 %v13360_v56, 0.0  ;;  %v3706_v35 = vadd.f32 %v10687_v14, %v10252_v52  ;;  %v13364_v14 = vld [vmem:[#allocation155_spill] sm:$0xff] }
 0x283   : > { %13355 = vst [vmem:[#allocation89_spill] sm:$0xff] %v10839_v48  ;;  %v3818_v26 = vmul.f32 %v10713_v16, %v12863_v62  ;;  %v555_v61 = vmul.f32 %v10703_v59, %v12857_v5  ;;  %v10865_v53 = vadd.f32 %v3837_v23, %v7399_v4  ;;  %v10868_v20 = vadd.f32 %v3844_v39, %v7474_v51  ;;  %v10874_v52 = vpop.f32.mrf.mxu3  ;;  %v13397_v48 = vld [vmem:[#allocation44_spill] sm:$0xff] }
 0x284   : > { %13358 = vst [vmem:[#allocation66_spill] sm:$0xff] %v10844_v17  ;;  %v1775_v55 = vadd.f32 %v13361_v3, %v1219_v22  ;;  %v3845_v60 = vadd.f32 %v3813_v8, %v3790_v25  ;;  %6345 = vmatmul.msk.f32.gmra.mxu0 %vm817_vm5, %v10498_v45  ;;  %v13365_v22 = vmax.f32 %v13364_v14, 0.0  ;;  %v3819_v39 = vmul.f32 %v10753_v42, %v12863_v62 }
 0x285   : > { %13359 = vst [vmem:[#allocation96_spill] sm:$0xff] %v10847_v27  ;;  %v587_v3 = vadd.f32 %v555_v61, %v12841_v11  ;;  %v3735_v23 = vadd.f32 %v10707_v50, %v555_v61  ;;  %6361 = vmatmul.msk.f32.gmra.mxu3 %vm817_vm5, %v10576_v12  ;;  %v3850_v14 = vadd.f32 %v3818_v26, %v3706_v35 }
 0x286   : > { %13362 = vst [vmem:[#allocation120_spill] sm:$0xff] %v10865_v53  ;;  %v10878_v56 = vadd.f32 %v13365_v22, %v1775_v55  ;;  %v10891_v55 = vmul.f32 %v10727_v43, %v12857_v5  ;;  %v3820_v50 = vmul.f32 %v10790_v36, %v12863_v62  ;;  %v10899_v61 = vmul.f32 %v10751_v54, %v12857_v5 }
 0x287   : > { %13363 = vst [vmem:[#allocation149_spill] sm:$0xff] %v10868_v20  ;;  %v619_v22 = vmax.f32 %v587_v3, 0.0  ;;  %6350 = vmatmul.msk.f32.gmra.mxu1 %vm817_vm5, %v10498_v45  ;;  %v10904_v8 = vadd.f32 %v3845_v60, %v7474_v51  ;;  %v3851_v26 = vadd.f32 %v3819_v39, %v3735_v23  ;;  %v3821_v3 = vmul.f32 %v10805_v24, %v12863_v62 }
 0x288   : > { %13366 = vst [vmem:[#allocation103_spill] sm:$0xff] %v10878_v56  ;;  %v3764_v35 = vadd.f32 %v10719_v38, %v10891_v55  ;;  %6356 = vmatmul.msk.f32.gmra.mxu2 %vm817_vm5, %v10576_v12  ;;  %v3709_v17 = vadd.f32 %v10773_v40, %v10316_v2  ;;  %v3793_v25 = vadd.f32 %v10734_v1, %v10899_v61  ;;  %v10924_v23 = vpop.f32.mrf.mxu1  ;;  %v13370_v2 = vld [vmem:[#allocation107_spill] sm:$0xff] }
 0x289   : > { %13367 = vst [vmem:[#allocation127_spill] sm:$0xff] %v10899_v61  ;;  %v651_v45 = vsub.f32 0.0, %v619_v22  ;;  %v3826_v60 = vmul.f32 %v10713_v16, %v12812_v63  ;;  %v563_v38 = vmul.f32 %v10703_v59, %v7160_v19  ;;  %v3827_v44 = vmul.f32 %v10753_v42, %v12812_v63  ;;  %v10922_v22 = vpop.f32.mrf.mxu0 }
 0x28a   : > { %13368 = vst [vmem:[#allocation155_spill] sm:$0xff] %v10904_v8  ;;  %v10927_v39 = vadd.f32 %v3850_v14, %v12841_v11  ;;  %v13371_v40 = vmax.f32 %v13370_v2, 0.0  ;;  %v3852_v1 = vadd.f32 %v3820_v50, %v3764_v35  ;;  %v10933_v16 = vmul.f32 %v10727_v43, %v7160_v19  ;;  %v4170_v14 = vpop.f32.mrf.mxu2 }
 0x28b   : > { %v3858_v20 = vadd.f32 %v3826_v60, %v3709_v17  ;;  %v595_v42 = vadd.f32 %v563_v38, %v12798_v31  ;;  %v3738_v10 = vadd.f32 %v10788_v58, %v563_v38  ;;  %v4199_v27 = vpop.f32.mrf.mxu3  ;;  %v13373_v2 = vmax.f32 %v13372_v32, 0.0 }
 0x28c   : > { %13369 = vst [vmem:[#allocation182_spill] sm:$0xff] %v10927_v39  ;;  %v1227_v53 = vadd.f32 %v13371_v40, %v651_v45  ;;  %6346 = vmatmul.msk.f32.gmra.mxu0 %vm817_vm5, %v10576_v12  ;;  %v10943_v50 = vadd.f32 %v3851_v26, %v12841_v11  ;;  %v3767_v43 = vadd.f32 %v10799_v41, %v10933_v16  ;;  %v13375_v40 = vld [vmem:[#allocation166_spill] sm:$0xff]  ;;  %v13405_v61 = vmax.f32 %v10383_v28, 0.0 }
 0x28d   : > { %v3828_v17 = vmul.f32 %v10790_v36, %v12812_v63  ;;  %v3853_v35 = vadd.f32 %v3821_v3, %v3793_v25  ;;  %v3890_v58 = vadd.f32 %v3858_v20, %v12798_v31  ;;  %v627_v60 = vmax.f32 %v595_v42, 0.0 }
 0x28e   : > { %v1783_v45 = vadd.f32 %v13373_v2, %v1227_v53  ;;  %13374 = vst [vmem:[#allocation107_spill] sm:$0xff] %v10943_v50  ;;  %v3859_v38 = vadd.f32 %v3827_v44, %v3738_v10  ;;  %v13376_v59 = vmax.f32 %v13375_v40, 0.0  ;;  %v10955_v32 = vadd.f32 %v3852_v1, %v12841_v11  ;;  %v13383_v2 = vld [vmem:[#allocation109_spill] sm:$0xff] }
 0x28f   : > { %6351 = vmatmul.msk.f32.gmra.mxu1 %vm817_vm5, %v10576_v12  ;;  %v3860_v53 = vadd.f32 %v3828_v17, %v3767_v43  ;;  %v10961_v41 = vmul.f32 %v10751_v54, %v7160_v19  ;;  %v3922_v20 = vmax.f32 %v3890_v58, 0.0  ;;  %v659_v25 = vsub.f32 0.0, %v627_v60  ;;  %v13380_v12 = vld [vmem:[#allocation72_spill] sm:$0xff]  ;;  %v13385_v43 = vld [vmem:[#allocation33_spill] sm:$0xff] }
 0x290   : > { %v10952_v8 = vadd.f32 %v13376_v59, %v1783_v45  ;;  %13378 = vst [vmem:[#allocation166_spill] sm:$0xff] %v10955_v32  ;;  %v3829_v10 = vmul.f32 %v10805_v24, %v12812_v63  ;;  %v3891_v26 = vadd.f32 %v3859_v38, %v12798_v31  ;;  %v13381_v1 = vrot.slane %v13380_v12, 4  ;;  %v13389_v44 = vld [vmem:[#allocation81_spill] sm:$0xff]  ;;  %v13393_v32 = vld [vmem:[#allocation71_spill] sm:$0xff] }
 0x291   : > { %13379 = vst [vmem:[#allocation183_spill] sm:$0xff] %v10961_v41  ;;  %v3796_v3 = vadd.f32 %v10801_v15, %v10961_v41  ;;  %v10974_v54 = vadd.f32 %v3853_v35, %v12841_v11  ;;  %v10977_v42 = vadd.f32 %v3922_v20, %v10421_v29  ;;  %v13384_v45 = vmax.f32 %v13383_v2, 0.0  ;;  %v10988_v35 = vpop.f32.mrf.mxu1 }
 0x292   : > { %13377 = vst [vmem:[#allocation137_spill] sm:$0xff] %v10952_v8  ;;  %v4001_v59 = vadd.f32 %v13381_v1, %v13380_v12  ;;  %v13386_v17 = vrot.slane %v13385_v43, 4  ;;  %v10986_v15 = vadd.f32 %v3860_v53, %v12798_v31  ;;  %v4115_v12 = vpop.f32.mrf.mxu0  ;;  %v13387_v1 = vld [vmem:[#allocation53_spill] sm:$0xff]  ;;  %v3923_v53 = vmax.f32 %v3891_v26, 0.0 }
 0x293   : > { %13382 = vst [vmem:[#allocation72_spill] sm:$0xff] %v10974_v54  ;;  %v1235_v24 = vadd.f32 %v13384_v45, %v659_v25  ;;  %v3861_v38 = vadd.f32 %v3829_v10, %v3796_v3  ;;  %v13388_v29 = vmax.f32 %v13387_v1, 0.0  ;;  %v4110_v25 = vadd.f32 %v10851_v7, %v13389_v44  ;;  %v13390_v45 = vld [vmem:[#allocation143_spill] sm:$0xff]  ;;  %v10997_v60 = vpop.f32.mrf.mxu3 }
 0x294   : > { %v4008_v58 = vadd.f32 %v13386_v17, %v13385_v43  ;;  %v4002_v40 = vrot.slane %v4001_v59, 2  ;;  %v13391_v43 = vrot.slane %v13390_v45, 4  ;;  %v13392_v10 = vld [vmem:[#allocation43_spill] sm:$0xff]  ;;  %v13394_v56 = vrot.slane %v13393_v32, 4 }
 0x295   : > { %v1791_v20 = vadd.f32 %v13388_v29, %v1235_v24  ;;  %v4139_v3 = vadd.f32 %v10853_v47, %v13392_v10  ;;  %v13395_v24 = vld [vmem:[#allocation104_spill] sm:$0xff]  ;;  %v4168_v8 = vadd.f32 %v10872_v0, %v13397_v48  ;;  %v13403_v48 = vld [vmem:[#allocation122_spill] sm:$0xff] }
 0x296   : > { %v4009_v2 = vrot.slane %v4008_v58, 2  ;;  %v4015_v17 = vadd.f32 %v13391_v43, %v13390_v45  ;;  %v4003_v36 = vadd.f32 %v4002_v40, %v4001_v59  ;;  %v4022_v1 = vadd.f32 %v13394_v56, %v13393_v32  ;;  %v4173_v45 = vpop.f32.mrf.mxu2  ;;  %v13399_v40 = vld [vmem:[#allocation68_spill] sm:$0xff] }
 0x297   : > { %v13396_v29 = vmax.f32 %v13395_v24, 0.0  ;;  %v11009_v43 = vadd.f32 %v3861_v38, %v12798_v31  ;;  %v4197_v47 = vadd.f32 %v10874_v52, %v13399_v40  ;;  %v13400_v10 = vld [vmem:[#allocation180_spill] sm:$0xff]  ;;  %v4142_v0 = vadd.f32 %v10924_v23, %v13403_v48  ;;  %v13404_v38 = vld [vmem:[#allocation150_spill] sm:$0xff]  ;;  %v13406_v40 = vld [vmem:[#allocation111_spill] sm:$0xff] }
 0x298   : > { %v4010_v7 = vadd.f32 %v4009_v2, %v4008_v58  ;;  %v4016_v44 = vrot.slane %v4015_v17, 2  ;;  %v4004_v26 = vrot.slane %v4003_v36, 1  ;;  %v4023_v59 = vrot.slane %v4022_v1, 2 }
 0x299   : > { %v2341_v50 = vadd.f32 %v13396_v29, %v1791_v20  ;;  %13398 = vst [vmem:[#allocation109_spill] sm:$0xff] %v11009_v43  ;;  %v13401_v39 = vmax.f32 %v13400_v10, 0.0  ;;  %v13402_v20 = vld [vmem:[#allocation83_spill] sm:$0xff]  ;;  %v4171_v41 = vadd.f32 %v4170_v14, %v13404_v38  ;;  %v4200_v10 = vadd.f32 %v4199_v27, %v13406_v40  ;;  %v13433_v43 = vld [vmem:[#allocation174_spill] sm:$0xff] }
 0x29a   : > { %v4011_v32 = vrot.slane %v4010_v7, 1  ;;  %v4017_v24 = vadd.f32 %v4016_v44, %v4015_v17  ;;  %v4113_v58 = vadd.f32 %v10922_v22, %v13402_v20  ;;  %v4005_v2 = vadd.f32 %v4004_v26, %v4003_v36  ;;  %v13407_v22 = vld [vmem:[#allocation41_spill] sm:$0xff] }
 0x29b   : > { %v2885_v56 = vadd.f32 %v13401_v39, %v2341_v50  ;;  %v4024_v29 = vadd.f32 %v4023_v59, %v4022_v1  ;;  %v4116_v36 = vadd.f32 %v4115_v12, %v13407_v22  ;;  %v4205_v28 = vpop.f32.mrf.mxu3  ;;  %v4118_v59 = vpop.f32.mrf.mxu0 }
 0x29c   : > { %v4012_v18 = vadd.f32 %v4011_v32, %v4010_v7  ;;  %v4018_v52 = vrot.slane %v4017_v24, 1  ;;  %v4324_v39 = vmul.f32 %v4005_v2, %v7339_v30  ;;  %v4332_v17 = vmul.f32 %v4005_v2, %v12913_v34 }
 0x29d   : > { %v3423_v33 = vadd.f32 %v13405_v61, %v2885_v56  ;;  %v4025_v50 = vrot.slane %v4024_v29, 1  ;;  %v4340_v27 = vmul.f32 %v4005_v2, %v12863_v62  ;;  %v4147_v56 = vpop.f32.mrf.mxu1 }
 0x29e   : > { %v4325_v23 = vmul.f32 %v4012_v18, %v7339_v30  ;;  %v4019_v44 = vadd.f32 %v4018_v52, %v4017_v24  ;;  %v4333_v14 = vmul.f32 %v4012_v18, %v12913_v34  ;;  %v4356_v61 = vadd.f32 %v4324_v39, %v4110_v25  ;;  %v4176_v38 = vpop.f32.mrf.mxu2 }
 0x29f   : > { %v11026_v1 = vadd.f32 %v3923_v53, %v3423_v33  ;;  %v4026_v7 = vadd.f32 %v4025_v50, %v4024_v29  ;;  %v4364_v26 = vadd.f32 %v4332_v17, %v4113_v58  ;;  %v4372_v50 = vadd.f32 %v4340_v27, %v4116_v36  ;;  %v13413_v27 = vld [vmem:[#allocation157_spill] sm:$0xff] }
 0x2a0   : > { %v4357_v32 = vadd.f32 %v4325_v23, %v4139_v3  ;;  %v4326_v20 = vmul.f32 %v4019_v44, %v7339_v30  ;;  %v4365_v48 = vadd.f32 %v4333_v14, %v4142_v0  ;;  %v4334_v33 = vmul.f32 %v4019_v44, %v12913_v34  ;;  %v13411_v14 = vld [vmem:[#allocation129_spill] sm:$0xff] }
 0x2a1   : > { %v11034_v12 = vadd.f32 %v4356_v61, %v7399_v4  ;;  %v4327_v53 = vmul.f32 %v4026_v7, %v7339_v30  ;;  %v11038_v24 = vadd.f32 %v4364_v26, %v7474_v51  ;;  %v4335_v25 = vmul.f32 %v4026_v7, %v12913_v34 }
 0x2a2   : > { %v11042_v58 = vadd.f32 %v4357_v32, %v7399_v4  ;;  %v4358_v29 = vadd.f32 %v4326_v20, %v4168_v8  ;;  %v11045_v3 = vadd.f32 %v4365_v48, %v7474_v51  ;;  %v4366_v0 = vadd.f32 %v4334_v33, %v4171_v41  ;;  %v13418_v41 = vld [vmem:[#allocation138_spill] sm:$0xff] }
 0x2a3   : > { %13408 = vst [vmem:[#allocation33_spill] sm:$0xff] %v11034_v12  ;;  %v4359_v40 = vadd.f32 %v4327_v53, %v4197_v47  ;;  %v4367_v39 = vadd.f32 %v4335_v25, %v4200_v10  ;;  %v4145_v8 = vadd.f32 %v10988_v35, %v13411_v14  ;;  %v4341_v47 = vmul.f32 %v4012_v18, %v12863_v62  ;;  %v11065_v48 = vpop.f32.mrf.mxu3 }
 0x2a4   : > { %13409 = vst [vmem:[#allocation53_spill] sm:$0xff] %v11042_v58  ;;  %v11051_v23 = vadd.f32 %v4358_v29, %v7399_v4  ;;  %v11061_v36 = vadd.f32 %v4366_v0, %v7474_v51  ;;  %v4174_v32 = vadd.f32 %v4173_v45, %v13413_v27  ;;  %v4342_v20 = vmul.f32 %v4019_v44, %v12863_v62  ;;  %v13416_v0 = vld [vmem:[#allocation114_spill] sm:$0xff]  ;;  %v13417_v27 = vld [vmem:[#allocation93_spill] sm:$0xff] }
 0x2a5   : > { %v11069_v33 = vadd.f32 %v4359_v40, %v7399_v4  ;;  %v11072_v53 = vadd.f32 %v4367_v39, %v7474_v51  ;;  %v11075_v25 = vadd.f32 %v4372_v50, %v12841_v11  ;;  %v4373_v29 = vadd.f32 %v4341_v47, %v4145_v8  ;;  %v4225_v39 = vpop.f32.mrf.mxu0  ;;  %v4254_v10 = vpop.f32.mrf.mxu1  ;;  %v13419_v8 = vld [vmem:[#allocation164_spill] sm:$0xff]  ;;  %v13431_v50 = vld [vmem:[#allocation161_spill] sm:$0xff] }
 0x2a6   : > { %13410 = vst [vmem:[#allocation81_spill] sm:$0xff] %v11051_v23  ;;  %v4203_v14 = vadd.f32 %v10997_v60, %v13416_v0  ;;  %v4343_v45 = vmul.f32 %v4026_v7, %v12863_v62  ;;  %v4119_v22 = vadd.f32 %v4118_v59, %v13417_v27  ;;  %v4374_v52 = vadd.f32 %v4342_v20, %v4174_v32  ;;  %v13420_v32 = vld [vmem:[#allocation175_spill] sm:$0xff]  ;;  %v4283_v27 = vpop.f32.mrf.mxu2 }
 0x2a7   : > { %13412 = vst [vmem:[#allocation143_spill] sm:$0xff] %v11061_v36  ;;  %v4348_v35 = vmul.f32 %v4005_v2, %v12812_v63  ;;  %v4148_v40 = vadd.f32 %v4147_v56, %v13418_v41  ;;  %v4349_v61 = vmul.f32 %v4012_v18, %v12812_v63  ;;  %v4177_v47 = vadd.f32 %v4176_v38, %v13419_v8  ;;  %v13440_v36 = vld [vmem:[#allocation128_spill] sm:$0xff] }
 0x2a8   : > { %13414 = vst [vmem:[#allocation43_spill] sm:$0xff] %v11069_v33  ;;  %v4375_v26 = vadd.f32 %v4343_v45, %v4203_v14  ;;  %v4350_v60 = vmul.f32 %v4019_v44, %v12812_v63  ;;  %v4206_v20 = vadd.f32 %v4205_v28, %v13420_v32  ;;  %v11091_v56 = vadd.f32 %v4373_v29, %v12841_v11 }
 0x2a9   : > { %13415 = vst [vmem:[#allocation71_spill] sm:$0xff] %v11072_v53  ;;  %v4380_v17 = vadd.f32 %v4348_v35, %v4119_v22  ;;  %v4381_v59 = vadd.f32 %v4349_v61, %v4148_v40  ;;  %v4351_v41 = vmul.f32 %v4026_v7, %v12812_v63  ;;  %v11095_v14 = vadd.f32 %v4374_v52, %v12841_v11 }
 0x2aa   : > { %v4382_v18 = vadd.f32 %v4350_v60, %v4177_v47  ;;  %v13422_v22 = vrot.slane %v10154_v49, 4  ;;  %v11103_v61 = vadd.f32 %v4375_v26, %v12841_v11  ;;  %v13424_v7 = vrot.slane %v10229_v9, 4 }
 0x2ab   : > { %13421 = vst [vmem:[#allocation104_spill] sm:$0xff] %v11095_v14  ;;  %v4412_v44 = vadd.f32 %v4380_v17, %v12798_v31  ;;  %v4413_v38 = vadd.f32 %v4381_v59, %v12798_v31  ;;  %v4383_v29 = vadd.f32 %v4351_v41, %v4206_v20  ;;  %v13425_v17 = vld [vmem:[#allocation39_spill] sm:$0xff]  ;;  %v11113_v26 = vpop.f32.mrf.mxu3 }
 0x2ac   : > { %v4029_v28 = vadd.f32 %v13422_v22, %v10154_v49  ;;  %13423 = vst [vmem:[#allocation44_spill] sm:$0xff] %v11103_v61  ;;  %v4414_v35 = vadd.f32 %v4382_v18, %v12798_v31  ;;  %v4036_v45 = vadd.f32 %v13424_v7, %v10229_v9  ;;  %v4226_v47 = vadd.f32 %v4225_v39, %v13425_v17  ;;  %v13426_v18 = vld [vmem:[#allocation156_spill] sm:$0xff]  ;;  %v13429_v22 = vld [vmem:[#allocation133_spill] sm:$0xff] }
 0x2ad   : > { %v4444_v52 = vmax.f32 %v4412_v44, 0.0  ;;  %v4445_v40 = vmax.f32 %v4413_v38, 0.0  ;;  %v4415_v59 = vadd.f32 %v4383_v29, %v12798_v31  ;;  %v524_v49 = vmul.f32 %v10697_v6, %v10697_v6  ;;  %v13427_v44 = vld [vmem:[#allocation48_spill] sm:$0xff] }
 0x2ae   : > { %v4030_v8 = vrot.slane %v4029_v28, 2  ;;  %v4446_v60 = vmax.f32 %v4414_v35, 0.0  ;;  %v4037_v32 = vrot.slane %v4036_v45, 2  ;;  %v13428_v38 = vrot.slane %v13427_v44, 4 }
 0x2af   : > { %v11116_v20 = vadd.f32 %v4444_v52, %v10665_v46  ;;  %v11119_v41 = vadd.f32 %v4445_v40, %v13426_v18  ;;  %v4447_v29 = vmax.f32 %v4415_v59, 0.0  ;;  %v11127_v17 = vperm.slane %v524_v49, 0  ;;  %v13430_v46 = vld [vmem:[#allocation145_spill] sm:$0xff]  ;;  %v4257_v18 = vpop.f32.mrf.mxu1 }
 0x2b0   : > { %v4031_v9 = vadd.f32 %v4030_v8, %v4029_v28  ;;  %v4043_v39 = vadd.f32 %v13428_v38, %v13427_v44  ;;  %v11125_v35 = vadd.f32 %v4446_v60, %v13429_v22  ;;  %v4038_v7 = vadd.f32 %v4037_v32, %v4036_v45  ;;  %v4228_v8 = vpop.f32.mrf.mxu0  ;;  %v13434_v45 = vld [vmem:[#allocation38_spill] sm:$0xff] }
 0x2b1   : > { %v3966_v52 = vmul.f32 %v13430_v46, %v10697_v6  ;;  %v13432_v40 = vrot.slane %v13431_v50, 4  ;;  %v11135_v44 = vadd.f32 %v4447_v29, %v13433_v43  ;;  %v4255_v59 = vadd.f32 %v4254_v10, %v10757_v13  ;;  %v4286_v29 = vpop.f32.mrf.mxu2 }
 0x2b2   : > { %v4032_v0 = vrot.slane %v4031_v9, 1  ;;  %v4044_v2 = vrot.slane %v4043_v39, 2  ;;  %v4039_v60 = vrot.slane %v4038_v7, 1  ;;  %v540_v32 = vmul.f32 %v11127_v17, %v13434_v45 }
 0x2b3   : > { %v4050_v28 = vadd.f32 %v13432_v40, %v13431_v50  ;;  %v11142_v54 = vperm.slane %v3966_v52, 0  ;;  %v13435_v40 = vld [vmem:[#allocation58_spill] sm:$0xff]  ;;  %v4258_v43 = vadd.f32 %v4257_v18, %v10809_v37 }
 0x2b4   : > { %v11140_v49 = vadd.f32 %v4032_v0, %v4031_v9  ;;  %v4045_v38 = vadd.f32 %v4044_v2, %v4043_v39  ;;  %v11144_v33 = vadd.f32 %v4039_v60, %v4038_v7  ;;  %v572_v50 = vadd.f32 %v540_v32, %v7399_v4 }
 0x2b5   : > { %v4051_v22 = vrot.slane %v4050_v28, 2  ;;  %v4229_v23 = vadd.f32 %v4228_v8, %v13435_v40  ;;  %v4284_v53 = vadd.f32 %v4283_v27, %v540_v32  ;;  %v11161_v18 = vmul.f32 %v11142_v54, %v13434_v45  ;;  %v6537_v40 = vld [vmem:[%s6786_s12] sm:$0x7f] }
 0x2b6   : > { %v4328_v13 = vmul.f32 %v11140_v49, %v7339_v30  ;;  %v4046_v10 = vrot.slane %v4045_v38, 1  ;;  %v4329_v2 = vmul.f32 %v11144_v33, %v7339_v30  ;;  %v604_v9 = vmax.f32 %v572_v50, 0.0 }
 0x2b7   : > { %v4052_v0 = vadd.f32 %v4051_v22, %v4050_v28  ;;  %v4336_v39 = vmul.f32 %v11140_v49, %v12913_v34  ;;  %v4337_v7 = vmul.f32 %v11144_v33, %v12913_v34  ;;  %v11163_v22 = vpop.f32.mrf.mxu3 }
 0x2b8   : > { %v4360_v52 = vadd.f32 %v4328_v13, %v4226_v47  ;;  %v11157_v37 = vadd.f32 %v4046_v10, %v4045_v38  ;;  %v4361_v27 = vadd.f32 %v4329_v2, %v4255_v59  ;;  %v636_v28 = vsub.f32 0.0, %v604_v9  ;;  %v11176_v59 = vld [vmem:[%s12261_s6] sm:$0xff] }
 0x2b9   : > { %v4053_v8 = vrot.slane %v4052_v0, 1  ;;  %v4368_v60 = vadd.f32 %v4336_v39, %v4229_v23  ;;  %v4369_v32 = vadd.f32 %v4337_v7, %v4258_v43  ;;  %v5068_v13 = vrot.slane %v6537_v40, 4  ;;  %v13437_v2 = vld [vmem:[#allocation100_spill] sm:$0xff]  ;;  %v4231_v23 = vpop.f32.mrf.mxu0 }
 0x2ba   : > { %v11166_v50 = vadd.f32 %v4360_v52, %v7399_v4  ;;  %v4330_v47 = vmul.f32 %v11157_v37, %v7339_v30  ;;  %v13438_v9 = vmax.f32 %v13437_v2, 0.0  ;;  %v13441_v43 = vmax.f32 %v13440_v36, 0.0  ;;  %v6539_v36 = vld [vmem:[%s6786_s12 + $0x18] sm:$0x7f] }
 0x2bb   : > { %v11170_v38 = vadd.f32 %v4053_v8, %v4052_v0  ;;  %v11185_v0 = vadd.f32 %v4361_v27, %v7399_v4  ;;  %6362 = vmatpush.msk.msra.mxu0 %vm709_vm4, %v5068_v13  ;;  %v6538_v8 = vld [vmem:[%s6786_s12 + $0x8] sm:$0x7f]  ;;  %v4313_v2 = vadd.f32 %v11065_v48, %v11161_v18  ;;  %v5071_v13 = vrot.slane %v6539_v36, 4  ;;  %v6540_v48 = vld [vmem:[%s6786_s12 + $0x10] sm:$0x7f]  ;;  %v4289_v36 = vpop.f32.mrf.mxu2 }
 0x2bc   : > { %13436 = vst [vmem:[#allocation68_spill] sm:$0xff] %v11166_v50  ;;  %v1212_v39 = vadd.f32 %v13438_v9, %v636_v28  ;;  %v4362_v52 = vadd.f32 %v4330_v47, %v4284_v53  ;;  %v5069_v40 = vrot.slane %v6538_v8, 4  ;;  %v11194_v28 = vadd.f32 %v4368_v60, %v7474_v51  ;;  %6363 = vmatmul.msk.f32.vlgmr.msra.gmra.mxu0 %vm817_vm5, %v11176_v59  ;;  %v4260_v53 = vpop.f32.mrf.mxu1  ;;  %v13444_v60 = vld [vmem:[#allocation154_spill] sm:$0xff] }
 0x2bd   : > { %13439 = vst [vmem:[#allocation180_spill] sm:$0xff] %v11185_v0  ;;  %v11197_v9 = vadd.f32 %v4369_v32, %v7474_v51  ;;  %v4331_v47 = vmul.f32 %v11170_v38, %v7339_v30  ;;  %v548_v32 = vmul.f32 %v11127_v17, %v13232_v57  ;;  %v4338_v27 = vmul.f32 %v11157_v37, %v12913_v34 }
 0x2be   : > { %v1768_v58 = vadd.f32 %v13441_v43, %v1212_v39  ;;  %13442 = vst [vmem:[#allocation83_spill] sm:$0xff] %v11194_v28  ;;  %6367 = vmatpush.msk.msra.mxu1 %vm709_vm4, %v5069_v40  ;;  %v5070_v43 = vrot.slane %v6540_v48, 4  ;;  %v13445_v39 = vmax.f32 %v13444_v60, 0.0  ;;  %v11219_v40 = vmul.f32 %v11142_v54, %v13232_v57  ;;  %6377 = vmatpush.msk.msra.mxu3 %vm709_vm4, %v5071_v13  ;;  %v13490_v28 = vld [vmem:[#allocation171_spill] sm:$0xff] }
 0x2bf   : > { %13443 = vst [vmem:[#allocation122_spill] sm:$0xff] %v11197_v9  ;;  %6368 = vmatmul.msk.f32.vlgmr.msra.gmra.mxu1 %vm817_vm5, %v11176_v59  ;;  %v11223_v60 = vadd.f32 %v4362_v52, %v7399_v4  ;;  %v580_v10 = vadd.f32 %v548_v32, %v7474_v51  ;;  %v4344_v48 = vmul.f32 %v11140_v49, %v12863_v62  ;;  %v13488_v9 = vld [vmem:[#allocation70_spill] sm:$0xff] }
 0x2c0   : > { %v11209_v8 = vadd.f32 %v13445_v39, %v1768_v58  ;;  %13447 = vst [vmem:[#allocation111_spill] sm:$0xff] %v11219_v40  ;;  %6372 = vmatpush.msk.msra.mxu2 %vm709_vm4, %v5070_v43  ;;  %v4339_v58 = vmul.f32 %v11170_v38, %v12913_v34  ;;  %v13449_v39 = vld [vmem:[#allocation116_spill] sm:$0xff]  ;;  %v4316_v50 = vadd.f32 %v11113_v26, %v11219_v40 }
 0x2c1   : > { %13448 = vst [vmem:[#allocation41_spill] sm:$0xff] %v11223_v60  ;;  %v4232_v7 = vadd.f32 %v4231_v23, %v13449_v39  ;;  %6373 = vmatmul.msk.f32.vlgmr.msra.gmra.mxu2 %vm817_vm5, %v11176_v59  ;;  %v4363_v52 = vadd.f32 %v4331_v47, %v4313_v2  ;;  %v4261_v13 = vadd.f32 %v4260_v53, %v10891_v55  ;;  %v612_v23 = vmax.f32 %v580_v10, 0.0  ;;  %v4321_v47 = vpop.f32.mrf.mxu3 }
 0x2c2   : > { %13446 = vst [vmem:[#allocation150_spill] sm:$0xff] %v11209_v8  ;;  %v4287_v8 = vadd.f32 %v4286_v29, %v548_v32  ;;  %v4345_v43 = vmul.f32 %v11144_v33, %v12863_v62  ;;  %6378 = vmatmul.msk.f32.vlgmr.msra.gmra.mxu3 %vm817_vm5, %v11176_v59  ;;  %v11245_v29 = vld [vmem:[%s12261_s6 + $0x8] sm:$0xff]  ;;  %v556_v26 = vmul.f32 %v11127_v17, %v12857_v5 }
 0x2c3   : > { %v4371_v39 = vadd.f32 %v4339_v58, %v4316_v50  ;;  %v4376_v2 = vadd.f32 %v4344_v48, %v4232_v7  ;;  %v4346_v57 = vmul.f32 %v11157_v37, %v12863_v62  ;;  %v644_v14 = vsub.f32 0.0, %v612_v23  ;;  %v13453_v48 = vld [vmem:[#allocation36_spill] sm:$0xff]  ;;  %v13457_v50 = vld [vmem:[#allocation131_spill] sm:$0xff] }
 0x2c4   : > { %v4370_v32 = vadd.f32 %v4338_v27, %v4287_v8  ;;  %v4377_v55 = vadd.f32 %v4345_v43, %v4261_v13  ;;  %v588_v53 = vadd.f32 %v556_v26, %v12841_v11  ;;  %v4290_v0 = vadd.f32 %v4289_v36, %v556_v26  ;;  %6364 = vmatmul.msk.f32.gmra.mxu0 %vm817_vm5, %v11245_v29  ;;  %v4234_v8 = vpop.f32.mrf.mxu0  ;;  %v4263_v23 = vpop.f32.mrf.mxu1 }
 0x2c5   : > { %v11261_v10 = vadd.f32 %v4371_v39, %v7474_v51  ;;  %v11265_v27 = vmul.f32 %v11142_v54, %v12857_v5  ;;  %v11268_v36 = vadd.f32 %v4363_v52, %v7399_v4  ;;  %v13454_v58 = vmax.f32 %v13453_v48, 0.0 }
 0x2c6   : > { %v11255_v12 = vadd.f32 %v4370_v32, %v7474_v51  ;;  %v620_v7 = vmax.f32 %v588_v53, 0.0  ;;  %v11273_v43 = vadd.f32 %v4376_v2, %v12841_v11  ;;  %v4378_v26 = vadd.f32 %v4346_v57, %v4290_v0  ;;  %v4292_v0 = vpop.f32.mrf.mxu2 }
 0x2c7   : > { %13451 = vst [vmem:[#allocation157_spill] sm:$0xff] %v11261_v10  ;;  %v1220_v13 = vadd.f32 %v13454_v58, %v644_v14  ;;  %6369 = vmatmul.msk.f32.gmra.mxu1 %vm817_vm5, %v11245_v29  ;;  %v11279_v39 = vadd.f32 %v4377_v55, %v12841_v11  ;;  %v4319_v52 = vadd.f32 %v11163_v22, %v11265_v27  ;;  %v13458_v48 = vmax.f32 %v13457_v50, 0.0  ;;  %v13459_v58 = vld [vmem:[#allocation126_spill] sm:$0xff] }
 0x2c8   : > { %13450 = vst [vmem:[#allocation129_spill] sm:$0xff] %v11255_v12  ;;  %v652_v53 = vsub.f32 0.0, %v620_v7  ;;  %v4347_v2 = vmul.f32 %v11170_v38, %v12863_v62  ;;  %v4235_v61 = vadd.f32 %v4234_v8, %v13459_v58  ;;  %v4352_v57 = vmul.f32 %v11140_v49, %v12812_v63  ;;  %v13460_v7 = vld [vmem:[#allocation90_spill] sm:$0xff]  ;;  %v13462_v8 = vld [vmem:[#allocation159_spill] sm:$0xff]  ;;  %v13486_v12 = vld [vmem:[#allocation144_spill] sm:$0xff] }
 0x2c9   : > { %13452 = vst [vmem:[#allocation114_spill] sm:$0xff] %v11268_v36  ;;  %v1776_v14 = vadd.f32 %v13458_v48, %v1220_v13  ;;  %6374 = vmatmul.msk.f32.gmra.mxu2 %vm817_vm5, %v11245_v29  ;;  %v13461_v32 = vmax.f32 %v13460_v7, 0.0  ;;  %v4264_v50 = vadd.f32 %v4263_v23, %v10933_v16  ;;  %v4353_v13 = vmul.f32 %v11144_v33, %v12812_v63  ;;  %v11303_v49 = vld [vmem:[%s12261_s6 + $0x10] sm:$0xff]  ;;  %v13466_v33 = vld [vmem:[#allocation140_spill] sm:$0xff] }
 0x2ca   : > { %13455 = vst [vmem:[#allocation93_spill] sm:$0xff] %v11273_v43  ;;  %6379 = vmatmul.msk.f32.gmra.mxu3 %vm817_vm5, %v11245_v29  ;;  %v13463_v48 = vmax.f32 %v13462_v8, 0.0  ;;  %v11310_v7 = vadd.f32 %v4378_v26, %v12841_v11  ;;  %v564_v16 = vmul.f32 %v11127_v17, %v7160_v19  ;;  %v13467_v23 = vmax.f32 %v13466_v33, 0.0  ;;  %v13471_v33 = vld [vmem:[#allocation79_spill] sm:$0xff] }
 0x2cb   : > { %13456 = vst [vmem:[#allocation138_spill] sm:$0xff] %v11279_v39  ;;  %v1228_v22 = vadd.f32 %v13461_v32, %v652_v53  ;;  %v4384_v32 = vadd.f32 %v4352_v57, %v4235_v61  ;;  %v4385_v55 = vadd.f32 %v4353_v13, %v4264_v50  ;;  %v4354_v40 = vmul.f32 %v11157_v37, %v12812_v63  ;;  %v13468_v57 = vld [vmem:[#allocation167_spill] sm:$0xff] }
 0x2cc   : > { %v11307_v58 = vadd.f32 %v13463_v48, %v1776_v14  ;;  %13465 = vst [vmem:[#allocation175_spill] sm:$0xff] %v11310_v7  ;;  %v11320_v36 = vmul.f32 %v11142_v54, %v7160_v19  ;;  %v4379_v14 = vadd.f32 %v4347_v2, %v4319_v52  ;;  %6365 = vmatmul.msk.f32.gmra.mxu0 %vm817_vm5, %v11303_v49  ;;  %v11326_v26 = vpop.f32.mrf.mxu3 }
 0x2cd   : > { %v1784_v53 = vadd.f32 %v13467_v23, %v1228_v22  ;;  %v4416_v8 = vadd.f32 %v4384_v32, %v12798_v31  ;;  %v596_v61 = vadd.f32 %v564_v16, %v12798_v31  ;;  %v4293_v17 = vadd.f32 %v4292_v0, %v564_v16 }
 0x2ce   : > { %13464 = vst [vmem:[#allocation164_spill] sm:$0xff] %v11307_v58  ;;  %v13469_v22 = vmax.f32 %v13468_v57, 0.0  ;;  %v4417_v37 = vadd.f32 %v4385_v55, %v12798_v31  ;;  %v4322_v54 = vadd.f32 %v4321_v47, %v11320_v36  ;;  %v4355_v52 = vmul.f32 %v11170_v38, %v12812_v63  ;;  %v13473_v55 = vld [vmem:[#allocation47_spill] sm:$0xff]  ;;  %v13484_v38 = vld [vmem:[#allocation165_spill] sm:$0xff] }
 0x2cf   : > { %v4448_v13 = vmax.f32 %v4416_v8, 0.0  ;;  %6370 = vmatmul.msk.f32.gmra.mxu1 %vm817_vm5, %v11303_v49  ;;  %v628_v0 = vmax.f32 %v596_v61, 0.0  ;;  %v4386_v48 = vadd.f32 %v4354_v40, %v4293_v17  ;;  %v13472_v23 = vrot.slane %v13471_v33, 4  ;;  %v4629_v2 = vpop.f32.mrf.mxu0  ;;  %v13476_v40 = vld [vmem:[#allocation170_spill] sm:$0xff] }
 0x2d0   : > { %v11330_v50 = vadd.f32 %v13469_v22, %v1784_v53  ;;  %v4449_v32 = vmax.f32 %v4417_v37, 0.0  ;;  %v4387_v16 = vadd.f32 %v4355_v52, %v4322_v54  ;;  %v13474_v47 = vrot.slane %v13473_v55, 4 }
 0x2d1   : > { %v4526_v53 = vadd.f32 %v13472_v23, %v13471_v33  ;;  %v11347_v22 = vadd.f32 %v4448_v13, %v10977_v42  ;;  %v660_v8 = vsub.f32 0.0, %v628_v0  ;;  %6375 = vmatmul.msk.f32.gmra.mxu2 %vm817_vm5, %v11303_v49  ;;  %v13477_v61 = vrot.slane %v13476_v40, 4  ;;  %v11366_v42 = vld [vmem:[%s12261_s6 + $0x18] sm:$0xff]  ;;  %v13480_v13 = vld [vmem:[#allocation49_spill] sm:$0xff] }
 0x2d2   : > { %13470 = vst [vmem:[#allocation39_spill] sm:$0xff] %v11330_v50  ;;  %v4533_v57 = vadd.f32 %v13474_v47, %v13473_v55  ;;  %v11356_v54 = vadd.f32 %v4379_v14, %v12841_v11  ;;  %v11359_v52 = vadd.f32 %v4449_v32, %v11026_v1  ;;  %6380 = vmatmul.msk.f32.gmra.mxu3 %vm817_vm5, %v11303_v49  ;;  %v13481_v0 = vmax.f32 %v13480_v13, 0.0  ;;  %v4687_v1 = vpop.f32.mrf.mxu2 }
 0x2d3   : > { %13475 = vst [vmem:[#allocation156_spill] sm:$0xff] %v11347_v22  ;;  %v4540_v17 = vadd.f32 %v13477_v61, %v13476_v40  ;;  %v4527_v33 = vrot.slane %v4526_v53, 2  ;;  %v11371_v55 = vadd.f32 %v4386_v48, %v12798_v31  ;;  %v11374_v32 = vadd.f32 %v4387_v16, %v12798_v31  ;;  %v13483_v61 = vld [vmem:[#allocation77_spill] sm:$0xff]  ;;  %v4658_v48 = vpop.f32.mrf.mxu1 }
 0x2d4   : > { %13478 = vst [vmem:[#allocation48_spill] sm:$0xff] %v11356_v54  ;;  %v1236_v23 = vadd.f32 %v13481_v0, %v660_v8  ;;  %v4534_v14 = vrot.slane %v4533_v57, 2  ;;  %v4630_v37 = vadd.f32 %v4629_v2, %v13483_v61  ;;  %v13485_v60 = vrot.slane %v13484_v38, 4  ;;  %6366 = vmatmul.msk.f32.gmra.mxu0 %vm817_vm5, %v11366_v42  ;;  %v4719_v16 = vpop.f32.mrf.mxu3  ;;  %v6541_v61 = vld [vmem:[%s6786_s12 + $0x20] sm:$0x7f] }
 0x2d5   : > { %13479 = vst [vmem:[#allocation133_spill] sm:$0xff] %v11359_v52  ;;  %v4541_v47 = vrot.slane %v4540_v17, 2  ;;  %v4528_v40 = vadd.f32 %v4527_v33, %v4526_v53  ;;  %v13487_v13 = vmax.f32 %v13486_v12, 0.0  ;;  %v4688_v58 = vadd.f32 %v4687_v1, %v13488_v9  ;;  %v13489_v53 = vld [vmem:[#allocation121_spill] sm:$0xff] }
 0x2d6   : > { %13482 = vst [vmem:[#allocation145_spill] sm:$0xff] %v11374_v32  ;;  %v4547_v10 = vadd.f32 %v13485_v60, %v13484_v38  ;;  %v4535_v0 = vadd.f32 %v4534_v14, %v4533_v57  ;;  %v4659_v33 = vadd.f32 %v4658_v48, %v13489_v53  ;;  %v5072_v39 = vrot.slane %v6541_v61, 4 }
 0x2d7   : > { %v1792_v8 = vadd.f32 %v13487_v13, %v1236_v23  ;;  %v4542_v7 = vadd.f32 %v4541_v47, %v4540_v17  ;;  %v4529_v50 = vrot.slane %v4528_v40, 1  ;;  %v13491_v60 = vmax.f32 %v13490_v28, 0.0  ;;  %6371 = vmatmul.msk.f32.gmra.mxu1 %vm817_vm5, %v11366_v42  ;;  %v13492_v23 = vld [vmem:[#allocation34_spill] sm:$0xff]  ;;  %v13493_v13 = vld [vmem:[#allocation181_spill] sm:$0xff] }
 0x2d8   : > { %v4548_v2 = vrot.slane %v4547_v10, 2  ;;  %v4536_v12 = vrot.slane %v4535_v0, 1  ;;  %v5073_v14 = vrot.slane %v13492_v23, 4  ;;  %6382 = vmatpush.msk.msrb.mxu0 %vm709_vm4, %v5072_v39  ;;  %v5075_v47 = vrot.slane %v13430_v46, 4 }
 0x2d9   : > { %v2342_v38 = vadd.f32 %v13491_v60, %v1792_v8  ;;  %v4543_v57 = vrot.slane %v4542_v7, 1  ;;  %v11392_v17 = vadd.f32 %v4529_v50, %v4528_v40  ;;  %v5074_v1 = vrot.slane %v10697_v6, 4  ;;  %v4632_v60 = vpop.f32.mrf.mxu0  ;;  %6376 = vmatmul.msk.f32.gmra.mxu2 %vm817_vm5, %v11366_v42  ;;  %v13495_v6 = vld [vmem:[#allocation84_spill] sm:$0xff] }
 0x2da   : > { %v4549_v9 = vadd.f32 %v4548_v2, %v4547_v10  ;;  %v13494_v48 = vmax.f32 %v13493_v13, 0.0  ;;  %v4450_v8 = vmax.f32 %v11371_v55, 0.0  ;;  %v11400_v53 = vadd.f32 %v4536_v12, %v4535_v0  ;;  %6387 = vmatpush.msk.msrb.mxu1 %vm709_vm4, %v5073_v14  ;;  %6381 = vmatmul.msk.f32.gmra.mxu3 %vm817_vm5, %v11366_v42  ;;  %v4690_v13 = vpop.f32.mrf.mxu2 }
 0x2db   : > { %v11402_v61 = vadd.f32 %v4543_v57, %v4542_v7  ;;  %v4844_v46 = vmul.f32 %v11392_v17, %v7339_v30  ;;  %v4633_v39 = vadd.f32 %v4632_v60, %v13495_v6  ;;  %v4852_v50 = vmul.f32 %v11392_v17, %v12913_v34  ;;  %6392 = vmatpush.msk.msrb.mxu2 %vm709_vm4, %v5074_v1  ;;  %v13496_v7 = vld [vmem:[#allocation63_spill] sm:$0xff] }
 0x2dc   : > { %v2886_v28 = vadd.f32 %v13494_v48, %v2342_v38  ;;  %v4550_v10 = vrot.slane %v4549_v9, 1  ;;  %v13497_v55 = vmax.f32 %v13496_v7, 0.0  ;;  %v4845_v0 = vmul.f32 %v11400_v53, %v7339_v30  ;;  %v13498_v38 = vld [vmem:[#allocation92_spill] sm:$0xff]  ;;  %6397 = vmatpush.msk.msrb.mxu3 %vm709_vm4, %v5075_v47  ;;  %v4661_v7 = vpop.f32.mrf.mxu1  ;;  %6383 = vmatmul.msk.f32.vlgmr.msrb.gmra.mxu0 %vm817_vm5, %v11176_v59  ;;  %v13501_v47 = vld [vmem:[#allocation123_spill] sm:$0xff] }
 0x2dd   : > { %v4846_v2 = vmul.f32 %v11402_v61, %v7339_v30  ;;  %v4717_v12 = vadd.f32 %v11326_v26, %v13498_v38  ;;  %v4876_v57 = vadd.f32 %v4844_v46, %v4630_v37  ;;  %v4884_v14 = vadd.f32 %v4852_v50, %v4633_v39  ;;  %v4722_v38 = vpop.f32.mrf.mxu3 }
 0x2de   : > { %v3424_v40 = vadd.f32 %v13497_v55, %v2886_v28  ;;  %v4551_v23 = vadd.f32 %v4550_v10, %v4549_v9  ;;  %v4854_v1 = vmul.f32 %v11402_v61, %v12913_v34  ;;  %v13499_v48 = vmax.f32 %v10986_v15, 0.0  ;;  %v13500_v55 = vld [vmem:[#allocation151_spill] sm:$0xff] }
 0x2df   : > { %v4877_v60 = vadd.f32 %v4845_v0, %v4659_v33  ;;  %v4878_v6 = vadd.f32 %v4846_v2, %v4688_v58  ;;  %v4691_v26 = vadd.f32 %v4690_v13, %v13500_v55  ;;  %v4662_v46 = vadd.f32 %v4661_v7, %v13501_v47  ;;  %6388 = vmatmul.msk.f32.vlgmr.msrb.gmra.mxu1 %vm817_vm5, %v11176_v59  ;;  %v13504_v13 = vld [vmem:[#allocation146_spill] sm:$0xff] }
 0x2e0   : > { %v3956_v28 = vadd.f32 %v13499_v48, %v3424_v40  ;;  %v4847_v9 = vmul.f32 %v4551_v23, %v7339_v30  ;;  %v4853_v10 = vmul.f32 %v11400_v53, %v12913_v34  ;;  %v13503_v39 = vrot.slane %v10746_v21, 1 }
 0x2e1   : > { %v4886_v33 = vadd.f32 %v4854_v1, %v4691_v26  ;;  %v11445_v40 = vadd.f32 %v4876_v57, %v7399_v4  ;;  %v4720_v48 = vadd.f32 %v4719_v16, %v13504_v13  ;;  %v11455_v7 = vadd.f32 %v4884_v14, %v7474_v51  ;;  %v4635_v1 = vpop.f32.mrf.mxu0  ;;  %6393 = vmatmul.msk.f32.vlgmr.msrb.gmra.mxu2 %vm817_vm5, %v11176_v59  ;;  %v13505_v57 = vld [vmem:[#allocation88_spill] sm:$0xff] }
 0x2e2   : > { %v11436_v15 = vadd.f32 %v4450_v8, %v3956_v28  ;;  %v4552_v50 = vsel %vm709_vm4, %v13503_v39, 0.0  ;;  %v4879_v0 = vadd.f32 %v4847_v9, %v4717_v12  ;;  %v4885_v2 = vadd.f32 %v4853_v10, %v4662_v46  ;;  %6398 = vmatmul.msk.f32.vlgmr.msrb.gmra.mxu3 %vm817_vm5, %v11176_v59  ;;  %v4693_v46 = vpop.f32.mrf.mxu2  ;;  %v13506_v10 = vld [vmem:[#allocation172_spill] sm:$0xff] }
 0x2e3   : > { %v11449_v8 = vadd.f32 %v4877_v60, %v7399_v4  ;;  %v11452_v28 = vadd.f32 %v4878_v6, %v7399_v4  ;;  %v4855_v21 = vmul.f32 %v4551_v23, %v12913_v34  ;;  %v11461_v12 = vadd.f32 %v4886_v33, %v7474_v51 }
 0x2e4   : > { %13502 = vst [vmem:[#allocation161_spill] sm:$0xff] %v11436_v15  ;;  %v4636_v16 = vadd.f32 %v4635_v1, %v13505_v57  ;;  %v4860_v60 = vmul.f32 %v11392_v17, %v12863_v62  ;;  %v4861_v6 = vmul.f32 %v11400_v53, %v12863_v62  ;;  %v11471_v14 = vadd.f32 %v4879_v0, %v7399_v4  ;;  %v4664_v59 = vpop.f32.mrf.mxu1  ;;  %v13507_v1 = vld [vmem:[#allocation59_spill] sm:$0xff]  ;;  %v13512_v15 = vld [vmem:[#allocation124_spill] sm:$0xff] }
 0x2e5   : > { %v11474_v55 = vadd.f32 %v4885_v2, %v7474_v51  ;;  %v4887_v26 = vadd.f32 %v4855_v21, %v4720_v48  ;;  %v4862_v9 = vmul.f32 %v11402_v61, %v12863_v62  ;;  %v4723_v33 = vadd.f32 %v4722_v38, %v13506_v10  ;;  %6384 = vmatmul.msk.f32.gmra.mxu0 %vm817_vm5, %v11245_v29  ;;  %v4725_v2 = vpop.f32.mrf.mxu3 }
 0x2e6   : > { %v4892_v47 = vadd.f32 %v4860_v60, %v4636_v16  ;;  %v4863_v39 = vmul.f32 %v4551_v23, %v12863_v62  ;;  %v4868_v13 = vmul.f32 %v11392_v17, %v12812_v63  ;;  %v4869_v0 = vmul.f32 %v11400_v53, %v12812_v63  ;;  %v13509_v60 = vld [vmem:[#allocation130_spill] sm:$0xff]  ;;  %v13510_v17 = vld [vmem:[#allocation179_spill] sm:$0xff]  ;;  %v13511_v53 = vld [vmem:[#allocation160_spill] sm:$0xff] }
 0x2e7   : > { %v4871_v48 = vmul.f32 %v4551_v23, %v12812_v63  ;;  %v4553_v21 = vrot.slane %v4552_v50, 4  ;;  %v13508_v57 = vrot.slane %v13507_v1, 1  ;;  %v4665_v10 = vadd.f32 %v4664_v59, %v13509_v60  ;;  %6389 = vmatmul.msk.f32.gmra.mxu1 %vm817_vm5, %v11245_v29  ;;  %v13513_v1 = vld [vmem:[#allocation147_spill] sm:$0xff] }
 0x2e8   : > { %v4924_v16 = vadd.f32 %v4892_v47, %v12841_v11  ;;  %v4726_v58 = vadd.f32 %v4725_v2, %v13510_v17  ;;  %v11494_v32 = vadd.f32 %v4887_v26, %v7474_v51  ;;  %v4694_v23 = vadd.f32 %v4693_v46, %v13511_v53  ;;  %v13516_v53 = vld [vmem:[#allocation98_spill] sm:$0xff] }
 0x2e9   : > { %v4559_v38 = vsel %vm709_vm4, %v13508_v57, 0.0  ;;  %v4554_v54 = vadd.f32 %v4553_v21, %v4552_v50  ;;  %v13514_v52 = vmax.f32 %v13513_v1, 0.0  ;;  %v4893_v47 = vadd.f32 %v4861_v6, %v4665_v10  ;;  %v4638_v2 = vpop.f32.mrf.mxu0  ;;  %6394 = vmatmul.msk.f32.gmra.mxu2 %vm817_vm5, %v11245_v29 }
 0x2ea   : > { %v4560_v37 = vrot.slane %v4559_v38, 4  ;;  %v4956_v22 = vmax.f32 %v4924_v16, 0.0  ;;  %v4903_v43 = vadd.f32 %v4871_v48, %v4726_v58  ;;  %v4895_v60 = vadd.f32 %v4863_v39, %v4723_v33  ;;  %6399 = vmatmul.msk.f32.gmra.mxu3 %vm817_vm5, %v11245_v29  ;;  %v13517_v39 = vld [vmem:[#allocation153_spill] sm:$0xff]  ;;  %v13518_v48 = vld [vmem:[#allocation110_spill] sm:$0xff]  ;;  %v4696_v10 = vpop.f32.mrf.mxu2 }
 0x2eb   : > { %v3942_v57 = vadd.f32 %v13514_v52, %v13512_v15  ;;  %v4870_v26 = vmul.f32 %v11402_v61, %v12812_v63  ;;  %v4555_v17 = vrot.slane %v4554_v54, 2  ;;  %v13515_v46 = vmax.f32 %v11075_v25, 0.0  ;;  %v13520_v29 = vld [vmem:[#allocation169_spill] sm:$0xff] }
 0x2ec   : > { %v4561_v59 = vadd.f32 %v4560_v37, %v4559_v38  ;;  %v4925_v21 = vadd.f32 %v4893_v47, %v12841_v11  ;;  %v4639_v52 = vadd.f32 %v4638_v2, %v13516_v53  ;;  %v4935_v37 = vadd.f32 %v4903_v43, %v12798_v31  ;;  %v4667_v47 = vpop.f32.mrf.mxu1 }
 0x2ed   : > { %v4468_v50 = vadd.f32 %v13515_v46, %v3942_v57  ;;  %v4894_v58 = vadd.f32 %v4862_v9, %v4694_v23  ;;  %v4556_v6 = vadd.f32 %v4555_v17, %v4554_v54  ;;  %v13519_v61 = vmax.f32 %v13518_v48, 0.0  ;;  %6385 = vmatmul.msk.f32.gmra.mxu0 %vm817_vm5, %v11303_v49  ;;  %v13522_v9 = vld [vmem:[#allocation162_spill] sm:$0xff]  ;;  %v13524_v46 = vld [vmem:[#allocation139_spill] sm:$0xff] }
 0x2ee   : > { %v4562_v15 = vrot.slane %v4561_v59, 2  ;;  %v4957_v16 = vmax.f32 %v4925_v21, 0.0  ;;  %v4900_v25 = vadd.f32 %v4868_v13, %v4639_v52  ;;  %v4967_v1 = vmax.f32 %v4935_v37, 0.0 }
 0x2ef   : > { %v4988_v33 = vadd.f32 %v4956_v22, %v4468_v50  ;;  %v3943_v38 = vadd.f32 %v13519_v61, %v13517_v39  ;;  %v4697_v2 = vadd.f32 %v4696_v10, %v13520_v29  ;;  %v4557_v43 = vrot.slane %v4556_v6, 1  ;;  %6390 = vmatmul.msk.f32.gmra.mxu1 %vm817_vm5, %v11303_v49  ;;  %v6542_v61 = vld [vmem:[%s6786_s12 + $0x38] sm:$0x7f]  ;;  %v13525_v10 = vld [vmem:[#allocation94_spill] sm:$0xff] }
 0x2f0   : > { %v4563_v57 = vadd.f32 %v4562_v15, %v4561_v59  ;;  %v13521_v54 = vmax.f32 %v11091_v56, 0.0  ;;  %v13523_v23 = vrot.slane %v13522_v9, 1  ;;  %v4932_v13 = vadd.f32 %v4900_v25, %v12798_v31 }
 0x2f1   : > { %v4668_v50 = vadd.f32 %v4667_v47, %v13524_v46  ;;  %v4999_v59 = vadd.f32 %v4967_v1, %v11135_v44  ;;  %v11528_v53 = vadd.f32 %v4895_v60, %v12841_v11  ;;  %v4902_v52 = vadd.f32 %v4870_v26, %v4697_v2  ;;  %6395 = vmatmul.msk.f32.gmra.mxu2 %vm817_vm5, %v11303_v49  ;;  %v4745_v47 = vpop.f32.mrf.mxu0  ;;  %v13527_v2 = vld [vmem:[#allocation61_spill] sm:$0xff] }
 0x2f2   : > { %v4469_v22 = vadd.f32 %v13521_v54, %v3943_v38  ;;  %v4566_v17 = vsel %vm709_vm4, %v13523_v23, 0.0  ;;  %v4564_v21 = vrot.slane %v4563_v57, 1  ;;  %v4964_v15 = vmax.f32 %v4932_v13, 0.0  ;;  %6400 = vmatmul.msk.f32.gmra.mxu3 %vm817_vm5, %v11303_v49  ;;  %v4803_v23 = vpop.f32.mrf.mxu2  ;;  %v13529_v13 = vld [vmem:[#allocation60_spill] sm:$0xff] }
 0x2f3   : > { %v4567_v37 = vrot.slane %v4566_v17, 4  ;;  %v4901_v39 = vadd.f32 %v4869_v0, %v4668_v50  ;;  %v11532_v48 = vadd.f32 %v4557_v43, %v4556_v6  ;;  %v525_v38 = vmul.f32 %v6542_v61, %v6542_v61  ;;  %5448 = vmatpush.msra.mxu3 %v4999_v59 }
 0x2f4   : > { %v4989_v56 = vadd.f32 %v4957_v16, %v4469_v22  ;;  %v4934_v25 = vadd.f32 %v4902_v52, %v12798_v31  ;;  %v11536_v44 = vadd.f32 %v4564_v21, %v4563_v57  ;;  %v13526_v1 = vrot.slane %v13525_v10, 1  ;;  %v4774_v59 = vpop.f32.mrf.mxu1 }
 0x2f5   : > { %v4568_v60 = vadd.f32 %v4567_v37, %v4566_v17  ;;  %v11544_v16 = vadd.f32 %v4894_v58, %v12841_v11  ;;  %v4996_v0 = vadd.f32 %v4964_v15, %v11116_v20  ;;  %v4933_v6 = vadd.f32 %v4901_v39, %v12798_v31  ;;  %v13528_v17 = vld [vmem:[#allocation46_spill] sm:$0xff]  ;;  %6386 = vmatmul.msk.f32.gmra.mxu0 %vm817_vm5, %v11366_v42  ;;  %v13531_v39 = vld [vmem:[#allocation28_spill] sm:$0xff] }
 0x2f6   : > { %v4573_v26 = vsel %vm709_vm4, %v13526_v1, 0.0  ;;  %v11550_v57 = vperm.slane %v525_v38, 0  ;;  %v4966_v29 = vmax.f32 %v4934_v25, 0.0  ;;  %v4746_v43 = vadd.f32 %v4745_v47, %v13527_v2  ;;  %v4832_v25 = vpop.f32.mrf.mxu3  ;;  %v13534_v47 = vld [vmem:[#allocation106_spill] sm:$0xff] }
 0x2f7   : > { %v4569_v54 = vrot.slane %v4568_v60, 2  ;;  %v4574_v22 = vrot.slane %v4573_v26, 4  ;;  %v4965_v9 = vmax.f32 %v4933_v6, 0.0  ;;  %v4848_v58 = vmul.f32 %v11532_v48, %v7339_v30  ;;  %5361 = vmatpush.msra.mxu0 %v4996_v0  ;;  %6391 = vmatmul.msk.f32.gmra.mxu1 %vm817_vm5, %v11366_v42 }
 0x2f8   : > { %v541_v20 = vmul.f32 %v11550_v57, %v13434_v45  ;;  %v13530_v46 = vmax.f32 %v13529_v13, 0.0  ;;  %v4998_v50 = vadd.f32 %v4966_v29, %v11125_v35  ;;  %v4849_v21 = vmul.f32 %v11536_v44, %v7339_v30 }
 0x2f9   : > { %v4570_v52 = vadd.f32 %v4569_v54, %v4568_v60  ;;  %v4948_v37 = vmax.f32 %v11455_v7, 0.0  ;;  %v4997_v15 = vadd.f32 %v4965_v9, %v11119_v41  ;;  %v4775_v45 = vadd.f32 %v4774_v59, %v13531_v39  ;;  %5362 = vmatpush.msra.mxu0 %v4988_v33  ;;  %v13533_v33 = vld [vmem:[#allocation76_spill] sm:$0xff]  ;;  %6396 = vmatmul.msk.f32.gmra.mxu2 %vm817_vm5, %v11366_v42 }
 0x2fa   : > { %v3934_v49 = vadd.f32 %v13530_v46, %v13528_v17  ;;  %v573_v61 = vadd.f32 %v541_v20, %v7399_v4  ;;  %v4575_v38 = vadd.f32 %v4574_v22, %v4573_v26  ;;  %v4959_v35 = vmax.f32 %v11528_v53, 0.0  ;;  %5419 = vmatpush.msra.mxu2 %v4998_v50  ;;  %v4748_v46 = vpop.f32.mrf.mxu0  ;;  %6401 = vmatmul.msk.f32.gmra.mxu3 %vm817_vm5, %v11366_v42  ;;  %v13581_v53 = vld [vmem:[#allocation57_spill] sm:$0xff] }
 0x2fb   : > { %v4880_v10 = vadd.f32 %v4848_v58, %v4746_v43  ;;  %v4571_v1 = vrot.slane %v4570_v52, 1  ;;  %v13532_v60 = vmax.f32 %v11038_v24, 0.0  ;;  %v4881_v7 = vadd.f32 %v4849_v21, %v4775_v45  ;;  %5390 = vmatpush.msra.mxu1 %v4997_v15 }
 0x2fc   : > { %v605_v41 = vmax.f32 %v573_v61, 0.0  ;;  %v4576_v6 = vrot.slane %v4575_v38, 2  ;;  %v13535_v29 = vmax.f32 %v13534_v47, 0.0  ;;  %v4804_v43 = vadd.f32 %v4803_v23, %v11161_v18  ;;  %v13537_v23 = vld [vmem:[#allocation73_spill] sm:$0xff]  ;;  %v4777_v45 = vpop.f32.mrf.mxu1  ;;  %v13540_v61 = vld [vmem:[#allocation74_spill] sm:$0xff] }
 0x2fd   : > { %v4460_v0 = vadd.f32 %v13532_v60, %v3934_v49  ;;  %v11577_v2 = vadd.f32 %v4571_v1, %v4570_v52  ;;  %v4949_v22 = vmax.f32 %v11474_v55, 0.0  ;;  %v4958_v24 = vmax.f32 %v11544_v16, 0.0  ;;  %5391 = vmatpush.msra.mxu1 %v4989_v56 }
 0x2fe   : > { %v3935_v26 = vadd.f32 %v13535_v29, %v13533_v33  ;;  %v637_v9 = vsub.f32 0.0, %v605_v41  ;;  %v4577_v58 = vadd.f32 %v4576_v6, %v4575_v38  ;;  %v13536_v17 = vmax.f32 %v11045_v3, 0.0  ;;  %v13538_v3 = vld [vmem:[#allocation101_spill] sm:$0xff]  ;;  %v13541_v38 = vld [vmem:[#allocation75_spill] sm:$0xff]  ;;  %v13545_v33 = vld [vmem:[#allocation64_spill] sm:$0xff] }
 0x2ff   : > { %v4980_v54 = vadd.f32 %v4948_v37, %v4460_v0  ;;  %v11589_v18 = vadd.f32 %v4880_v10, %v7399_v4  ;;  %v4850_v55 = vmul.f32 %v11577_v2, %v7339_v30  ;;  %v4749_v49 = vadd.f32 %v4748_v46, %v13537_v23  ;;  %v4806_v37 = vpop.f32.mrf.mxu2  ;;  %v13543_v0 = vld [vmem:[#allocation134_spill] sm:$0xff] }
 0x300   : > { %v4461_v13 = vadd.f32 %v13536_v17, %v3935_v26  ;;  %v4856_v56 = vmul.f32 %v11532_v48, %v12913_v34  ;;  %v11597_v50 = vadd.f32 %v4881_v7, %v7399_v4  ;;  %v13539_v59 = vmax.f32 %v13538_v3, 0.0  ;;  %v13546_v29 = vld [vmem:[#allocation142_spill] sm:$0xff]  ;;  %v13547_v26 = vld [vmem:[#allocation56_spill] sm:$0xff]  ;;  %v13549_v17 = vld [vmem:[#allocation33_spill] sm:$0xff] }
 0x301   : > { %5363 = vmatpush.msra.mxu0 %v4980_v54  ;;  %v4578_v52 = vrot.slane %v4577_v58, 1  ;;  %v4882_v15 = vadd.f32 %v4850_v55, %v4804_v43  ;;  %v13542_v10 = vmax.f32 %v13541_v38, 0.0  ;;  %v4940_v60 = vmax.f32 %v11445_v40, 0.0  ;;  %v13553_v3 = vld [vmem:[#allocation53_spill] sm:$0xff]  ;;  %v13556_v38 = vld [vmem:[#allocation31_spill] sm:$0xff] }
 0x302   : > { %v1213_v21 = vadd.f32 %v13539_v59, %v637_v9  ;;  %v4981_v42 = vadd.f32 %v4949_v22, %v4461_v13  ;;  %v4888_v39 = vadd.f32 %v4856_v56, %v4749_v49  ;;  %v13544_v41 = vmax.f32 %v13543_v0, 0.0  ;;  %v4835_v59 = vpop.f32.mrf.mxu3  ;;  %v13558_v0 = vld [vmem:[#allocation97_spill] sm:$0xff] }
 0x303   : > { %v3926_v1 = vadd.f32 %v13542_v10, %v13540_v61  ;;  %v11607_v7 = vadd.f32 %v4578_v52, %v4577_v58  ;;  %v4778_v47 = vadd.f32 %v4777_v45, %v13545_v33  ;;  %v13548_v54 = vmax.f32 %v13547_v26, 0.0  ;;  %v13551_v58 = vld [vmem:[#allocation158_spill] sm:$0xff]  ;;  %v13555_v61 = vld [vmem:[#allocation35_spill] sm:$0xff] }
 0x304   : > { %v1769_v6 = vadd.f32 %v13544_v41, %v1213_v21  ;;  %5392 = vmatpush.msra.mxu1 %v4981_v42  ;;  %v4833_v22 = vadd.f32 %v4832_v25, %v541_v20  ;;  %v4857_v9 = vmul.f32 %v11536_v44, %v12913_v34  ;;  %v13550_v13 = vmax.f32 %v13549_v17, 0.0  ;;  %v13559_v41 = vld [vmem:[#allocation125_spill] sm:$0xff]  ;;  %v13561_v33 = vld [vmem:[#allocation119_spill] sm:$0xff]  ;;  %v13564_v17 = vld [vmem:[#allocation86_spill] sm:$0xff] }
 0x305   : > { %v3927_v43 = vadd.f32 %v13548_v54, %v13546_v29  ;;  %v4941_v40 = vmax.f32 %v11449_v8, 0.0  ;;  %v11619_v55 = vadd.f32 %v4882_v15, %v7399_v4  ;;  %v13552_v23 = vmax.f32 %v13551_v58, 0.0  ;;  %v11635_v8 = vld [vmem:[%s12260_s5] sm:$0xff] }
 0x306   : > { %v4452_v46 = vadd.f32 %v13550_v13, %v3926_v1  ;;  %v11626_v56 = vadd.f32 %v4888_v39, %v7474_v51  ;;  %v13554_v20 = vmax.f32 %v13553_v3, 0.0  ;;  %v4944_v21 = vmax.f32 %v11589_v18, 0.0  ;;  %v13562_v29 = vld [vmem:[#allocation52_spill] sm:$0xff]  ;;  %v13565_v13 = vld [vmem:[#allocation91_spill] sm:$0xff]  ;;  %v13660_v18 = vld [vmem:[#allocation122_spill] sm:$0xff] }
 0x307   : > { %v11623_v49 = vadd.f32 %v13552_v23, %v1769_v6  ;;  %v4945_v52 = vmax.f32 %v11597_v50, 0.0  ;;  %v4851_v15 = vmul.f32 %v11607_v7, %v7339_v30  ;;  %v4889_v39 = vadd.f32 %v4857_v9, %v4778_v47 }
 0x308   : > { %v4453_v25 = vadd.f32 %v13554_v20, %v3927_v43  ;;  %v4972_v42 = vadd.f32 %v4940_v60, %v4452_v46  ;;  %v13557_v10 = vmax.f32 %v13556_v38, 0.0  ;;  %v13560_v6 = vmax.f32 %v13559_v41, 0.0  ;;  %v4751_v20 = vpop.f32.mrf.mxu0 }
 0x309   : > { %v13563_v26 = vmax.f32 %v13562_v29, 0.0  ;;  %v4950_v43 = vmax.f32 %v11461_v12, 0.0  ;;  %v13566_v30 = vmax.f32 %v13565_v13, 0.0  ;;  %v4946_v9 = vmax.f32 %v11619_v55, 0.0  ;;  %v13569_v12 = vld [vmem:[#allocation44_spill] sm:$0xff]  ;;  %v4780_v13 = vpop.f32.mrf.mxu1 }
 0x30a   : > { %v4973_v45 = vadd.f32 %v4941_v40, %v4453_v25  ;;  %v3944_v1 = vadd.f32 %v13557_v10, %v13555_v61  ;;  %5364 = vmatpush.msra.mxu0 %v4972_v42  ;;  %v3945_v60 = vadd.f32 %v13560_v6, %v13558_v0  ;;  %v4952_v46 = vmax.f32 %v11626_v56, 0.0  ;;  %v13567_v40 = vld [vmem:[#allocation104_spill] sm:$0xff]  ;;  %v13571_v61 = vld [vmem:[#allocation143_spill] sm:$0xff] }
 0x30b   : > { %v3936_v54 = vadd.f32 %v13563_v26, %v13561_v33  ;;  %v3937_v47 = vadd.f32 %v13566_v30, %v13564_v17  ;;  %6402 = vmatmul.msk.f32.vlgmr.msra.gmra.mxu0 %vm5336_vm6, %v11635_v8  ;;  %v13568_v58 = vmax.f32 %v13567_v40, 0.0  ;;  %v4951_v3 = vmax.f32 %v11494_v32, 0.0  ;;  %v13573_v0 = vld [vmem:[#allocation71_spill] sm:$0xff]  ;;  %v13576_v26 = vld [vmem:[#allocation40_spill] sm:$0xff] }
 0x30c   : > { %5393 = vmatpush.msra.mxu1 %v4973_v45  ;;  %v13570_v25 = vmax.f32 %v13569_v12, 0.0  ;;  %v13572_v38 = vmax.f32 %v13571_v61, 0.0  ;;  %v13574_v45 = vmax.f32 %v13573_v0, 0.0  ;;  %v13575_v6 = vld [vmem:[#allocation111_spill] sm:$0xff]  ;;  %v4883_v29 = vadd.f32 %v4851_v15, %v4833_v22  ;;  %v13577_v15 = vld [vmem:[#allocation30_spill] sm:$0xff]  ;;  %v11691_v61 = vld [vmem:[%s12260_s5 + $0x8] sm:$0xff] }
 0x30d   : > { %v4470_v23 = vadd.f32 %v13568_v58, %v3944_v1  ;;  %6406 = vmatmul.msk.f32.vlgmr.msra.gmra.mxu1 %vm5336_vm6, %v11635_v8  ;;  %v4807_v33 = vadd.f32 %v4806_v37, %v13575_v6  ;;  %v4858_v32 = vmul.f32 %v11577_v2, %v12913_v34  ;;  %v549_v17 = vmul.f32 %v11550_v57, %v13576_v26  ;;  %v13586_v6 = vld [vmem:[#allocation43_spill] sm:$0xff] }
 0x30e   : > { %v4471_v42 = vadd.f32 %v13570_v25, %v3945_v60  ;;  %v4462_v10 = vadd.f32 %v13572_v38, %v3936_v54  ;;  %v4463_v41 = vadd.f32 %v13574_v45, %v3937_v47  ;;  %v4809_v60 = vpop.f32.mrf.mxu2  ;;  %v4859_v37 = vmul.f32 %v11607_v7, %v12913_v34  ;;  %v13578_v47 = vld [vmem:[#allocation82_spill] sm:$0xff]  ;;  %v13580_v25 = vld [vmem:[#allocation80_spill] sm:$0xff] }
 0x30f   : > { %v4990_v1 = vadd.f32 %v4958_v24, %v4470_v23  ;;  %v4890_v22 = vadd.f32 %v4858_v32, %v4807_v33  ;;  %v581_v16 = vadd.f32 %v549_v17, %v7474_v51  ;;  %v4836_v24 = vadd.f32 %v4835_v59, %v549_v17 }
 0x310   : > { %v4991_v54 = vadd.f32 %v4959_v35, %v4471_v42  ;;  %v4982_v30 = vadd.f32 %v4950_v43, %v4462_v10  ;;  %v4983_v40 = vadd.f32 %v4951_v3, %v4463_v41  ;;  %v13579_v58 = vmax.f32 %v13578_v47, 0.0  ;;  %v13583_v42 = vld [vmem:[#allocation69_spill] sm:$0xff]  ;;  %v4838_v41 = vpop.f32.mrf.mxu3 }
 0x311   : > { %5420 = vmatpush.msra.mxu2 %v4990_v1  ;;  %v4942_v12 = vmax.f32 %v11452_v28, 0.0  ;;  %v13582_v35 = vmax.f32 %v13581_v53, 0.0  ;;  %v4943_v3 = vmax.f32 %v11471_v14, 0.0  ;;  %v4752_v34 = vadd.f32 %v4751_v20, %v13583_v42  ;;  %v13584_v28 = vld [vmem:[#allocation81_spill] sm:$0xff]  ;;  %v13588_v1 = vld [vmem:[#allocation127_spill] sm:$0xff] }
 0x312   : > { %v3928_v23 = vadd.f32 %v13579_v58, %v13577_v15  ;;  %5449 = vmatpush.msra.mxu3 %v4991_v54  ;;  %v11694_v59 = vadd.f32 %v4889_v39, %v7474_v51  ;;  %v613_v38 = vmax.f32 %v581_v16, 0.0  ;;  %v4891_v10 = vadd.f32 %v4859_v37, %v4836_v24 }
 0x313   : > { %v3929_v43 = vadd.f32 %v13582_v35, %v13580_v25  ;;  %5421 = vmatpush.msra.mxu2 %v4982_v30  ;;  %v13585_v0 = vmax.f32 %v13584_v28, 0.0  ;;  %v13587_v14 = vmax.f32 %v13586_v6, 0.0  ;;  %v4864_v20 = vmul.f32 %v11532_v48, %v12863_v62  ;;  %6403 = vmatmul.msk.f32.gmra.mxu0 %vm5336_vm6, %v11691_v61 }
 0x314   : > { %5450 = vmatpush.msra.mxu3 %v4983_v40  ;;  %v4781_v32 = vadd.f32 %v4780_v13, %v13588_v1  ;;  %v4865_v39 = vmul.f32 %v11536_v44, %v12863_v62  ;;  %v11706_v26 = vadd.f32 %v4890_v22, %v7474_v51  ;;  %v645_v17 = vsub.f32 0.0, %v613_v38  ;;  %v13589_v22 = vld [vmem:[#allocation105_spill] sm:$0xff] }
 0x315   : > { %v4454_v45 = vadd.f32 %v13585_v0, %v3928_v23  ;;  %v4455_v33 = vadd.f32 %v13587_v14, %v3929_v43  ;;  %v11709_v54 = vadd.f32 %v4891_v10, %v7474_v51  ;;  %v4896_v37 = vadd.f32 %v4864_v20, %v4752_v34  ;;  %6407 = vmatmul.msk.f32.gmra.mxu1 %vm5336_vm6, %v11691_v61  ;;  %v4754_v23 = vpop.f32.mrf.mxu0  ;;  %v13593_v10 = vld [vmem:[#allocation42_spill] sm:$0xff] }
 0x316   : > { %v4897_v16 = vadd.f32 %v4865_v39, %v4781_v32  ;;  %v4810_v13 = vadd.f32 %v4809_v60, %v11265_v27  ;;  %v11717_v24 = vadd.f32 %v4883_v29, %v7399_v4  ;;  %v13590_v15 = vmax.f32 %v13589_v22, 0.0  ;;  %v13591_v29 = vld [vmem:[#allocation135_spill] sm:$0xff]  ;;  %v4812_v42 = vpop.f32.mrf.mxu2  ;;  %v11747_v0 = vld [vmem:[%s12260_s5 + $0x10] sm:$0xff] }
 0x317   : > { %v4974_v30 = vadd.f32 %v4942_v12, %v4454_v45  ;;  %v4975_v40 = vadd.f32 %v4943_v3, %v4455_v33  ;;  %v4866_v51 = vmul.f32 %v11577_v2, %v12863_v62  ;;  %v557_v58 = vmul.f32 %v11550_v57, %v12857_v5  ;;  %v4783_v3 = vpop.f32.mrf.mxu1  ;;  %v13594_v45 = vld [vmem:[#allocation163_spill] sm:$0xff] }
 0x318   : > { %v1221_v47 = vadd.f32 %v13590_v15, %v645_v17  ;;  %v4953_v12 = vmax.f32 %v11694_v59, 0.0  ;;  %v4928_v25 = vadd.f32 %v4896_v37, %v12841_v11  ;;  %v11728_v27 = vadd.f32 %v4897_v16, %v12841_v11  ;;  %v13596_v32 = vld [vmem:[#allocation183_spill] sm:$0xff] }
 0x319   : > { %5422 = vmatpush.msra.mxu2 %v4974_v30  ;;  %5451 = vmatpush.msra.mxu3 %v4975_v40  ;;  %v4867_v4 = vmul.f32 %v11607_v7, %v12863_v62  ;;  %v13592_v60 = vmax.f32 %v13591_v29, 0.0  ;;  %v4898_v5 = vadd.f32 %v4866_v51, %v4810_v13  ;;  %v589_v35 = vadd.f32 %v557_v58, %v12841_v11  ;;  %v4841_v13 = vpop.f32.mrf.mxu3  ;;  %v13685_v59 = vld [vmem:[#allocation175_spill] sm:$0xff] }
 0x31a   : > { %6410 = vmatmul.msk.f32.vlgmr.msra.gmra.mxu2 %vm5336_vm6, %v11635_v8  ;;  %6414 = vmatmul.msk.f32.vlgmr.msra.gmra.mxu3 %vm5336_vm6, %v11635_v8  ;;  %v4839_v43 = vadd.f32 %v4838_v41, %v557_v58  ;;  %v4954_v34 = vmax.f32 %v11706_v26, 0.0  ;;  %v4955_v38 = vmax.f32 %v11709_v54, 0.0  ;;  %v4755_v28 = vadd.f32 %v4754_v23, %v13593_v10  ;;  %v13607_v10 = vld [vmem:[#allocation176_spill] sm:$0xff] }
 0x31b   : > { %v1777_v53 = vadd.f32 %v13592_v60, %v1221_v47  ;;  %v4872_v62 = vmul.f32 %v11532_v48, %v12812_v63  ;;  %v13595_v6 = vmax.f32 %v13594_v45, 0.0  ;;  %v4960_v41 = vmax.f32 %v4928_v25, 0.0  ;;  %6404 = vmatmul.msk.f32.gmra.mxu0 %vm5336_vm6, %v11747_v0  ;;  %v13597_v47 = vld [vmem:[#allocation108_spill] sm:$0xff] }
 0x31c   : > { %v621_v33 = vmax.f32 %v589_v35, 0.0  ;;  %v4899_v20 = vadd.f32 %v4867_v4, %v4839_v43  ;;  %v4784_v39 = vadd.f32 %v4783_v3, %v13596_v32  ;;  %v4873_v17 = vmul.f32 %v11536_v44, %v12812_v63  ;;  %v13599_v25 = vld [vmem:[#allocation152_spill] sm:$0xff]  ;;  %v11798_v32 = vld [vmem:[%s12260_s5 + $0x18] sm:$0xff] }
 0x31d   : > { %v11751_v14 = vadd.f32 %v13595_v6, %v1777_v53  ;;  %v4904_v1 = vadd.f32 %v4872_v62, %v4755_v28  ;;  %v4813_v48 = vadd.f32 %v4812_v42, %v11320_v36  ;;  %v4961_v30 = vmax.f32 %v11728_v27, 0.0  ;;  %6408 = vmatmul.msk.f32.gmra.mxu1 %vm5336_vm6, %v11747_v0  ;;  %v13600_v27 = vld [vmem:[#allocation182_spill] sm:$0xff]  ;;  %v13606_v42 = vld [vmem:[#allocation137_spill] sm:$0xff]  ;;  %v13609_v45 = vld [vmem:[#allocation156_spill] sm:$0xff] }
 0x31e   : > { %v11759_v40 = vadd.f32 %v4898_v5, %v12841_v11  ;;  %v653_v37 = vsub.f32 0.0, %v621_v33  ;;  %v4874_v16 = vmul.f32 %v11577_v2, %v12812_v63  ;;  %v11766_v22 = vadd.f32 %v4899_v20, %v12841_v11 }
 0x31f   : > { %v4936_v44 = vadd.f32 %v4904_v1, %v12798_v31  ;;  %v4905_v15 = vadd.f32 %v4873_v17, %v4784_v39  ;;  %v565_v36 = vmul.f32 %v11550_v57, %v7160_v19  ;;  %v13598_v51 = vmax.f32 %v13597_v47, 0.0  ;;  %v13602_v57 = vld [vmem:[#allocation141_spill] sm:$0xff]  ;;  %v13610_v39 = vld [vmem:[#allocation168_spill] sm:$0xff] }
 0x320   : > { %v4906_v23 = vadd.f32 %v4874_v16, %v4813_v48  ;;  %v4875_v2 = vmul.f32 %v11607_v7, %v12812_v63  ;;  %v13601_v11 = vmax.f32 %v13600_v27, 0.0  ;;  %v13603_v5 = vmax.f32 %v13602_v57, 0.0  ;;  %v13604_v7 = vld [vmem:[#allocation93_spill] sm:$0xff] }
 0x321   : > { %v1229_v58 = vadd.f32 %v13598_v51, %v653_v37  ;;  %v4968_v29 = vmax.f32 %v4936_v44, 0.0  ;;  %v4937_v60 = vadd.f32 %v4905_v15, %v12798_v31  ;;  %v597_v53 = vadd.f32 %v565_v36, %v12798_v31 }
 0x322   : > { %v3946_v4 = vadd.f32 %v13601_v11, %v13599_v25  ;;  %6411 = vmatmul.msk.f32.gmra.mxu2 %vm5336_vm6, %v11691_v61  ;;  %v4842_v19 = vadd.f32 %v4841_v13, %v565_v36  ;;  %6415 = vmatmul.msk.f32.gmra.mxu3 %vm5336_vm6, %v11691_v61  ;;  %v4938_v63 = vadd.f32 %v4906_v23, %v12798_v31  ;;  %v13605_v43 = vmax.f32 %v13604_v7, 0.0  ;;  %v13612_v13 = vld [vmem:[#allocation148_spill] sm:$0xff]  ;;  %v13614_v36 = vld [vmem:[#allocation133_spill] sm:$0xff] }
 0x323   : > { %v1785_v35 = vadd.f32 %v13603_v5, %v1229_v58  ;;  %v13608_v28 = vmax.f32 %v13607_v10, 0.0  ;;  %v5000_v6 = vadd.f32 %v4968_v29, %v13609_v45  ;;  %v4969_v33 = vmax.f32 %v4937_v60, 0.0  ;;  %v13615_v23 = vld [vmem:[#allocation113_spill] sm:$0xff]  ;;  %6405 = vmatmul.msk.f32.gmra.mxu0 %vm5336_vm6, %v11798_v32 }
 0x324   : > { %v4472_v3 = vadd.f32 %v13605_v43, %v3946_v4  ;;  %v629_v20 = vmax.f32 %v597_v53, 0.0  ;;  %v4907_v1 = vadd.f32 %v4875_v2, %v4842_v19  ;;  %v13611_v17 = vmax.f32 %v13610_v39, 0.0  ;;  %v13616_v2 = vld [vmem:[#allocation89_spill] sm:$0xff]  ;;  %v13621_v53 = vld [vmem:[#allocation103_spill] sm:$0xff] }
 0x325   : > { %v2877_v62 = vadd.f32 %v13608_v28, %v13606_v42  ;;  %v4970_v37 = vmax.f32 %v4938_v63, 0.0  ;;  %v13613_v44 = vmax.f32 %v13612_v13, 0.0  ;;  %v5001_v47 = vadd.f32 %v4969_v33, %v13614_v36  ;;  %5477 = vmatpush.msrb.mxu0 %v5000_v6  ;;  %v13618_v11 = vld [vmem:[#allocation161_spill] sm:$0xff]  ;;  %6409 = vmatmul.msk.f32.gmra.mxu1 %vm5336_vm6, %v11798_v32  ;;  %v13629_v28 = vld [vmem:[#allocation83_spill] sm:$0xff]  ;;  %v13631_v6 = vld [vmem:[#allocation132_spill] sm:$0xff] }
 0x326   : > { %v2335_v48 = vadd.f32 %v13611_v17, %v1785_v35  ;;  %v4992_v16 = vadd.f32 %v4960_v41, %v4472_v3  ;;  %v661_v51 = vsub.f32 0.0, %v629_v20  ;;  %v11806_v58 = vadd.f32 %v4907_v1, %v12798_v31  ;;  %v13619_v41 = vld [vmem:[#allocation107_spill] sm:$0xff]  ;;  %v13622_v19 = vld [vmem:[#allocation117_spill] sm:$0xff]  ;;  %v13624_v35 = vld [vmem:[#allocation32_spill] sm:$0xff] }
 0x327   : > { %v3415_v15 = vadd.f32 %v13613_v44, %v2877_v62  ;;  %v13617_v25 = vmax.f32 %v13616_v2, 0.0  ;;  %v5002_v4 = vadd.f32 %v4970_v37, %v13618_v11  ;;  %v13620_v29 = vmax.f32 %v13619_v41, 0.0  ;;  %v13625_v31 = vld [vmem:[#allocation115_spill] sm:$0xff]  ;;  %v13627_v3 = vld [vmem:[#allocation50_spill] sm:$0xff]  ;;  %v13632_v33 = vld [vmem:[#allocation112_spill] sm:$0xff]  ;;  %5506 = vmatpush.msrb.mxu1 %v5001_v47 }
 0x328   : > { %v13623_v57 = vmax.f32 %v13622_v19, 0.0  ;;  %v13626_v63 = vmax.f32 %v13625_v31, 0.0  ;;  %v4962_v43 = vmax.f32 %v11759_v40, 0.0  ;;  %v13628_v42 = vmax.f32 %v13627_v3, 0.0  ;;  %5478 = vmatpush.msrb.mxu0 %v4992_v16  ;;  %v13634_v17 = vld [vmem:[#allocation138_spill] sm:$0xff]  ;;  %v13638_v36 = vld [vmem:[#allocation68_spill] sm:$0xff] }
 0x329   : > { %v3938_v27 = vadd.f32 %v13617_v25, %v13615_v23  ;;  %v3947_v60 = vadd.f32 %v13620_v29, %v3415_v15  ;;  %v13630_v62 = vmax.f32 %v13629_v28, 0.0  ;;  %v13633_v20 = vmax.f32 %v13632_v33, 0.0  ;;  %v13636_v13 = vld [vmem:[#allocation78_spill] sm:$0xff]  ;;  %5535 = vmatpush.msrb.mxu2 %v5002_v4  ;;  %v13640_v16 = vld [vmem:[#allocation37_spill] sm:$0xff]  ;;  %v13642_v47 = vld [vmem:[#allocation55_spill] sm:$0xff] }
 0x32a   : > { %v2869_v5 = vadd.f32 %v13623_v57, %v13621_v53  ;;  %v3930_v7 = vadd.f32 %v13626_v63, %v13624_v35  ;;  %v1237_v10 = vadd.f32 %v13628_v42, %v661_v51  ;;  %v4963_v39 = vmax.f32 %v11766_v22, 0.0  ;;  %6412 = vmatmul.msk.f32.gmra.mxu2 %vm5336_vm6, %v11747_v0  ;;  %v13644_v41 = vld [vmem:[#allocation39_spill] sm:$0xff]  ;;  %v13645_v29 = vld [vmem:[#allocation177_spill] sm:$0xff]  ;;  %6416 = vmatmul.msk.f32.gmra.mxu3 %vm5336_vm6, %v11747_v0  ;;  %v13647_v19 = vld [vmem:[#allocation96_spill] sm:$0xff] }
 0x32b   : > { %v4464_v45 = vadd.f32 %v13630_v62, %v3938_v27  ;;  %v2861_v1 = vadd.f32 %v13633_v20, %v13631_v6  ;;  %v13635_v37 = vmax.f32 %v13634_v17, 0.0  ;;  %v13637_v44 = vmax.f32 %v13636_v13, 0.0  ;;  %v13649_v31 = vld [vmem:[#allocation178_spill] sm:$0xff]  ;;  %v13651_v63 = vld [vmem:[#allocation99_spill] sm:$0xff]  ;;  %v13658_v33 = vld [vmem:[#allocation45_spill] sm:$0xff] }
 0x32c   : > { %v13639_v51 = vmax.f32 %v13638_v36, 0.0  ;;  %v13641_v2 = vmax.f32 %v13640_v16, 0.0  ;;  %v13643_v27 = vmax.f32 %v13642_v47, 0.0  ;;  %v13648_v57 = vmax.f32 %v13647_v19, 0.0  ;;  %v13653_v42 = vld [vmem:[#allocation54_spill] sm:$0xff]  ;;  %v13664_v13 = vld [vmem:[#allocation173_spill] sm:$0xff] }
 0x32d   : > { %v4473_v40 = vadd.f32 %v13635_v37, %v3947_v60  ;;  %v3407_v15 = vadd.f32 %v13637_v44, %v2869_v5  ;;  %v4984_v22 = vadd.f32 %v4952_v46, %v4464_v45  ;;  %v13646_v60 = vmax.f32 %v13645_v29, 0.0  ;;  %v13655_v62 = vld [vmem:[#allocation102_spill] sm:$0xff]  ;;  %v13662_v37 = vld [vmem:[#allocation136_spill] sm:$0xff] }
 0x32e   : > { %v4456_v23 = vadd.f32 %v13639_v51, %v3930_v7  ;;  %v1793_v25 = vadd.f32 %v13641_v2, %v1237_v10  ;;  %v3399_v11 = vadd.f32 %v13643_v27, %v2861_v1  ;;  %v13650_v56 = vmax.f32 %v13649_v31, 0.0  ;;  %v13666_v36 = vld [vmem:[#allocation150_spill] sm:$0xff]  ;;  %v13667_v51 = vld [vmem:[#allocation87_spill] sm:$0xff]  ;;  %v13671_v47 = vld [vmem:[#allocation180_spill] sm:$0xff] }
 0x32f   : > { %v2878_v53 = vadd.f32 %v13646_v60, %v13644_v41  ;;  %v4993_v4 = vadd.f32 %v4961_v30, %v4473_v40  ;;  %v3939_v5 = vadd.f32 %v13648_v57, %v3407_v15  ;;  %v13652_v7 = vmax.f32 %v13651_v63, 0.0  ;;  %5479 = vmatpush.msrb.mxu0 %v4984_v22  ;;  %v13657_v30 = vld [vmem:[#allocation164_spill] sm:$0xff]  ;;  %v13669_v2 = vld [vmem:[#allocation67_spill] sm:$0xff]  ;;  %v13673_v41 = vld [vmem:[#allocation166_spill] sm:$0xff] }
 0x330   : > { %v4976_v35 = vadd.f32 %v4944_v21, %v4456_v23  ;;  %v2879_v46 = vadd.f32 %v13650_v56, %v2335_v48  ;;  %v13654_v10 = vmax.f32 %v13653_v42, 0.0  ;;  %v13656_v45 = vmax.f32 %v13655_v62, 0.0  ;;  %v13677_v57 = vld [vmem:[#allocation72_spill] sm:$0xff]  ;;  %v13679_v56 = vld [vmem:[#allocation95_spill] sm:$0xff]  ;;  %v13681_v63 = vld [vmem:[#allocation118_spill] sm:$0xff] }
 0x331   : > { %v2343_v3 = vadd.f32 %v13652_v7, %v1793_v25  ;;  %v13659_v20 = vmax.f32 %v13658_v33, 0.0  ;;  %5507 = vmatpush.msrb.mxu1 %v4993_v4  ;;  %v13661_v21 = vmax.f32 %v13660_v18, 0.0  ;;  %v13663_v48 = vmax.f32 %v13662_v37, 0.0  ;;  %v13683_v42 = vld [vmem:[#allocation51_spill] sm:$0xff] }
 0x332   : > { %v3931_v28 = vadd.f32 %v13654_v10, %v3399_v11  ;;  %v3416_v6 = vadd.f32 %v13656_v45, %v2878_v53  ;;  %v13665_v44 = vmax.f32 %v13664_v13, 0.0  ;;  %v13668_v23 = vmax.f32 %v13667_v51, 0.0  ;;  %5480 = vmatpush.msrb.mxu0 %v4976_v35  ;;  %v13675_v53 = vld [vmem:[#allocation62_spill] sm:$0xff]  ;;  %6413 = vmatmul.msk.f32.gmra.mxu2 %vm5336_vm6, %v11798_v32 }
 0x333   : > { %v2870_v1 = vadd.f32 %v13659_v20, %v13657_v30  ;;  %v4465_v17 = vadd.f32 %v13661_v21, %v3939_v5  ;;  %v3417_v40 = vadd.f32 %v13663_v48, %v2879_v46  ;;  %v13670_v25 = vmax.f32 %v13669_v2, 0.0  ;;  %6418 = vmatmul.msk.f32.vlgmr.msrb.gmra.mxu0 %vm5336_vm6, %v11635_v8  ;;  %v13689_v20 = vld [vmem:[#allocation48_spill] sm:$0xff]  ;;  %v13691_v21 = vld [vmem:[#allocation155_spill] sm:$0xff]  ;;  %v13693_v48 = vld [vmem:[#allocation66_spill] sm:$0xff]  ;;  %6417 = vmatmul.msk.f32.gmra.mxu3 %vm5336_vm6, %v11798_v32 }
 0x334   : > { %v2871_v15 = vadd.f32 %v13665_v44, %v11751_v14  ;;  %v2862_v16 = vadd.f32 %v13668_v23, %v13666_v36  ;;  %v13672_v27 = vmax.f32 %v13671_v47, 0.0  ;;  %v13674_v29 = vmax.f32 %v13673_v41, 0.0  ;;  %v13695_v44 = vld [vmem:[#allocation65_spill] sm:$0xff] }
 0x335   : > { %v2887_v22 = vadd.f32 %v13670_v25, %v2343_v3  ;;  %v13676_v4 = vmax.f32 %v13675_v53, 0.0  ;;  %v4985_v14 = vadd.f32 %v4953_v12, %v4465_v17  ;;  %v13678_v5 = vmax.f32 %v13677_v57, 0.0  ;;  %v13699_v2 = vld [vmem:[#allocation129_spill] sm:$0xff]  ;;  %v13705_v53 = vld [vmem:[#allocation114_spill] sm:$0xff] }
 0x336   : > { %v4457_v11 = vadd.f32 %v13672_v27, %v3931_v28  ;;  %v3948_v60 = vadd.f32 %v13674_v29, %v3416_v6  ;;  %v13680_v35 = vmax.f32 %v13679_v56, 0.0  ;;  %v13682_v7 = vmax.f32 %v13681_v63, 0.0  ;;  %v13687_v6 = vld [vmem:[#allocation149_spill] sm:$0xff]  ;;  %v13710_v63 = vld [vmem:[#allocation120_spill] sm:$0xff] }
 0x337   : > { %v3408_v19 = vadd.f32 %v13676_v4, %v2870_v1  ;;  %v3949_v31 = vadd.f32 %v13678_v5, %v3417_v40  ;;  %v13684_v10 = vmax.f32 %v13683_v42, 0.0  ;;  %v13686_v12 = vmax.f32 %v13685_v59, 0.0  ;;  %5508 = vmatpush.msrb.mxu1 %v4985_v14  ;;  %v13701_v27 = vld [vmem:[#allocation157_spill] sm:$0xff] }
 0x338   : > { %v3409_v46 = vadd.f32 %v13680_v35, %v2871_v15  ;;  %v3400_v3 = vadd.f32 %v13682_v7, %v2862_v16  ;;  %v4977_v62 = vadd.f32 %v4945_v52, %v4457_v11  ;;  %v13688_v30 = vmax.f32 %v13687_v6, 0.0  ;;  %v13697_v15 = vld [vmem:[#allocation109_spill] sm:$0xff] }
 0x339   : > { %v3425_v28 = vadd.f32 %v13684_v10, %v2887_v22  ;;  %v4474_v45 = vadd.f32 %v13686_v12, %v3948_v60  ;;  %v13690_v1 = vmax.f32 %v13689_v20, 0.0  ;;  %v13692_v17 = vmax.f32 %v13691_v21, 0.0  ;;  %v13703_v41 = vld [vmem:[#allocation41_spill] sm:$0xff]  ;;  %v5121_v55 = vpop.f32.mrf.mxu0 }
 0x33a   : > { %v3940_v33 = vadd.f32 %v13688_v30, %v3408_v19  ;;  %v13694_v40 = vmax.f32 %v13693_v48, 0.0  ;;  %v13696_v50 = vmax.f32 %v13695_v44, 0.0  ;;  %v13698_v36 = vmax.f32 %v13697_v15, 0.0  ;;  %5509 = vmatpush.msrb.mxu1 %v4977_v62  ;;  %v13706_v4 = vld [vmem:[#allocation145_spill] sm:$0xff] }
 0x33b   : > { %v4475_v18 = vadd.f32 %v13690_v1, %v3949_v31  ;;  %v3941_v37 = vadd.f32 %v13692_v17, %v3409_v46  ;;  %v4971_v23 = vmax.f32 %v11806_v58, 0.0  ;;  %v4994_v16 = vadd.f32 %v4962_v43, %v4474_v45  ;;  %6422 = vmatmul.msk.f32.vlgmr.msrb.gmra.mxu1 %vm5336_vm6, %v11635_v8  ;;  %v13708_v57 = vld [vmem:[#allocation85_spill] sm:$0xff]  ;;  %6419 = vmatmul.msk.f32.gmra.mxu0 %vm5336_vm6, %v11691_v61 }
 0x33c   : > { %v3932_v13 = vadd.f32 %v13694_v40, %v3400_v3  ;;  %v2863_v52 = vadd.f32 %v13696_v50, %v11623_v49  ;;  %v3957_v51 = vadd.f32 %v13698_v36, %v3425_v28  ;;  %v13700_v25 = vmax.f32 %v13699_v2, 0.0  ;;  %v12019_v2 = vpop.permute.xlu0 %5025 }
 0x33d   : > { %v4995_v47 = vadd.f32 %v4963_v39, %v4475_v18  ;;  %v13702_v11 = vmax.f32 %v13701_v27, 0.0  ;;  %v13704_v29 = vmax.f32 %v13703_v41, 0.0  ;;  %v4427_v58 = vmax.f32 %v13705_v53, 0.0  ;;  %5536 = vmatpush.msrb.mxu2 %v4994_v16 }
 0x33e   : > { %v4466_v22 = vadd.f32 %v13700_v25, %v3940_v33  ;;  %v13707_v19 = vmax.f32 %v13706_v4, 0.0  ;;  %v13709_v39 = vmax.f32 %v13708_v57, 0.0  ;;  %v4947_v35 = vmax.f32 %v11717_v24, 0.0  ;;  %v12021_v25 = vpop.permute.xlu1 %5020  ;;  %v13712_v4 = vld [vmem:[#allocation12_spill] sm:$0xff]  ;;  %v13713_v57 = vld [vmem:[#allocation13_spill] sm:$0xff] }
 0x33f   : > { %v4467_v49 = vadd.f32 %v13702_v11, %v3941_v37  ;;  %v4458_v60 = vadd.f32 %v13704_v29, %v3932_v13  ;;  %v13711_v7 = vmax.f32 %v13710_v63, 0.0  ;;  %v12025_v11 = vpop.permute.xlu2 %5015 }
 0x340   : > { %v4483_v14 = vadd.f32 %v13707_v19, %v3957_v51  ;;  %v4986_v43 = vadd.f32 %v4954_v34, %v4466_v22  ;;  %v3401_v5 = vadd.f32 %v13709_v39, %v2863_v52  ;;  %v5597_v19 = vmul.f32 %v12021_v25, %v13712_v4 }
 0x341   : > { %v4987_v31 = vadd.f32 %v4955_v38, %v4467_v49  ;;  %v4978_v56 = vadd.f32 %v4946_v9, %v4458_v60  ;;  %v11959_v9 = vpop.f32.mrf.mxu1  ;;  %v5590_v39 = vmul.f32 %v12025_v11, %v13713_v57 }
 0x342   : > { %v5003_v46 = vadd.f32 %v4971_v23, %v4483_v14  ;;  %5537 = vmatpush.msrb.mxu2 %v4986_v43  ;;  %v3933_v3 = vadd.f32 %v13711_v7, %v3401_v5  ;;  %v5589_v14 = vmul.f32 %v12025_v11, %v13712_v4  ;;  %v5598_v5 = vmul.f32 %v12021_v25, %v13713_v57 }
 0x343   : > { %6423 = vmatmul.msk.f32.gmra.mxu1 %vm5336_vm6, %v11691_v61  ;;  %6420 = vmatmul.msk.f32.gmra.mxu0 %vm5336_vm6, %v11747_v0  ;;  %v5605_v7 = vmul.f32 %v12019_v2, %v13712_v4 }
 0x344   : > { %5564 = vmatpush.msrb.mxu3 %v5003_v46  ;;  %5538 = vmatpush.msrb.mxu2 %v4978_v56  ;;  %v4459_v26 = vadd.f32 %v4427_v58, %v3933_v3  ;;  %v11967_v24 = vpop.f32.mrf.mxu2  ;;  %v12029_v41 = vpop.permute.xlu0 %5049 }
 0x345   : > { %6426 = vmatmul.msk.f32.vlgmr.msrb.gmra.mxu2 %vm5336_vm6, %v11635_v8  ;;  %v11969_v38 = vpop.f32.mrf.mxu3 }
 0x346   : > { %5565 = vmatpush.msrb.mxu3 %v4995_v47  ;;  %v4979_v34 = vadd.f32 %v4947_v35, %v4459_v26  ;;  %v12031_v60 = vpop.permute.xlu1 %5010 }
 0x348   : > { %5566 = vmatpush.msrb.mxu3 %v4987_v31 }
 0x349   : > { %v5153_v54 = vpop.f32.mrf.mxu1 }
 0x34a   : > { %5567 = vmatpush.msrb.mxu3 %v4979_v34 }
 0x34b   : > { %6430 = vmatmul.msk.f32.vlgmr.msrb.gmra.mxu3 %vm5336_vm6, %v11635_v8  ;;  %6424 = vmatmul.msk.f32.gmra.mxu1 %vm5336_vm6, %v11747_v0  ;;  %v5124_v8 = vpop.f32.mrf.mxu0 }
 0x34c   : > { %6421 = vmatmul.msk.f32.gmra.mxu0 %vm5336_vm6, %v11798_v32  ;;  %v11975_v10 = vpop.f32.mrf.mxu2 }
 0x34d   : > { %6427 = vmatmul.msk.f32.gmra.mxu2 %vm5336_vm6, %v11691_v61  ;;  %v11977_v28 = vpop.f32.mrf.mxu3 }
 0x351   : > { %v5156_v42 = vpop.f32.mrf.mxu1 }
 0x353   : > { %6431 = vmatmul.msk.f32.gmra.mxu3 %vm5336_vm6, %v11691_v61  ;;  %6425 = vmatmul.msk.f32.gmra.mxu1 %vm5336_vm6, %v11798_v32  ;;  %v5127_v61 = vpop.f32.mrf.mxu0 }
 0x355   : > { %6428 = vmatmul.msk.f32.gmra.mxu2 %vm5336_vm6, %v11747_v0  ;;  %v11981_v12 = vpop.f32.mrf.mxu3 }
 0x359   : > { %v5159_v59 = vpop.f32.mrf.mxu1 }
 0x35b   : > { %6432 = vmatmul.msk.f32.gmra.mxu3 %vm5336_vm6, %v11747_v0  ;;  %v5130_v62 = vpop.f32.mrf.mxu0  ;;  %v11979_v0 = vpop.f32.mrf.mxu2 }
 0x35d   : > { %6429 = vmatmul.msk.f32.gmra.mxu2 %vm5336_vm6, %v11798_v32  ;;  %v11989_v33 = vpop.f32.mrf.mxu3 }
 0x361   : > { %v11985_v6 = vpop.f32.mrf.mxu1 }
 0x363   : > { %6433 = vmatmul.msk.f32.gmra.mxu3 %vm5336_vm6, %v11798_v32  ;;  %v11983_v45 = vpop.f32.mrf.mxu0  ;;  %v11987_v30 = vpop.f32.mrf.mxu2 }
 0x365   : > { %v11997_v18 = vpop.f32.mrf.mxu3 }
 0x369   : > { %v11993_v20 = vpop.f32.mrf.mxu1 }
 0x36b   : > { %v11991_v32 = vpop.f32.mrf.mxu0  ;;  %v11995_v1 = vpop.f32.mrf.mxu2 }
 0x36d   : > { %v12005_v48 = vpop.f32.mrf.mxu3 }
 0x371   : > { %v12001_v17 = vpop.f32.mrf.mxu1 }
 0x373   : > { %v11999_v21 = vpop.f32.mrf.mxu0  ;;  %v12003_v37 = vpop.f32.mrf.mxu2 }
 0x375   : > { %v12013_v50 = vpop.f32.mrf.mxu3 }
 0x379   : > { %v12009_v13 = vpop.f32.mrf.mxu1 }
 0x37b   : > { %v12007_v40 = vpop.f32.mrf.mxu0  ;;  %v12011_v44 = vpop.f32.mrf.mxu2 }
 0x37d   : > { %v12017_v51 = vpop.f32.mrf.mxu3 }
 0x383   : > { %v12015_v36 = vpop.f32.mrf.mxu2 }
 0x388   : > { %v5366_v52 = vpop.f32.mrf.mxu0 }
 0x389   : > { %v5367_v56 = vadd.f32 %v5366_v52, %v5121_v55  ;;  %v12048_v52 = vpop.permute.xlu2 %5044 }
 0x38a   : > { %v5395_v15 = vpop.f32.mrf.mxu1 }
 0x38b   : > { %v5396_v26 = vadd.f32 %v5395_v15, %v11959_v9  ;;  %v12054_v15 = vpop.permute.xlu0 %5039 }
 0x390   : > { %v5369_v23 = vpop.f32.mrf.mxu0 }
 0x391   : > { %v5370_v58 = vadd.f32 %v5369_v23, %v5124_v8 }
 0x392   : > { %v5398_v16 = vpop.f32.mrf.mxu1 }
 0x393   : > { %v5399_v43 = vadd.f32 %v5398_v16, %v5153_v54  ;;  %v5621_v23 = vadd.f32 %v5589_v14, %v5370_v58  ;;  %v12059_v14 = vpop.permute.xlu1 %5034 }
 0x395   : > { %v5622_v16 = vadd.f32 %v5590_v39, %v5399_v43 }
 0x397   : > { %v5654_v39 = vadd.f32 %v5622_v16, %v12054_v15 }
 0x398   : > { %v5372_v22 = vpop.f32.mrf.mxu0 }
 0x399   : > { %v5373_v29 = vadd.f32 %v5372_v22, %v5127_v61  ;;  %v5606_v61 = vmul.f32 %v12019_v2, %v13713_v57 }
 0x39a   : > { %v5401_v27 = vpop.f32.mrf.mxu1 }
 0x39b   : > { %v5402_v53 = vadd.f32 %v5401_v27, %v5156_v42  ;;  %v5629_v35 = vadd.f32 %v5597_v19, %v5373_v29  ;;  %v5581_v42 = vmul.f32 %v12031_v60, %v13712_v4  ;;  %v5653_v19 = vadd.f32 %v5621_v23, %v12054_v15 }
 0x39d   : > { %v12023_v47 = vpop.f32.mrf.mxu2  ;;  %v12027_v49 = vpop.f32.mrf.mxu3  ;;  %v5630_v34 = vadd.f32 %v5598_v5, %v5402_v53  ;;  %v5613_v27 = vadd.f32 %v5581_v42, %v5367_v56 }
 0x39f   : > { %v5662_v58 = vadd.f32 %v5630_v34, %v12048_v52  ;;  %v5645_v56 = vadd.f32 %v5613_v27, %v12059_v14 }
 0x3a0   : > { %v5375_v31 = vpop.f32.mrf.mxu0 }
 0x3a1   : > { %v5376_v63 = vadd.f32 %v5375_v31, %v5130_v62  ;;  %v5582_v62 = vmul.f32 %v12031_v60, %v13713_v57 }
 0x3a2   : > { %v5404_v3 = vpop.f32.mrf.mxu1 }
 0x3a3   : > { %v5405_v54 = vadd.f32 %v5404_v3, %v5159_v59  ;;  %v5637_v55 = vadd.f32 %v5605_v7, %v5376_v63  ;;  %v5661_v59 = vadd.f32 %v5629_v35, %v12048_v52  ;;  %v5614_v29 = vadd.f32 %v5582_v62, %v5396_v26  ;;  %v13714_v62 = vld [vmem:[#allocation14_spill] sm:$0xff] }
 0x3a4   : > { %v5694_v63 = vmax.f32 %v5662_v58, 0.0  ;;  %v5685_v3 = vmax.f32 %v5653_v19, 0.0  ;;  %v5686_v26 = vmax.f32 %v5654_v39, 0.0  ;;  %v5599_v16 = vmul.f32 %v12021_v25, %v13714_v62 }
 0x3a5   : > { %v5427_v46 = vpop.f32.mrf.mxu2  ;;  %v5456_v8 = vpop.f32.mrf.mxu3  ;;  %v5638_v22 = vadd.f32 %v5606_v61, %v5405_v54  ;;  %v5669_v9 = vadd.f32 %v5637_v55, %v12029_v41  ;;  %v5693_v31 = vmax.f32 %v5661_v59, 0.0  ;;  %v5646_v7 = vadd.f32 %v5614_v29, %v12059_v14  ;;  %v13715_v59 = vld [vmem:[#allocation15_spill] sm:$0xff] }
 0x3a6   : > { %v5677_v54 = vmax.f32 %v5645_v56, 0.0  ;;  %v5428_v55 = vadd.f32 %v5427_v46, %v11975_v10  ;;  %v5591_v27 = vmul.f32 %v12025_v11, %v13714_v62  ;;  %v5600_v29 = vmul.f32 %v12021_v25, %v13715_v59 }
 0x3a7   : > { %v5670_v53 = vadd.f32 %v5638_v22, %v12029_v41  ;;  %v5701_v4 = vmax.f32 %v5669_v9, 0.0  ;;  %v5678_v42 = vmax.f32 %v5646_v7, 0.0  ;;  %v5457_v9 = vadd.f32 %v5456_v8, %v11977_v28 }
 0x3a8   : > { %v5425_v10 = vadd.f32 %v12023_v47, %v11967_v24  ;;  %v5607_v58 = vmul.f32 %v12019_v2, %v13714_v62  ;;  %v5454_v28 = vadd.f32 %v12027_v49, %v11969_v38  ;;  %v5583_v39 = vmul.f32 %v12031_v60, %v13714_v62 }
 0x3a9   : > { %v5702_v57 = vmax.f32 %v5670_v53, 0.0  ;;  %5725 = vmatpush.msra.mxu0 %v5701_v4  ;;  %v5623_v24 = vadd.f32 %v5591_v27, %v5428_v55 }
 0x3ab   : > { %5745 = vmatpush.msra.mxu1 %v5702_v57  ;;  %5726 = vmatpush.msra.mxu0 %v5693_v31  ;;  %v5608_v57 = vmul.f32 %v12019_v2, %v13715_v59 }
 0x3ad   : > { %v5430_v5 = vpop.f32.mrf.mxu2  ;;  %v5459_v35 = vpop.f32.mrf.mxu3  ;;  %5746 = vmatpush.msra.mxu1 %v5694_v63  ;;  %5727 = vmatpush.msra.mxu0 %v5685_v3 }
 0x3ae   : > { %v5431_v61 = vadd.f32 %v5430_v5, %v11979_v0  ;;  %v5460_v23 = vadd.f32 %v5459_v35, %v11981_v12  ;;  %v5592_v0 = vmul.f32 %v12025_v11, %v13715_v59  ;;  %v5615_v35 = vadd.f32 %v5583_v39, %v5425_v10 }
 0x3af   : > { %5747 = vmatpush.msra.mxu1 %v5686_v26  ;;  %5728 = vmatpush.msra.mxu0 %v5677_v54  ;;  %v5655_v54 = vadd.f32 %v5623_v24, %v12054_v15 }
 0x3b0   : > { %v12061_v43 = vpop.f32.mrf.mxu0  ;;  %v5631_v46 = vadd.f32 %v5599_v16, %v5431_v61  ;;  %v5632_v8 = vadd.f32 %v5600_v29, %v5460_v23  ;;  %v5624_v5 = vadd.f32 %v5592_v0, %v5457_v9  ;;  %v5647_v62 = vadd.f32 %v5615_v35, %v12059_v14 }
 0x3b1   : > { %5748 = vmatpush.msra.mxu1 %v5678_v42  ;;  %v5687_v9 = vmax.f32 %v5655_v54, 0.0 }
 0x3b2   : > { %v5663_v49 = vadd.f32 %v5631_v46, %v12048_v52  ;;  %v5664_v7 = vadd.f32 %v5632_v8, %v12048_v52  ;;  %v5656_v23 = vadd.f32 %v5624_v5, %v12054_v15  ;;  %v5679_v10 = vmax.f32 %v5647_v62, 0.0 }
 0x3b4   : > { %v5695_v55 = vmax.f32 %v5663_v49, 0.0  ;;  %v5696_v16 = vmax.f32 %v5664_v7, 0.0  ;;  %v5688_v29 = vmax.f32 %v5656_v23, 0.0 }
 0x3b5   : > { %v5433_v12 = vpop.f32.mrf.mxu2 }
 0x3b6   : > { %v5434_v53 = vadd.f32 %v5433_v12, %v11987_v30  ;;  %v5462_v4 = vpop.f32.mrf.mxu3  ;;  %v5584_v30 = vmul.f32 %v12031_v60, %v13715_v59 }
 0x3b7   : > { %v5463_v19 = vadd.f32 %v5462_v4, %v11989_v33 }
 0x3b8   : > { %v12066_v34 = vpop.f32.mrf.mxu1  ;;  %v5485_v22 = vpop.f32.mrf.mxu0  ;;  %v5639_v47 = vadd.f32 %v5607_v58, %v5434_v53  ;;  %v5616_v33 = vadd.f32 %v5584_v30, %v5454_v28  ;;  %v13716_v53 = vld [vmem:[#allocation16_spill] sm:$0xff] }
 0x3b9   : > { %v5640_v31 = vadd.f32 %v5608_v57, %v5463_v19  ;;  %v5486_v46 = vadd.f32 %v5485_v22, %v11991_v32  ;;  %v5601_v58 = vmul.f32 %v12021_v25, %v13716_v53  ;;  %v5593_v28 = vmul.f32 %v12025_v11, %v13716_v53 }
 0x3ba   : > { %v5671_v38 = vadd.f32 %v5639_v47, %v12029_v41  ;;  %v5648_v27 = vadd.f32 %v5616_v33, %v12059_v14  ;;  %v5609_v32 = vmul.f32 %v12019_v2, %v13716_v53  ;;  %v5585_v24 = vmul.f32 %v12031_v60, %v13716_v53  ;;  %v12132_v33 = vld [vmem:[%s12264_s9] sm:$0x7] }
 0x3bb   : > { %v5672_v63 = vadd.f32 %v5640_v31, %v12029_v41  ;;  %v5625_v47 = vadd.f32 %v5593_v28, %v5486_v46  ;;  %v13717_v31 = vld [vmem:[#allocation17_spill] sm:$0xff]  ;;  %6435 = vmatmul.msk.f32.vlgmr.msra.gmra.mxu1 %vm5336_vm6, %v12132_v33  ;;  %6434 = vmatmul.msk.f32.vlgmr.msra.gmra.mxu0 %vm5336_vm6, %v12132_v33 }
 0x3bc   : > { %v5703_v3 = vmax.f32 %v5671_v38, 0.0  ;;  %v5680_v4 = vmax.f32 %v5648_v27, 0.0 }
 0x3bd   : > { %v5704_v61 = vmax.f32 %v5672_v63, 0.0 }
 0x3be   : > { %5765 = vmatpush.msra.mxu2 %v5703_v3 }
 0x3bf   : > { %5785 = vmatpush.msra.mxu3 %v5704_v61 }
 0x3c0   : > { %v5514_v56 = vpop.f32.mrf.mxu1  ;;  %v5488_v26 = vpop.f32.mrf.mxu0  ;;  %5766 = vmatpush.msra.mxu2 %v5695_v55 }
 0x3c1   : > { %5786 = vmatpush.msra.mxu3 %v5696_v16  ;;  %v5489_v59 = vadd.f32 %v5488_v26, %v11999_v21  ;;  %v5483_v21 = vadd.f32 %v12061_v43, %v11983_v45  ;;  %v5515_v5 = vadd.f32 %v5514_v56, %v11993_v20  ;;  %v5594_v45 = vmul.f32 %v12025_v11, %v13717_v31 }
 0x3c2   : > { %5767 = vmatpush.msra.mxu2 %v5687_v9  ;;  %v5602_v43 = vmul.f32 %v12021_v25, %v13717_v31  ;;  %v5512_v20 = vadd.f32 %v12066_v34, %v11985_v6  ;;  %v5657_v26 = vadd.f32 %v5625_v47, %v12054_v15  ;;  %v5586_v6 = vmul.f32 %v12031_v60, %v13717_v31 }
 0x3c3   : > { %5787 = vmatpush.msra.mxu3 %v5688_v29  ;;  %v5633_v19 = vadd.f32 %v5601_v58, %v5489_v59  ;;  %v5617_v35 = vadd.f32 %v5585_v24, %v5483_v21  ;;  %v5626_v34 = vadd.f32 %v5594_v45, %v5515_v5 }
 0x3c4   : > { %5768 = vmatpush.msra.mxu2 %v5679_v10  ;;  %v5618_v55 = vadd.f32 %v5586_v6, %v5512_v20  ;;  %v5689_v27 = vmax.f32 %v5657_v26, 0.0 }
 0x3c5   : > { %5788 = vmatpush.msra.mxu3 %v5680_v4  ;;  %v5665_v49 = vadd.f32 %v5633_v19, %v12048_v52  ;;  %6436 = vmatmul.msk.f32.vlgmr.msra.gmra.mxu2 %vm5336_vm6, %v12132_v33  ;;  %v5649_v23 = vadd.f32 %v5617_v35, %v12059_v14  ;;  %v5658_v59 = vadd.f32 %v5626_v34, %v12054_v15  ;;  %v13718_v4 = vld [vmem:[#allocation18_spill] sm:$0xff] }
 0x3c6   : > { %6437 = vmatmul.msk.f32.vlgmr.msra.gmra.mxu3 %vm5336_vm6, %v12132_v33  ;;  %v5650_v53 = vadd.f32 %v5618_v55, %v12059_v14  ;;  %v5603_v28 = vmul.f32 %v12021_v25, %v13718_v4  ;;  %v5595_v21 = vmul.f32 %v12025_v11, %v13718_v4  ;;  %v5611_v19 = vmul.f32 %v12019_v2, %v13718_v4 }
 0x3c7   : > { %v5697_v61 = vmax.f32 %v5665_v49, 0.0  ;;  %v5587_v24 = vmul.f32 %v12031_v60, %v13718_v4 }
 0x3c8   : > { %v12099_v42 = vpop.f32.mrf.mxu2  ;;  %v5517_v0 = vpop.f32.mrf.mxu1 }
 0x3c9   : > { %v5491_v8 = vpop.f32.mrf.mxu0  ;;  %v5518_v22 = vadd.f32 %v5517_v0, %v12001_v17  ;;  %v5610_v17 = vmul.f32 %v12019_v2, %v13717_v31  ;;  %v5681_v0 = vmax.f32 %v5649_v23, 0.0  ;;  %v13719_v31 = vld [vmem:[#allocation19_spill] sm:$0xff] }
 0x3ca   : > { %v5492_v39 = vadd.f32 %v5491_v8, %v12007_v40  ;;  %v5690_v8 = vmax.f32 %v5658_v59, 0.0  ;;  %v5604_v45 = vmul.f32 %v12021_v25, %v13719_v31  ;;  %v5612_v25 = vmul.f32 %v12019_v2, %v13719_v31 }
 0x3cb   : > { %v5634_v56 = vadd.f32 %v5602_v43, %v5518_v22 }
 0x3cc   : > { %v5641_v30 = vadd.f32 %v5609_v32, %v5492_v39  ;;  %v5541_v39 = vadd.f32 %v12099_v42, %v11995_v1 }
 0x3cd   : > { %v5666_v16 = vadd.f32 %v5634_v56, %v12048_v52 }
 0x3ce   : > { %v12105_v12 = vpop.f32.mrf.mxu3  ;;  %v5673_v40 = vadd.f32 %v5641_v30, %v12029_v41  ;;  %v5619_v1 = vadd.f32 %v5587_v24, %v5541_v39  ;;  %v13725_v24 = vld [vmem:[#allocation27_spill] sm:$0xff] }
 0x3cf   : > { %v5698_v46 = vmax.f32 %v5666_v16, 0.0  ;;  %v5570_v35 = vadd.f32 %v12105_v12, %v11997_v18 }
 0x3d0   : > { %v5543_v57 = vpop.f32.mrf.mxu2  ;;  %v5520_v38 = vpop.f32.mrf.mxu1  ;;  %v5705_v3 = vmax.f32 %v5673_v40, 0.0 }
 0x3d1   : > { %v5521_v7 = vadd.f32 %v5520_v38, %v12009_v13  ;;  %v5544_v58 = vadd.f32 %v5543_v57, %v12003_v37  ;;  %v5682_v57 = vmax.f32 %v5650_v53, 0.0  ;;  %v13724_v53 = vld [vmem:[#allocation23_spill] sm:$0xff] }
 0x3d2   : > { %5805 = vmatpush.msrb.mxu0 %v5705_v3 }
 0x3d3   : > { %v5642_v13 = vadd.f32 %v5610_v17, %v5521_v7  ;;  %v5627_v47 = vadd.f32 %v5595_v21, %v5544_v58 }
 0x3d4   : > { %5806 = vmatpush.msrb.mxu0 %v5697_v61  ;;  %v13720_v61 = vld [vmem:[#allocation22_spill] sm:$0xff] }
 0x3d5   : > { %v5674_v62 = vadd.f32 %v5642_v13, %v12029_v41  ;;  %v5659_v17 = vadd.f32 %v5627_v47, %v12054_v15 }
 0x3d6   : > { %v5572_v63 = vpop.f32.mrf.mxu3  ;;  %5807 = vmatpush.msrb.mxu0 %v5689_v27 }
 0x3d7   : > { %v5706_v9 = vmax.f32 %v5674_v62, 0.0  ;;  %v5573_v5 = vadd.f32 %v5572_v63, %v12005_v48  ;;  %v5651_v63 = vadd.f32 %v5619_v1, %v12059_v14  ;;  %v5691_v12 = vmax.f32 %v5659_v17, 0.0  ;;  %v13722_v62 = vld [vmem:[#allocation20_spill] sm:$0xff] }
 0x3d8   : > { %v5546_v54 = vpop.f32.mrf.mxu2  ;;  %5808 = vmatpush.msrb.mxu0 %v5681_v0 }
 0x3d9   : > { %v5547_v29 = vadd.f32 %v5546_v54, %v12011_v44  ;;  %5825 = vmatpush.msrb.mxu1 %v5706_v9  ;;  %6438 = vmatmul.msk.f32.vlgmr.msrb.gmra.mxu0 %vm5336_vm6, %v12132_v33  ;;  %v5683_v26 = vmax.f32 %v5651_v63, 0.0 }
 0x3db   : > { %5826 = vmatpush.msrb.mxu1 %v5698_v46  ;;  %v5635_v32 = vadd.f32 %v5603_v28, %v5547_v29 }
 0x3dd   : > { %5827 = vmatpush.msrb.mxu1 %v5690_v8  ;;  %v5667_v43 = vadd.f32 %v5635_v32, %v12048_v52 }
 0x3de   : > { %v5575_v10 = vpop.f32.mrf.mxu3 }
 0x3df   : > { %v5576_v22 = vadd.f32 %v5575_v10, %v12013_v50  ;;  %5828 = vmatpush.msrb.mxu1 %v5682_v57  ;;  %v5699_v56 = vmax.f32 %v5667_v43, 0.0 }
 0x3e0   : > { %v5549_v44 = vpop.f32.mrf.mxu2  ;;  %6439 = vmatmul.msk.f32.vlgmr.msrb.gmra.mxu1 %vm5336_vm6, %v12132_v33 }
 0x3e1   : > { %v5550_v37 = vadd.f32 %v5549_v44, %v12015_v36  ;;  %v5596_v36 = vmul.f32 %v12025_v11, %v13719_v31  ;;  %v5636_v40 = vadd.f32 %v5604_v45, %v5576_v22  ;;  %v5588_v11 = vmul.f32 %v12031_v60, %v13719_v31 }
 0x3e3   : > { %v5643_v30 = vadd.f32 %v5611_v19, %v5550_v37  ;;  %v5628_v49 = vadd.f32 %v5596_v36, %v5573_v5  ;;  %v5620_v7 = vadd.f32 %v5588_v11, %v5570_v35 }
 0x3e5   : > { %v5675_v50 = vadd.f32 %v5643_v30, %v12029_v41  ;;  %v5660_v3 = vadd.f32 %v5628_v49, %v12054_v15  ;;  %v5652_v6 = vadd.f32 %v5620_v7, %v12059_v14  ;;  %v13721_v14 = vld [vmem:[#allocation21_spill] sm:$0xff] }
 0x3e6   : > { %v5578_v42 = vpop.f32.mrf.mxu3  ;;  %v13726_v30 = vld [vmem:[#allocation29_spill] sm:$0xff] }
 0x3e7   : > { %v5579_v48 = vadd.f32 %v5578_v42, %v12017_v51  ;;  %v5707_v38 = vmax.f32 %v5675_v50, 0.0  ;;  %v5668_v51 = vadd.f32 %v5636_v40, %v12048_v52  ;;  %v5692_v34 = vmax.f32 %v5660_v3, 0.0 }
 0x3e9   : > { %v5644_v20 = vadd.f32 %v5612_v25, %v5579_v48  ;;  %5845 = vmatpush.msrb.mxu2 %v5707_v38  ;;  %v5700_v60 = vmax.f32 %v5668_v51, 0.0  ;;  %v13727_v48 = vld [vmem:[#allocation26_spill] sm:$0xff]  ;;  %v13728_v38 = vld [vmem:[#allocation25_spill] sm:$0xff] }
 0x3eb   : > { %v5676_v18 = vadd.f32 %v5644_v20, %v12029_v41  ;;  %5846 = vmatpush.msrb.mxu2 %v5699_v56  ;;  %v5684_v41 = vmax.f32 %v5652_v6, 0.0 }
 0x3ed   : > { %v5708_v2 = vmax.f32 %v5676_v18, 0.0  ;;  %5847 = vmatpush.msrb.mxu2 %v5691_v12 }
 0x3ef   : > { %5865 = vmatpush.msrb.mxu3 %v5708_v2  ;;  %5848 = vmatpush.msrb.mxu2 %v5683_v26 }
 0x3f0   : > { %6440 = vmatmul.msk.f32.vlgmr.msrb.gmra.mxu2 %vm5336_vm6, %v12132_v33 }
 0x3f1   : > { %5866 = vmatpush.msrb.mxu3 %v5700_v60 }
 0x3f3   : > { %5867 = vmatpush.msrb.mxu3 %v5692_v34 }
 0x3f5   : > { %5868 = vmatpush.msrb.mxu3 %v5684_v41 }
 0x3f6   : > { %6441 = vmatmul.msk.f32.vlgmr.msrb.gmra.mxu3 %vm5336_vm6, %v12132_v33  ;;  %v13723_v33 = vld [vmem:[#allocation24_spill] sm:$0xff] }
 0x438   : > { %v5750_v52 = vpop.f32.mrf.mxu1  ;;  %v5730_v15 = vpop.f32.mrf.mxu0 }
 0x439   : > { %v5882_v13 = vrot.slane %v5750_v52, 7  ;;  %v5881_v54 = vrot.slane %v5730_v15, 7 }
 0x43b   : > { %v5898_v23 = vadd.f32 %v5882_v13, %v13720_v61  ;;  %v5897_v55 = vadd.f32 %v5881_v54, %v13721_v14 }
 0x43d   : > { %v5906_v16 = vadd.f32 %v5898_v23, %v13722_v62  ;;  %v5905_v9 = vadd.f32 %v5897_v55, %v13722_v62 }
 0x43f   : > { %v5921_v10 = vrot.slane %v5906_v16, 4 }
 0x441   : > { %v5926_v4 = vsel %vm5925_vm7, %v5905_v9, %v5921_v10 }
 0x442   : > { %v6442_v8 = vrot.slane %v5926_v4, 9 }
 0x444   : > { %5942 = vst [vmem:[%s12205_s29] sm:$0x77] %v6442_v8 }
 0x448   : > { %v5770_v59 = vpop.f32.mrf.mxu2 }
 0x449   : > { %v5790_v27 = vpop.f32.mrf.mxu3  ;;  %v5883_v29 = vrot.slane %v5770_v59, 7 }
 0x44a   : > { %v5884_v0 = vrot.slane %v5790_v27, 7 }
 0x44b   : > { %v5899_v58 = vadd.f32 %v5883_v29, %v13724_v53 }
 0x44c   : > { %v5900_v46 = vadd.f32 %v5884_v0, %v13723_v33 }
 0x44d   : > { %v5907_v21 = vadd.f32 %v5899_v58, %v13722_v62 }
 0x44e   : > { %v5908_v28 = vadd.f32 %v5900_v46, %v13722_v62 }
 0x450   : > { %v5922_v44 = vrot.slane %v5908_v28, 4 }
 0x452   : > { %v5927_v32 = vsel %vm5925_vm7, %v5907_v21, %v5922_v44 }
 0x453   : > { %v6443_v57 = vrot.slane %v5927_v32, 9 }
 0x455   : > { %5943 = vst [vmem:[%s12205_s29 + $0x8] sm:$0x77] %v6443_v57 }
 0x456   : > { %v5810_v19 = vpop.f32.mrf.mxu0 }
 0x457   : > { %v5885_v39 = vrot.slane %v5810_v19, 7 }
 0x459   : > { %v5901_v47 = vadd.f32 %v5885_v39, %v13725_v24 }
 0x45b   : > { %v5909_v45 = vadd.f32 %v5901_v47, %v13722_v62 }
 0x45d   : > { %v5830_v37 = vpop.f32.mrf.mxu1 }
 0x45e   : > { %v5886_v22 = vrot.slane %v5830_v37, 7 }
 0x460   : > { %v5902_v5 = vadd.f32 %v5886_v22, %v13726_v30 }
 0x462   : > { %v5910_v31 = vadd.f32 %v5902_v5, %v13722_v62 }
 0x464   : > { %v5923_v1 = vrot.slane %v5910_v31, 4 }
 0x466   : > { %v5928_v36 = vsel %vm5925_vm7, %v5909_v45, %v5923_v1 }
 0x467   : > { %v6444_v50 = vrot.slane %v5928_v36, 9 }
 0x469   : > { %5944 = vst [vmem:[%s12205_s29 + $0x10] sm:$0x77] %v6444_v50 }
 0x473   : > { %v5850_v42 = vpop.f32.mrf.mxu2 }
 0x474   : > { %v5887_v43 = vrot.slane %v5850_v42, 7 }
 0x476   : > { %v5903_v25 = vadd.f32 %v5887_v43, %v13727_v48 }
 0x478   : > { %v5911_v49 = vadd.f32 %v5903_v25, %v13722_v62 }
 0x479   : > { %v5870_v35 = vpop.f32.mrf.mxu3 }
 0x47a   : > { %v5888_v40 = vrot.slane %v5870_v35, 7 }
 0x47c   : > { %v5904_v17 = vadd.f32 %v5888_v40, %v13728_v38 }
 0x47e   : > { %v5912_v11 = vadd.f32 %v5904_v17, %v13722_v62 }
 0x480   : > { %v5924_v20 = vrot.slane %v5912_v11, 4 }
 0x482   : > { %v5929_v56 = vsel %vm5925_vm7, %v5911_v49, %v5924_v20 }
 0x483   : > { %v6445_v63 = vrot.slane %v5929_v56, 9 }
 0x485   : > { %5945 = vst [vmem:[%s12205_s29 + $0x18] sm:$0x77] %v6445_v63 }
 0x486   : > { %6600 = shalt.err (!%p6597_p4)
}
 0x487   : > { %6455 = dma.vmem_to_hbm [thread:$0]  (%p6746_p10), %s5961_s19, 512, %s5963_s26, %s5947_s17  }
 0x488 PF: > { %p6466_p5 = scmp.ge.s32.totalorder %s6639_s16, 2  ;;  %s5974_s29 = sand.u32 1, %s6627_s13  }
 0x489   : > { %s5975_s23 = scalar_lea.sflag [#allocation4], %s5974_s29 }
 0x48a   : > { %p6462_p7 = pnand %p6466_p5, %p6750_p11 }
 0x48c   : > { %p6463_p8 = pneg %p6462_p7 }
 0x48e   : > { %6622 = dma.done.wait (%p6463_p8), %s5975_s23, 512  }
 0x48f   : > { %6624 = vsyncadd (%p6463_p8), %s5975_s23, 4294966784  ;;  %s13730_s16 = sld [smem:[#allocation9_spill]]  ;;  %s13733_s13 = smov %s6631_s14 }
 0x490   : > { %s13731_s30 = sld [smem:[#allocation8_spill]] }
 0x491   : > { %s13732_s15 = sld [smem:[#allocation10_spill]] }
 0x495   : > { %p23_p9 = scmp.ge.s32.totalorder %s13730_s16, 6  }
 0x496   : > { %s13734_s14 = smov %s13731_s30 }
 0x497   :  { %25 = sbr.rel (!%p23_p9) target bundleno = 5 (0x5), region = 105 }
 0x49c   :  { %5981 = vsyncpa [#allocation3], 1 }
 0x49d   :  { %5983 = vsyncpa [#allocation3 + $0x1], 1 }
 0x49e   :  { %5984 = vsyncpa [#allocation4], 1 }
 0x49f   :  { %5986 = vsyncpa [#allocation4 + $0x1], 1 }

</bundles_post_ra>
